<compile_context>
chip_gen: v7x
topology: tpu7x:2x2x1
jax: 0.10.0
libtpu: 0.0.40
codegen_flags: <defaults>
</compile_context>

<pallas_src>
import functools

import jax
import jax.numpy as jnp
from jax.experimental import pallas as pl
from jax.experimental.pallas import tpu as pltpu


def _round_up(v, m):
    return (v + m - 1) // m * m


# Static architecture description: (kh, kw, stride, out_channels) per conv layer.
CONV_CFG = ((5, 5, 2, 24), (5, 5, 2, 36), (5, 5, 2, 48), (3, 3, 1, 64), (3, 3, 1, 64))
BN_EPS = 1e-3  # PilotNet uses nn.BatchNorm2d(..., eps=0.001)


# ---------------------------------------------------------------------------
# Pallas kernels
# ---------------------------------------------------------------------------
def _matmul_bias_kernel(x_ref, w_ref, b_ref, o_ref, *, apply_relu):
    acc = jnp.dot(x_ref[...], w_ref[...], preferred_element_type=jnp.float32)
    acc = acc + b_ref[...]
    if apply_relu:
        acc = jnp.maximum(acc, 0.0)
    o_ref[...] = acc.astype(o_ref.dtype)


def _fc_stack_kernel(x_ref, w1, b1, w2, b2, w3, b3, w4, b4, w5, b5, o_ref):
    # fc1..fc4 with ReLU, fc5 linear — all weights resident in VMEM.
    h = x_ref[...]
    h = jnp.maximum(jnp.dot(h, w1[...], preferred_element_type=jnp.float32) + b1[...], 0.0)
    h = jnp.maximum(jnp.dot(h, w2[...], preferred_element_type=jnp.float32) + b2[...], 0.0)
    h = jnp.maximum(jnp.dot(h, w3[...], preferred_element_type=jnp.float32) + b3[...], 0.0)
    h = jnp.maximum(jnp.dot(h, w4[...], preferred_element_type=jnp.float32) + b4[...], 0.0)
    h = jnp.dot(h, w5[...], preferred_element_type=jnp.float32) + b5[...]
    o_ref[...] = h.astype(o_ref.dtype)


def _choose_tm(m):
    """Per-layer M tile: big for early convs, >=2 grid steps for small layers."""
    mp8 = _round_up(m, 8)
    if mp8 >= 1024:
        return 512
    if mp8 >= 256:
        return 128
    if mp8 >= 16:
        return _round_up(mp8 // 2, 8)   # keeps >=2 steps (v7x has 2 TensorCores)
    return 8


def pallas_matmul_bias(x, w_pad, b_pad, n_out, apply_relu):
    """y = (relu)(x @ w + b).  w_pad:(Kp,Np), b_pad:(1,Np) are pre-padded constants."""
    M, K = x.shape
    Kp, Np = w_pad.shape
    tm = _choose_tm(M)
    Mp = _round_up(M, tm)
    if (Mp, Kp) != (M, K):
        xp = jnp.zeros((Mp, Kp), jnp.float32).at[:M, :K].set(x)
    else:
        xp = x
    out = pl.pallas_call(
        functools.partial(_matmul_bias_kernel, apply_relu=apply_relu),
        out_shape=jax.ShapeDtypeStruct((Mp, Np), jnp.float32),
        grid=(Mp // tm,),
        in_specs=[
            pl.BlockSpec((tm, Kp), lambda i: (i, 0)),
            pl.BlockSpec((Kp, Np), lambda i: (0, 0)),
            pl.BlockSpec((1, Np), lambda i: (0, 0)),
        ],
        out_specs=pl.BlockSpec((tm, Np), lambda i: (i, 0)),
        compiler_params=pltpu.CompilerParams(
            dimension_semantics=("parallel",)),
    )(xp, w_pad, b_pad)
    return out[:M, :n_out]


def pallas_fc_stack(x, fc_w, fc_b, num_labels):
    """Fused fc1..fc5 in one pallas_call (single grid step, weights in VMEM)."""
    M, K = x.shape
    Mp = _round_up(M, 8)
    xp = jnp.zeros((Mp, K), jnp.float32).at[:M, :K].set(x) if Mp != M else x
    args = [xp]
    for w, b in zip(fc_w, fc_b):
        args += [w, b]
    np_out = fc_w[-1].shape[1]
    in_specs = [pl.BlockSpec(a.shape, lambda i: (0, 0)) for a in args]
    out = pl.pallas_call(
        _fc_stack_kernel,
        out_shape=jax.ShapeDtypeStruct((Mp, np_out), jnp.float32),
        grid=(1,),
        in_specs=in_specs,
        out_specs=pl.BlockSpec((Mp, np_out), lambda i: (0, 0)),
        compiler_params=pltpu.CompilerParams(
            dimension_semantics=("arbitrary",),
            # fc1's (1152,1280) f32 block is ~5.9 MB and is double-buffered by
            # default; raise the scoped limit so v5e (16 MiB default) is safe.
            vmem_limit_bytes=48 * 1024 * 1024),
    )(*args)
    return out[:M, :num_labels]


# ---------------------------------------------------------------------------
# Conv = NHWC im2col (XLA glue, fused under jit) + Pallas matmul
# ---------------------------------------------------------------------------
def _im2col_nhwc(x, kh, kw, stride):
    N, H, W, C = x.shape
    Ho = (H - kh) // stride + 1
    Wo = (W - kw) // stride + 1
    cols = []
    for i in range(kh):
        for j in range(kw):
            cols.append(x[:, i:i + stride * Ho:stride, j:j + stride * Wo:stride, :])
    patches = jnp.stack(cols, axis=3)            # (N, Ho, Wo, kh*kw, C)
    return patches.reshape(N * Ho * Wo, kh * kw * C), Ho, Wo


def conv2d_relu_nhwc(x, w_pad, b_pad, kh, kw, stride, n_out):
    cols, Ho, Wo = _im2col_nhwc(x, kh, kw, stride)
    y = pallas_matmul_bias(cols, w_pad, b_pad, n_out, apply_relu=True)
    return y.reshape(x.shape[0], Ho, Wo, n_out)  # stays NHWC


# ---------------------------------------------------------------------------
# Parameters (deterministic synthetic init, PyTorch-like shapes) + preparation
# ---------------------------------------------------------------------------
def init_params(key, num_channels=3, num_labels=2):
    conv_shapes = [(24, num_channels, 5, 5), (36, 24, 5, 5), (48, 36, 5, 5),
                   (64, 48, 3, 3), (64, 64, 3, 3)]
    fc_shapes = [(1164, 1 * 18 * 64), (100, 1164), (50, 100), (10, 50),
                 (num_labels, 10)]
    keys = jax.random.split(key, 2 * (len(conv_shapes) + len(fc_shapes)))
    params, ki = {}, 0
    for idx, s in enumerate(conv_shapes, 1):
        params[f"cn{idx}_w"] = 0.05 * jax.random.normal(keys[ki], s, jnp.float32); ki += 1
        params[f"cn{idx}_b"] = 0.05 * jax.random.normal(keys[ki], (s[0],), jnp.float32); ki += 1
    for idx, s in enumerate(fc_shapes, 1):
        params[f"fc{idx}_w"] = 0.05 * jax.random.normal(keys[ki], s, jnp.float32); ki += 1
        params[f"fc{idx}_b"] = 0.05 * jax.random.normal(keys[ki], (s[0],), jnp.float32); ki += 1
    params["bn_gamma"] = jnp.ones((num_channels,), jnp.float32)
    params["bn_beta"] = jnp.zeros((num_channels,), jnp.float32)
    params["bn_mean"] = jnp.zeros((num_channels,), jnp.float32)
    params["bn_var"] = jnp.ones((num_channels,), jnp.float32)
    return params


def _pad_matmul_weight(w2d, b1d):
    K, N = w2d.shape
    Kp, Np = _round_up(K, 128), _round_up(N, 128)
    wp = jnp.zeros((Kp, Np), jnp.float32).at[:K, :N].set(w2d)
    bp = jnp.zeros((1, Np), jnp.float32).at[0, :N].set(b1d)
    return wp, bp


def prepare_params(params, eps=BN_EPS):
    """One-time: fold BN into conv1, reorder conv weights for NHWC im2col, pad."""
    # TODO(synk): train-mode BatchNorm batch statistics are not reproduced
    # (eval semantics with running stats, i.e. nn.BatchNorm2d inference).
    scale = params["bn_gamma"] / jnp.sqrt(params["bn_var"] + eps)       # (C,)
    shift = params["bn_beta"] - params["bn_mean"] * scale               # (C,)
    w1 = params["cn1_w"] * scale[None, :, None, None]
    b1 = params["cn1_b"] + jnp.sum(params["cn1_w"] * shift[None, :, None, None],
                                   axis=(1, 2, 3))

    raw = [(w1, b1)] + [(params[f"cn{i}_w"], params[f"cn{i}_b"]) for i in range(2, 6)]
    conv_w, conv_b = [], []
    for (w, b), (kh, kw, _, _) in zip(raw, CONV_CFG):
        # (O,C,kh,kw) -> (kh,kw,C,O) -> (kh*kw*C, O): matches NHWC im2col K order.
        w2d = w.transpose(2, 3, 1, 0).reshape(kh * kw * w.shape[1], w.shape[0])
        wp, bp = _pad_matmul_weight(w2d, b)
        conv_w.append(wp); conv_b.append(bp)

    fc_w, fc_b = [], []
    for i in range(1, 6):
        wp, bp = _pad_matmul_weight(params[f"fc{i}_w"].T, params[f"fc{i}_b"])
        fc_w.append(wp); fc_b.append(bp)
    return {"conv_w": conv_w, "conv_b": conv_b, "fc_w": fc_w, "fc_b": fc_b}


# ---------------------------------------------------------------------------
# Forward (single jit)
# ---------------------------------------------------------------------------
@functools.partial(jax.jit, static_argnames=("num_labels",))
def pilotnet_forward(prepared, img_nchw, *, num_labels):
    out = img_nchw.transpose(0, 2, 3, 1)          # NCHW -> NHWC (once, tiny)
    for li, (kh, kw, stride, n_out) in enumerate(CONV_CFG):
        out = conv2d_relu_nhwc(out, prepared["conv_w"][li], prepared["conv_b"][li],
                               kh, kw, stride, n_out)
    # Reproduce torch.nn.Flatten on NCHW: (N,1,18,64) -> (N,64,1,18) -> (N,1152).
    N = out.shape[0]
    out = out.transpose(0, 3, 1, 2).reshape(N, -1)
    return pallas_fc_stack(out, prepared["fc_w"], prepared["fc_b"], num_labels)


if __name__ == "__main__":
    # image_shape = (66, 200, 3) is required by fc_1 (1*18*64 = 1152 flattened).
    image_shape = (66, 200, 3)
    num_labels = 2
    batch = 2

    key = jax.random.PRNGKey(0)
    pkey, xkey = jax.random.split(key)
    params = init_params(pkey, num_channels=image_shape[2], num_labels=num_labels)
    prepared = prepare_params(params)             # pad / fold once, outside jit
    img = jax.random.normal(
        xkey, (batch, image_shape[2], image_shape[0], image_shape[1]),
        dtype=jnp.float32)                        # NCHW, like PyTorch

    out = pilotnet_forward(prepared, img, num_labels=num_labels)
    out = jax.block_until_ready(out)
    assert out.shape == (batch, num_labels), out.shape
    print("KERNEL_OK")
</pallas_src>

<mosaic_0001>
module attributes {stable_mosaic.version = 11 : i64} {
  func.func @_matmul_bias_kernel(%arg0: i32, %arg1: memref<512x128xf32, #tpu.memory_space<vmem>>, %arg2: memref<128x128xf32, #tpu.memory_space<vmem>>, %arg3: memref<1x128xf32, #tpu.memory_space<vmem>>, %arg4: memref<512x128xf32, #tpu.memory_space<vmem>>) attributes {dimension_semantics = [#tpu.dimension_semantics<parallel>], iteration_bounds = array<i64: 12>, scalar_prefetch = 0 : i64, scratch_operands = 0 : i64, tpu.core_type = #tpu.core_type<tc>, window_params = [{transform_indices = @transform_0, window_bounds = array<i64: 512, 128>}, {pipeline_mode = #tpu.pipeline_mode<synchronous>, transform_indices = @transform_1, window_bounds = array<i64: 128, 128>}, {pipeline_mode = #tpu.pipeline_mode<synchronous>, transform_indices = @transform_2, window_bounds = array<i64: 1, 128>}, {transform_indices = @transform_3, window_bounds = array<i64: 512, 128>}]} {
    %c0 = arith.constant 0 : index
    %c0_0 = arith.constant 0 : index
    %0 = vector.load %arg1[%c0, %c0_0] : memref<512x128xf32, #tpu.memory_space<vmem>>, vector<512x128xf32>
    %c0_1 = arith.constant 0 : index
    %c0_2 = arith.constant 0 : index
    %1 = vector.load %arg2[%c0_1, %c0_2] : memref<128x128xf32, #tpu.memory_space<vmem>>, vector<128x128xf32>
    %cst = arith.constant dense<0.000000e+00> : vector<512x128xf32>
    %2 = tpu.matmul %0, %1, %cst {dimension_numbers = #tpu.dot_dimension_numbers<[1], [0], [0], [1], [0, 0, 1, 1], [], []>} : vector<512x128xf32>, vector<128x128xf32>, vector<512x128xf32> -> vector<512x128xf32>
    %c0_3 = arith.constant 0 : index
    %c0_4 = arith.constant 0 : index
    %3 = vector.load %arg3[%c0_3, %c0_4] : memref<1x128xf32, #tpu.memory_space<vmem>>, vector<1x128xf32>
    %4 = vector.broadcast %3 : vector<1x128xf32> to vector<512x128xf32>
    %5 = arith.addf %2, %4 : vector<512x128xf32>
    %cst_5 = arith.constant 0.000000e+00 : f32
    %6 = vector.broadcast %cst_5 : f32 to vector<512x128xf32>
    %7 = arith.maximumf %5, %6 : vector<512x128xf32>
    %c0_6 = arith.constant 0 : index
    %c0_7 = arith.constant 0 : index
    %8 = vector.load %arg4[%c0_6, %c0_7] : memref<512x128xf32, #tpu.memory_space<vmem>>, vector<512x128xf32>
    tpu.vector_store %arg4[%c0_6, %c0_7], %7 {strides = array<i32>} : memref<512x128xf32, #tpu.memory_space<vmem>>, vector<512x128xf32>,
    return
  }
  func.func @transform_0(%arg0: i32) -> (i32, i32) {
    %c0_i32 = arith.constant 0 : i32
    %c0_i32_0 = arith.constant 0 : i32
    return %arg0, %c0_i32 : i32, i32
  }
  func.func @transform_1(%arg0: i32) -> (i32, i32) {
    %c0_i32 = arith.constant 0 : i32
    %c0_i32_0 = arith.constant 0 : i32
    %c0_i32_1 = arith.constant 0 : i32
    return %c0_i32, %c0_i32_0 : i32, i32
  }
  func.func @transform_2(%arg0: i32) -> (i32, i32) {
    %c0_i32 = arith.constant 0 : i32
    %c0_i32_0 = arith.constant 0 : i32
    %c0_i32_1 = arith.constant 0 : i32
    return %c0_i32, %c0_i32_0 : i32, i32
  }
  func.func @transform_3(%arg0: i32) -> (i32, i32) {
    %c0_i32 = arith.constant 0 : i32
    %c0_i32_0 = arith.constant 0 : i32
    return %arg0, %c0_i32 : i32, i32
  }
}

module attributes {stable_mosaic.version = 11 : i64} {
  func.func @_matmul_bias_kernel(%arg0: i32, %arg1: memref<512x640xf32, #tpu.memory_space<vmem>>, %arg2: memref<640x128xf32, #tpu.memory_space<vmem>>, %arg3: memref<1x128xf32, #tpu.memory_space<vmem>>, %arg4: memref<512x128xf32, #tpu.memory_space<vmem>>) attributes {dimension_semantics = [#tpu.dimension_semantics<parallel>], iteration_bounds = array<i64: 3>, scalar_prefetch = 0 : i64, scratch_operands = 0 : i64, tpu.core_type = #tpu.core_type<tc>, window_params = [{transform_indices = @transform_0, window_bounds = array<i64: 512, 640>}, {pipeline_mode = #tpu.pipeline_mode<synchronous>, transform_indices = @transform_1, window_bounds = array<i64: 640, 128>}, {pipeline_mode = #tpu.pipeline_mode<synchronous>, transform_indices = @transform_2, window_bounds = array<i64: 1, 128>}, {transform_indices = @transform_3, window_bounds = array<i64: 512, 128>}]} {
    %c0 = arith.constant 0 : index
    %c0_0 = arith.constant 0 : index
    %0 = vector.load %arg1[%c0, %c0_0] : memref<512x640xf32, #tpu.memory_space<vmem>>, vector<512x640xf32>
    %c0_1 = arith.constant 0 : index
    %c0_2 = arith.constant 0 : index
    %1 = vector.load %arg2[%c0_1, %c0_2] : memref<640x128xf32, #tpu.memory_space<vmem>>, vector<640x128xf32>
    %cst = arith.constant dense<0.000000e+00> : vector<512x128xf32>
    %2 = tpu.matmul %0, %1, %cst {dimension_numbers = #tpu.dot_dimension_numbers<[1], [0], [0], [1], [0, 0, 1, 1], [], []>} : vector<512x640xf32>, vector<640x128xf32>, vector<512x128xf32> -> vector<512x128xf32>
    %c0_3 = arith.constant 0 : index
    %c0_4 = arith.constant 0 : index
    %3 = vector.load %arg3[%c0_3, %c0_4] : memref<1x128xf32, #tpu.memory_space<vmem>>, vector<1x128xf32>
    %4 = vector.broadcast %3 : vector<1x128xf32> to vector<512x128xf32>
    %5 = arith.addf %2, %4 : vector<512x128xf32>
    %cst_5 = arith.constant 0.000000e+00 : f32
    %6 = vector.broadcast %cst_5 : f32 to vector<512x128xf32>
    %7 = arith.maximumf %5, %6 : vector<512x128xf32>
    %c0_6 = arith.constant 0 : index
    %c0_7 = arith.constant 0 : index
    %8 = vector.load %arg4[%c0_6, %c0_7] : memref<512x128xf32, #tpu.memory_space<vmem>>, vector<512x128xf32>
    tpu.vector_store %arg4[%c0_6, %c0_7], %7 {strides = array<i32>} : memref<512x128xf32, #tpu.memory_space<vmem>>, vector<512x128xf32>,
    return
  }
  func.func @transform_0(%arg0: i32) -> (i32, i32) {
    %c0_i32 = arith.constant 0 : i32
    %c0_i32_0 = arith.constant 0 : i32
    return %arg0, %c0_i32 : i32, i32
  }
  func.func @transform_1(%arg0: i32) -> (i32, i32) {
    %c0_i32 = arith.constant 0 : i32
    %c0_i32_0 = arith.constant 0 : i32
    %c0_i32_1 = arith.constant 0 : i32
    return %c0_i32, %c0_i32_0 : i32, i32
  }
  func.func @transform_2(%arg0: i32) -> (i32, i32) {
    %c0_i32 = arith.constant 0 : i32
    %c0_i32_0 = arith.constant 0 : i32
    %c0_i32_1 = arith.constant 0 : i32
    return %c0_i32, %c0_i32_0 : i32, i32
  }
  func.func @transform_3(%arg0: i32) -> (i32, i32) {
    %c0_i32 = arith.constant 0 : i32
    %c0_i32_0 = arith.constant 0 : i32
    return %arg0, %c0_i32 : i32, i32
  }
}

module attributes {stable_mosaic.version = 11 : i64} {
  func.func @_matmul_bias_kernel(%arg0: i32, %arg1: memref<112x1024xf32, #tpu.memory_space<vmem>>, %arg2: memref<1024x128xf32, #tpu.memory_space<vmem>>, %arg3: memref<1x128xf32, #tpu.memory_space<vmem>>, %arg4: memref<112x128xf32, #tpu.memory_space<vmem>>) attributes {dimension_semantics = [#tpu.dimension_semantics<parallel>], iteration_bounds = array<i64: 2>, scalar_prefetch = 0 : i64, scratch_operands = 0 : i64, tpu.core_type = #tpu.core_type<tc>, window_params = [{transform_indices = @transform_0, window_bounds = array<i64: 112, 1024>}, {pipeline_mode = #tpu.pipeline_mode<synchronous>, transform_indices = @transform_1, window_bounds = array<i64: 1024, 128>}, {pipeline_mode = #tpu.pipeline_mode<synchronous>, transform_indices = @transform_2, window_bounds = array<i64: 1, 128>}, {transform_indices = @transform_3, window_bounds = array<i64: 112, 128>}]} {
    %c0 = arith.constant 0 : index
    %c0_0 = arith.constant 0 : index
    %0 = vector.load %arg1[%c0, %c0_0] : memref<112x1024xf32, #tpu.memory_space<vmem>>, vector<112x1024xf32>
    %c0_1 = arith.constant 0 : index
    %c0_2 = arith.constant 0 : index
    %1 = vector.load %arg2[%c0_1, %c0_2] : memref<1024x128xf32, #tpu.memory_space<vmem>>, vector<1024x128xf32>
    %cst = arith.constant dense<0.000000e+00> : vector<112x128xf32>
    %2 = tpu.matmul %0, %1, %cst {dimension_numbers = #tpu.dot_dimension_numbers<[1], [0], [0], [1], [0, 0, 1, 1], [], []>} : vector<112x1024xf32>, vector<1024x128xf32>, vector<112x128xf32> -> vector<112x128xf32>
    %c0_3 = arith.constant 0 : index
    %c0_4 = arith.constant 0 : index
    %3 = vector.load %arg3[%c0_3, %c0_4] : memref<1x128xf32, #tpu.memory_space<vmem>>, vector<1x128xf32>
    %4 = vector.broadcast %3 : vector<1x128xf32> to vector<112x128xf32>
    %5 = arith.addf %2, %4 : vector<112x128xf32>
    %cst_5 = arith.constant 0.000000e+00 : f32
    %6 = vector.broadcast %cst_5 : f32 to vector<112x128xf32>
    %7 = arith.maximumf %5, %6 : vector<112x128xf32>
    %c0_6 = arith.constant 0 : index
    %c0_7 = arith.constant 0 : index
    %8 = vector.load %arg4[%c0_6, %c0_7] : memref<112x128xf32, #tpu.memory_space<vmem>>, vector<112x128xf32>
    tpu.vector_store %arg4[%c0_6, %c0_7], %7 {strides = array<i32>} : memref<112x128xf32, #tpu.memory_space<vmem>>, vector<112x128xf32>,
    return
  }
  func.func @transform_0(%arg0: i32) -> (i32, i32) {
    %c0_i32 = arith.constant 0 : i32
    %c0_i32_0 = arith.constant 0 : i32
    return %arg0, %c0_i32 : i32, i32
  }
  func.func @transform_1(%arg0: i32) -> (i32, i32) {
    %c0_i32 = arith.constant 0 : i32
    %c0_i32_0 = arith.constant 0 : i32
    %c0_i32_1 = arith.constant 0 : i32
    return %c0_i32, %c0_i32_0 : i32, i32
  }
  func.func @transform_2(%arg0: i32) -> (i32, i32) {
    %c0_i32 = arith.constant 0 : i32
    %c0_i32_0 = arith.constant 0 : i32
    %c0_i32_1 = arith.constant 0 : i32
    return %c0_i32, %c0_i32_0 : i32, i32
  }
  func.func @transform_3(%arg0: i32) -> (i32, i32) {
    %c0_i32 = arith.constant 0 : i32
    %c0_i32_0 = arith.constant 0 : i32
    return %arg0, %c0_i32 : i32, i32
  }
}

module attributes {stable_mosaic.version = 11 : i64} {
  func.func @_matmul_bias_kernel(%arg0: i32, %arg1: memref<64x512xf32, #tpu.memory_space<vmem>>, %arg2: memref<512x128xf32, #tpu.memory_space<vmem>>, %arg3: memref<1x128xf32, #tpu.memory_space<vmem>>, %arg4: memref<64x128xf32, #tpu.memory_space<vmem>>) attributes {dimension_semantics = [#tpu.dimension_semantics<parallel>], iteration_bounds = array<i64: 2>, scalar_prefetch = 0 : i64, scratch_operands = 0 : i64, tpu.core_type = #tpu.core_type<tc>, window_params = [{transform_indices = @transform_0, window_bounds = array<i64: 64, 512>}, {pipeline_mode = #tpu.pipeline_mode<synchronous>, transform_indices = @transform_1, window_bounds = array<i64: 512, 128>}, {pipeline_mode = #tpu.pipeline_mode<synchronous>, transform_indices = @transform_2, window_bounds = array<i64: 1, 128>}, {transform_indices = @transform_3, window_bounds = array<i64: 64, 128>}]} {
    %c0 = arith.constant 0 : index
    %c0_0 = arith.constant 0 : index
    %0 = vector.load %arg1[%c0, %c0_0] : memref<64x512xf32, #tpu.memory_space<vmem>>, vector<64x512xf32>
    %c0_1 = arith.constant 0 : index
    %c0_2 = arith.constant 0 : index
    %1 = vector.load %arg2[%c0_1, %c0_2] : memref<512x128xf32, #tpu.memory_space<vmem>>, vector<512x128xf32>
    %cst = arith.constant dense<0.000000e+00> : vector<64x128xf32>
    %2 = tpu.matmul %0, %1, %cst {dimension_numbers = #tpu.dot_dimension_numbers<[1], [0], [0], [1], [0, 0, 1, 1], [], []>} : vector<64x512xf32>, vector<512x128xf32>, vector<64x128xf32> -> vector<64x128xf32>
    %c0_3 = arith.constant 0 : index
    %c0_4 = arith.constant 0 : index
    %3 = vector.load %arg3[%c0_3, %c0_4] : memref<1x128xf32, #tpu.memory_space<vmem>>, vector<1x128xf32>
    %4 = vector.broadcast %3 : vector<1x128xf32> to vector<64x128xf32>
    %5 = arith.addf %2, %4 : vector<64x128xf32>
    %cst_5 = arith.constant 0.000000e+00 : f32
    %6 = vector.broadcast %cst_5 : f32 to vector<64x128xf32>
    %7 = arith.maximumf %5, %6 : vector<64x128xf32>
    %c0_6 = arith.constant 0 : index
    %c0_7 = arith.constant 0 : index
    %8 = vector.load %arg4[%c0_6, %c0_7] : memref<64x128xf32, #tpu.memory_space<vmem>>, vector<64x128xf32>
    tpu.vector_store %arg4[%c0_6, %c0_7], %7 {strides = array<i32>} : memref<64x128xf32, #tpu.memory_space<vmem>>, vector<64x128xf32>,
    return
  }
  func.func @transform_0(%arg0: i32) -> (i32, i32) {
    %c0_i32 = arith.constant 0 : i32
    %c0_i32_0 = arith.constant 0 : i32
    return %arg0, %c0_i32 : i32, i32
  }
  func.func @transform_1(%arg0: i32) -> (i32, i32) {
    %c0_i32 = arith.constant 0 : i32
    %c0_i32_0 = arith.constant 0 : i32
    %c0_i32_1 = arith.constant 0 : i32
    return %c0_i32, %c0_i32_0 : i32, i32
  }
  func.func @transform_2(%arg0: i32) -> (i32, i32) {
    %c0_i32 = arith.constant 0 : i32
    %c0_i32_0 = arith.constant 0 : i32
    %c0_i32_1 = arith.constant 0 : i32
    return %c0_i32, %c0_i32_0 : i32, i32
  }
  func.func @transform_3(%arg0: i32) -> (i32, i32) {
    %c0_i32 = arith.constant 0 : i32
    %c0_i32_0 = arith.constant 0 : i32
    return %arg0, %c0_i32 : i32, i32
  }
}

module attributes {stable_mosaic.version = 11 : i64} {
  func.func @_matmul_bias_kernel(%arg0: i32, %arg1: memref<24x640xf32, #tpu.memory_space<vmem>>, %arg2: memref<640x128xf32, #tpu.memory_space<vmem>>, %arg3: memref<1x128xf32, #tpu.memory_space<vmem>>, %arg4: memref<24x128xf32, #tpu.memory_space<vmem>>) attributes {dimension_semantics = [#tpu.dimension_semantics<parallel>], iteration_bounds = array<i64: 2>, scalar_prefetch = 0 : i64, scratch_operands = 0 : i64, tpu.core_type = #tpu.core_type<tc>, window_params = [{transform_indices = @transform_0, window_bounds = array<i64: 24, 640>}, {pipeline_mode = #tpu.pipeline_mode<synchronous>, transform_indices = @transform_1, window_bounds = array<i64: 640, 128>}, {pipeline_mode = #tpu.pipeline_mode<synchronous>, transform_indices = @transform_2, window_bounds = array<i64: 1, 128>}, {transform_indices = @transform_3, window_bounds = array<i64: 24, 128>}]} {
    %c0 = arith.constant 0 : index
    %c0_0 = arith.constant 0 : index
    %0 = vector.load %arg1[%c0, %c0_0] : memref<24x640xf32, #tpu.memory_space<vmem>>, vector<24x640xf32>
    %c0_1 = arith.constant 0 : index
    %c0_2 = arith.constant 0 : index
    %1 = vector.load %arg2[%c0_1, %c0_2] : memref<640x128xf32, #tpu.memory_space<vmem>>, vector<640x128xf32>
    %cst = arith.constant dense<0.000000e+00> : vector<24x128xf32>
    %2 = tpu.matmul %0, %1, %cst {dimension_numbers = #tpu.dot_dimension_numbers<[1], [0], [0], [1], [0, 0, 1, 1], [], []>} : vector<24x640xf32>, vector<640x128xf32>, vector<24x128xf32> -> vector<24x128xf32>
    %c0_3 = arith.constant 0 : index
    %c0_4 = arith.constant 0 : index
    %3 = vector.load %arg3[%c0_3, %c0_4] : memref<1x128xf32, #tpu.memory_space<vmem>>, vector<1x128xf32>
    %4 = vector.broadcast %3 : vector<1x128xf32> to vector<24x128xf32>
    %5 = arith.addf %2, %4 : vector<24x128xf32>
    %cst_5 = arith.constant 0.000000e+00 : f32
    %6 = vector.broadcast %cst_5 : f32 to vector<24x128xf32>
    %7 = arith.maximumf %5, %6 : vector<24x128xf32>
    %c0_6 = arith.constant 0 : index
    %c0_7 = arith.constant 0 : index
    %8 = vector.load %arg4[%c0_6, %c0_7] : memref<24x128xf32, #tpu.memory_space<vmem>>, vector<24x128xf32>
    tpu.vector_store %arg4[%c0_6, %c0_7], %7 {strides = array<i32>} : memref<24x128xf32, #tpu.memory_space<vmem>>, vector<24x128xf32>,
    return
  }
  func.func @transform_0(%arg0: i32) -> (i32, i32) {
    %c0_i32 = arith.constant 0 : i32
    %c0_i32_0 = arith.constant 0 : i32
    return %arg0, %c0_i32 : i32, i32
  }
  func.func @transform_1(%arg0: i32) -> (i32, i32) {
    %c0_i32 = arith.constant 0 : i32
    %c0_i32_0 = arith.constant 0 : i32
    %c0_i32_1 = arith.constant 0 : i32
    return %c0_i32, %c0_i32_0 : i32, i32
  }
  func.func @transform_2(%arg0: i32) -> (i32, i32) {
    %c0_i32 = arith.constant 0 : i32
    %c0_i32_0 = arith.constant 0 : i32
    %c0_i32_1 = arith.constant 0 : i32
    return %c0_i32, %c0_i32_0 : i32, i32
  }
  func.func @transform_3(%arg0: i32) -> (i32, i32) {
    %c0_i32 = arith.constant 0 : i32
    %c0_i32_0 = arith.constant 0 : i32
    return %arg0, %c0_i32 : i32, i32
  }
}

module attributes {stable_mosaic.version = 11 : i64} {
  func.func @_fc_stack_kernel(%arg0: i32, %arg1: memref<8x1152xf32, #tpu.memory_space<vmem>>, %arg2: memref<1152x1280xf32, #tpu.memory_space<vmem>>, %arg3: memref<1x1280xf32, #tpu.memory_space<vmem>>, %arg4: memref<1280x128xf32, #tpu.memory_space<vmem>>, %arg5: memref<1x128xf32, #tpu.memory_space<vmem>>, %arg6: memref<128x128xf32, #tpu.memory_space<vmem>>, %arg7: memref<1x128xf32, #tpu.memory_space<vmem>>, %arg8: memref<128x128xf32, #tpu.memory_space<vmem>>, %arg9: memref<1x128xf32, #tpu.memory_space<vmem>>, %arg10: memref<128x128xf32, #tpu.memory_space<vmem>>, %arg11: memref<1x128xf32, #tpu.memory_space<vmem>>, %arg12: memref<8x128xf32, #tpu.memory_space<vmem>>) attributes {dimension_semantics = [#tpu.dimension_semantics<arbitrary>], iteration_bounds = array<i64: 1>, scalar_prefetch = 0 : i64, scratch_operands = 0 : i64, tpu.core_type = #tpu.core_type<tc>, window_params = [{pipeline_mode = #tpu.pipeline_mode<synchronous>, transform_indices = @transform_0, window_bounds = array<i64: 8, 1152>}, {pipeline_mode = #tpu.pipeline_mode<synchronous>, transform_indices = @transform_1, window_bounds = array<i64: 1152, 1280>}, {pipeline_mode = #tpu.pipeline_mode<synchronous>, transform_indices = @transform_2, window_bounds = array<i64: 1, 1280>}, {pipeline_mode = #tpu.pipeline_mode<synchronous>, transform_indices = @transform_3, window_bounds = array<i64: 1280, 128>}, {pipeline_mode = #tpu.pipeline_mode<synchronous>, transform_indices = @transform_4, window_bounds = array<i64: 1, 128>}, {pipeline_mode = #tpu.pipeline_mode<synchronous>, transform_indices = @transform_5, window_bounds = array<i64: 128, 128>}, {pipeline_mode = #tpu.pipeline_mode<synchronous>, transform_indices = @transform_6, window_bounds = array<i64: 1, 128>}, {pipeline_mode = #tpu.pipeline_mode<synchronous>, transform_indices = @transform_7, window_bounds = array<i64: 128, 128>}, {pipeline_mode = #tpu.pipeline_mode<synchronous>, transform_indices = @transform_8, window_bounds = array<i64: 1, 128>}, {pipeline_mode = #tpu.pipeline_mode<synchronous>, transform_indices = @transform_9, window_bounds = array<i64: 128, 128>}, {pipeline_mode = #tpu.pipeline_mode<synchronous>, transform_indices = @transform_10, window_bounds = array<i64: 1, 128>}, {pipeline_mode = #tpu.pipeline_mode<synchronous>, transform_indices = @transform_11, window_bounds = array<i64: 8, 128>}]} {
    %c0 = arith.constant 0 : index
    %c0_0 = arith.constant 0 : index
    %0 = vector.load %arg1[%c0, %c0_0] : memref<8x1152xf32, #tpu.memory_space<vmem>>, vector<8x1152xf32>
    %c0_1 = arith.constant 0 : index
    %c0_2 = arith.constant 0 : index
    %1 = vector.load %arg2[%c0_1, %c0_2] : memref<1152x1280xf32, #tpu.memory_space<vmem>>, vector<1152x1280xf32>
    %cst = arith.constant dense<0.000000e+00> : vector<8x1280xf32>
    %2 = tpu.matmul %0, %1, %cst {dimension_numbers = #tpu.dot_dimension_numbers<[1], [0], [0], [1], [0, 0, 1, 1], [], []>} : vector<8x1152xf32>, vector<1152x1280xf32>, vector<8x1280xf32> -> vector<8x1280xf32>
    %c0_3 = arith.constant 0 : index
    %c0_4 = arith.constant 0 : index
    %3 = vector.load %arg3[%c0_3, %c0_4] : memref<1x1280xf32, #tpu.memory_space<vmem>>, vector<1x1280xf32>
    %4 = vector.broadcast %3 : vector<1x1280xf32> to vector<8x1280xf32>
    %5 = arith.addf %2, %4 : vector<8x1280xf32>
    %cst_5 = arith.constant 0.000000e+00 : f32
    %6 = vector.broadcast %cst_5 : f32 to vector<8x1280xf32>
    %7 = arith.maximumf %5, %6 : vector<8x1280xf32>
    %c0_6 = arith.constant 0 : index
    %c0_7 = arith.constant 0 : index
    %8 = vector.load %arg4[%c0_6, %c0_7] : memref<1280x128xf32, #tpu.memory_space<vmem>>, vector<1280x128xf32>
    %cst_8 = arith.constant dense<0.000000e+00> : vector<8x128xf32>
    %9 = tpu.matmul %7, %8, %cst_8 {dimension_numbers = #tpu.dot_dimension_numbers<[1], [0], [0], [1], [0, 0, 1, 1], [], []>} : vector<8x1280xf32>, vector<1280x128xf32>, vector<8x128xf32> -> vector<8x128xf32>
    %c0_9 = arith.constant 0 : index
    %c0_10 = arith.constant 0 : index
    %10 = vector.load %arg5[%c0_9, %c0_10] : memref<1x128xf32, #tpu.memory_space<vmem>>, vector<1x128xf32>
    %11 = vector.broadcast %10 : vector<1x128xf32> to vector<8x128xf32>
    %12 = arith.addf %9, %11 : vector<8x128xf32>
    %cst_11 = arith.constant 0.000000e+00 : f32
    %13 = vector.broadcast %cst_11 : f32 to vector<8x128xf32>
    %14 = arith.maximumf %12, %13 : vector<8x128xf32>
    %c0_12 = arith.constant 0 : index
    %c0_13 = arith.constant 0 : index
    %15 = vector.load %arg6[%c0_12, %c0_13] : memref<128x128xf32, #tpu.memory_space<vmem>>, vector<128x128xf32>
    %cst_14 = arith.constant dense<0.000000e+00> : vector<8x128xf32>
    %16 = tpu.matmul %14, %15, %cst_14 {dimension_numbers = #tpu.dot_dimension_numbers<[1], [0], [0], [1], [0, 0, 1, 1], [], []>} : vector<8x128xf32>, vector<128x128xf32>, vector<8x128xf32> -> vector<8x128xf32>
    %c0_15 = arith.constant 0 : index
    %c0_16 = arith.constant 0 : index
    %17 = vector.load %arg7[%c0_15, %c0_16] : memref<1x128xf32, #tpu.memory_space<vmem>>, vector<1x128xf32>
    %18 = vector.broadcast %17 : vector<1x128xf32> to vector<8x128xf32>
    %19 = arith.addf %16, %18 : vector<8x128xf32>
    %cst_17 = arith.constant 0.000000e+00 : f32
    %20 = vector.broadcast %cst_17 : f32 to vector<8x128xf32>
    %21 = arith.maximumf %19, %20 : vector<8x128xf32>
    %c0_18 = arith.constant 0 : index
    %c0_19 = arith.constant 0 : index
    %22 = vector.load %arg8[%c0_18, %c0_19] : memref<128x128xf32, #tpu.memory_space<vmem>>, vector<128x128xf32>
    %cst_20 = arith.constant dense<0.000000e+00> : vector<8x128xf32>
    %23 = tpu.matmul %21, %22, %cst_20 {dimension_numbers = #tpu.dot_dimension_numbers<[1], [0], [0], [1], [0, 0, 1, 1], [], []>} : vector<8x128xf32>, vector<128x128xf32>, vector<8x128xf32> -> vector<8x128xf32>
    %c0_21 = arith.constant 0 : index
    %c0_22 = arith.constant 0 : index
    %24 = vector.load %arg9[%c0_21, %c0_22] : memref<1x128xf32, #tpu.memory_space<vmem>>, vector<1x128xf32>
    %25 = vector.broadcast %24 : vector<1x128xf32> to vector<8x128xf32>
    %26 = arith.addf %23, %25 : vector<8x128xf32>
    %cst_23 = arith.constant 0.000000e+00 : f32
    %27 = vector.broadcast %cst_23 : f32 to vector<8x128xf32>
    %28 = arith.maximumf %26, %27 : vector<8x128xf32>
    %c0_24 = arith.constant 0 : index
    %c0_25 = arith.constant 0 : index
    %29 = vector.load %arg10[%c0_24, %c0_25] : memref<128x128xf32, #tpu.memory_space<vmem>>, vector<128x128xf32>
    %cst_26 = arith.constant dense<0.000000e+00> : vector<8x128xf32>
    %30 = tpu.matmul %28, %29, %cst_26 {dimension_numbers = #tpu.dot_dimension_numbers<[1], [0], [0], [1], [0, 0, 1, 1], [], []>} : vector<8x128xf32>, vector<128x128xf32>, vector<8x128xf32> -> vector<8x128xf32>
    %c0_27 = arith.constant 0 : index
    %c0_28 = arith.constant 0 : index
    %31 = vector.load %arg11[%c0_27, %c0_28] : memref<1x128xf32, #tpu.memory_space<vmem>>, vector<1x128xf32>
    %32 = vector.broadcast %31 : vector<1x128xf32> to vector<8x128xf32>
    %33 = arith.addf %30, %32 : vector<8x128xf32>
    %c0_29 = arith.constant 0 : index
    %c0_30 = arith.constant 0 : index
    %34 = vector.load %arg12[%c0_29, %c0_30] : memref<8x128xf32, #tpu.memory_space<vmem>>, vector<8x128xf32>
    tpu.vector_store %arg12[%c0_29, %c0_30], %33 {strides = array<i32>} : memref<8x128xf32, #tpu.memory_space<vmem>>, vector<8x128xf32>,
    return
  }
  func.func @transform_0(%arg0: i32) -> (i32, i32) {
    %c0_i32 = arith.constant 0 : i32
    %c0_i32_0 = arith.constant 0 : i32
    %c0_i32_1 = arith.constant 0 : i32
    return %c0_i32, %c0_i32_0 : i32, i32
  }
  func.func @transform_1(%arg0: i32) -> (i32, i32) {
    %c0_i32 = arith.constant 0 : i32
    %c0_i32_0 = arith.constant 0 : i32
    %c0_i32_1 = arith.constant 0 : i32
    return %c0_i32, %c0_i32_0 : i32, i32
  }
  func.func @transform_2(%arg0: i32) -> (i32, i32) {
    %c0_i32 = arith.constant 0 : i32
    %c0_i32_0 = arith.constant 0 : i32
    %c0_i32_1 = arith.constant 0 : i32
    return %c0_i32, %c0_i32_0 : i32, i32
  }
  func.func @transform_3(%arg0: i32) -> (i32, i32) {
    %c0_i32 = arith.constant 0 : i32
    %c0_i32_0 = arith.constant 0 : i32
    %c0_i32_1 = arith.constant 0 : i32
    return %c0_i32, %c0_i32_0 : i32, i32
  }
  func.func @transform_4(%arg0: i32) -> (i32, i32) {
    %c0_i32 = arith.constant 0 : i32
    %c0_i32_0 = arith.constant 0 : i32
    %c0_i32_1 = arith.constant 0 : i32
    return %c0_i32, %c0_i32_0 : i32, i32
  }
  func.func @transform_5(%arg0: i32) -> (i32, i32) {
    %c0_i32 = arith.constant 0 : i32
    %c0_i32_0 = arith.constant 0 : i32
    %c0_i32_1 = arith.constant 0 : i32
    return %c0_i32, %c0_i32_0 : i32, i32
  }
  func.func @transform_6(%arg0: i32) -> (i32, i32) {
    %c0_i32 = arith.constant 0 : i32
    %c0_i32_0 = arith.constant 0 : i32
    %c0_i32_1 = arith.constant 0 : i32
    return %c0_i32, %c0_i32_0 : i32, i32
  }
  func.func @transform_7(%arg0: i32) -> (i32, i32) {
    %c0_i32 = arith.constant 0 : i32
    %c0_i32_0 = arith.constant 0 : i32
    %c0_i32_1 = arith.constant 0 : i32
    return %c0_i32, %c0_i32_0 : i32, i32
  }
  func.func @transform_8(%arg0: i32) -> (i32, i32) {
    %c0_i32 = arith.constant 0 : i32
    %c0_i32_0 = arith.constant 0 : i32
    %c0_i32_1 = arith.constant 0 : i32
    return %c0_i32, %c0_i32_0 : i32, i32
  }
  func.func @transform_9(%arg0: i32) -> (i32, i32) {
    %c0_i32 = arith.constant 0 : i32
    %c0_i32_0 = arith.constant 0 : i32
    %c0_i32_1 = arith.constant 0 : i32
    return %c0_i32, %c0_i32_0 : i32, i32
  }
  func.func @transform_10(%arg0: i32) -> (i32, i32) {
    %c0_i32 = arith.constant 0 : i32
    %c0_i32_0 = arith.constant 0 : i32
    %c0_i32_1 = arith.constant 0 : i32
    return %c0_i32, %c0_i32_0 : i32, i32
  }
  func.func @transform_11(%arg0: i32) -> (i32, i32) {
    %c0_i32 = arith.constant 0 : i32
    %c0_i32_0 = arith.constant 0 : i32
    %c0_i32_1 = arith.constant 0 : i32
    return %c0_i32, %c0_i32_0 : i32, i32
  }
}

</mosaic_0001>

<bundles_post_ra>
// kernel: pilotnet_forward.6
= control target key start
LH: loop header
LB: loop body
LE: loop exit
PB: predicated region body
PF: predicated region fallthrough
CT: control target
= control target key end

     0   :  { %s1134_s12 = smov 0   ;;  %s1407_s0 = inlined_call_operand.vmem [shape: f32[6144,128], index: 0, kind: input, shape index: {}]   ;;  %s1408_s1 = inlined_call_operand.vmem [shape: f32[128,128], index: 1, kind: input, shape index: {}]   ;;  %s1409_s2 = inlined_call_operand.vmem [shape: f32[1,128], index: 2, kind: input, shape index: {}]   ;;  %s1410_s3 = inlined_call_operand.vmem [shape: f32[6144,128], index: 3, kind: output, shape index: {}]  }
   0x1 LB: > { %s830_s13 = sadd.s32 4294967295, %s1112_s12   ;;  %p834_p0 = scmp.ge.s32.totalorder %s1112_s12, 1  ;;  %s1112_s12 = sphi %s1134_s12, %s13_s12  }
   0x2   : > { %p138_p1 = scmp.lt.s32.totalorder %s1112_s12, 13 }
   0x4   : > { %p139_p2 = pnand %p834_p0, %p138_p1 }
   0x5   : > { %v238_v0 = vld [vmem:[%s1408_s1] sm:$0xff] (!%p139_p2)  ;;  %v239_v1 = vld [vmem:[%s1408_s1 + $0x8] sm:$0xff] (!%p139_p2)  ;;  %v240_v2 = vld [vmem:[%s1408_s1 + $0x10] sm:$0xff] (!%p139_p2)  ;;  %s835_s20 = sshll.u32 (!%p139_p2), %s830_s13, 6 }
   0x6   : > { %142 = sbr.rel (%p139_p2) target bundleno = 319 (0x13f), region = 32  ;;  %v1050_v3 = vpack.c.bf16 (!%p139_p2), %v239_v1, %v238_v0  ;;  %v241_v4 = vld [vmem:[%s1408_s1 + $0x18] sm:$0xff] (!%p139_p2)  ;;  %p163_p3 = scmp.lt.s32.totalorder (!%p139_p2), %s835_s20, 767  ;;  %v242_v6 = vld [vmem:[%s1408_s1 + $0x20] sm:$0xff] (!%p139_p2)  ;;  %v243_v7 = vld [vmem:[%s1408_s1 + $0x28] sm:$0xff] (!%p139_p2) }
   0x7   : > { %v1054_v5 = vpack.c.bf16 (!%p139_p2), %v241_v4, %v240_v2  ;;  %v1058_v8 = vpack.c.bf16 (!%p139_p2), %v243_v7, %v242_v6  ;;  %v244_v9 = vld [vmem:[%s1408_s1 + $0x30] sm:$0xff] (!%p139_p2)  ;;  %v245_v10 = vld [vmem:[%s1408_s1 + $0x38] sm:$0xff] (!%p139_p2)  ;;  %v246_v14 = vld [vmem:[%s1408_s1 + $0x40] sm:$0xff] (!%p139_p2) }
   0x8   : > { %1051 = vmatprep.subr.bf16.mxu0 (!%p139_p2), %v1050_v3  ;;  %1082 = vmatprep.subr.bf16.mxu1 (!%p139_p2), %v1050_v3  ;;  %v1062_v13 = vpack.c.bf16 (!%p139_p2), %v245_v10, %v244_v9  ;;  %v247_v15 = vld [vmem:[%s1408_s1 + $0x48] sm:$0xff] (!%p139_p2)  ;;  %v248_v17 = vld [vmem:[%s1408_s1 + $0x50] sm:$0xff] (!%p139_p2)  ;;  %v249_v18 = vld [vmem:[%s1408_s1 + $0x58] sm:$0xff] (!%p139_p2) }
   0x9   : > { %1053 = vmatpush3.bf16.msra.mxu0 (!%p139_p2), %v1050_v3  ;;  %1090 = vmatpush3.bf16.msra.mxu1 (!%p139_p2), %v1050_v3  ;;  %v1066_v16 = vpack.c.bf16 (!%p139_p2), %v247_v15, %v246_v14  ;;  %v1070_v19 = vpack.c.bf16 (!%p139_p2), %v249_v18, %v248_v17  ;;  %v250_v20 = vld [vmem:[%s1408_s1 + $0x60] sm:$0xff] (!%p139_p2)  ;;  %v251_v21 = vld [vmem:[%s1408_s1 + $0x68] sm:$0xff] (!%p139_p2)  ;;  %v252_v23 = vld [vmem:[%s1408_s1 + $0x70] sm:$0xff] (!%p139_p2) }
   0xa   : > { %1055 = vmatprep.subr.bf16.mxu0 (!%p139_p2), %v1054_v5  ;;  %1083 = vmatprep.subr.bf16.mxu1 (!%p139_p2), %v1054_v5  ;;  %v1074_v22 = vpack.c.bf16 (!%p139_p2), %v251_v21, %v250_v20  ;;  %v253_v24 = vld [vmem:[%s1408_s1 + $0x78] sm:$0xff] (!%p139_p2) }
   0xb   : > { %v1078_v25 = vpack.c.bf16 (!%p139_p2), %v253_v24, %v252_v23  ;;  %v1267_v24 = vld [vmem:[%s1409_s2] ss:$0 sm:$0xff] (!%p139_p2) }
   0xd   : > { %s1412_s20 = smov (!%p163_p3, %s835_s20), 767  ;;  %1057 = vmatpush3.bf16.msra.mxu0 %v1054_v5  ;;  %1091 = vmatpush3.bf16.msra.mxu1 %v1054_v5 }
   0xe   : > { %s836_s27 = sshll.u32 %s1412_s20, 3  ;;  %1059 = vmatprep.subr.bf16.mxu0 %v1058_v8  ;;  %1084 = vmatprep.subr.bf16.mxu1 %v1058_v8 }
   0xf   : > { %s1174_s7 = scalar_lea.vmem %s1407_s0, %s836_s27  ;;  %s1276_s4 = scalar_lea.vmem %s1410_s3, %s836_s27 }
  0x10   : > { %v174_v11 = vld [vmem:[%s1174_s7] sm:$0xff]  ;;  %v175_v26 = vld [vmem:[%s1174_s7 + $0x8] sm:$0xff]  ;;  %v176_v28 = vld [vmem:[%s1174_s7 + $0x10] sm:$0xff] }
  0x11   : > { %v206_v12 = vld [vmem:[%s1174_s7 + $0x100] sm:$0xff]  ;;  %954 = vmatprep.mubr.f32.mxu0 %v174_v11  ;;  %1061 = vmatpush3.bf16.msra.mxu0 %v1058_v8  ;;  %v207_v27 = vld [vmem:[%s1174_s7 + $0x108] sm:$0xff]  ;;  %v208_v29 = vld [vmem:[%s1174_s7 + $0x110] sm:$0xff] }
  0x12   : > { %1002 = vmatprep.mubr.f32.mxu1 %v206_v12  ;;  %1092 = vmatpush3.bf16.msra.mxu1 %v1058_v8  ;;  %v177_v30 = vld [vmem:[%s1174_s7 + $0x18] sm:$0xff]  ;;  %v178_v32 = vld [vmem:[%s1174_s7 + $0x20] sm:$0xff]  ;;  %v179_v34 = vld [vmem:[%s1174_s7 + $0x28] sm:$0xff] }
  0x13   : > { %1063 = vmatprep.subr.bf16.mxu0 %v1062_v13  ;;  %1085 = vmatprep.subr.bf16.mxu1 %v1062_v13  ;;  %v209_v31 = vld [vmem:[%s1174_s7 + $0x118] sm:$0xff]  ;;  %v210_v33 = vld [vmem:[%s1174_s7 + $0x120] sm:$0xff]  ;;  %v211_v35 = vld [vmem:[%s1174_s7 + $0x128] sm:$0xff] }
  0x14   : > { %v180_v36 = vld [vmem:[%s1174_s7 + $0x30] sm:$0xff]  ;;  %v181_v38 = vld [vmem:[%s1174_s7 + $0x38] sm:$0xff]  ;;  %v182_v40 = vld [vmem:[%s1174_s7 + $0x40] sm:$0xff] }
  0x15   : > { %1065 = vmatpush3.bf16.msra.mxu0 %v1062_v13  ;;  %v212_v37 = vld [vmem:[%s1174_s7 + $0x130] sm:$0xff]  ;;  %v213_v39 = vld [vmem:[%s1174_s7 + $0x138] sm:$0xff]  ;;  %v214_v41 = vld [vmem:[%s1174_s7 + $0x140] sm:$0xff] }
  0x16   : > { %1093 = vmatpush3.bf16.msra.mxu1 %v1062_v13  ;;  %1067 = vmatprep.subr.bf16.mxu0 %v1066_v16  ;;  %v183_v42 = vld [vmem:[%s1174_s7 + $0x48] sm:$0xff]  ;;  %v184_v44 = vld [vmem:[%s1174_s7 + $0x50] sm:$0xff]  ;;  %v185_v46 = vld [vmem:[%s1174_s7 + $0x58] sm:$0xff] }
  0x17   : > { %1086 = vmatprep.subr.bf16.mxu1 %v1066_v16  ;;  %v215_v43 = vld [vmem:[%s1174_s7 + $0x148] sm:$0xff]  ;;  %v216_v45 = vld [vmem:[%s1174_s7 + $0x150] sm:$0xff]  ;;  %v217_v47 = vld [vmem:[%s1174_s7 + $0x158] sm:$0xff] }
  0x18   : > { %v186_v48 = vld [vmem:[%s1174_s7 + $0x60] sm:$0xff]  ;;  %v187_v50 = vld [vmem:[%s1174_s7 + $0x68] sm:$0xff]  ;;  %v188_v52 = vld [vmem:[%s1174_s7 + $0x70] sm:$0xff] }
  0x19   : > { %1069 = vmatpush3.bf16.msra.mxu0 %v1066_v16  ;;  %v218_v49 = vld [vmem:[%s1174_s7 + $0x160] sm:$0xff]  ;;  %v219_v51 = vld [vmem:[%s1174_s7 + $0x168] sm:$0xff]  ;;  %v220_v53 = vld [vmem:[%s1174_s7 + $0x170] sm:$0xff] }
  0x1a   : > { %1094 = vmatpush3.bf16.msra.mxu1 %v1066_v16  ;;  %1071 = vmatprep.subr.bf16.mxu0 %v1070_v19  ;;  %v189_v54 = vld [vmem:[%s1174_s7 + $0x78] sm:$0xff]  ;;  %v190_v56 = vld [vmem:[%s1174_s7 + $0x80] sm:$0xff]  ;;  %v191_v58 = vld [vmem:[%s1174_s7 + $0x88] sm:$0xff] }
  0x1b   : > { %1087 = vmatprep.subr.bf16.mxu1 %v1070_v19  ;;  %v221_v55 = vld [vmem:[%s1174_s7 + $0x178] sm:$0xff]  ;;  %v222_v57 = vld [vmem:[%s1174_s7 + $0x180] sm:$0xff]  ;;  %v223_v59 = vld [vmem:[%s1174_s7 + $0x188] sm:$0xff] }
  0x1c   : > { %v192_v60 = vld [vmem:[%s1174_s7 + $0x90] sm:$0xff]  ;;  %v193_v62 = vld [vmem:[%s1174_s7 + $0x98] sm:$0xff]  ;;  %v194_v0 = vld [vmem:[%s1174_s7 + $0xa0] sm:$0xff] }
  0x1d   : > { %1073 = vmatpush3.bf16.msra.mxu0 %v1070_v19  ;;  %v224_v61 = vld [vmem:[%s1174_s7 + $0x190] sm:$0xff]  ;;  %v225_v63 = vld [vmem:[%s1174_s7 + $0x198] sm:$0xff]  ;;  %v226_v1 = vld [vmem:[%s1174_s7 + $0x1a0] sm:$0xff] }
  0x1e   : > { %1095 = vmatpush3.bf16.msra.mxu1 %v1070_v19  ;;  %1075 = vmatprep.subr.bf16.mxu0 %v1074_v22  ;;  %v195_v2 = vld [vmem:[%s1174_s7 + $0xa8] sm:$0xff]  ;;  %v196_v4 = vld [vmem:[%s1174_s7 + $0xb0] sm:$0xff]  ;;  %v197_v6 = vld [vmem:[%s1174_s7 + $0xb8] sm:$0xff] }
  0x1f   : > { %1088 = vmatprep.subr.bf16.mxu1 %v1074_v22  ;;  %v227_v3 = vld [vmem:[%s1174_s7 + $0x1a8] sm:$0xff]  ;;  %v228_v5 = vld [vmem:[%s1174_s7 + $0x1b0] sm:$0xff]  ;;  %v229_v7 = vld [vmem:[%s1174_s7 + $0x1b8] sm:$0xff] }
  0x20   : > { %v198_v8 = vld [vmem:[%s1174_s7 + $0xc0] sm:$0xff]  ;;  %v199_v10 = vld [vmem:[%s1174_s7 + $0xc8] sm:$0xff]  ;;  %v200_v12 = vld [vmem:[%s1174_s7 + $0xd0] sm:$0xff] }
  0x21   : > { %1077 = vmatpush3.bf16.msra.mxu0 %v1074_v22  ;;  %v230_v9 = vld [vmem:[%s1174_s7 + $0x1c0] sm:$0xff]  ;;  %v231_v11 = vld [vmem:[%s1174_s7 + $0x1c8] sm:$0xff]  ;;  %v232_v13 = vld [vmem:[%s1174_s7 + $0x1d0] sm:$0xff] }
  0x22   : > { %1096 = vmatpush3.bf16.msra.mxu1 %v1074_v22  ;;  %1079 = vmatprep.subr.bf16.mxu0 %v1078_v25  ;;  %v201_v14 = vld [vmem:[%s1174_s7 + $0xd8] sm:$0xff]  ;;  %v202_v16 = vld [vmem:[%s1174_s7 + $0xe0] sm:$0xff]  ;;  %v203_v18 = vld [vmem:[%s1174_s7 + $0xe8] sm:$0xff] }
  0x23   : > { %1089 = vmatprep.subr.bf16.mxu1 %v1078_v25  ;;  %v233_v15 = vld [vmem:[%s1174_s7 + $0x1d8] sm:$0xff]  ;;  %v234_v17 = vld [vmem:[%s1174_s7 + $0x1e0] sm:$0xff]  ;;  %v235_v19 = vld [vmem:[%s1174_s7 + $0x1e8] sm:$0xff] }
  0x24   : > { %v204_v20 = vld [vmem:[%s1174_s7 + $0xf0] sm:$0xff]  ;;  %v205_v22 = vld [vmem:[%s1174_s7 + $0xf8] sm:$0xff] }
  0x25   : > { %1081 = vmatpush3.bf16.msra.mxu0 %v1078_v25  ;;  %v236_v21 = vld [vmem:[%s1174_s7 + $0x1f0] sm:$0xff]  ;;  %v237_v23 = vld [vmem:[%s1174_s7 + $0x1f8] sm:$0xff] }
  0x26   : > { %1097 = vmatpush3.bf16.msra.mxu1 %v1078_v25 }
  0x28   : > { %955 = vmatmul.mubr.f32.vlgmr.msra.gmra.mrb[0].mxu0 %v175_v26 }
  0x29   : > { %1003 = vmatmul.mubr.f32.vlgmr.msra.gmra.mrb[0].mxu1 %v207_v27  ;;  %957 = vmatprep.mubr.f32.mxu0 %v176_v28 }
  0x2a   : > { %1005 = vmatprep.mubr.f32.mxu1 %v208_v29 }
  0x2c   : > { %958 = vmatmul.mubr.f32.gmra.mrb[2].mxu0 %v177_v30 }
  0x2d   : > { %1006 = vmatmul.mubr.f32.gmra.mrb[2].mxu1 %v209_v31  ;;  %960 = vmatprep.mubr.f32.mxu0 %v178_v32 }
  0x2e   : > { %1008 = vmatprep.mubr.f32.mxu1 %v210_v33 }
  0x30   : > { %961 = vmatmul.mubr.f32.gmra.mrb[4].mxu0 %v179_v34 }
  0x31   : > { %1009 = vmatmul.mubr.f32.gmra.mrb[4].mxu1 %v211_v35  ;;  %963 = vmatprep.mubr.f32.mxu0 %v180_v36 }
  0x32   : > { %1011 = vmatprep.mubr.f32.mxu1 %v212_v37 }
  0x34   : > { %964 = vmatmul.mubr.f32.gmra.mrb[6].mxu0 %v181_v38 }
  0x35   : > { %1012 = vmatmul.mubr.f32.gmra.mrb[6].mxu1 %v213_v39  ;;  %966 = vmatprep.mubr.f32.mxu0 %v182_v40 }
  0x36   : > { %1014 = vmatprep.mubr.f32.mxu1 %v214_v41 }
  0x38   : > { %967 = vmatmul.mubr.f32.gmra.mrb[8].mxu0 %v183_v42 }
  0x39   : > { %1015 = vmatmul.mubr.f32.gmra.mrb[8].mxu1 %v215_v43  ;;  %969 = vmatprep.mubr.f32.mxu0 %v184_v44 }
  0x3a   : > { %1017 = vmatprep.mubr.f32.mxu1 %v216_v45 }
  0x3c   : > { %970 = vmatmul.mubr.f32.gmra.mrb[10].mxu0 %v185_v46 }
  0x3d   : > { %1018 = vmatmul.mubr.f32.gmra.mrb[10].mxu1 %v217_v47  ;;  %972 = vmatprep.mubr.f32.mxu0 %v186_v48 }
  0x3e   : > { %1020 = vmatprep.mubr.f32.mxu1 %v218_v49 }
  0x40   : > { %973 = vmatmul.mubr.f32.gmra.mrb[12].mxu0 %v187_v50 }
  0x41   : > { %1021 = vmatmul.mubr.f32.gmra.mrb[12].mxu1 %v219_v51  ;;  %975 = vmatprep.mubr.f32.mxu0 %v188_v52 }
  0x42   : > { %1023 = vmatprep.mubr.f32.mxu1 %v220_v53 }
  0x44   : > { %976 = vmatmul.mubr.f32.gmra.mrb[14].mxu0 %v189_v54 }
  0x45   : > { %1024 = vmatmul.mubr.f32.gmra.mrb[14].mxu1 %v221_v55  ;;  %978 = vmatprep.mubr.f32.mxu0 %v190_v56 }
  0x46   : > { %1026 = vmatprep.mubr.f32.mxu1 %v222_v57 }
  0x48   : > { %979 = vmatmul.mubr.f32.gmra.mrb[16].mxu0 %v191_v58 }
  0x49   : > { %1027 = vmatmul.mubr.f32.gmra.mrb[16].mxu1 %v223_v59  ;;  %981 = vmatprep.mubr.f32.mxu0 %v192_v60 }
  0x4a   : > { %1029 = vmatprep.mubr.f32.mxu1 %v224_v61 }
  0x4c   : > { %982 = vmatmul.mubr.f32.gmra.mrb[18].mxu0 %v193_v62 }
  0x4d   : > { %1030 = vmatmul.mubr.f32.gmra.mrb[18].mxu1 %v225_v63  ;;  %984 = vmatprep.mubr.f32.mxu0 %v194_v0 }
  0x4e   : > { %1032 = vmatprep.mubr.f32.mxu1 %v226_v1 }
  0x50   : > { %985 = vmatmul.mubr.f32.gmra.mrb[20].mxu0 %v195_v2 }
  0x51   : > { %1033 = vmatmul.mubr.f32.gmra.mrb[20].mxu1 %v227_v3  ;;  %987 = vmatprep.mubr.f32.mxu0 %v196_v4 }
  0x52   : > { %1035 = vmatprep.mubr.f32.mxu1 %v228_v5 }
  0x54   : > { %988 = vmatmul.mubr.f32.gmra.mrb[22].mxu0 %v197_v6 }
  0x55   : > { %1036 = vmatmul.mubr.f32.gmra.mrb[22].mxu1 %v229_v7  ;;  %990 = vmatprep.mubr.f32.mxu0 %v198_v8 }
  0x56   : > { %1038 = vmatprep.mubr.f32.mxu1 %v230_v9 }
  0x58   : > { %991 = vmatmul.mubr.f32.gmra.mrb[24].mxu0 %v199_v10 }
  0x59   : > { %1039 = vmatmul.mubr.f32.gmra.mrb[24].mxu1 %v231_v11  ;;  %993 = vmatprep.mubr.f32.mxu0 %v200_v12 }
  0x5a   : > { %1041 = vmatprep.mubr.f32.mxu1 %v232_v13 }
  0x5c   : > { %994 = vmatmul.mubr.f32.gmra.mrb[26].mxu0 %v201_v14 }
  0x5d   : > { %1042 = vmatmul.mubr.f32.gmra.mrb[26].mxu1 %v233_v15  ;;  %996 = vmatprep.mubr.f32.mxu0 %v202_v16 }
  0x5e   : > { %1044 = vmatprep.mubr.f32.mxu1 %v234_v17 }
  0x60   : > { %997 = vmatmul.mubr.f32.gmra.mrb[28].mxu0 %v203_v18 }
  0x61   : > { %1045 = vmatmul.mubr.f32.gmra.mrb[28].mxu1 %v235_v19  ;;  %999 = vmatprep.mubr.f32.mxu0 %v204_v20 }
  0x62   : > { %1047 = vmatprep.mubr.f32.mxu1 %v236_v21 }
  0x64   : > { %1000 = vmatmul.mubr.f32.gmra.mrb[30].mxu0 %v205_v22 }
  0x65   : > { %1048 = vmatmul.mubr.f32.gmra.mrb[30].mxu1 %v237_v23 }
  0xfb   : > { %v956_v25 = vpop.f32.mrb[0].mxu0 }
  0xfc   : > { %v1004_v26 = vpop.f32.mrb[0].mxu1  ;;  %v333_v27 = vadd.f32 %v956_v25, %v1267_v24  ;;  %v327_v29 = vpop.f32.mrb[1].mxu0 }
  0xfd   : > { %v493_v28 = vadd.f32 %v1004_v26, %v1267_v24  ;;  %v487_v30 = vpop.f32.mrb[1].mxu1  ;;  %v328_v31 = vadd.f32 %v1267_v24, %v327_v29 }
  0xfe   : > { %v488_v32 = vadd.f32 %v1267_v24, %v487_v30  ;;  %v647_v33 = vmax.f32 %v333_v27, 0.0 }
  0xff   : > { %v679_v34 = vmax.f32 %v493_v28, 0.0  ;;  %v646_v35 = vmax.f32 %v328_v31, 0.0  ;;  %v959_v37 = vpop.f32.mrb[2].mxu0 }
 0x100   : > { %v678_v36 = vmax.f32 %v488_v32, 0.0  ;;  %v1007_v38 = vpop.f32.mrb[2].mxu1  ;;  %711 = vst [vmem:[%s1276_s4 + $0x8] sm:$0xff] %v647_v33  ;;  %v343_v39 = vadd.f32 %v959_v37, %v1267_v24  ;;  %v337_v41 = vpop.f32.mrb[3].mxu0 }
 0x101   : > { %743 = vst [vmem:[%s1276_s4 + $0x108] sm:$0xff] %v679_v34  ;;  %v503_v40 = vadd.f32 %v1007_v38, %v1267_v24  ;;  %v497_v42 = vpop.f32.mrb[3].mxu1  ;;  %710 = vst [vmem:[%s1276_s4] sm:$0xff] %v646_v35  ;;  %v338_v43 = vadd.f32 %v1267_v24, %v337_v41 }
 0x102   : > { %742 = vst [vmem:[%s1276_s4 + $0x100] sm:$0xff] %v678_v36  ;;  %v498_v44 = vadd.f32 %v1267_v24, %v497_v42  ;;  %v649_v45 = vmax.f32 %v343_v39, 0.0 }
 0x103   : > { %v681_v46 = vmax.f32 %v503_v40, 0.0  ;;  %v648_v47 = vmax.f32 %v338_v43, 0.0  ;;  %v962_v49 = vpop.f32.mrb[4].mxu0 }
 0x104   : > { %v680_v48 = vmax.f32 %v498_v44, 0.0  ;;  %v1010_v50 = vpop.f32.mrb[4].mxu1  ;;  %713 = vst [vmem:[%s1276_s4 + $0x18] sm:$0xff] %v649_v45  ;;  %v353_v51 = vadd.f32 %v962_v49, %v1267_v24  ;;  %v347_v53 = vpop.f32.mrb[5].mxu0 }
 0x105   : > { %745 = vst [vmem:[%s1276_s4 + $0x118] sm:$0xff] %v681_v46  ;;  %v513_v52 = vadd.f32 %v1010_v50, %v1267_v24  ;;  %v507_v54 = vpop.f32.mrb[5].mxu1  ;;  %712 = vst [vmem:[%s1276_s4 + $0x10] sm:$0xff] %v648_v47  ;;  %v348_v55 = vadd.f32 %v1267_v24, %v347_v53 }
 0x106   : > { %744 = vst [vmem:[%s1276_s4 + $0x110] sm:$0xff] %v680_v48  ;;  %v508_v56 = vadd.f32 %v1267_v24, %v507_v54  ;;  %v651_v57 = vmax.f32 %v353_v51, 0.0 }
 0x107   : > { %v683_v58 = vmax.f32 %v513_v52, 0.0  ;;  %v650_v59 = vmax.f32 %v348_v55, 0.0  ;;  %v965_v61 = vpop.f32.mrb[6].mxu0 }
 0x108   : > { %v682_v60 = vmax.f32 %v508_v56, 0.0  ;;  %v1013_v62 = vpop.f32.mrb[6].mxu1  ;;  %715 = vst [vmem:[%s1276_s4 + $0x28] sm:$0xff] %v651_v57  ;;  %v363_v63 = vadd.f32 %v965_v61, %v1267_v24  ;;  %v357_v1 = vpop.f32.mrb[7].mxu0 }
 0x109   : > { %747 = vst [vmem:[%s1276_s4 + $0x128] sm:$0xff] %v683_v58  ;;  %v523_v0 = vadd.f32 %v1013_v62, %v1267_v24  ;;  %v517_v2 = vpop.f32.mrb[7].mxu1  ;;  %714 = vst [vmem:[%s1276_s4 + $0x20] sm:$0xff] %v650_v59  ;;  %v358_v3 = vadd.f32 %v1267_v24, %v357_v1 }
 0x10a   : > { %746 = vst [vmem:[%s1276_s4 + $0x120] sm:$0xff] %v682_v60  ;;  %v518_v4 = vadd.f32 %v1267_v24, %v517_v2  ;;  %v653_v5 = vmax.f32 %v363_v63, 0.0 }
 0x10b   : > { %v685_v6 = vmax.f32 %v523_v0, 0.0  ;;  %v652_v7 = vmax.f32 %v358_v3, 0.0  ;;  %v968_v9 = vpop.f32.mrb[8].mxu0 }
 0x10c   : > { %v684_v8 = vmax.f32 %v518_v4, 0.0  ;;  %v1016_v10 = vpop.f32.mrb[8].mxu1  ;;  %717 = vst [vmem:[%s1276_s4 + $0x38] sm:$0xff] %v653_v5  ;;  %v373_v11 = vadd.f32 %v968_v9, %v1267_v24  ;;  %v367_v13 = vpop.f32.mrb[9].mxu0 }
 0x10d   : > { %749 = vst [vmem:[%s1276_s4 + $0x138] sm:$0xff] %v685_v6  ;;  %v533_v12 = vadd.f32 %v1016_v10, %v1267_v24  ;;  %v527_v14 = vpop.f32.mrb[9].mxu1  ;;  %716 = vst [vmem:[%s1276_s4 + $0x30] sm:$0xff] %v652_v7  ;;  %v368_v15 = vadd.f32 %v1267_v24, %v367_v13 }
 0x10e   : > { %748 = vst [vmem:[%s1276_s4 + $0x130] sm:$0xff] %v684_v8  ;;  %v528_v16 = vadd.f32 %v1267_v24, %v527_v14  ;;  %v655_v17 = vmax.f32 %v373_v11, 0.0 }
 0x10f   : > { %v687_v18 = vmax.f32 %v533_v12, 0.0  ;;  %v654_v19 = vmax.f32 %v368_v15, 0.0  ;;  %v971_v21 = vpop.f32.mrb[10].mxu0 }
 0x110   : > { %v686_v20 = vmax.f32 %v528_v16, 0.0  ;;  %v1019_v22 = vpop.f32.mrb[10].mxu1  ;;  %719 = vst [vmem:[%s1276_s4 + $0x48] sm:$0xff] %v655_v17  ;;  %v383_v23 = vadd.f32 %v971_v21, %v1267_v24  ;;  %v377_v26 = vpop.f32.mrb[11].mxu0 }
 0x111   : > { %751 = vst [vmem:[%s1276_s4 + $0x148] sm:$0xff] %v687_v18  ;;  %v543_v25 = vadd.f32 %v1019_v22, %v1267_v24  ;;  %v537_v27 = vpop.f32.mrb[11].mxu1  ;;  %718 = vst [vmem:[%s1276_s4 + $0x40] sm:$0xff] %v654_v19  ;;  %v378_v28 = vadd.f32 %v1267_v24, %v377_v26 }
 0x112   : > { %750 = vst [vmem:[%s1276_s4 + $0x140] sm:$0xff] %v686_v20  ;;  %v538_v29 = vadd.f32 %v1267_v24, %v537_v27  ;;  %v657_v30 = vmax.f32 %v383_v23, 0.0 }
 0x113   : > { %v689_v31 = vmax.f32 %v543_v25, 0.0  ;;  %v656_v32 = vmax.f32 %v378_v28, 0.0  ;;  %v974_v34 = vpop.f32.mrb[12].mxu0 }
 0x114   : > { %v688_v33 = vmax.f32 %v538_v29, 0.0  ;;  %v1022_v35 = vpop.f32.mrb[12].mxu1  ;;  %721 = vst [vmem:[%s1276_s4 + $0x58] sm:$0xff] %v657_v30  ;;  %v393_v36 = vadd.f32 %v974_v34, %v1267_v24  ;;  %v387_v38 = vpop.f32.mrb[13].mxu0 }
 0x115   : > { %753 = vst [vmem:[%s1276_s4 + $0x158] sm:$0xff] %v689_v31  ;;  %v553_v37 = vadd.f32 %v1022_v35, %v1267_v24  ;;  %v547_v39 = vpop.f32.mrb[13].mxu1  ;;  %720 = vst [vmem:[%s1276_s4 + $0x50] sm:$0xff] %v656_v32  ;;  %v388_v40 = vadd.f32 %v1267_v24, %v387_v38 }
 0x116   : > { %752 = vst [vmem:[%s1276_s4 + $0x150] sm:$0xff] %v688_v33  ;;  %v548_v41 = vadd.f32 %v1267_v24, %v547_v39  ;;  %v659_v42 = vmax.f32 %v393_v36, 0.0 }
 0x117   : > { %v691_v43 = vmax.f32 %v553_v37, 0.0  ;;  %v658_v44 = vmax.f32 %v388_v40, 0.0  ;;  %v977_v46 = vpop.f32.mrb[14].mxu0 }
 0x118   : > { %v690_v45 = vmax.f32 %v548_v41, 0.0  ;;  %v1025_v47 = vpop.f32.mrb[14].mxu1  ;;  %723 = vst [vmem:[%s1276_s4 + $0x68] sm:$0xff] %v659_v42  ;;  %v403_v48 = vadd.f32 %v977_v46, %v1267_v24  ;;  %v397_v50 = vpop.f32.mrb[15].mxu0 }
 0x119   : > { %755 = vst [vmem:[%s1276_s4 + $0x168] sm:$0xff] %v691_v43  ;;  %v563_v49 = vadd.f32 %v1025_v47, %v1267_v24  ;;  %v557_v51 = vpop.f32.mrb[15].mxu1  ;;  %722 = vst [vmem:[%s1276_s4 + $0x60] sm:$0xff] %v658_v44  ;;  %v398_v52 = vadd.f32 %v1267_v24, %v397_v50 }
 0x11a   : > { %754 = vst [vmem:[%s1276_s4 + $0x160] sm:$0xff] %v690_v45  ;;  %v558_v53 = vadd.f32 %v1267_v24, %v557_v51  ;;  %v661_v54 = vmax.f32 %v403_v48, 0.0 }
 0x11b   : > { %v693_v55 = vmax.f32 %v563_v49, 0.0  ;;  %v660_v56 = vmax.f32 %v398_v52, 0.0  ;;  %v980_v58 = vpop.f32.mrb[16].mxu0 }
 0x11c   : > { %v692_v57 = vmax.f32 %v558_v53, 0.0  ;;  %v1028_v59 = vpop.f32.mrb[16].mxu1  ;;  %725 = vst [vmem:[%s1276_s4 + $0x78] sm:$0xff] %v661_v54  ;;  %v413_v60 = vadd.f32 %v980_v58, %v1267_v24  ;;  %v407_v62 = vpop.f32.mrb[17].mxu0 }
 0x11d   : > { %757 = vst [vmem:[%s1276_s4 + $0x178] sm:$0xff] %v693_v55  ;;  %v573_v61 = vadd.f32 %v1028_v59, %v1267_v24  ;;  %v567_v63 = vpop.f32.mrb[17].mxu1  ;;  %724 = vst [vmem:[%s1276_s4 + $0x70] sm:$0xff] %v660_v56  ;;  %v408_v0 = vadd.f32 %v1267_v24, %v407_v62 }
 0x11e   : > { %756 = vst [vmem:[%s1276_s4 + $0x170] sm:$0xff] %v692_v57  ;;  %v568_v1 = vadd.f32 %v1267_v24, %v567_v63  ;;  %v663_v2 = vmax.f32 %v413_v60, 0.0 }
 0x11f   : > { %v695_v3 = vmax.f32 %v573_v61, 0.0  ;;  %v662_v4 = vmax.f32 %v408_v0, 0.0  ;;  %v983_v6 = vpop.f32.mrb[18].mxu0 }
 0x120   : > { %v694_v5 = vmax.f32 %v568_v1, 0.0  ;;  %v1031_v7 = vpop.f32.mrb[18].mxu1  ;;  %727 = vst [vmem:[%s1276_s4 + $0x88] sm:$0xff] %v663_v2  ;;  %v423_v8 = vadd.f32 %v983_v6, %v1267_v24  ;;  %v417_v10 = vpop.f32.mrb[19].mxu0 }
 0x121   : > { %759 = vst [vmem:[%s1276_s4 + $0x188] sm:$0xff] %v695_v3  ;;  %v583_v9 = vadd.f32 %v1031_v7, %v1267_v24  ;;  %v577_v11 = vpop.f32.mrb[19].mxu1  ;;  %726 = vst [vmem:[%s1276_s4 + $0x80] sm:$0xff] %v662_v4  ;;  %v418_v12 = vadd.f32 %v1267_v24, %v417_v10 }
 0x122   : > { %758 = vst [vmem:[%s1276_s4 + $0x180] sm:$0xff] %v694_v5  ;;  %v578_v13 = vadd.f32 %v1267_v24, %v577_v11  ;;  %v665_v14 = vmax.f32 %v423_v8, 0.0 }
 0x123   : > { %v697_v15 = vmax.f32 %v583_v9, 0.0  ;;  %v664_v16 = vmax.f32 %v418_v12, 0.0  ;;  %v986_v18 = vpop.f32.mrb[20].mxu0 }
 0x124   : > { %v696_v17 = vmax.f32 %v578_v13, 0.0  ;;  %v1034_v19 = vpop.f32.mrb[20].mxu1  ;;  %729 = vst [vmem:[%s1276_s4 + $0x98] sm:$0xff] %v665_v14  ;;  %v433_v20 = vadd.f32 %v986_v18, %v1267_v24  ;;  %v427_v22 = vpop.f32.mrb[21].mxu0 }
 0x125   : > { %761 = vst [vmem:[%s1276_s4 + $0x198] sm:$0xff] %v697_v15  ;;  %v593_v21 = vadd.f32 %v1034_v19, %v1267_v24  ;;  %v587_v23 = vpop.f32.mrb[21].mxu1  ;;  %728 = vst [vmem:[%s1276_s4 + $0x90] sm:$0xff] %v664_v16  ;;  %v428_v25 = vadd.f32 %v1267_v24, %v427_v22 }
 0x126   : > { %760 = vst [vmem:[%s1276_s4 + $0x190] sm:$0xff] %v696_v17  ;;  %v588_v26 = vadd.f32 %v1267_v24, %v587_v23  ;;  %v667_v27 = vmax.f32 %v433_v20, 0.0 }
 0x127   : > { %v699_v28 = vmax.f32 %v593_v21, 0.0  ;;  %v666_v29 = vmax.f32 %v428_v25, 0.0  ;;  %v989_v31 = vpop.f32.mrb[22].mxu0 }
 0x128   : > { %v698_v30 = vmax.f32 %v588_v26, 0.0  ;;  %v1037_v32 = vpop.f32.mrb[22].mxu1  ;;  %731 = vst [vmem:[%s1276_s4 + $0xa8] sm:$0xff] %v667_v27  ;;  %v443_v33 = vadd.f32 %v989_v31, %v1267_v24  ;;  %v437_v35 = vpop.f32.mrb[23].mxu0 }
 0x129   : > { %763 = vst [vmem:[%s1276_s4 + $0x1a8] sm:$0xff] %v699_v28  ;;  %v603_v34 = vadd.f32 %v1037_v32, %v1267_v24  ;;  %v597_v36 = vpop.f32.mrb[23].mxu1  ;;  %730 = vst [vmem:[%s1276_s4 + $0xa0] sm:$0xff] %v666_v29  ;;  %v438_v37 = vadd.f32 %v1267_v24, %v437_v35 }
 0x12a   : > { %762 = vst [vmem:[%s1276_s4 + $0x1a0] sm:$0xff] %v698_v30  ;;  %v598_v38 = vadd.f32 %v1267_v24, %v597_v36  ;;  %v669_v39 = vmax.f32 %v443_v33, 0.0 }
 0x12b   : > { %v701_v40 = vmax.f32 %v603_v34, 0.0  ;;  %v668_v41 = vmax.f32 %v438_v37, 0.0  ;;  %v992_v43 = vpop.f32.mrb[24].mxu0 }
 0x12c   : > { %v700_v42 = vmax.f32 %v598_v38, 0.0  ;;  %v1040_v44 = vpop.f32.mrb[24].mxu1  ;;  %733 = vst [vmem:[%s1276_s4 + $0xb8] sm:$0xff] %v669_v39  ;;  %v453_v45 = vadd.f32 %v992_v43, %v1267_v24  ;;  %v447_v47 = vpop.f32.mrb[25].mxu0 }
 0x12d   : > { %765 = vst [vmem:[%s1276_s4 + $0x1b8] sm:$0xff] %v701_v40  ;;  %v613_v46 = vadd.f32 %v1040_v44, %v1267_v24  ;;  %v607_v48 = vpop.f32.mrb[25].mxu1  ;;  %732 = vst [vmem:[%s1276_s4 + $0xb0] sm:$0xff] %v668_v41  ;;  %v448_v49 = vadd.f32 %v1267_v24, %v447_v47 }
 0x12e   : > { %764 = vst [vmem:[%s1276_s4 + $0x1b0] sm:$0xff] %v700_v42  ;;  %v608_v50 = vadd.f32 %v1267_v24, %v607_v48  ;;  %v671_v51 = vmax.f32 %v453_v45, 0.0 }
 0x12f   : > { %v703_v52 = vmax.f32 %v613_v46, 0.0  ;;  %v670_v53 = vmax.f32 %v448_v49, 0.0  ;;  %v995_v55 = vpop.f32.mrb[26].mxu0 }
 0x130   : > { %v702_v54 = vmax.f32 %v608_v50, 0.0  ;;  %v1043_v56 = vpop.f32.mrb[26].mxu1  ;;  %735 = vst [vmem:[%s1276_s4 + $0xc8] sm:$0xff] %v671_v51  ;;  %v463_v57 = vadd.f32 %v995_v55, %v1267_v24  ;;  %v457_v59 = vpop.f32.mrb[27].mxu0 }
 0x131   : > { %767 = vst [vmem:[%s1276_s4 + $0x1c8] sm:$0xff] %v703_v52  ;;  %v623_v58 = vadd.f32 %v1043_v56, %v1267_v24  ;;  %v617_v60 = vpop.f32.mrb[27].mxu1  ;;  %734 = vst [vmem:[%s1276_s4 + $0xc0] sm:$0xff] %v670_v53  ;;  %v458_v61 = vadd.f32 %v1267_v24, %v457_v59 }
 0x132   : > { %766 = vst [vmem:[%s1276_s4 + $0x1c0] sm:$0xff] %v702_v54  ;;  %v618_v62 = vadd.f32 %v1267_v24, %v617_v60  ;;  %v673_v63 = vmax.f32 %v463_v57, 0.0 }
 0x133   : > { %v705_v0 = vmax.f32 %v623_v58, 0.0  ;;  %v672_v1 = vmax.f32 %v458_v61, 0.0  ;;  %v998_v3 = vpop.f32.mrb[28].mxu0 }
 0x134   : > { %v704_v2 = vmax.f32 %v618_v62, 0.0  ;;  %v1046_v4 = vpop.f32.mrb[28].mxu1  ;;  %737 = vst [vmem:[%s1276_s4 + $0xd8] sm:$0xff] %v673_v63  ;;  %v473_v5 = vadd.f32 %v998_v3, %v1267_v24  ;;  %v467_v7 = vpop.f32.mrb[29].mxu0 }
 0x135   : > { %769 = vst [vmem:[%s1276_s4 + $0x1d8] sm:$0xff] %v705_v0  ;;  %v633_v6 = vadd.f32 %v1046_v4, %v1267_v24  ;;  %v627_v8 = vpop.f32.mrb[29].mxu1  ;;  %736 = vst [vmem:[%s1276_s4 + $0xd0] sm:$0xff] %v672_v1  ;;  %v468_v9 = vadd.f32 %v1267_v24, %v467_v7 }
 0x136   : > { %768 = vst [vmem:[%s1276_s4 + $0x1d0] sm:$0xff] %v704_v2  ;;  %v628_v10 = vadd.f32 %v1267_v24, %v627_v8  ;;  %v675_v11 = vmax.f32 %v473_v5, 0.0 }
 0x137   : > { %v707_v12 = vmax.f32 %v633_v6, 0.0  ;;  %v674_v13 = vmax.f32 %v468_v9, 0.0  ;;  %v1001_v15 = vpop.f32.mrb[30].mxu0 }
 0x138   : > { %v706_v14 = vmax.f32 %v628_v10, 0.0  ;;  %v1049_v16 = vpop.f32.mrb[30].mxu1  ;;  %739 = vst [vmem:[%s1276_s4 + $0xe8] sm:$0xff] %v675_v11  ;;  %v483_v17 = vadd.f32 %v1001_v15, %v1267_v24  ;;  %v477_v19 = vpop.f32.mrb[31].mxu0 }
 0x139   : > { %771 = vst [vmem:[%s1276_s4 + $0x1e8] sm:$0xff] %v707_v12  ;;  %v643_v18 = vadd.f32 %v1049_v16, %v1267_v24  ;;  %v637_v20 = vpop.f32.mrb[31].mxu1  ;;  %738 = vst [vmem:[%s1276_s4 + $0xe0] sm:$0xff] %v674_v13  ;;  %v478_v21 = vadd.f32 %v1267_v24, %v477_v19 }
 0x13a   : > { %770 = vst [vmem:[%s1276_s4 + $0x1e0] sm:$0xff] %v706_v14  ;;  %v638_v22 = vadd.f32 %v1267_v24, %v637_v20  ;;  %v677_v23 = vmax.f32 %v483_v17, 0.0 }
 0x13b   : > { %v709_v25 = vmax.f32 %v643_v18, 0.0  ;;  %v676_v26 = vmax.f32 %v478_v21, 0.0 }
 0x13c   : > { %v708_v27 = vmax.f32 %v638_v22, 0.0  ;;  %741 = vst [vmem:[%s1276_s4 + $0xf8] sm:$0xff] %v677_v23 }
 0x13d   : > { %773 = vst [vmem:[%s1276_s4 + $0x1f8] sm:$0xff] %v709_v25  ;;  %740 = vst [vmem:[%s1276_s4 + $0xf0] sm:$0xff] %v676_v26 }
 0x13e   : > { %772 = vst [vmem:[%s1276_s4 + $0x1f0] sm:$0xff] %v708_v27 }
 0x13f PF: > { %s13_s12 = sadd.s32 1, %s1112_s12  }
 0x140   : > { %p10_p4 = scmp.ge.s32.totalorder %s13_s12, 14  }
 0x142   :  { %12 = sbr.rel (!%p10_p4) target bundleno = 1 (0x1), region = 62 }

// kernel: pilotnet_forward.7
= control target key start
LH: loop header
LB: loop body
LE: loop exit
PB: predicated region body
PF: predicated region fallthrough
CT: control target
= control target key end

     0   :  { %s2486_s12 = smov 0   ;;  %s3558_s0 = inlined_call_operand.vmem [shape: f32[1536,640], index: 0, kind: input, shape index: {}]   ;;  %s3559_s1 = inlined_call_operand.vmem [shape: f32[640,128], index: 1, kind: input, shape index: {}]   ;;  %s3560_s2 = inlined_call_operand.vmem [shape: f32[1,128], index: 2, kind: input, shape index: {}]   ;;  %s3561_s3 = inlined_call_operand.vmem [shape: f32[1536,128], index: 3, kind: output, shape index: {}]  }
   0x1 LB: > { %s1923_s13 = sadd.s32 4294967295, %s2463_s12   ;;  %p1927_p0 = scmp.ge.s32.totalorder %s2463_s12, 1  ;;  %s2463_s12 = sphi %s2486_s12, %s13_s12  }
   0x2   : > { %p139_p1 = scmp.lt.s32.totalorder %s2463_s12, 4 }
   0x4   : > { %p140_p2 = pnand %p1927_p0, %p139_p1 }
   0x6   : > { %143 = sbr.rel (%p140_p2) target bundleno = 614 (0x266), region = 32 }
   0xd   : > { %v497_v0 = vld [vmem:[%s3559_s1] sm:$0xff]  ;;  %v498_v1 = vld [vmem:[%s3559_s1 + $0x8] sm:$0xff]  ;;  %v499_v2 = vld [vmem:[%s3559_s1 + $0x10] sm:$0xff]  ;;  %s1928_s20 = sshll.u32 %s1923_s13, 6  ;;  %v2465_v3 = vmov 0.0|0.0  }
   0xe   : > { %2143 = vmatprep.subr.bf16.mxu0 %v2465_v3  ;;  %2271 = vmatprep.subr.bf16.mxu1 %v2465_v3  ;;  %v2144_v4 = vpack.c.bf16 %v498_v1, %v497_v0  ;;  %v500_v5 = vld [vmem:[%s3559_s1 + $0x18] sm:$0xff]  ;;  %p165_p3 = scmp.lt.s32.totalorder %s1928_s20, 191  ;;  %v501_v7 = vld [vmem:[%s3559_s1 + $0x20] sm:$0xff]  ;;  %v502_v8 = vld [vmem:[%s3559_s1 + $0x28] sm:$0xff] }
   0xf   : > { %v2147_v6 = vpack.c.bf16 %v500_v5, %v499_v2  ;;  %v2150_v9 = vpack.c.bf16 %v502_v8, %v501_v7  ;;  %v503_v10 = vld [vmem:[%s3559_s1 + $0x30] sm:$0xff]  ;;  %v504_v11 = vld [vmem:[%s3559_s1 + $0x38] sm:$0xff]  ;;  %v505_v15 = vld [vmem:[%s3559_s1 + $0x40] sm:$0xff] }
  0x10   : > { %2145 = vmatpush1.bf16.msra.mxu0 %v2144_v4  ;;  %2287 = vmatpush1.bf16.msra.mxu1 %v2144_v4  ;;  %s3589_s20 = smov (!%p165_p3, %s1928_s20), 191  ;;  %v2153_v13 = vpack.c.bf16 %v504_v11, %v503_v10  ;;  %v506_v16 = vld [vmem:[%s3559_s1 + $0x48] sm:$0xff]  ;;  %v507_v18 = vld [vmem:[%s3559_s1 + $0x50] sm:$0xff]  ;;  %v508_v19 = vld [vmem:[%s3559_s1 + $0x58] sm:$0xff] }
  0x11   : > { %2146 = vmatprep.subr.bf16.mxu0 %v2465_v3  ;;  %2272 = vmatprep.subr.bf16.mxu1 %v2465_v3  ;;  %s2447_s27 = smul.u32 40, %s3589_s20  ;;  %v2156_v17 = vpack.c.bf16 %v506_v16, %v505_v15  ;;  %v2159_v20 = vpack.c.bf16 %v508_v19, %v507_v18  ;;  %v509_v21 = vld [vmem:[%s3559_s1 + $0x60] sm:$0xff]  ;;  %v510_v22 = vld [vmem:[%s3559_s1 + $0x68] sm:$0xff]  ;;  %v511_v24 = vld [vmem:[%s3559_s1 + $0x70] sm:$0xff]  ;;  %s1931_s9 = sshll.u32 %s3589_s20, 3 }
  0x12   : > { %v2162_v23 = vpack.c.bf16 %v510_v22, %v509_v21  ;;  %v512_v25 = vld [vmem:[%s3559_s1 + $0x78] sm:$0xff]  ;;  %v513_v27 = vld [vmem:[%s3559_s1 + $0x80] sm:$0xff]  ;;  %v514_v28 = vld [vmem:[%s3559_s1 + $0x88] sm:$0xff]  ;;  %s3319_s13 = scalar_lea.vmem %s3561_s3, %s1931_s9 }
  0x13   : > { %s2522_s30 = scalar_lea.vmem %s3558_s0, %s2447_s27  ;;  %v2165_v26 = vpack.c.bf16 %v512_v25, %v511_v24  ;;  %v2168_v29 = vpack.c.bf16 %v514_v28, %v513_v27  ;;  %v515_v30 = vld [vmem:[%s3559_s1 + $0x90] sm:$0xff]  ;;  %v516_v31 = vld [vmem:[%s3559_s1 + $0x98] sm:$0xff]  ;;  %v517_v33 = vld [vmem:[%s3559_s1 + $0xa0] sm:$0xff] }
  0x14   : > { %2148 = vmatpush1.bf16.msra.mxu0 %v2147_v6  ;;  %2288 = vmatpush1.bf16.msra.mxu1 %v2147_v6  ;;  %v178_v12 = vld [vmem:[%s2522_s30 + $0x8] sm:$0xff]  ;;  %v2171_v32 = vpack.c.bf16 %v516_v31, %v515_v30  ;;  %v519_v36 = vld [vmem:[%s3559_s1 + $0xb0] sm:$0xff]  ;;  %v520_v37 = vld [vmem:[%s3559_s1 + $0xb8] sm:$0xff] }
  0x15   : > { %2149 = vmatprep.subr.bf16.mxu0 %v2465_v3  ;;  %2273 = vmatprep.subr.bf16.mxu1 %v2465_v3  ;;  %v258_v14 = vld [vmem:[%s2522_s30 + $0x288] sm:$0xff]  ;;  %v2177_v38 = vpack.c.bf16 %v520_v37, %v519_v36  ;;  %v521_v39 = vld [vmem:[%s3559_s1 + $0xc0] sm:$0xff]  ;;  %v523_v42 = vld [vmem:[%s3559_s1 + $0xd0] sm:$0xff] }
  0x16   : > { %648 = vmatprep.mubr.f32.mxu0 %v178_v12  ;;  %728 = vmatprep.mubr.f32.mxu1 %v258_v14  ;;  %v518_v34 = vld [vmem:[%s3559_s1 + $0xa8] sm:$0xff]  ;;  %v524_v43 = vld [vmem:[%s3559_s1 + $0xd8] sm:$0xff]  ;;  %v525_v45 = vld [vmem:[%s3559_s1 + $0xe0] sm:$0xff] }
  0x17   : > { %v2174_v35 = vpack.c.bf16 %v518_v34, %v517_v33  ;;  %v522_v40 = vld [vmem:[%s3559_s1 + $0xc8] sm:$0xff]  ;;  %v2183_v44 = vpack.c.bf16 %v524_v43, %v523_v42  ;;  %v527_v48 = vld [vmem:[%s3559_s1 + $0xf0] sm:$0xff]  ;;  %v528_v49 = vld [vmem:[%s3559_s1 + $0xf8] sm:$0xff] }
  0x18   : > { %2151 = vmatpush1.bf16.msra.mxu0 %v2150_v9  ;;  %2289 = vmatpush1.bf16.msra.mxu1 %v2150_v9  ;;  %v2180_v41 = vpack.c.bf16 %v522_v40, %v521_v39  ;;  %v526_v46 = vld [vmem:[%s3559_s1 + $0xe8] sm:$0xff]  ;;  %v561_v50 = vld [vmem:[%s3559_s1 + $0x200] sm:$0xff]  ;;  %v2189_v52 = vpack.c.bf16 %v528_v49, %v527_v48  ;;  %v563_v56 = vld [vmem:[%s3559_s1 + $0x210] sm:$0xff] }
  0x19   : > { %2152 = vmatprep.subr.bf16.mxu0 %v2465_v3  ;;  %2274 = vmatprep.subr.bf16.mxu1 %v2465_v3  ;;  %v2186_v47 = vpack.c.bf16 %v526_v46, %v525_v45  ;;  %v562_v51 = vld [vmem:[%s3559_s1 + $0x208] sm:$0xff]  ;;  %v529_v53 = vld [vmem:[%s3559_s1 + $0x100] sm:$0xff]  ;;  %v564_v57 = vld [vmem:[%s3559_s1 + $0x218] sm:$0xff] }
  0x1a   : > { %v530_v54 = vld [vmem:[%s3559_s1 + $0x108] sm:$0xff]  ;;  %v2239_v55 = vpack.c.bf16 %v562_v51, %v561_v50  ;;  %v177_v58 = vld [vmem:[%s2522_s30] sm:$0xff]  ;;  %v531_v61 = vld [vmem:[%s3559_s1 + $0x110] sm:$0xff]  ;;  %v2243_v1 = vpack.c.bf16 %v564_v57, %v563_v56 }
  0x1b   : > { %v257_v59 = vld [vmem:[%s2522_s30 + $0x280] sm:$0xff]  ;;  %v2192_v60 = vpack.c.bf16 %v530_v54, %v529_v53  ;;  %v532_v62 = vld [vmem:[%s3559_s1 + $0x118] sm:$0xff]  ;;  %v183_v63 = vld [vmem:[%s2522_s30 + $0x30] sm:$0xff] }
  0x1c   : > { %2154 = vmatpush1.bf16.msra.mxu0 %v2153_v13  ;;  %2290 = vmatpush1.bf16.msra.mxu1 %v2153_v13  ;;  %v263_v0 = vld [vmem:[%s2522_s30 + $0x2b0] sm:$0xff]  ;;  %v182_v2 = vld [vmem:[%s2522_s30 + $0x28] sm:$0xff]  ;;  %v2195_v5 = vpack.c.bf16 %v532_v62, %v531_v61  ;;  %v188_v6 = vld [vmem:[%s2522_s30 + $0x58] sm:$0xff] }
  0x1d   : > { %2155 = vmatprep.subr.bf16.mxu0 %v2465_v3  ;;  %2275 = vmatprep.subr.bf16.mxu1 %v2465_v3  ;;  %v262_v4 = vld [vmem:[%s2522_s30 + $0x2a8] sm:$0xff]  ;;  %v533_v7 = vld [vmem:[%s3559_s1 + $0x120] sm:$0xff]  ;;  %v268_v9 = vld [vmem:[%s2522_s30 + $0x2d8] sm:$0xff] }
  0x1e   : > { %v534_v8 = vld [vmem:[%s3559_s1 + $0x128] sm:$0xff]  ;;  %v565_v10 = vld [vmem:[%s3559_s1 + $0x220] sm:$0xff]  ;;  %v187_v12 = vld [vmem:[%s2522_s30 + $0x50] sm:$0xff] }
  0x1f   : > { %v566_v11 = vld [vmem:[%s3559_s1 + $0x228] sm:$0xff]  ;;  %v267_v13 = vld [vmem:[%s2522_s30 + $0x2d0] sm:$0xff]  ;;  %v2198_v14 = vpack.c.bf16 %v534_v8, %v533_v7  ;;  %v193_v15 = vld [vmem:[%s2522_s30 + $0x80] sm:$0xff] }
  0x20   : > { %2157 = vmatpush1.bf16.msra.mxu0 %v2156_v17  ;;  %2291 = vmatpush1.bf16.msra.mxu1 %v2156_v17  ;;  %v535_v16 = vld [vmem:[%s3559_s1 + $0x130] sm:$0xff]  ;;  %v536_v17 = vld [vmem:[%s3559_s1 + $0x138] sm:$0xff]  ;;  %v273_v18 = vld [vmem:[%s2522_s30 + $0x300] sm:$0xff]  ;;  %v2247_v19 = vpack.c.bf16 %v566_v11, %v565_v10 }
  0x21   : > { %2158 = vmatprep.subr.bf16.mxu0 %v2465_v3  ;;  %2276 = vmatprep.subr.bf16.mxu1 %v2465_v3  ;;  %v272_v21 = vld [vmem:[%s2522_s30 + $0x2f8] sm:$0xff]  ;;  %v2201_v22 = vpack.c.bf16 %v536_v17, %v535_v16  ;;  %v537_v24 = vld [vmem:[%s3559_s1 + $0x140] sm:$0xff]  ;;  %v538_v25 = vld [vmem:[%s3559_s1 + $0x148] sm:$0xff] }
  0x22   : > { %v567_v27 = vld [vmem:[%s3559_s1 + $0x230] sm:$0xff]  ;;  %v568_v28 = vld [vmem:[%s3559_s1 + $0x238] sm:$0xff]  ;;  %v277_v30 = vld [vmem:[%s2522_s30 + $0x320] sm:$0xff]  ;;  %v2204_v31 = vpack.c.bf16 %v538_v25, %v537_v24 }
  0x23   : > { %v539_v33 = vld [vmem:[%s3559_s1 + $0x150] sm:$0xff]  ;;  %v540_v34 = vld [vmem:[%s3559_s1 + $0x158] sm:$0xff]  ;;  %v2251_v36 = vpack.c.bf16 %v568_v28, %v567_v27  ;;  %v202_v37 = vld [vmem:[%s2522_s30 + $0xc8] sm:$0xff] }
  0x24   : > { %2160 = vmatpush1.bf16.msra.mxu0 %v2159_v20  ;;  %2292 = vmatpush1.bf16.msra.mxu1 %v2159_v20  ;;  %v192_v20 = vld [vmem:[%s2522_s30 + $0x78] sm:$0xff]  ;;  %v2207_v39 = vpack.c.bf16 %v540_v34, %v539_v33  ;;  %v542_v42 = vld [vmem:[%s3559_s1 + $0x168] sm:$0xff]  ;;  %v207_v46 = vld [vmem:[%s2522_s30 + $0xf0] sm:$0xff] }
  0x25   : > { %2161 = vmatprep.subr.bf16.mxu0 %v2465_v3  ;;  %2277 = vmatprep.subr.bf16.mxu1 %v2465_v3  ;;  %v208_v40 = vld [vmem:[%s2522_s30 + $0xf8] sm:$0xff]  ;;  %v570_v45 = vld [vmem:[%s3559_s1 + $0x248] sm:$0xff]  ;;  %v213_v49 = vld [vmem:[%s2522_s30 + $0x120] sm:$0xff] }
  0x26   : > { %v288_v43 = vld [vmem:[%s2522_s30 + $0x378] sm:$0xff]  ;;  %v543_v50 = vld [vmem:[%s3559_s1 + $0x170] sm:$0xff]  ;;  %v218_v57 = vld [vmem:[%s2522_s30 + $0x148] sm:$0xff] }
  0x27   : > { %v544_v51 = vld [vmem:[%s3559_s1 + $0x178] sm:$0xff]  ;;  %v571_v61 = vld [vmem:[%s3559_s1 + $0x250] sm:$0xff]  ;;  %v222_v8 = vld [vmem:[%s2522_s30 + $0x168] sm:$0xff] }
  0x28   : > { %2163 = vmatpush1.bf16.msra.mxu0 %v2162_v23  ;;  %2293 = vmatpush1.bf16.msra.mxu1 %v2162_v23  ;;  %v198_v23 = vld [vmem:[%s2522_s30 + $0xa8] sm:$0xff]  ;;  %v212_v54 = vld [vmem:[%s2522_s30 + $0x118] sm:$0xff]  ;;  %v2213_v56 = vpack.c.bf16 %v544_v51, %v543_v50  ;;  %v227_v17 = vld [vmem:[%s2522_s30 + $0x190] sm:$0xff] }
  0x29   : > { %2164 = vmatprep.subr.bf16.mxu0 %v2465_v3  ;;  %2278 = vmatprep.subr.bf16.mxu1 %v2465_v3  ;;  %v572_v62 = vld [vmem:[%s3559_s1 + $0x258] sm:$0xff]  ;;  %v574_v16 = vld [vmem:[%s3559_s1 + $0x268] sm:$0xff]  ;;  %v237_v34 = vld [vmem:[%s2522_s30 + $0x1e0] sm:$0xff] }
  0x2a   : > { %v2259_v7 = vpack.c.bf16 %v572_v62, %v571_v61  ;;  %v228_v11 = vld [vmem:[%s2522_s30 + $0x198] sm:$0xff]  ;;  %v238_v28 = vld [vmem:[%s2522_s30 + $0x1e8] sm:$0xff]  ;;  %v327_v50 = vld [vmem:[%s2522_s30 + $0x4b0] sm:$0xff] }
  0x2b   : > { %v232_v25 = vld [vmem:[%s2522_s30 + $0x1b8] sm:$0xff]  ;;  %v337_v61 = vld [vmem:[%s2522_s30 + $0x500] sm:$0xff]  ;;  %v179_v62 = vld [vmem:[%s2522_s30 + $0x10] sm:$0xff] }
  0x2c   : > { %2166 = vmatpush1.bf16.msra.mxu0 %v2165_v26  ;;  %2294 = vmatpush1.bf16.msra.mxu1 %v2165_v26  ;;  %v278_v26 = vld [vmem:[%s2522_s30 + $0x328] sm:$0xff]  ;;  %v576_v33 = vld [vmem:[%s3559_s1 + $0x278] sm:$0xff] }
  0x2d   : > { %2167 = vmatprep.subr.bf16.mxu0 %v2465_v3  ;;  %2279 = vmatprep.subr.bf16.mxu1 %v2465_v3 }
  0x30   : > { %2169 = vmatpush1.bf16.msra.mxu0 %v2168_v29  ;;  %2295 = vmatpush1.bf16.msra.mxu1 %v2168_v29  ;;  %v197_v29 = vld [vmem:[%s2522_s30 + $0xa0] sm:$0xff] }
  0x31   : > { %2170 = vmatprep.subr.bf16.mxu0 %v2465_v3  ;;  %2280 = vmatprep.subr.bf16.mxu1 %v2465_v3 }
  0x34   : > { %2172 = vmatpush1.bf16.msra.mxu0 %v2171_v32  ;;  %2296 = vmatpush1.bf16.msra.mxu1 %v2171_v32  ;;  %v203_v32 = vld [vmem:[%s2522_s30 + $0xd0] sm:$0xff] }
  0x35   : > { %2173 = vmatprep.subr.bf16.mxu0 %v2465_v3  ;;  %2281 = vmatprep.subr.bf16.mxu1 %v2465_v3 }
  0x38   : > { %2175 = vmatpush1.bf16.msra.mxu0 %v2174_v35  ;;  %2297 = vmatpush1.bf16.msra.mxu1 %v2174_v35  ;;  %v283_v35 = vld [vmem:[%s2522_s30 + $0x350] sm:$0xff] }
  0x39   : > { %2176 = vmatprep.subr.bf16.mxu0 %v2465_v3  ;;  %2282 = vmatprep.subr.bf16.mxu1 %v2465_v3 }
  0x3c   : > { %2178 = vmatpush1.bf16.msra.mxu0 %v2177_v38  ;;  %2298 = vmatpush1.bf16.msra.mxu1 %v2177_v38  ;;  %v282_v38 = vld [vmem:[%s2522_s30 + $0x348] sm:$0xff] }
  0x3d   : > { %2179 = vmatprep.subr.bf16.mxu0 %v2465_v3  ;;  %2283 = vmatprep.subr.bf16.mxu1 %v2465_v3 }
  0x40   : > { %2181 = vmatpush1.bf16.msra.mxu0 %v2180_v41  ;;  %2299 = vmatpush1.bf16.msra.mxu1 %v2180_v41  ;;  %v541_v41 = vld [vmem:[%s3559_s1 + $0x160] sm:$0xff] }
  0x41   : > { %2182 = vmatprep.subr.bf16.mxu0 %v2465_v3  ;;  %2284 = vmatprep.subr.bf16.mxu1 %v2465_v3  ;;  %v2210_v48 = vpack.c.bf16 %v542_v42, %v541_v41  ;;  %v242_v42 = vld [vmem:[%s2522_s30 + $0x208] sm:$0xff] }
  0x44   : > { %2184 = vmatpush1.bf16.msra.mxu0 %v2183_v44  ;;  %2300 = vmatpush1.bf16.msra.mxu1 %v2183_v44  ;;  %v569_v44 = vld [vmem:[%s3559_s1 + $0x240] sm:$0xff] }
  0x45   : > { %2185 = vmatprep.subr.bf16.mxu0 %v2465_v3  ;;  %2285 = vmatprep.subr.bf16.mxu1 %v2465_v3  ;;  %v2255_v53 = vpack.c.bf16 %v570_v45, %v569_v44  ;;  %v248_v45 = vld [vmem:[%s2522_s30 + $0x238] sm:$0xff] }
  0x48   : > { %2187 = vmatpush1.bf16.msra.mxu0 %v2186_v47  ;;  %2301 = vmatpush1.bf16.msra.mxu1 %v2186_v47  ;;  %v287_v47 = vld [vmem:[%s2522_s30 + $0x370] sm:$0xff] }
  0x49   : > { %2188 = vmatprep.subr.bf16.mxu0 %v2465_v3  ;;  %2286 = vmatprep.subr.bf16.mxu1 %v2465_v3 }
  0x4c   : > { %2190 = vmatpush1.bf16.msra.mxu0 %v2189_v52  ;;  %2302 = vmatpush1.bf16.msra.mxu1 %v2189_v52  ;;  %v293_v52 = vld [vmem:[%s2522_s30 + $0x3a0] sm:$0xff] }
  0x4d   : > { %2191 = vmatprep.subr.bf16.mxu0 %v2465_v3  ;;  %2240 = vmatprep.subr.bf16.mxu1 %v2239_v55 }
  0x4f   : > { %649 = vmatmul.mubr.f32.vlgmr.msra.gmra.mrb[0].mxu0 %v177_v58  ;;  %729 = vmatmul.mubr.f32.vlgmr.msra.gmra.mrb[0].mxu1 %v257_v59  ;;  %v545_v58 = vld [vmem:[%s3559_s1 + $0x180] sm:$0xff]  ;;  %v546_v59 = vld [vmem:[%s3559_s1 + $0x188] sm:$0xff] }
  0x50   : > { %2193 = vmatpush1.bf16.msra.mxu0 %v2192_v60  ;;  %2242 = vmatpush3.bf16.msra.mxu1 %v2239_v55  ;;  %v292_v55 = vld [vmem:[%s2522_s30 + $0x398] sm:$0xff]  ;;  %v298_v60 = vld [vmem:[%s2522_s30 + $0x3c8] sm:$0xff] }
  0x51   : > { %653 = vmatprep.mubr.f32.mxu0 %v183_v63  ;;  %733 = vmatprep.mubr.f32.mxu1 %v263_v0  ;;  %v217_v63 = vld [vmem:[%s2522_s30 + $0x140] sm:$0xff] }
  0x52   : > { %2194 = vmatprep.subr.bf16.mxu0 %v2465_v3  ;;  %2244 = vmatprep.subr.bf16.mxu1 %v2243_v1  ;;  %v297_v0 = vld [vmem:[%s2522_s30 + $0x3c0] sm:$0xff] }
  0x53   : > { %654 = vmatmul.mubr.f32.gmra.mrb[2].mxu0 %v182_v2  ;;  %734 = vmatmul.mubr.f32.gmra.mrb[2].mxu1 %v262_v4  ;;  %v223_v2 = vld [vmem:[%s2522_s30 + $0x170] sm:$0xff] }
  0x54   : > { %2196 = vmatpush1.bf16.msra.mxu0 %v2195_v5  ;;  %658 = vmatprep.mubr.f32.mxu0 %v188_v6  ;;  %v547_v4 = vld [vmem:[%s3559_s1 + $0x190] sm:$0xff]  ;;  %v548_v5 = vld [vmem:[%s3559_s1 + $0x198] sm:$0xff] }
  0x55   : > { %738 = vmatprep.mubr.f32.mxu1 %v268_v9  ;;  %2197 = vmatprep.subr.bf16.mxu0 %v2465_v3  ;;  %v303_v6 = vld [vmem:[%s2522_s30 + $0x3f0] sm:$0xff]  ;;  %v302_v9 = vld [vmem:[%s2522_s30 + $0x3e8] sm:$0xff]  ;;  %v2219_v10 = vpack.c.bf16 %v548_v5, %v547_v4 }
  0x56   : > { %2246 = vmatpush3.bf16.msra.mxu1 %v2243_v1  ;;  %v2216_v1 = vpack.c.bf16 %v546_v59, %v545_v58  ;;  %v338_v59 = vld [vmem:[%s2522_s30 + $0x508] sm:$0xff]  ;;  %v347_v5 = vld [vmem:[%s2522_s30 + $0x550] sm:$0xff] }
  0x57   : > { %659 = vmatmul.mubr.f32.gmra.mrb[4].mxu0 %v187_v12  ;;  %739 = vmatmul.mubr.f32.gmra.mrb[4].mxu1 %v267_v13  ;;  %v549_v12 = vld [vmem:[%s3559_s1 + $0x1a0] sm:$0xff]  ;;  %v550_v13 = vld [vmem:[%s3559_s1 + $0x1a8] sm:$0xff] }
  0x58   : > { %2199 = vmatpush1.bf16.msra.mxu0 %v2198_v14  ;;  %663 = vmatprep.mubr.f32.mxu0 %v193_v15  ;;  %v308_v14 = vld [vmem:[%s2522_s30 + $0x418] sm:$0xff]  ;;  %v573_v15 = vld [vmem:[%s3559_s1 + $0x260] sm:$0xff]  ;;  %v190_v4 = vld [vmem:[%s2522_s30 + $0x68] sm:$0xff] }
  0x59   : > { %743 = vmatprep.mubr.f32.mxu1 %v273_v18  ;;  %2200 = vmatprep.subr.bf16.mxu0 %v2465_v3  ;;  %v307_v18 = vld [vmem:[%s2522_s30 + $0x410] sm:$0xff]  ;;  %v2263_v24 = vpack.c.bf16 %v574_v16, %v573_v15  ;;  %v205_v16 = vld [vmem:[%s2522_s30 + $0xe0] sm:$0xff] }
  0x5a   : > { %2248 = vmatprep.subr.bf16.mxu1 %v2247_v19  ;;  %v363_v15 = vld [vmem:[%s2522_s30 + $0x5d0] sm:$0xff] }
  0x5b   : > { %664 = vmatmul.mubr.f32.gmra.mrb[6].mxu0 %v192_v20  ;;  %744 = vmatmul.mubr.f32.gmra.mrb[6].mxu1 %v272_v21  ;;  %v233_v20 = vld [vmem:[%s2522_s30 + $0x1c0] sm:$0xff]  ;;  %v551_v21 = vld [vmem:[%s3559_s1 + $0x1b0] sm:$0xff] }
  0x5c   : > { %2202 = vmatpush1.bf16.msra.mxu0 %v2201_v22  ;;  %668 = vmatprep.mubr.f32.mxu0 %v198_v23  ;;  %v552_v22 = vld [vmem:[%s3559_s1 + $0x1b8] sm:$0xff]  ;;  %v313_v23 = vld [vmem:[%s2522_s30 + $0x440] sm:$0xff] }
  0x5d   : > { %748 = vmatprep.mubr.f32.mxu1 %v278_v26  ;;  %2203 = vmatprep.subr.bf16.mxu0 %v2465_v3  ;;  %v312_v26 = vld [vmem:[%s2522_s30 + $0x438] sm:$0xff]  ;;  %v2225_v27 = vpack.c.bf16 %v552_v22, %v551_v21  ;;  %v367_v21 = vld [vmem:[%s2522_s30 + $0x5f0] sm:$0xff]  ;;  %v209_v22 = vld [vmem:[%s2522_s30 + $0x100] sm:$0xff] }
  0x5e   : > { %2250 = vmatpush3.bf16.msra.mxu1 %v2247_v19  ;;  %v2222_v19 = vpack.c.bf16 %v550_v13, %v549_v12  ;;  %v200_v12 = vld [vmem:[%s2522_s30 + $0xb8] sm:$0xff]  ;;  %v357_v13 = vld [vmem:[%s2522_s30 + $0x5a0] sm:$0xff] }
  0x5f   : > { %669 = vmatmul.mubr.f32.gmra.mrb[8].mxu0 %v197_v29  ;;  %749 = vmatmul.mubr.f32.gmra.mrb[8].mxu1 %v277_v30  ;;  %v553_v29 = vld [vmem:[%s3559_s1 + $0x1c0] sm:$0xff]  ;;  %v554_v30 = vld [vmem:[%s3559_s1 + $0x1c8] sm:$0xff] }
  0x60   : > { %2205 = vmatpush1.bf16.msra.mxu0 %v2204_v31  ;;  %673 = vmatprep.mubr.f32.mxu0 %v203_v32  ;;  %v318_v31 = vld [vmem:[%s2522_s30 + $0x468] sm:$0xff]  ;;  %v575_v32 = vld [vmem:[%s3559_s1 + $0x270] sm:$0xff] }
  0x61   : > { %753 = vmatprep.mubr.f32.mxu1 %v283_v35  ;;  %2206 = vmatprep.subr.bf16.mxu0 %v2465_v3  ;;  %v317_v35 = vld [vmem:[%s2522_s30 + $0x460] sm:$0xff]  ;;  %v2267_v41 = vpack.c.bf16 %v576_v33, %v575_v32  ;;  %v382_v33 = vld [vmem:[%s2522_s30 + $0x668] sm:$0xff] }
  0x62   : > { %2252 = vmatprep.subr.bf16.mxu1 %v2251_v36  ;;  %v225_v32 = vld [vmem:[%s2522_s30 + $0x180] sm:$0xff] }
  0x63   : > { %674 = vmatmul.mubr.f32.gmra.mrb[10].mxu0 %v202_v37  ;;  %754 = vmatmul.mubr.f32.gmra.mrb[10].mxu1 %v282_v38  ;;  %v243_v37 = vld [vmem:[%s2522_s30 + $0x210] sm:$0xff] }
  0x64   : > { %2208 = vmatpush1.bf16.msra.mxu0 %v2207_v39  ;;  %678 = vmatprep.mubr.f32.mxu0 %v208_v40  ;;  %v555_v38 = vld [vmem:[%s3559_s1 + $0x1d0] sm:$0xff]  ;;  %v556_v39 = vld [vmem:[%s3559_s1 + $0x1d8] sm:$0xff] }
  0x65   : > { %758 = vmatprep.mubr.f32.mxu1 %v288_v43  ;;  %2209 = vmatprep.subr.bf16.mxu0 %v2465_v3  ;;  %v323_v40 = vld [vmem:[%s2522_s30 + $0x490] sm:$0xff]  ;;  %v322_v43 = vld [vmem:[%s2522_s30 + $0x488] sm:$0xff]  ;;  %v2231_v44 = vpack.c.bf16 %v556_v39, %v555_v38  ;;  %v229_v38 = vld [vmem:[%s2522_s30 + $0x1a0] sm:$0xff] }
  0x66   : > { %2254 = vmatpush3.bf16.msra.mxu1 %v2251_v36  ;;  %v2228_v36 = vpack.c.bf16 %v554_v30, %v553_v29  ;;  %v377_v29 = vld [vmem:[%s2522_s30 + $0x640] sm:$0xff]  ;;  %v219_v30 = vld [vmem:[%s2522_s30 + $0x150] sm:$0xff] }
  0x67   : > { %679 = vmatmul.mubr.f32.gmra.mrb[12].mxu0 %v207_v46  ;;  %759 = vmatmul.mubr.f32.gmra.mrb[12].mxu1 %v287_v47  ;;  %v557_v46 = vld [vmem:[%s3559_s1 + $0x1e0] sm:$0xff]  ;;  %v558_v47 = vld [vmem:[%s3559_s1 + $0x1e8] sm:$0xff] }
  0x68   : > { %2211 = vmatpush1.bf16.msra.mxu0 %v2210_v48  ;;  %683 = vmatprep.mubr.f32.mxu0 %v213_v49  ;;  %v328_v48 = vld [vmem:[%s2522_s30 + $0x4b8] sm:$0xff]  ;;  %v247_v49 = vld [vmem:[%s2522_s30 + $0x230] sm:$0xff]  ;;  %v2234_v51 = vpack.c.bf16 %v558_v47, %v557_v46  ;;  %v393_v39 = vld [vmem:[%s2522_s30 + $0x6c0] sm:$0xff] }
  0x69   : > { %763 = vmatprep.mubr.f32.mxu1 %v293_v52  ;;  %2212 = vmatprep.subr.bf16.mxu0 %v2465_v3  ;;  %v253_v52 = vld [vmem:[%s2522_s30 + $0x260] sm:$0xff]  ;;  %v239_v46 = vld [vmem:[%s2522_s30 + $0x1f0] sm:$0xff] }
  0x6a   : > { %2256 = vmatprep.subr.bf16.mxu1 %v2255_v53  ;;  %v403_v47 = vld [vmem:[%s2522_s30 + $0x710] sm:$0xff] }
  0x6b   : > { %684 = vmatmul.mubr.f32.gmra.mrb[14].mxu0 %v212_v54  ;;  %764 = vmatmul.mubr.f32.gmra.mrb[14].mxu1 %v292_v55  ;;  %v560_v54 = vld [vmem:[%s3559_s1 + $0x1f8] sm:$0xff]  ;;  %v333_v55 = vld [vmem:[%s2522_s30 + $0x4e0] sm:$0xff] }
  0x6c   : > { %2214 = vmatpush1.bf16.msra.mxu0 %v2213_v56  ;;  %688 = vmatprep.mubr.f32.mxu0 %v218_v57  ;;  %v252_v56 = vld [vmem:[%s2522_s30 + $0x258] sm:$0xff] }
  0x6d   : > { %768 = vmatprep.mubr.f32.mxu1 %v298_v60  ;;  %2215 = vmatprep.subr.bf16.mxu0 %v2465_v3  ;;  %v332_v57 = vld [vmem:[%s2522_s30 + $0x4d8] sm:$0xff] }
  0x6e   : > { %2258 = vmatpush3.bf16.msra.mxu1 %v2255_v53  ;;  %v559_v53 = vld [vmem:[%s3559_s1 + $0x1f0] sm:$0xff]  ;;  %v180_v60 = vld [vmem:[%s2522_s30 + $0x18] sm:$0xff] }
  0x6f   : > { %689 = vmatmul.mubr.f32.gmra.mrb[16].mxu0 %v217_v63  ;;  %769 = vmatmul.mubr.f32.gmra.mrb[16].mxu1 %v297_v0  ;;  %v2237_v58 = vpack.c.bf16 %v560_v54, %v559_v53  ;;  %v343_v63 = vld [vmem:[%s2522_s30 + $0x530] sm:$0xff]  ;;  %v185_v0 = vld [vmem:[%s2522_s30 + $0x40] sm:$0xff] }
  0x70   : > { %2217 = vmatpush1.bf16.msra.mxu0 %v2216_v1  ;;  %693 = vmatprep.mubr.f32.mxu0 %v223_v2  ;;  %v184_v1 = vld [vmem:[%s2522_s30 + $0x38] sm:$0xff]  ;;  %v407_v53 = vld [vmem:[%s2522_s30 + $0x730] sm:$0xff]  ;;  %v249_v54 = vld [vmem:[%s2522_s30 + $0x240] sm:$0xff] }
  0x71   : > { %773 = vmatprep.mubr.f32.mxu1 %v303_v6  ;;  %2218 = vmatprep.subr.bf16.mxu0 %v2465_v3  ;;  %v348_v2 = vld [vmem:[%s2522_s30 + $0x558] sm:$0xff]  ;;  %v189_v6 = vld [vmem:[%s2522_s30 + $0x60] sm:$0xff] }
  0x72   : > { %2260 = vmatprep.subr.bf16.mxu1 %v2259_v7 }
  0x73   : > { %694 = vmatmul.mubr.f32.gmra.mrb[18].mxu0 %v222_v8  ;;  %774 = vmatmul.mubr.f32.gmra.mrb[18].mxu1 %v302_v9  ;;  %v195_v8 = vld [vmem:[%s2522_s30 + $0x90] sm:$0xff]  ;;  %v352_v9 = vld [vmem:[%s2522_s30 + $0x578] sm:$0xff] }
  0x74   : > { %2220 = vmatpush1.bf16.msra.mxu0 %v2219_v10  ;;  %698 = vmatprep.mubr.f32.mxu0 %v228_v11  ;;  %v194_v10 = vld [vmem:[%s2522_s30 + $0x88] sm:$0xff] }
  0x75   : > { %778 = vmatprep.mubr.f32.mxu1 %v308_v14  ;;  %2221 = vmatprep.subr.bf16.mxu0 %v2465_v3  ;;  %v358_v11 = vld [vmem:[%s2522_s30 + $0x5a8] sm:$0xff]  ;;  %v199_v14 = vld [vmem:[%s2522_s30 + $0xb0] sm:$0xff] }
  0x76   : > { %2262 = vmatpush3.bf16.msra.mxu1 %v2259_v7  ;;  %v353_v7 = vld [vmem:[%s2522_s30 + $0x580] sm:$0xff] }
  0x77   : > { %699 = vmatmul.mubr.f32.gmra.mrb[20].mxu0 %v227_v17  ;;  %779 = vmatmul.mubr.f32.gmra.mrb[20].mxu1 %v307_v18  ;;  %v362_v17 = vld [vmem:[%s2522_s30 + $0x5c8] sm:$0xff]  ;;  %v204_v18 = vld [vmem:[%s2522_s30 + $0xd8] sm:$0xff] }
  0x78   : > { %2223 = vmatpush1.bf16.msra.mxu0 %v2222_v19  ;;  %703 = vmatprep.mubr.f32.mxu0 %v233_v20  ;;  %v368_v19 = vld [vmem:[%s2522_s30 + $0x5f8] sm:$0xff]  ;;  %v210_v20 = vld [vmem:[%s2522_s30 + $0x108] sm:$0xff] }
  0x79   : > { %783 = vmatprep.mubr.f32.mxu1 %v313_v23  ;;  %2224 = vmatprep.subr.bf16.mxu0 %v2465_v3  ;;  %v373_v23 = vld [vmem:[%s2522_s30 + $0x620] sm:$0xff] }
  0x7a   : > { %2264 = vmatprep.subr.bf16.mxu1 %v2263_v24 }
  0x7b   : > { %704 = vmatmul.mubr.f32.gmra.mrb[22].mxu0 %v232_v25  ;;  %784 = vmatmul.mubr.f32.gmra.mrb[22].mxu1 %v312_v26  ;;  %v372_v25 = vld [vmem:[%s2522_s30 + $0x618] sm:$0xff]  ;;  %v214_v26 = vld [vmem:[%s2522_s30 + $0x128] sm:$0xff] }
  0x7c   : > { %2226 = vmatpush1.bf16.msra.mxu0 %v2225_v27  ;;  %708 = vmatprep.mubr.f32.mxu0 %v238_v28  ;;  %v378_v27 = vld [vmem:[%s2522_s30 + $0x648] sm:$0xff]  ;;  %v220_v28 = vld [vmem:[%s2522_s30 + $0x158] sm:$0xff] }
  0x7d   : > { %788 = vmatprep.mubr.f32.mxu1 %v318_v31  ;;  %2227 = vmatprep.subr.bf16.mxu0 %v2465_v3  ;;  %v383_v31 = vld [vmem:[%s2522_s30 + $0x670] sm:$0xff] }
  0x7e   : > { %2266 = vmatpush3.bf16.msra.mxu1 %v2263_v24  ;;  %v215_v24 = vld [vmem:[%s2522_s30 + $0x130] sm:$0xff] }
  0x7f   : > { %709 = vmatmul.mubr.f32.gmra.mrb[24].mxu0 %v237_v34  ;;  %789 = vmatmul.mubr.f32.gmra.mrb[24].mxu1 %v317_v35  ;;  %v224_v34 = vld [vmem:[%s2522_s30 + $0x178] sm:$0xff] }
  0x80   : > { %2229 = vmatpush1.bf16.msra.mxu0 %v2228_v36  ;;  %713 = vmatprep.mubr.f32.mxu0 %v243_v37  ;;  %v388_v35 = vld [vmem:[%s2522_s30 + $0x698] sm:$0xff]  ;;  %v230_v36 = vld [vmem:[%s2522_s30 + $0x1a8] sm:$0xff]  ;;  %v387_v37 = vld [vmem:[%s2522_s30 + $0x690] sm:$0xff] }
  0x81   : > { %793 = vmatprep.mubr.f32.mxu1 %v323_v40  ;;  %2230 = vmatprep.subr.bf16.mxu0 %v2465_v3  ;;  %v235_v40 = vld [vmem:[%s2522_s30 + $0x1d0] sm:$0xff] }
  0x82   : > { %2268 = vmatprep.subr.bf16.mxu1 %v2267_v41 }
  0x83   : > { %714 = vmatmul.mubr.f32.gmra.mrb[26].mxu0 %v242_v42  ;;  %794 = vmatmul.mubr.f32.gmra.mrb[26].mxu1 %v322_v43  ;;  %v234_v42 = vld [vmem:[%s2522_s30 + $0x1c8] sm:$0xff] }
  0x84   : > { %2232 = vmatpush1.bf16.msra.mxu0 %v2231_v44  ;;  %718 = vmatprep.mubr.f32.mxu0 %v248_v45  ;;  %v398_v43 = vld [vmem:[%s2522_s30 + $0x6e8] sm:$0xff]  ;;  %v240_v44 = vld [vmem:[%s2522_s30 + $0x1f8] sm:$0xff]  ;;  %v397_v45 = vld [vmem:[%s2522_s30 + $0x6e0] sm:$0xff] }
  0x85   : > { %798 = vmatprep.mubr.f32.mxu1 %v328_v48  ;;  %2233 = vmatprep.subr.bf16.mxu0 %v2465_v3  ;;  %v245_v48 = vld [vmem:[%s2522_s30 + $0x220] sm:$0xff] }
  0x86   : > { %2270 = vmatpush3.bf16.msra.mxu1 %v2267_v41  ;;  %v392_v41 = vld [vmem:[%s2522_s30 + $0x6b8] sm:$0xff] }
  0x87   : > { %719 = vmatmul.mubr.f32.gmra.mrb[28].mxu0 %v247_v49  ;;  %799 = vmatmul.mubr.f32.gmra.mrb[28].mxu1 %v327_v50  ;;  %v402_v49 = vld [vmem:[%s2522_s30 + $0x708] sm:$0xff]  ;;  %v244_v50 = vld [vmem:[%s2522_s30 + $0x218] sm:$0xff] }
  0x88   : > { %2235 = vmatpush1.bf16.msra.mxu0 %v2234_v51  ;;  %723 = vmatprep.mubr.f32.mxu0 %v253_v52  ;;  %v408_v51 = vld [vmem:[%s2522_s30 + $0x738] sm:$0xff]  ;;  %v250_v52 = vld [vmem:[%s2522_s30 + $0x248] sm:$0xff] }
  0x89   : > { %803 = vmatprep.mubr.f32.mxu1 %v333_v55  ;;  %2236 = vmatprep.subr.bf16.mxu0 %v2465_v3  ;;  %v342_v3 = vld [vmem:[%s2522_s30 + $0x528] sm:$0xff]  ;;  %v413_v55 = vld [vmem:[%s2522_s30 + $0x760] sm:$0xff] }
  0x8b   : > { %724 = vmatmul.mubr.f32.gmra.mrb[30].mxu0 %v252_v56  ;;  %804 = vmatmul.mubr.f32.gmra.mrb[30].mxu1 %v332_v57  ;;  %v255_v56 = vld [vmem:[%s2522_s30 + $0x270] sm:$0xff]  ;;  %v412_v57 = vld [vmem:[%s2522_s30 + $0x758] sm:$0xff] }
  0x8c   : > { %2238 = vmatpush1.bf16.msra.mxu0 %v2237_v58  ;;  %808 = vmatprep.mubr.f32.mxu1 %v338_v59  ;;  %v254_v58 = vld [vmem:[%s2522_s30 + $0x268] sm:$0xff] }
  0x8d   : > { %1033 = vmatprep.mubr.f32.mxu0 %v180_v60  ;;  %v418_v59 = vld [vmem:[%s2522_s30 + $0x788] sm:$0xff]  ;;  %v260_v60 = vld [vmem:[%s2522_s30 + $0x298] sm:$0xff] }
  0x8f   : > { %809 = vmatmul.mubr.f32.gmra.mrb[32].mxu1 %v337_v61  ;;  %1034 = vmatmul.mubr.f32.vlgmr.msra.gmra.mrb[0].mxu0 %v179_v62  ;;  %v417_v61 = vld [vmem:[%s2522_s30 + $0x780] sm:$0xff]  ;;  %v259_v62 = vld [vmem:[%s2522_s30 + $0x290] sm:$0xff] }
  0x90   : > { %813 = vmatprep.mubr.f32.mxu1 %v343_v63  ;;  %1038 = vmatprep.mubr.f32.mxu0 %v185_v0  ;;  %v423_v63 = vld [vmem:[%s2522_s30 + $0x7b0] sm:$0xff]  ;;  %v265_v0 = vld [vmem:[%s2522_s30 + $0x2c0] sm:$0xff] }
  0x93   : > { %814 = vmatmul.mubr.f32.gmra.mrb[34].mxu1 %v342_v3  ;;  %1039 = vmatmul.mubr.f32.gmra.mrb[2].mxu0 %v184_v1  ;;  %v422_v3 = vld [vmem:[%s2522_s30 + $0x7a8] sm:$0xff]  ;;  %v264_v1 = vld [vmem:[%s2522_s30 + $0x2b8] sm:$0xff] }
  0x94   : > { %818 = vmatprep.mubr.f32.mxu1 %v348_v2  ;;  %1043 = vmatprep.mubr.f32.mxu0 %v190_v4  ;;  %v428_v2 = vld [vmem:[%s2522_s30 + $0x7d8] sm:$0xff]  ;;  %v270_v4 = vld [vmem:[%s2522_s30 + $0x2e8] sm:$0xff] }
  0x97   : > { %819 = vmatmul.mubr.f32.gmra.mrb[36].mxu1 %v347_v5  ;;  %1044 = vmatmul.mubr.f32.gmra.mrb[4].mxu0 %v189_v6  ;;  %v427_v5 = vld [vmem:[%s2522_s30 + $0x7d0] sm:$0xff]  ;;  %v269_v6 = vld [vmem:[%s2522_s30 + $0x2e0] sm:$0xff] }
  0x98   : > { %823 = vmatprep.mubr.f32.mxu1 %v353_v7  ;;  %1048 = vmatprep.mubr.f32.mxu0 %v195_v8  ;;  %v433_v7 = vld [vmem:[%s2522_s30 + $0x800] sm:$0xff]  ;;  %v275_v8 = vld [vmem:[%s2522_s30 + $0x310] sm:$0xff] }
  0x9b   : > { %824 = vmatmul.mubr.f32.gmra.mrb[38].mxu1 %v352_v9  ;;  %1049 = vmatmul.mubr.f32.gmra.mrb[6].mxu0 %v194_v10  ;;  %v432_v9 = vld [vmem:[%s2522_s30 + $0x7f8] sm:$0xff]  ;;  %v274_v10 = vld [vmem:[%s2522_s30 + $0x308] sm:$0xff] }
  0x9c   : > { %828 = vmatprep.mubr.f32.mxu1 %v358_v11  ;;  %1053 = vmatprep.mubr.f32.mxu0 %v200_v12  ;;  %v438_v11 = vld [vmem:[%s2522_s30 + $0x828] sm:$0xff]  ;;  %v280_v12 = vld [vmem:[%s2522_s30 + $0x338] sm:$0xff] }
  0x9f   : > { %829 = vmatmul.mubr.f32.gmra.mrb[40].mxu1 %v357_v13  ;;  %1054 = vmatmul.mubr.f32.gmra.mrb[8].mxu0 %v199_v14  ;;  %v437_v13 = vld [vmem:[%s2522_s30 + $0x820] sm:$0xff]  ;;  %v279_v14 = vld [vmem:[%s2522_s30 + $0x330] sm:$0xff] }
  0xa0   : > { %833 = vmatprep.mubr.f32.mxu1 %v363_v15  ;;  %1058 = vmatprep.mubr.f32.mxu0 %v205_v16  ;;  %v443_v15 = vld [vmem:[%s2522_s30 + $0x850] sm:$0xff]  ;;  %v285_v16 = vld [vmem:[%s2522_s30 + $0x360] sm:$0xff] }
  0xa3   : > { %834 = vmatmul.mubr.f32.gmra.mrb[42].mxu1 %v362_v17  ;;  %1059 = vmatmul.mubr.f32.gmra.mrb[10].mxu0 %v204_v18  ;;  %v442_v17 = vld [vmem:[%s2522_s30 + $0x848] sm:$0xff]  ;;  %v284_v18 = vld [vmem:[%s2522_s30 + $0x358] sm:$0xff] }
  0xa4   : > { %838 = vmatprep.mubr.f32.mxu1 %v368_v19  ;;  %1063 = vmatprep.mubr.f32.mxu0 %v210_v20  ;;  %v448_v19 = vld [vmem:[%s2522_s30 + $0x878] sm:$0xff]  ;;  %v290_v20 = vld [vmem:[%s2522_s30 + $0x388] sm:$0xff] }
  0xa7   : > { %839 = vmatmul.mubr.f32.gmra.mrb[44].mxu1 %v367_v21  ;;  %1064 = vmatmul.mubr.f32.gmra.mrb[12].mxu0 %v209_v22  ;;  %v447_v21 = vld [vmem:[%s2522_s30 + $0x870] sm:$0xff]  ;;  %v289_v22 = vld [vmem:[%s2522_s30 + $0x380] sm:$0xff] }
  0xa8   : > { %843 = vmatprep.mubr.f32.mxu1 %v373_v23  ;;  %1068 = vmatprep.mubr.f32.mxu0 %v215_v24  ;;  %v453_v23 = vld [vmem:[%s2522_s30 + $0x8a0] sm:$0xff]  ;;  %v295_v24 = vld [vmem:[%s2522_s30 + $0x3b0] sm:$0xff] }
  0xab   : > { %844 = vmatmul.mubr.f32.gmra.mrb[46].mxu1 %v372_v25  ;;  %1069 = vmatmul.mubr.f32.gmra.mrb[14].mxu0 %v214_v26  ;;  %v452_v25 = vld [vmem:[%s2522_s30 + $0x898] sm:$0xff]  ;;  %v294_v26 = vld [vmem:[%s2522_s30 + $0x3a8] sm:$0xff] }
  0xac   : > { %848 = vmatprep.mubr.f32.mxu1 %v378_v27  ;;  %1073 = vmatprep.mubr.f32.mxu0 %v220_v28  ;;  %v458_v27 = vld [vmem:[%s2522_s30 + $0x8c8] sm:$0xff]  ;;  %v300_v28 = vld [vmem:[%s2522_s30 + $0x3d8] sm:$0xff] }
  0xaf   : > { %849 = vmatmul.mubr.f32.gmra.mrb[48].mxu1 %v377_v29  ;;  %1074 = vmatmul.mubr.f32.gmra.mrb[16].mxu0 %v219_v30  ;;  %v457_v29 = vld [vmem:[%s2522_s30 + $0x8c0] sm:$0xff]  ;;  %v299_v30 = vld [vmem:[%s2522_s30 + $0x3d0] sm:$0xff] }
  0xb0   : > { %853 = vmatprep.mubr.f32.mxu1 %v383_v31  ;;  %1078 = vmatprep.mubr.f32.mxu0 %v225_v32  ;;  %v463_v31 = vld [vmem:[%s2522_s30 + $0x8f0] sm:$0xff]  ;;  %v305_v32 = vld [vmem:[%s2522_s30 + $0x400] sm:$0xff] }
  0xb3   : > { %854 = vmatmul.mubr.f32.gmra.mrb[50].mxu1 %v382_v33  ;;  %1079 = vmatmul.mubr.f32.gmra.mrb[18].mxu0 %v224_v34  ;;  %v462_v33 = vld [vmem:[%s2522_s30 + $0x8e8] sm:$0xff]  ;;  %v304_v34 = vld [vmem:[%s2522_s30 + $0x3f8] sm:$0xff] }
  0xb4   : > { %858 = vmatprep.mubr.f32.mxu1 %v388_v35  ;;  %1083 = vmatprep.mubr.f32.mxu0 %v230_v36  ;;  %v468_v35 = vld [vmem:[%s2522_s30 + $0x918] sm:$0xff]  ;;  %v310_v36 = vld [vmem:[%s2522_s30 + $0x428] sm:$0xff] }
  0xb7   : > { %859 = vmatmul.mubr.f32.gmra.mrb[52].mxu1 %v387_v37  ;;  %1084 = vmatmul.mubr.f32.gmra.mrb[20].mxu0 %v229_v38  ;;  %v467_v37 = vld [vmem:[%s2522_s30 + $0x910] sm:$0xff]  ;;  %v309_v38 = vld [vmem:[%s2522_s30 + $0x420] sm:$0xff] }
  0xb8   : > { %863 = vmatprep.mubr.f32.mxu1 %v393_v39  ;;  %1088 = vmatprep.mubr.f32.mxu0 %v235_v40  ;;  %v473_v39 = vld [vmem:[%s2522_s30 + $0x940] sm:$0xff]  ;;  %v315_v40 = vld [vmem:[%s2522_s30 + $0x450] sm:$0xff] }
  0xbb   : > { %864 = vmatmul.mubr.f32.gmra.mrb[54].mxu1 %v392_v41  ;;  %1089 = vmatmul.mubr.f32.gmra.mrb[22].mxu0 %v234_v42  ;;  %v472_v41 = vld [vmem:[%s2522_s30 + $0x938] sm:$0xff]  ;;  %v314_v42 = vld [vmem:[%s2522_s30 + $0x448] sm:$0xff] }
  0xbc   : > { %868 = vmatprep.mubr.f32.mxu1 %v398_v43  ;;  %1093 = vmatprep.mubr.f32.mxu0 %v240_v44  ;;  %v478_v43 = vld [vmem:[%s2522_s30 + $0x968] sm:$0xff]  ;;  %v320_v44 = vld [vmem:[%s2522_s30 + $0x478] sm:$0xff] }
  0xbf   : > { %869 = vmatmul.mubr.f32.gmra.mrb[56].mxu1 %v397_v45  ;;  %1094 = vmatmul.mubr.f32.gmra.mrb[24].mxu0 %v239_v46  ;;  %v477_v45 = vld [vmem:[%s2522_s30 + $0x960] sm:$0xff]  ;;  %v319_v46 = vld [vmem:[%s2522_s30 + $0x470] sm:$0xff] }
  0xc0   : > { %873 = vmatprep.mubr.f32.mxu1 %v403_v47  ;;  %1098 = vmatprep.mubr.f32.mxu0 %v245_v48  ;;  %v483_v47 = vld [vmem:[%s2522_s30 + $0x990] sm:$0xff]  ;;  %v325_v48 = vld [vmem:[%s2522_s30 + $0x4a0] sm:$0xff] }
  0xc3   : > { %874 = vmatmul.mubr.f32.gmra.mrb[58].mxu1 %v402_v49  ;;  %1099 = vmatmul.mubr.f32.gmra.mrb[26].mxu0 %v244_v50  ;;  %v482_v49 = vld [vmem:[%s2522_s30 + $0x988] sm:$0xff]  ;;  %v324_v50 = vld [vmem:[%s2522_s30 + $0x498] sm:$0xff] }
  0xc4   : > { %878 = vmatprep.mubr.f32.mxu1 %v408_v51  ;;  %1103 = vmatprep.mubr.f32.mxu0 %v250_v52  ;;  %v488_v51 = vld [vmem:[%s2522_s30 + $0x9b8] sm:$0xff]  ;;  %v330_v52 = vld [vmem:[%s2522_s30 + $0x4c8] sm:$0xff] }
  0xc7   : > { %879 = vmatmul.mubr.f32.gmra.mrb[60].mxu1 %v407_v53  ;;  %1104 = vmatmul.mubr.f32.gmra.mrb[28].mxu0 %v249_v54  ;;  %v487_v53 = vld [vmem:[%s2522_s30 + $0x9b0] sm:$0xff]  ;;  %v329_v54 = vld [vmem:[%s2522_s30 + $0x4c0] sm:$0xff] }
  0xc8   : > { %883 = vmatprep.mubr.f32.mxu1 %v413_v55  ;;  %1108 = vmatprep.mubr.f32.mxu0 %v255_v56  ;;  %v493_v55 = vld [vmem:[%s2522_s30 + $0x9e0] sm:$0xff]  ;;  %v335_v56 = vld [vmem:[%s2522_s30 + $0x4f0] sm:$0xff] }
  0xcb   : > { %884 = vmatmul.mubr.f32.gmra.mrb[62].mxu1 %v412_v57  ;;  %1109 = vmatmul.mubr.f32.gmra.mrb[30].mxu0 %v254_v58  ;;  %v492_v57 = vld [vmem:[%s2522_s30 + $0x9d8] sm:$0xff]  ;;  %v334_v58 = vld [vmem:[%s2522_s30 + $0x4e8] sm:$0xff] }
  0xcc   : > { %888 = vmatprep.mubr.f32.mxu1 %v418_v59  ;;  %1113 = vmatprep.mubr.f32.mxu0 %v260_v60  ;;  %v340_v59 = vld [vmem:[%s2522_s30 + $0x518] sm:$0xff]  ;;  %v181_v60 = vld [vmem:[%s2522_s30 + $0x20] sm:$0xff] }
  0xcf   : > { %889 = vmatmul.mubr.f32.gmra.mrb[64].mxu1 %v417_v61  ;;  %1114 = vmatmul.mubr.f32.gmra.mrb[32].mxu0 %v259_v62  ;;  %v339_v61 = vld [vmem:[%s2522_s30 + $0x510] sm:$0xff]  ;;  %v186_v62 = vld [vmem:[%s2522_s30 + $0x48] sm:$0xff] }
  0xd0   : > { %893 = vmatprep.mubr.f32.mxu1 %v423_v63  ;;  %1118 = vmatprep.mubr.f32.mxu0 %v265_v0  ;;  %v345_v63 = vld [vmem:[%s2522_s30 + $0x540] sm:$0xff]  ;;  %v191_v0 = vld [vmem:[%s2522_s30 + $0x70] sm:$0xff] }
  0xd3   : > { %894 = vmatmul.mubr.f32.gmra.mrb[66].mxu1 %v422_v3  ;;  %1119 = vmatmul.mubr.f32.gmra.mrb[34].mxu0 %v264_v1  ;;  %v344_v3 = vld [vmem:[%s2522_s30 + $0x538] sm:$0xff] }
  0xd4   : > { %898 = vmatprep.mubr.f32.mxu1 %v428_v2  ;;  %1123 = vmatprep.mubr.f32.mxu0 %v270_v4  ;;  %v196_v1 = vld [vmem:[%s2522_s30 + $0x98] sm:$0xff]  ;;  %v350_v2 = vld [vmem:[%s2522_s30 + $0x568] sm:$0xff]  ;;  %v201_v4 = vld [vmem:[%s2522_s30 + $0xc0] sm:$0xff] }
  0xd7   : > { %899 = vmatmul.mubr.f32.gmra.mrb[68].mxu1 %v427_v5  ;;  %1124 = vmatmul.mubr.f32.gmra.mrb[36].mxu0 %v269_v6  ;;  %v349_v5 = vld [vmem:[%s2522_s30 + $0x560] sm:$0xff]  ;;  %v206_v6 = vld [vmem:[%s2522_s30 + $0xe8] sm:$0xff] }
  0xd8   : > { %903 = vmatprep.mubr.f32.mxu1 %v433_v7  ;;  %1128 = vmatprep.mubr.f32.mxu0 %v275_v8  ;;  %v355_v7 = vld [vmem:[%s2522_s30 + $0x590] sm:$0xff] }
  0xd9   : > { %v211_v8 = vld [vmem:[%s2522_s30 + $0x110] sm:$0xff] }
  0xdb   : > { %904 = vmatmul.mubr.f32.gmra.mrb[70].mxu1 %v432_v9  ;;  %1129 = vmatmul.mubr.f32.gmra.mrb[38].mxu0 %v274_v10  ;;  %v354_v9 = vld [vmem:[%s2522_s30 + $0x588] sm:$0xff]  ;;  %v216_v10 = vld [vmem:[%s2522_s30 + $0x138] sm:$0xff] }
  0xdc   : > { %908 = vmatprep.mubr.f32.mxu1 %v438_v11  ;;  %1133 = vmatprep.mubr.f32.mxu0 %v280_v12  ;;  %v360_v11 = vld [vmem:[%s2522_s30 + $0x5b8] sm:$0xff]  ;;  %v221_v12 = vld [vmem:[%s2522_s30 + $0x160] sm:$0xff] }
  0xdf   : > { %909 = vmatmul.mubr.f32.gmra.mrb[72].mxu1 %v437_v13  ;;  %1134 = vmatmul.mubr.f32.gmra.mrb[40].mxu0 %v279_v14  ;;  %v359_v13 = vld [vmem:[%s2522_s30 + $0x5b0] sm:$0xff]  ;;  %v226_v14 = vld [vmem:[%s2522_s30 + $0x188] sm:$0xff] }
  0xe0   : > { %913 = vmatprep.mubr.f32.mxu1 %v443_v15  ;;  %1138 = vmatprep.mubr.f32.mxu0 %v285_v16  ;;  %v365_v15 = vld [vmem:[%s2522_s30 + $0x5e0] sm:$0xff]  ;;  %v231_v16 = vld [vmem:[%s2522_s30 + $0x1b0] sm:$0xff] }
  0xe3   : > { %914 = vmatmul.mubr.f32.gmra.mrb[74].mxu1 %v442_v17  ;;  %1139 = vmatmul.mubr.f32.gmra.mrb[42].mxu0 %v284_v18  ;;  %v364_v17 = vld [vmem:[%s2522_s30 + $0x5d8] sm:$0xff] }
  0xe4   : > { %918 = vmatprep.mubr.f32.mxu1 %v448_v19  ;;  %1143 = vmatprep.mubr.f32.mxu0 %v290_v20  ;;  %v236_v18 = vld [vmem:[%s2522_s30 + $0x1d8] sm:$0xff]  ;;  %v370_v19 = vld [vmem:[%s2522_s30 + $0x608] sm:$0xff]  ;;  %v241_v20 = vld [vmem:[%s2522_s30 + $0x200] sm:$0xff] }
  0xe7   : > { %919 = vmatmul.mubr.f32.gmra.mrb[76].mxu1 %v447_v21  ;;  %1144 = vmatmul.mubr.f32.gmra.mrb[44].mxu0 %v289_v22 }
  0xe8   : > { %923 = vmatprep.mubr.f32.mxu1 %v453_v23  ;;  %1148 = vmatprep.mubr.f32.mxu0 %v295_v24  ;;  %v369_v23 = vld [vmem:[%s2522_s30 + $0x600] sm:$0xff]  ;;  %v246_v24 = vld [vmem:[%s2522_s30 + $0x228] sm:$0xff] }
  0xeb   : > { %924 = vmatmul.mubr.f32.gmra.mrb[78].mxu1 %v452_v25  ;;  %1149 = vmatmul.mubr.f32.gmra.mrb[46].mxu0 %v294_v26  ;;  %v375_v25 = vld [vmem:[%s2522_s30 + $0x630] sm:$0xff] }
  0xec   : > { %928 = vmatprep.mubr.f32.mxu1 %v458_v27  ;;  %1153 = vmatprep.mubr.f32.mxu0 %v300_v28  ;;  %v251_v26 = vld [vmem:[%s2522_s30 + $0x250] sm:$0xff] }
  0xef   : > { %929 = vmatmul.mubr.f32.gmra.mrb[80].mxu1 %v457_v29  ;;  %1154 = vmatmul.mubr.f32.gmra.mrb[48].mxu0 %v299_v30  ;;  %v374_v29 = vld [vmem:[%s2522_s30 + $0x628] sm:$0xff]  ;;  %v256_v30 = vld [vmem:[%s2522_s30 + $0x278] sm:$0xff] }
  0xf0   : > { %933 = vmatprep.mubr.f32.mxu1 %v463_v31  ;;  %1158 = vmatprep.mubr.f32.mxu0 %v305_v32  ;;  %v380_v31 = vld [vmem:[%s2522_s30 + $0x658] sm:$0xff]  ;;  %v261_v32 = vld [vmem:[%s2522_s30 + $0x2a0] sm:$0xff] }
  0xf3   : > { %934 = vmatmul.mubr.f32.gmra.mrb[82].mxu1 %v462_v33  ;;  %1159 = vmatmul.mubr.f32.gmra.mrb[50].mxu0 %v304_v34 }
  0xf4   : > { %938 = vmatprep.mubr.f32.mxu1 %v468_v35  ;;  %1163 = vmatprep.mubr.f32.mxu0 %v310_v36  ;;  %v379_v35 = vld [vmem:[%s2522_s30 + $0x650] sm:$0xff]  ;;  %v266_v36 = vld [vmem:[%s2522_s30 + $0x2c8] sm:$0xff] }
  0xf7   : > { %939 = vmatmul.mubr.f32.gmra.mrb[84].mxu1 %v467_v37  ;;  %1164 = vmatmul.mubr.f32.gmra.mrb[52].mxu0 %v309_v38  ;;  %v385_v37 = vld [vmem:[%s2522_s30 + $0x680] sm:$0xff]  ;;  %v271_v38 = vld [vmem:[%s2522_s30 + $0x2f0] sm:$0xff] }
  0xf8   : > { %943 = vmatprep.mubr.f32.mxu1 %v473_v39  ;;  %1168 = vmatprep.mubr.f32.mxu0 %v315_v40 }
  0xfb   : > { %944 = vmatmul.mubr.f32.gmra.mrb[86].mxu1 %v472_v41  ;;  %1169 = vmatmul.mubr.f32.gmra.mrb[54].mxu0 %v314_v42  ;;  %v384_v41 = vld [vmem:[%s2522_s30 + $0x678] sm:$0xff] }
  0xfc   : > { %948 = vmatprep.mubr.f32.mxu1 %v478_v43  ;;  %1173 = vmatprep.mubr.f32.mxu0 %v320_v44  ;;  %v276_v42 = vld [vmem:[%s2522_s30 + $0x318] sm:$0xff]  ;;  %v390_v43 = vld [vmem:[%s2522_s30 + $0x6a8] sm:$0xff]  ;;  %v281_v44 = vld [vmem:[%s2522_s30 + $0x340] sm:$0xff] }
  0xff   : > { %949 = vmatmul.mubr.f32.gmra.mrb[88].mxu1 %v477_v45  ;;  %1174 = vmatmul.mubr.f32.gmra.mrb[56].mxu0 %v319_v46 }
 0x100   : > { %953 = vmatprep.mubr.f32.mxu1 %v483_v47  ;;  %1178 = vmatprep.mubr.f32.mxu0 %v325_v48  ;;  %v389_v47 = vld [vmem:[%s2522_s30 + $0x6a0] sm:$0xff]  ;;  %v286_v48 = vld [vmem:[%s2522_s30 + $0x368] sm:$0xff] }
 0x103   : > { %954 = vmatmul.mubr.f32.gmra.mrb[90].mxu1 %v482_v49  ;;  %1179 = vmatmul.mubr.f32.gmra.mrb[58].mxu0 %v324_v50  ;;  %v395_v49 = vld [vmem:[%s2522_s30 + $0x6d0] sm:$0xff] }
 0x104   : > { %958 = vmatprep.mubr.f32.mxu1 %v488_v51  ;;  %1183 = vmatprep.mubr.f32.mxu0 %v330_v52  ;;  %v291_v50 = vld [vmem:[%s2522_s30 + $0x390] sm:$0xff] }
 0x107   : > { %959 = vmatmul.mubr.f32.gmra.mrb[92].mxu1 %v487_v53  ;;  %1184 = vmatmul.mubr.f32.gmra.mrb[60].mxu0 %v329_v54  ;;  %v394_v53 = vld [vmem:[%s2522_s30 + $0x6c8] sm:$0xff]  ;;  %v296_v54 = vld [vmem:[%s2522_s30 + $0x3b8] sm:$0xff] }
 0x108   : > { %963 = vmatprep.mubr.f32.mxu1 %v493_v55  ;;  %1188 = vmatprep.mubr.f32.mxu0 %v335_v56  ;;  %v400_v55 = vld [vmem:[%s2522_s30 + $0x6f8] sm:$0xff]  ;;  %v301_v56 = vld [vmem:[%s2522_s30 + $0x3e0] sm:$0xff] }
 0x10b   : > { %964 = vmatmul.mubr.f32.gmra.mrb[94].mxu1 %v492_v57  ;;  %1189 = vmatmul.mubr.f32.gmra.mrb[62].mxu0 %v334_v58 }
 0x10c   : > { %1193 = vmatprep.mubr.f32.mxu0 %v340_v59  ;;  %2047 = vmatprep.mubr.f32.mxu1 %v181_v60  ;;  %v399_v59 = vld [vmem:[%s2522_s30 + $0x6f0] sm:$0xff]  ;;  %v306_v60 = vld [vmem:[%s2522_s30 + $0x408] sm:$0xff] }
 0x10f   : > { %1194 = vmatmul.mubr.f32.gmra.mrb[64].mxu0 %v339_v61  ;;  %2048 = vmatmul.mubr.f32.vlgmr.msra.gmra.mrb[96].mxu1 %v186_v62  ;;  %v405_v61 = vld [vmem:[%s2522_s30 + $0x720] sm:$0xff]  ;;  %v311_v62 = vld [vmem:[%s2522_s30 + $0x430] sm:$0xff] }
 0x110   : > { %1198 = vmatprep.mubr.f32.mxu0 %v345_v63  ;;  %2050 = vmatprep.mubr.f32.mxu1 %v191_v0 }
 0x113   : > { %1199 = vmatmul.mubr.f32.gmra.mrb[66].mxu0 %v344_v3  ;;  %2051 = vmatmul.mubr.f32.gmra.mrb[98].mxu1 %v196_v1  ;;  %v404_v3 = vld [vmem:[%s2522_s30 + $0x718] sm:$0xff] }
 0x114   : > { %1203 = vmatprep.mubr.f32.mxu0 %v350_v2  ;;  %2053 = vmatprep.mubr.f32.mxu1 %v201_v4  ;;  %v316_v1 = vld [vmem:[%s2522_s30 + $0x458] sm:$0xff]  ;;  %v410_v2 = vld [vmem:[%s2522_s30 + $0x748] sm:$0xff]  ;;  %v321_v4 = vld [vmem:[%s2522_s30 + $0x480] sm:$0xff] }
 0x117   : > { %1204 = vmatmul.mubr.f32.gmra.mrb[68].mxu0 %v349_v5  ;;  %2054 = vmatmul.mubr.f32.gmra.mrb[100].mxu1 %v206_v6 }
 0x118   : > { %1208 = vmatprep.mubr.f32.mxu0 %v355_v7  ;;  %2056 = vmatprep.mubr.f32.mxu1 %v211_v8  ;;  %v409_v7 = vld [vmem:[%s2522_s30 + $0x740] sm:$0xff]  ;;  %v326_v8 = vld [vmem:[%s2522_s30 + $0x4a8] sm:$0xff] }
 0x11b   : > { %1209 = vmatmul.mubr.f32.gmra.mrb[70].mxu0 %v354_v9  ;;  %2057 = vmatmul.mubr.f32.gmra.mrb[102].mxu1 %v216_v10  ;;  %v415_v9 = vld [vmem:[%s2522_s30 + $0x770] sm:$0xff] }
 0x11c   : > { %1213 = vmatprep.mubr.f32.mxu0 %v360_v11  ;;  %2059 = vmatprep.mubr.f32.mxu1 %v221_v12  ;;  %v331_v10 = vld [vmem:[%s2522_s30 + $0x4d0] sm:$0xff] }
 0x11f   : > { %1214 = vmatmul.mubr.f32.gmra.mrb[72].mxu0 %v359_v13  ;;  %2060 = vmatmul.mubr.f32.gmra.mrb[104].mxu1 %v226_v14  ;;  %v414_v13 = vld [vmem:[%s2522_s30 + $0x768] sm:$0xff]  ;;  %v336_v14 = vld [vmem:[%s2522_s30 + $0x4f8] sm:$0xff] }
 0x120   : > { %1218 = vmatprep.mubr.f32.mxu0 %v365_v15  ;;  %2062 = vmatprep.mubr.f32.mxu1 %v231_v16  ;;  %v420_v15 = vld [vmem:[%s2522_s30 + $0x798] sm:$0xff]  ;;  %v341_v16 = vld [vmem:[%s2522_s30 + $0x520] sm:$0xff] }
 0x122   : > { %v3008_v21 = vpop.f32.mrb[0].mxu1 }
 0x123   : > { %1219 = vmatmul.mubr.f32.gmra.mrb[74].mxu0 %v364_v17  ;;  %2063 = vmatmul.mubr.f32.gmra.mrb[106].mxu1 %v236_v18  ;;  %v732_v22 = vpop.f32.mrb[1].mxu1 }
 0x124   : > { %1223 = vmatprep.mubr.f32.mxu0 %v370_v19  ;;  %2065 = vmatprep.mubr.f32.mxu1 %v241_v20  ;;  %v419_v19 = vld [vmem:[%s2522_s30 + $0x790] sm:$0xff]  ;;  %v346_v20 = vld [vmem:[%s2522_s30 + $0x548] sm:$0xff]  ;;  %v425_v22 = vld [vmem:[%s2522_s30 + $0x7c0] sm:$0xff] }
 0x126   : > { %v3014_v27 = vpop.f32.mrb[2].mxu1 }
 0x127   : > { %1224 = vmatmul.mubr.f32.gmra.mrb[76].mxu0 %v369_v23  ;;  %2066 = vmatmul.mubr.f32.gmra.mrb[108].mxu1 %v246_v24  ;;  %v737_v28 = vpop.f32.mrb[3].mxu1  ;;  %v351_v23 = vld [vmem:[%s2522_s30 + $0x570] sm:$0xff] }
 0x128   : > { %1228 = vmatprep.mubr.f32.mxu0 %v375_v25  ;;  %2068 = vmatprep.mubr.f32.mxu1 %v251_v26  ;;  %v424_v26 = vld [vmem:[%s2522_s30 + $0x7b8] sm:$0xff] }
 0x129   : > { %v356_v28 = vld [vmem:[%s2522_s30 + $0x598] sm:$0xff] }
 0x12a   : > { %v3020_v33 = vpop.f32.mrb[4].mxu1 }
 0x12b   : > { %1229 = vmatmul.mubr.f32.gmra.mrb[78].mxu0 %v374_v29  ;;  %2069 = vmatmul.mubr.f32.gmra.mrb[110].mxu1 %v256_v30  ;;  %v742_v34 = vpop.f32.mrb[5].mxu1  ;;  %v430_v29 = vld [vmem:[%s2522_s30 + $0x7e8] sm:$0xff]  ;;  %v361_v30 = vld [vmem:[%s2522_s30 + $0x5c0] sm:$0xff] }
 0x12c   : > { %1233 = vmatprep.mubr.f32.mxu0 %v380_v31  ;;  %2071 = vmatprep.mubr.f32.mxu1 %v261_v32  ;;  %v429_v34 = vld [vmem:[%s2522_s30 + $0x7e0] sm:$0xff] }
 0x12e   : > { %v3026_v39 = vpop.f32.mrb[6].mxu1 }
 0x12f   : > { %1234 = vmatmul.mubr.f32.gmra.mrb[80].mxu0 %v379_v35  ;;  %2072 = vmatmul.mubr.f32.gmra.mrb[112].mxu1 %v266_v36  ;;  %v747_v40 = vpop.f32.mrb[7].mxu1  ;;  %v366_v35 = vld [vmem:[%s2522_s30 + $0x5e8] sm:$0xff]  ;;  %v435_v36 = vld [vmem:[%s2522_s30 + $0x810] sm:$0xff] }
 0x130   : > { %1238 = vmatprep.mubr.f32.mxu0 %v385_v37  ;;  %2074 = vmatprep.mubr.f32.mxu1 %v271_v38  ;;  %v371_v37 = vld [vmem:[%s2522_s30 + $0x610] sm:$0xff] }
 0x132   : > { %v3032_v45 = vpop.f32.mrb[8].mxu1 }
 0x133   : > { %1239 = vmatmul.mubr.f32.gmra.mrb[82].mxu0 %v384_v41  ;;  %2075 = vmatmul.mubr.f32.gmra.mrb[114].mxu1 %v276_v42  ;;  %v752_v46 = vpop.f32.mrb[9].mxu1  ;;  %v434_v41 = vld [vmem:[%s2522_s30 + $0x808] sm:$0xff]  ;;  %v376_v42 = vld [vmem:[%s2522_s30 + $0x638] sm:$0xff] }
 0x134   : > { %1243 = vmatprep.mubr.f32.mxu0 %v390_v43  ;;  %2077 = vmatprep.mubr.f32.mxu1 %v281_v44  ;;  %v440_v43 = vld [vmem:[%s2522_s30 + $0x838] sm:$0xff]  ;;  %v381_v44 = vld [vmem:[%s2522_s30 + $0x660] sm:$0xff] }
 0x136   : > { %v3038_v51 = vpop.f32.mrb[10].mxu1 }
 0x137   : > { %1244 = vmatmul.mubr.f32.gmra.mrb[84].mxu0 %v389_v47  ;;  %2078 = vmatmul.mubr.f32.gmra.mrb[116].mxu1 %v286_v48  ;;  %v757_v52 = vpop.f32.mrb[11].mxu1  ;;  %v439_v48 = vld [vmem:[%s2522_s30 + $0x830] sm:$0xff] }
 0x138   : > { %1248 = vmatprep.mubr.f32.mxu0 %v395_v49  ;;  %2080 = vmatprep.mubr.f32.mxu1 %v291_v50  ;;  %v386_v49 = vld [vmem:[%s2522_s30 + $0x688] sm:$0xff]  ;;  %v445_v50 = vld [vmem:[%s2522_s30 + $0x860] sm:$0xff]  ;;  %v391_v52 = vld [vmem:[%s2522_s30 + $0x6b0] sm:$0xff] }
 0x13a   : > { %v3044_v57 = vpop.f32.mrb[12].mxu1 }
 0x13b   : > { %1249 = vmatmul.mubr.f32.gmra.mrb[86].mxu0 %v394_v53  ;;  %2081 = vmatmul.mubr.f32.gmra.mrb[118].mxu1 %v296_v54  ;;  %v762_v58 = vpop.f32.mrb[13].mxu1 }
 0x13c   : > { %1253 = vmatprep.mubr.f32.mxu0 %v400_v55  ;;  %2083 = vmatprep.mubr.f32.mxu1 %v301_v56  ;;  %v444_v55 = vld [vmem:[%s2522_s30 + $0x858] sm:$0xff]  ;;  %v450_v58 = vld [vmem:[%s2522_s30 + $0x888] sm:$0xff] }
 0x13d   : > { %v396_v56 = vld [vmem:[%s2522_s30 + $0x6d8] sm:$0xff] }
 0x13e   : > { %v3050_v63 = vpop.f32.mrb[14].mxu1 }
 0x13f   : > { %1254 = vmatmul.mubr.f32.gmra.mrb[88].mxu0 %v399_v59  ;;  %2084 = vmatmul.mubr.f32.gmra.mrb[120].mxu1 %v306_v60  ;;  %v767_v0 = vpop.f32.mrb[15].mxu1  ;;  %v401_v59 = vld [vmem:[%s2522_s30 + $0x700] sm:$0xff] }
 0x140   : > { %1258 = vmatprep.mubr.f32.mxu0 %v405_v61  ;;  %2086 = vmatprep.mubr.f32.mxu1 %v311_v62 }
 0x142   : > { %v3056_v5 = vpop.f32.mrb[16].mxu1 }
 0x143   : > { %1259 = vmatmul.mubr.f32.gmra.mrb[90].mxu0 %v404_v3  ;;  %2087 = vmatmul.mubr.f32.gmra.mrb[122].mxu1 %v316_v1  ;;  %v772_v6 = vpop.f32.mrb[17].mxu1  ;;  %v449_v3 = vld [vmem:[%s2522_s30 + $0x880] sm:$0xff]  ;;  %v406_v1 = vld [vmem:[%s2522_s30 + $0x728] sm:$0xff] }
 0x144   : > { %1263 = vmatprep.mubr.f32.mxu0 %v410_v2  ;;  %2089 = vmatprep.mubr.f32.mxu1 %v321_v4  ;;  %v455_v2 = vld [vmem:[%s2522_s30 + $0x8b0] sm:$0xff] }
 0x145   : > { %v411_v4 = vld [vmem:[%s2522_s30 + $0x750] sm:$0xff] }
 0x146   : > { %v3062_v11 = vpop.f32.mrb[18].mxu1 }
 0x147   : > { %1264 = vmatmul.mubr.f32.gmra.mrb[92].mxu0 %v409_v7  ;;  %2090 = vmatmul.mubr.f32.gmra.mrb[124].mxu1 %v326_v8  ;;  %v777_v12 = vpop.f32.mrb[19].mxu1 }
 0x148   : > { %1268 = vmatprep.mubr.f32.mxu0 %v415_v9  ;;  %2092 = vmatprep.mubr.f32.mxu1 %v331_v10  ;;  %v454_v10 = vld [vmem:[%s2522_s30 + $0x8a8] sm:$0xff]  ;;  %v416_v12 = vld [vmem:[%s2522_s30 + $0x778] sm:$0xff] }
 0x14a   : > { %v3068_v17 = vpop.f32.mrb[20].mxu1 }
 0x14b   : > { %1269 = vmatmul.mubr.f32.gmra.mrb[94].mxu0 %v414_v13  ;;  %2093 = vmatmul.mubr.f32.gmra.mrb[126].mxu1 %v336_v14  ;;  %v782_v18 = vpop.f32.mrb[21].mxu1  ;;  %v460_v13 = vld [vmem:[%s2522_s30 + $0x8d8] sm:$0xff]  ;;  %v421_v14 = vld [vmem:[%s2522_s30 + $0x7a0] sm:$0xff] }
 0x14c   : > { %1273 = vmatprep.mubr.f32.mxu0 %v420_v15  ;;  %2095 = vmatprep.mubr.f32.mxu1 %v341_v16 }
 0x14e   : > { %v3074_v24 = vpop.f32.mrb[22].mxu1 }
 0x14f   : > { %1274 = vmatmul.mubr.f32.gmra.mrb[96].mxu0 %v419_v19  ;;  %2096 = vmatmul.mubr.f32.gmra.mrb[128].mxu1 %v346_v20  ;;  %v787_v25 = vpop.f32.mrb[23].mxu1  ;;  %v459_v20 = vld [vmem:[%s2522_s30 + $0x8d0] sm:$0xff] }
 0x150   : > { %1278 = vmatprep.mubr.f32.mxu0 %v425_v22  ;;  %2098 = vmatprep.mubr.f32.mxu1 %v351_v23  ;;  %v426_v22 = vld [vmem:[%s2522_s30 + $0x7c8] sm:$0xff]  ;;  %v465_v23 = vld [vmem:[%s2522_s30 + $0x900] sm:$0xff]  ;;  %v431_v25 = vld [vmem:[%s2522_s30 + $0x7f0] sm:$0xff] }
 0x152   : > { %v3080_v31 = vpop.f32.mrb[24].mxu1 }
 0x153   : > { %1279 = vmatmul.mubr.f32.gmra.mrb[98].mxu0 %v424_v26  ;;  %2099 = vmatmul.mubr.f32.gmra.mrb[130].mxu1 %v356_v28  ;;  %v792_v32 = vpop.f32.mrb[25].mxu1 }
 0x154   : > { %1283 = vmatprep.mubr.f32.mxu0 %v430_v29  ;;  %2101 = vmatprep.mubr.f32.mxu1 %v361_v30  ;;  %v464_v32 = vld [vmem:[%s2522_s30 + $0x8f8] sm:$0xff] }
 0x156   : > { %v3086_v38 = vpop.f32.mrb[26].mxu1 }
 0x157   : > { %1284 = vmatmul.mubr.f32.gmra.mrb[100].mxu0 %v429_v34  ;;  %2102 = vmatmul.mubr.f32.gmra.mrb[132].mxu1 %v366_v35  ;;  %v797_v40 = vpop.f32.mrb[27].mxu1  ;;  %v436_v34 = vld [vmem:[%s2522_s30 + $0x818] sm:$0xff]  ;;  %v470_v35 = vld [vmem:[%s2522_s30 + $0x928] sm:$0xff] }
 0x158   : > { %1288 = vmatprep.mubr.f32.mxu0 %v435_v36  ;;  %2104 = vmatprep.mubr.f32.mxu1 %v371_v37  ;;  %v441_v36 = vld [vmem:[%s2522_s30 + $0x840] sm:$0xff] }
 0x15a   : > { %v3092_v46 = vpop.f32.mrb[28].mxu1 }
 0x15b   : > { %1289 = vmatmul.mubr.f32.gmra.mrb[102].mxu0 %v434_v41  ;;  %2105 = vmatmul.mubr.f32.gmra.mrb[134].mxu1 %v376_v42  ;;  %v802_v47 = vpop.f32.mrb[29].mxu1 }
 0x15c   : > { %1293 = vmatprep.mubr.f32.mxu0 %v440_v43  ;;  %2107 = vmatprep.mubr.f32.mxu1 %v381_v44  ;;  %v469_v43 = vld [vmem:[%s2522_s30 + $0x920] sm:$0xff]  ;;  %v446_v44 = vld [vmem:[%s2522_s30 + $0x868] sm:$0xff]  ;;  %v475_v47 = vld [vmem:[%s2522_s30 + $0x950] sm:$0xff] }
 0x15e   : > { %v3098_v53 = vpop.f32.mrb[30].mxu1 }
 0x15f   : > { %1294 = vmatmul.mubr.f32.gmra.mrb[104].mxu0 %v439_v48  ;;  %2108 = vmatmul.mubr.f32.gmra.mrb[136].mxu1 %v386_v49  ;;  %v807_v54 = vpop.f32.mrb[31].mxu1  ;;  %v451_v48 = vld [vmem:[%s2522_s30 + $0x890] sm:$0xff] }
 0x160   : > { %1298 = vmatprep.mubr.f32.mxu0 %v445_v50  ;;  %2110 = vmatprep.mubr.f32.mxu1 %v391_v52 }
 0x162   : > { %v3104_v60 = vpop.f32.mrb[0].mxu0  ;;  %v3106_v61 = vpop.f32.mrb[32].mxu1 }
 0x163   : > { %v1037_v62 = vpop.f32.mrb[1].mxu0  ;;  %1299 = vmatmul.mubr.f32.gmra.mrb[106].mxu0 %v444_v55  ;;  %2111 = vmatmul.mubr.f32.gmra.mrb[138].mxu1 %v396_v56  ;;  %v812_v0 = vpop.f32.mrb[33].mxu1  ;;  %v474_v55 = vld [vmem:[%s2522_s30 + $0x948] sm:$0xff]  ;;  %v456_v56 = vld [vmem:[%s2522_s30 + $0x8b8] sm:$0xff] }
 0x164   : > { %1303 = vmatprep.mubr.f32.mxu0 %v450_v58  ;;  %2113 = vmatprep.mubr.f32.mxu1 %v401_v59  ;;  %v480_v58 = vld [vmem:[%s2522_s30 + $0x978] sm:$0xff]  ;;  %v461_v59 = vld [vmem:[%s2522_s30 + $0x8e0] sm:$0xff] }
 0x166   : > { %v3112_v6 = vpop.f32.mrb[2].mxu0  ;;  %v3114_v7 = vpop.f32.mrb[34].mxu1 }
 0x167   : > { %v1042_v8 = vpop.f32.mrb[3].mxu0  ;;  %1304 = vmatmul.mubr.f32.gmra.mrb[108].mxu0 %v449_v3  ;;  %2114 = vmatmul.mubr.f32.gmra.mrb[140].mxu1 %v406_v1  ;;  %v817_v9 = vpop.f32.mrb[35].mxu1 }
 0x168   : > { %1308 = vmatprep.mubr.f32.mxu0 %v455_v2  ;;  %2116 = vmatprep.mubr.f32.mxu1 %v411_v4  ;;  %v479_v2 = vld [vmem:[%s2522_s30 + $0x970] sm:$0xff]  ;;  %v466_v4 = vld [vmem:[%s2522_s30 + $0x908] sm:$0xff]  ;;  %v485_v8 = vld [vmem:[%s2522_s30 + $0x9a0] sm:$0xff] }
 0x169   : > { %v471_v9 = vld [vmem:[%s2522_s30 + $0x930] sm:$0xff] }
 0x16a   : > { %v3120_v15 = vpop.f32.mrb[4].mxu0  ;;  %v3122_v16 = vpop.f32.mrb[36].mxu1 }
 0x16b   : > { %v1047_v18 = vpop.f32.mrb[5].mxu0  ;;  %1309 = vmatmul.mubr.f32.gmra.mrb[110].mxu0 %v454_v10  ;;  %2117 = vmatmul.mubr.f32.gmra.mrb[142].mxu1 %v416_v12  ;;  %v822_v19 = vpop.f32.mrb[37].mxu1 }
 0x16c   : > { %1313 = vmatprep.mubr.f32.mxu0 %v460_v13  ;;  %2119 = vmatprep.mubr.f32.mxu1 %v421_v14  ;;  %v484_v18 = vld [vmem:[%s2522_s30 + $0x998] sm:$0xff] }
 0x16d   : > { %v476_v19 = vld [vmem:[%s2522_s30 + $0x958] sm:$0xff] }
 0x16e   : > { %v3128_v26 = vpop.f32.mrb[6].mxu0  ;;  %v3130_v28 = vpop.f32.mrb[38].mxu1 }
 0x16f   : > { %v1052_v29 = vpop.f32.mrb[7].mxu0  ;;  %1314 = vmatmul.mubr.f32.gmra.mrb[112].mxu0 %v459_v20  ;;  %2120 = vmatmul.mubr.f32.gmra.mrb[144].mxu1 %v426_v22  ;;  %v827_v30 = vpop.f32.mrb[39].mxu1  ;;  %v490_v20 = vld [vmem:[%s2522_s30 + $0x9c8] sm:$0xff]  ;;  %v481_v22 = vld [vmem:[%s2522_s30 + $0x980] sm:$0xff] }
 0x170   : > { %1318 = vmatprep.mubr.f32.mxu0 %v465_v23  ;;  %2122 = vmatprep.mubr.f32.mxu1 %v431_v25 }
 0x172   : > { %v3136_v37 = vpop.f32.mrb[8].mxu0  ;;  %v3138_v40 = vpop.f32.mrb[40].mxu1 }
 0x173   : > { %v1057_v41 = vpop.f32.mrb[9].mxu0  ;;  %1319 = vmatmul.mubr.f32.gmra.mrb[114].mxu0 %v464_v32  ;;  %2123 = vmatmul.mubr.f32.gmra.mrb[146].mxu1 %v436_v34  ;;  %v832_v42 = vpop.f32.mrb[41].mxu1  ;;  %v489_v32 = vld [vmem:[%s2522_s30 + $0x9c0] sm:$0xff]  ;;  %v486_v34 = vld [vmem:[%s2522_s30 + $0x9a8] sm:$0xff] }
 0x174   : > { %1323 = vmatprep.mubr.f32.mxu0 %v470_v35  ;;  %2125 = vmatprep.mubr.f32.mxu1 %v441_v36  ;;  %v495_v35 = vld [vmem:[%s2522_s30 + $0x9f0] sm:$0xff] }
 0x175   : > { %v491_v36 = vld [vmem:[%s2522_s30 + $0x9d0] sm:$0xff] }
 0x176   : > { %v3144_v49 = vpop.f32.mrb[10].mxu0  ;;  %v3146_v50 = vpop.f32.mrb[42].mxu1 }
 0x177   : > { %v1062_v52 = vpop.f32.mrb[11].mxu0  ;;  %1324 = vmatmul.mubr.f32.gmra.mrb[116].mxu0 %v469_v43  ;;  %2126 = vmatmul.mubr.f32.gmra.mrb[148].mxu1 %v446_v44  ;;  %v837_v54 = vpop.f32.mrb[43].mxu1 }
 0x178   : > { %1328 = vmatprep.mubr.f32.mxu0 %v475_v47  ;;  %2128 = vmatprep.mubr.f32.mxu1 %v451_v48  ;;  %v494_v47 = vld [vmem:[%s2522_s30 + $0x9e8] sm:$0xff]  ;;  %v496_v48 = vld [vmem:[%s2522_s30 + $0x9f8] sm:$0xff] }
 0x17a   : > { %v3152_v62 = vpop.f32.mrb[12].mxu0  ;;  %v3154_v0 = vpop.f32.mrb[44].mxu1 }
 0x17b   : > { %v1067_v3 = vpop.f32.mrb[13].mxu0  ;;  %1329 = vmatmul.mubr.f32.gmra.mrb[118].mxu0 %v474_v55  ;;  %2129 = vmatmul.mubr.f32.gmra.mrb[150].mxu1 %v456_v56  ;;  %v842_v1 = vpop.f32.mrb[45].mxu1 }
 0x17c   : > { %1333 = vmatprep.mubr.f32.mxu0 %v480_v58  ;;  %2131 = vmatprep.mubr.f32.mxu1 %v461_v59 }
 0x17e   : > { %v3160_v10 = vpop.f32.mrb[14].mxu0  ;;  %v3162_v12 = vpop.f32.mrb[46].mxu1 }
 0x17f   : > { %v1072_v13 = vpop.f32.mrb[15].mxu0  ;;  %1334 = vmatmul.mubr.f32.gmra.mrb[120].mxu0 %v479_v2  ;;  %2132 = vmatmul.mubr.f32.gmra.mrb[152].mxu1 %v466_v4  ;;  %v847_v14 = vpop.f32.mrb[47].mxu1 }
 0x180   : > { %1338 = vmatprep.mubr.f32.mxu0 %v485_v8  ;;  %2134 = vmatprep.mubr.f32.mxu1 %v471_v9 }
 0x182   : > { %v3168_v23 = vpop.f32.mrb[16].mxu0  ;;  %v3170_v25 = vpop.f32.mrb[48].mxu1 }
 0x183   : > { %v1077_v29 = vpop.f32.mrb[17].mxu0  ;;  %1339 = vmatmul.mubr.f32.gmra.mrb[122].mxu0 %v484_v18  ;;  %2135 = vmatmul.mubr.f32.gmra.mrb[154].mxu1 %v476_v19  ;;  %v852_v30 = vpop.f32.mrb[49].mxu1 }
 0x184   : > { %1343 = vmatprep.mubr.f32.mxu0 %v490_v20  ;;  %2137 = vmatprep.mubr.f32.mxu1 %v481_v22 }
 0x186   : > { %v3176_v41 = vpop.f32.mrb[18].mxu0  ;;  %v3178_v42 = vpop.f32.mrb[50].mxu1 }
 0x187   : > { %v1082_v43 = vpop.f32.mrb[19].mxu0  ;;  %1344 = vmatmul.mubr.f32.gmra.mrb[124].mxu0 %v489_v32  ;;  %2138 = vmatmul.mubr.f32.gmra.mrb[156].mxu1 %v486_v34  ;;  %v857_v44 = vpop.f32.mrb[51].mxu1  ;;  %v3205_v32 = vld [vmem:[%s3560_s2] ss:$0 sm:$0xff] }
 0x188   : > { %1348 = vmatprep.mubr.f32.mxu0 %v495_v35  ;;  %2140 = vmatprep.mubr.f32.mxu1 %v491_v36  ;;  %v731_v44 = vadd.f32 %v3205_v32, %v3008_v21  ;;  %v741_v21 = vadd.f32 %v3205_v32, %v3020_v33  ;;  %v751_v33 = vadd.f32 %v3205_v32, %v3032_v45 }
 0x189   : > { %v761_v45 = vadd.f32 %v3205_v32, %v3044_v57  ;;  %v771_v57 = vadd.f32 %v3205_v32, %v3056_v5  ;;  %v781_v5 = vadd.f32 %v3205_v32, %v3068_v17  ;;  %v791_v17 = vadd.f32 %v3205_v32, %v3080_v31 }
 0x18a   : > { %v3182_v52 = vpop.f32.mrb[20].mxu0  ;;  %v3184_v54 = vpop.f32.mrb[52].mxu1  ;;  %v801_v31 = vadd.f32 %v3205_v32, %v3092_v46  ;;  %v811_v46 = vadd.f32 %v3205_v32, %v3106_v61 }
 0x18b   : > { %v1087_v55 = vpop.f32.mrb[21].mxu0  ;;  %1349 = vmatmul.mubr.f32.gmra.mrb[126].mxu0 %v494_v47  ;;  %2141 = vmatmul.mubr.f32.gmra.mrb[158].mxu1 %v496_v48  ;;  %v862_v56 = vpop.f32.mrb[53].mxu1 }
 0x18e   : > { %v3186_v58 = vpop.f32.mrb[22].mxu0  ;;  %v3188_v59 = vpop.f32.mrb[54].mxu1 }
 0x18f   : > { %v1092_v3 = vpop.f32.mrb[23].mxu0  ;;  %v867_v1 = vpop.f32.mrb[55].mxu1 }
 0x190   : > { %v736_v1 = vadd.f32 %v3205_v32, %v3014_v27  ;;  %v746_v27 = vadd.f32 %v3205_v32, %v3026_v39  ;;  %v756_v39 = vadd.f32 %v3205_v32, %v3038_v51  ;;  %v766_v51 = vadd.f32 %v3205_v32, %v3050_v63 }
 0x191   : > { %v776_v63 = vadd.f32 %v3205_v32, %v3062_v11  ;;  %v786_v11 = vadd.f32 %v3205_v32, %v3074_v24  ;;  %v796_v24 = vadd.f32 %v3205_v32, %v3086_v38  ;;  %v806_v38 = vadd.f32 %v3205_v32, %v3098_v53 }
 0x192   : > { %v3190_v2 = vpop.f32.mrb[24].mxu0  ;;  %v3192_v4 = vpop.f32.mrb[56].mxu1 }
 0x193   : > { %v1097_v8 = vpop.f32.mrb[25].mxu0  ;;  %v872_v9 = vpop.f32.mrb[57].mxu1 }
 0x196   : > { %v3194_v13 = vpop.f32.mrb[26].mxu0  ;;  %v3196_v14 = vpop.f32.mrb[58].mxu1 }
 0x197   : > { %v1102_v18 = vpop.f32.mrb[27].mxu0  ;;  %v877_v19 = vpop.f32.mrb[59].mxu1 }
 0x19a   : > { %v3198_v20 = vpop.f32.mrb[28].mxu0  ;;  %v3200_v22 = vpop.f32.mrb[60].mxu1 }
 0x19b   : > { %v1107_v29 = vpop.f32.mrb[29].mxu0  ;;  %v882_v30 = vpop.f32.mrb[61].mxu1 }
 0x19e   : > { %v3207_v34 = vpop.f32.mrb[30].mxu0  ;;  %v3209_v35 = vpop.f32.mrb[62].mxu1 }
 0x19f   : > { %v1112_v36 = vpop.f32.mrb[31].mxu0  ;;  %v887_v43 = vpop.f32.mrb[63].mxu1 }
 0x1a2   : > { %v1115_v47 = vpop.f32.mrb[32].mxu0  ;;  %v3213_v48 = vpop.f32.mrb[64].mxu1 }
 0x1a3   : > { %v3215_v55 = vadd.f32 %v1115_v47, %v731_v44  ;;  %v1117_v56 = vpop.f32.mrb[33].mxu0  ;;  %v892_v3 = vpop.f32.mrb[65].mxu1 }
 0x1a6   : > { %v1120_v8 = vpop.f32.mrb[34].mxu0  ;;  %v3219_v9 = vpop.f32.mrb[66].mxu1 }
 0x1a7   : > { %3562 = vst [vmem:[#allocation2_spill] sm:$0xff] %v3219_v9  ;;  %v3221_v18 = vadd.f32 %v1120_v8, %v736_v1  ;;  %v1122_v19 = vpop.f32.mrb[35].mxu0  ;;  %v897_v29 = vpop.f32.mrb[67].mxu1 }
 0x1aa   : > { %v1125_v30 = vpop.f32.mrb[36].mxu0  ;;  %v3225_v36 = vpop.f32.mrb[68].mxu1 }
 0x1ab   : > { %3563 = vst [vmem:[#allocation3_spill] sm:$0xff] %v3225_v36  ;;  %v3227_v43 = vadd.f32 %v1125_v30, %v741_v21  ;;  %v1127_v44 = vpop.f32.mrb[37].mxu0  ;;  %v902_v47 = vpop.f32.mrb[69].mxu1 }
 0x1ae   : > { %v1130_v56 = vpop.f32.mrb[38].mxu0  ;;  %v3231_v3 = vpop.f32.mrb[70].mxu1 }
 0x1af   : > { %3564 = vst [vmem:[#allocation4_spill] sm:$0xff] %v3231_v3  ;;  %v3233_v1 = vadd.f32 %v1130_v56, %v746_v27  ;;  %v1132_v8 = vpop.f32.mrb[39].mxu0  ;;  %v907_v19 = vpop.f32.mrb[71].mxu1 }
 0x1b2   : > { %v1135_v29 = vpop.f32.mrb[40].mxu0  ;;  %v3237_v9 = vpop.f32.mrb[72].mxu1 }
 0x1b3   : > { %3565 = vst [vmem:[#allocation5_spill] sm:$0xff] %v3237_v9  ;;  %v3239_v21 = vadd.f32 %v1135_v29, %v751_v33  ;;  %v1137_v30 = vpop.f32.mrb[41].mxu0  ;;  %v912_v44 = vpop.f32.mrb[73].mxu1 }
 0x1b6   : > { %v1140_v47 = vpop.f32.mrb[42].mxu0  ;;  %v3243_v36 = vpop.f32.mrb[74].mxu1 }
 0x1b7   : > { %3566 = vst [vmem:[#allocation6_spill] sm:$0xff] %v3243_v36  ;;  %v3245_v27 = vadd.f32 %v1140_v47, %v756_v39  ;;  %v1142_v56 = vpop.f32.mrb[43].mxu0  ;;  %v917_v8 = vpop.f32.mrb[75].mxu1 }
 0x1ba   : > { %v1145_v19 = vpop.f32.mrb[44].mxu0  ;;  %v3249_v3 = vpop.f32.mrb[76].mxu1 }
 0x1bb   : > { %3567 = vst [vmem:[#allocation7_spill] sm:$0xff] %v3249_v3  ;;  %v3251_v33 = vadd.f32 %v1145_v19, %v761_v45  ;;  %v1147_v29 = vpop.f32.mrb[45].mxu0  ;;  %v922_v30 = vpop.f32.mrb[77].mxu1 }
 0x1be   : > { %v1150_v44 = vpop.f32.mrb[46].mxu0  ;;  %v3255_v9 = vpop.f32.mrb[78].mxu1 }
 0x1bf   : > { %3568 = vst [vmem:[#allocation8_spill] sm:$0xff] %v3255_v9  ;;  %v3257_v39 = vadd.f32 %v1150_v44, %v766_v51  ;;  %v1152_v47 = vpop.f32.mrb[47].mxu0  ;;  %v927_v56 = vpop.f32.mrb[79].mxu1 }
 0x1c2   : > { %v1155_v8 = vpop.f32.mrb[48].mxu0  ;;  %v3261_v36 = vpop.f32.mrb[80].mxu1 }
 0x1c3   : > { %3569 = vst [vmem:[#allocation9_spill] sm:$0xff] %v3261_v36  ;;  %v3263_v45 = vadd.f32 %v1155_v8, %v771_v57  ;;  %v1157_v19 = vpop.f32.mrb[49].mxu0  ;;  %v932_v29 = vpop.f32.mrb[81].mxu1 }
 0x1c6   : > { %v1160_v30 = vpop.f32.mrb[50].mxu0  ;;  %v3267_v3 = vpop.f32.mrb[82].mxu1 }
 0x1c7   : > { %3570 = vst [vmem:[#allocation10_spill] sm:$0xff] %v3267_v3  ;;  %v3269_v51 = vadd.f32 %v1160_v30, %v776_v63  ;;  %v1162_v44 = vpop.f32.mrb[51].mxu0  ;;  %v937_v47 = vpop.f32.mrb[83].mxu1 }
 0x1ca   : > { %v1165_v56 = vpop.f32.mrb[52].mxu0  ;;  %v3273_v9 = vpop.f32.mrb[84].mxu1 }
 0x1cb   : > { %3571 = vst [vmem:[#allocation11_spill] sm:$0xff] %v3273_v9  ;;  %v3275_v57 = vadd.f32 %v1165_v56, %v781_v5  ;;  %v1167_v8 = vpop.f32.mrb[53].mxu0  ;;  %v942_v19 = vpop.f32.mrb[85].mxu1 }
 0x1ce   : > { %v1170_v29 = vpop.f32.mrb[54].mxu0  ;;  %v3279_v36 = vpop.f32.mrb[86].mxu1 }
 0x1cf   : > { %v3281_v63 = vadd.f32 %v1170_v29, %v786_v11  ;;  %v1172_v30 = vpop.f32.mrb[55].mxu0  ;;  %v947_v44 = vpop.f32.mrb[87].mxu1 }
 0x1d2   : > { %v1175_v47 = vpop.f32.mrb[56].mxu0  ;;  %v3285_v3 = vpop.f32.mrb[88].mxu1 }
 0x1d3   : > { %3572 = vst [vmem:[#allocation12_spill] sm:$0xff] %v3285_v3  ;;  %v3287_v5 = vadd.f32 %v1175_v47, %v791_v17  ;;  %v1177_v56 = vpop.f32.mrb[57].mxu0  ;;  %v952_v8 = vpop.f32.mrb[89].mxu1 }
 0x1d6   : > { %v1180_v19 = vpop.f32.mrb[58].mxu0  ;;  %v3291_v9 = vpop.f32.mrb[90].mxu1 }
 0x1d7   : > { %3573 = vst [vmem:[#allocation13_spill] sm:$0xff] %v3291_v9  ;;  %v3293_v11 = vadd.f32 %v1180_v19, %v796_v24  ;;  %v1182_v29 = vpop.f32.mrb[59].mxu0  ;;  %v957_v30 = vpop.f32.mrb[91].mxu1 }
 0x1d8   : > { %v2304_v30 = vadd.f32 %v3205_v32, %v3112_v6  ;;  %v816_v6 = vadd.f32 %v3205_v32, %v3114_v7 }
 0x1da   : > { %v1185_v44 = vpop.f32.mrb[60].mxu0  ;;  %v3297_v3 = vpop.f32.mrb[92].mxu1 }
 0x1db   : > { %v3299_v17 = vadd.f32 %v1185_v44, %v801_v31  ;;  %v1187_v47 = vpop.f32.mrb[61].mxu0  ;;  %v962_v56 = vpop.f32.mrb[93].mxu1  ;;  %v2303_v31 = vadd.f32 %v3205_v32, %v3104_v60  ;;  %v2306_v60 = vadd.f32 %v3205_v32, %v3128_v26  ;;  %v821_v26 = vadd.f32 %v3205_v32, %v3122_v16 }
 0x1de   : > { %v1190_v8 = vpop.f32.mrb[62].mxu0  ;;  %v3303_v9 = vpop.f32.mrb[94].mxu1 }
 0x1df   : > { %3574 = vst [vmem:[#allocation14_spill] sm:$0xff] %v3303_v9  ;;  %v3305_v24 = vadd.f32 %v1190_v8, %v806_v38  ;;  %v1192_v19 = vpop.f32.mrb[63].mxu0  ;;  %v967_v29 = vpop.f32.mrb[95].mxu1 }
 0x1e0   : > { %v2305_v19 = vadd.f32 %v3205_v32, %v3120_v15 }
 0x1e2   : > { %v1195_v44 = vpop.f32.mrb[64].mxu0  ;;  %v2049_v47 = vpop.f32.mrb[96].mxu1 }
 0x1e3   : > { %v3314_v53 = vadd.f32 %v1195_v44, %v811_v46  ;;  %v1426_v56 = vadd.f32 %v2304_v30, %v2049_v47  ;;  %v1197_v9 = vpop.f32.mrb[65].mxu0  ;;  %v1420_v38 = vpop.f32.mrb[97].mxu1 }
 0x1e4   : > { %v1421_v61 = vadd.f32 %v2303_v31, %v1420_v38  ;;  %v2307_v38 = vadd.f32 %v3205_v32, %v3136_v37 }
 0x1e5   : > { %v1740_v8 = vmax.f32 %v1426_v56, 0.0  ;;  %v2308_v56 = vadd.f32 %v3205_v32, %v3144_v49  ;;  %v826_v49 = vadd.f32 %v3205_v32, %v3130_v28 }
 0x1e6   : > { %v1739_v9 = vmax.f32 %v1421_v61, 0.0  ;;  %v1200_v29 = vpop.f32.mrb[66].mxu0  ;;  %v2052_v46 = vpop.f32.mrb[98].mxu1 }
 0x1e7   : > { %1804 = vst [vmem:[%s3319_s13 + $0x8] sm:$0xff] %v1740_v8  ;;  %v3328_v30 = vadd.f32 %v1200_v29, %v816_v6  ;;  %v1436_v44 = vadd.f32 %v2306_v60, %v2052_v46  ;;  %v1202_v47 = vpop.f32.mrb[67].mxu0  ;;  %v1430_v31 = vpop.f32.mrb[99].mxu1  ;;  %v2310_v46 = vadd.f32 %v3205_v32, %v3160_v10  ;;  %v831_v10 = vadd.f32 %v3205_v32, %v3138_v40 }
 0x1e8   : > { %1803 = vst [vmem:[%s3319_s13] sm:$0xff] %v1739_v9  ;;  %v1431_v7 = vadd.f32 %v2305_v19, %v1430_v31 }
 0x1e9   : > { %v1742_v15 = vmax.f32 %v1436_v44, 0.0  ;;  %v2309_v44 = vadd.f32 %v3205_v32, %v3152_v62 }
 0x1ea   : > { %v1741_v61 = vmax.f32 %v1431_v7, 0.0  ;;  %v1205_v8 = vpop.f32.mrb[68].mxu0  ;;  %v2055_v6 = vpop.f32.mrb[100].mxu1 }
 0x1eb   : > { %1806 = vst [vmem:[%s3319_s13 + $0x18] sm:$0xff] %v1742_v15  ;;  %v3338_v60 = vadd.f32 %v1205_v8, %v821_v26  ;;  %v1446_v29 = vadd.f32 %v2308_v56, %v2055_v6  ;;  %v1207_v9 = vpop.f32.mrb[69].mxu0  ;;  %v1440_v19 = vpop.f32.mrb[101].mxu1  ;;  %v2311_v8 = vadd.f32 %v3205_v32, %v3168_v23 }
 0x1ec   : > { %1805 = vst [vmem:[%s3319_s13 + $0x10] sm:$0xff] %v1741_v61  ;;  %v1441_v16 = vadd.f32 %v2307_v38, %v1440_v19  ;;  %v2312_v61 = vadd.f32 %v3205_v32, %v3176_v41  ;;  %v836_v41 = vadd.f32 %v3205_v32, %v3146_v50 }
 0x1ed   : > { %v1744_v37 = vmax.f32 %v1446_v29, 0.0 }
 0x1ee   : > { %v1743_v47 = vmax.f32 %v1441_v16, 0.0  ;;  %v1210_v31 = vpop.f32.mrb[70].mxu0  ;;  %v2058_v7 = vpop.f32.mrb[102].mxu1 }
 0x1ef   : > { %1808 = vst [vmem:[%s3319_s13 + $0x28] sm:$0xff] %v1744_v37  ;;  %v3348_v26 = vadd.f32 %v1210_v31, %v826_v49  ;;  %v1456_v56 = vadd.f32 %v2310_v46, %v2058_v7  ;;  %v1212_v15 = vpop.f32.mrb[71].mxu0  ;;  %v1450_v38 = vpop.f32.mrb[103].mxu1  ;;  %v2314_v37 = vadd.f32 %v3205_v32, %v3186_v58  ;;  %v841_v58 = vadd.f32 %v3205_v32, %v3154_v0 }
 0x1f0   : > { %1807 = vst [vmem:[%s3319_s13 + $0x20] sm:$0xff] %v1743_v47  ;;  %v1451_v28 = vadd.f32 %v2309_v44, %v1450_v38  ;;  %v2313_v44 = vadd.f32 %v3205_v32, %v3182_v52 }
 0x1f1   : > { %v1746_v62 = vmax.f32 %v1456_v56, 0.0 }
 0x1f2   : > { %v1745_v6 = vmax.f32 %v1451_v28, 0.0  ;;  %v1215_v29 = vpop.f32.mrb[72].mxu0  ;;  %v2061_v9 = vpop.f32.mrb[104].mxu1 }
 0x1f3   : > { %1810 = vst [vmem:[%s3319_s13 + $0x38] sm:$0xff] %v1746_v62  ;;  %v3358_v19 = vadd.f32 %v1215_v29, %v831_v10  ;;  %v1466_v16 = vadd.f32 %v2312_v61, %v2061_v9  ;;  %v1217_v49 = vpop.f32.mrb[73].mxu0  ;;  %v1460_v46 = vpop.f32.mrb[105].mxu1  ;;  %v2316_v10 = vadd.f32 %v3205_v32, %v3194_v13  ;;  %v2315_v61 = vadd.f32 %v3205_v32, %v3190_v2 }
 0x1f4   : > { %1809 = vst [vmem:[%s3319_s13 + $0x30] sm:$0xff] %v1745_v6  ;;  %v1461_v40 = vadd.f32 %v2311_v8, %v1460_v46  ;;  %v846_v13 = vadd.f32 %v3205_v32, %v3162_v12  ;;  %v2318_v46 = vadd.f32 %v3205_v32, %v3207_v34  ;;  %v851_v34 = vadd.f32 %v3205_v32, %v3170_v25 }
 0x1f5   : > { %v1748_v23 = vmax.f32 %v1466_v16, 0.0 }
 0x1f6   : > { %v1747_v47 = vmax.f32 %v1461_v40, 0.0  ;;  %v1220_v31 = vpop.f32.mrb[74].mxu0  ;;  %v2064_v7 = vpop.f32.mrb[106].mxu1  ;;  %v2317_v40 = vadd.f32 %v3205_v32, %v3198_v20 }
 0x1f7   : > { %1812 = vst [vmem:[%s3319_s13 + $0x48] sm:$0xff] %v1748_v23  ;;  %v3368_v56 = vadd.f32 %v1220_v31, %v836_v41  ;;  %v1476_v15 = vadd.f32 %v2314_v37, %v2064_v7  ;;  %v1222_v38 = vpop.f32.mrb[75].mxu0  ;;  %v1470_v28 = vpop.f32.mrb[107].mxu1 }
 0x1f8   : > { %1811 = vst [vmem:[%s3319_s13 + $0x40] sm:$0xff] %v1747_v47  ;;  %v1471_v50 = vadd.f32 %v2313_v44, %v1470_v28 }
 0x1f9   : > { %v1750_v52 = vmax.f32 %v1476_v15, 0.0 }
 0x1fa   : > { %v1749_v62 = vmax.f32 %v1471_v50, 0.0  ;;  %v1225_v8 = vpop.f32.mrb[76].mxu0  ;;  %v2067_v6 = vpop.f32.mrb[108].mxu1 }
 0x1fb   : > { %1814 = vst [vmem:[%s3319_s13 + $0x58] sm:$0xff] %v1750_v52  ;;  %v3378_v29 = vadd.f32 %v1225_v8, %v841_v58  ;;  %v1486_v9 = vadd.f32 %v2316_v10, %v2067_v6  ;;  %v1227_v16 = vpop.f32.mrb[77].mxu0  ;;  %v1480_v49 = vpop.f32.mrb[109].mxu1 }
 0x1fc   : > { %1813 = vst [vmem:[%s3319_s13 + $0x50] sm:$0xff] %v1749_v62  ;;  %v1481_v0 = vadd.f32 %v2315_v61, %v1480_v49  ;;  %v856_v62 = vadd.f32 %v3205_v32, %v3178_v42 }
 0x1fd   : > { %v1752_v2 = vmax.f32 %v1486_v9, 0.0 }
 0x1fe   : > { %v1751_v41 = vmax.f32 %v1481_v0, 0.0  ;;  %v1230_v37 = vpop.f32.mrb[78].mxu0  ;;  %v2070_v23 = vpop.f32.mrb[110].mxu1 }
 0x1ff   : > { %1816 = vst [vmem:[%s3319_s13 + $0x68] sm:$0xff] %v1752_v2  ;;  %v3388_v44 = vadd.f32 %v1230_v37, %v846_v13  ;;  %v1496_v47 = vadd.f32 %v2318_v46, %v2070_v23  ;;  %v1232_v31 = vpop.f32.mrb[79].mxu0  ;;  %v1490_v7 = vpop.f32.mrb[111].mxu1 }
 0x200   : > { %1815 = vst [vmem:[%s3319_s13 + $0x60] sm:$0xff] %v1751_v41  ;;  %v1491_v12 = vadd.f32 %v2317_v40, %v1490_v7 }
 0x201   : > { %v1754_v15 = vmax.f32 %v1496_v47, 0.0 }
 0x202   : > { %v1753_v38 = vmax.f32 %v1491_v12, 0.0  ;;  %v1235_v20 = vpop.f32.mrb[80].mxu0  ;;  %v2073_v28 = vpop.f32.mrb[112].mxu1 }
 0x203   : > { %1818 = vst [vmem:[%s3319_s13 + $0x78] sm:$0xff] %v1754_v15  ;;  %v3394_v50 = vadd.f32 %v1235_v20, %v851_v34  ;;  %v1506_v58 = vadd.f32 %v2073_v28, %v3221_v18  ;;  %v1237_v10 = vpop.f32.mrb[81].mxu0  ;;  %v1500_v52 = vpop.f32.mrb[113].mxu1 }
 0x204   : > { %1817 = vst [vmem:[%s3319_s13 + $0x70] sm:$0xff] %v1753_v38  ;;  %v1501_v61 = vadd.f32 %v1500_v52, %v3215_v55  ;;  %v861_v55 = vadd.f32 %v3205_v32, %v3184_v54 }
 0x205   : > { %v1756_v25 = vmax.f32 %v1506_v58, 0.0 }
 0x206   : > { %v1755_v8 = vmax.f32 %v1501_v61, 0.0  ;;  %v1240_v6 = vpop.f32.mrb[82].mxu0  ;;  %v2076_v9 = vpop.f32.mrb[114].mxu1 }
 0x207   : > { %1820 = vst [vmem:[%s3319_s13 + $0x88] sm:$0xff] %v1756_v25  ;;  %v3402_v16 = vadd.f32 %v1240_v6, %v856_v62  ;;  %v1516_v49 = vadd.f32 %v2076_v9, %v3233_v1  ;;  %v1242_v18 = vpop.f32.mrb[83].mxu0  ;;  %v1510_v0 = vpop.f32.mrb[115].mxu1 }
 0x208   : > { %1819 = vst [vmem:[%s3319_s13 + $0x80] sm:$0xff] %v1755_v8  ;;  %v1511_v13 = vadd.f32 %v1510_v0, %v3227_v43  ;;  %v866_v43 = vadd.f32 %v3205_v32, %v3188_v59 }
 0x209   : > { %v1758_v42 = vmax.f32 %v1516_v49, 0.0 }
 0x20a   : > { %v1757_v46 = vmax.f32 %v1511_v13, 0.0  ;;  %v1245_v2 = vpop.f32.mrb[84].mxu0  ;;  %v2079_v40 = vpop.f32.mrb[116].mxu1 }
 0x20b   : > { %1822 = vst [vmem:[%s3319_s13 + $0x98] sm:$0xff] %v1758_v42  ;;  %v3410_v41 = vadd.f32 %v1245_v2, %v861_v55  ;;  %v1526_v37 = vadd.f32 %v2079_v40, %v3245_v27  ;;  %v1247_v1 = vpop.f32.mrb[85].mxu0  ;;  %v1520_v23 = vpop.f32.mrb[117].mxu1 }
 0x20c   : > { %1821 = vst [vmem:[%s3319_s13 + $0x90] sm:$0xff] %v1757_v46  ;;  %v1521_v47 = vadd.f32 %v1520_v23, %v3239_v21  ;;  %v871_v21 = vadd.f32 %v3205_v32, %v3192_v4 }
 0x20d   : > { %v1760_v54 = vmax.f32 %v1526_v37, 0.0 }
 0x20e   : > { %v1759_v31 = vmax.f32 %v1521_v47, 0.0  ;;  %v1250_v7 = vpop.f32.mrb[86].mxu0  ;;  %v2082_v12 = vpop.f32.mrb[118].mxu1 }
 0x20f   : > { %1824 = vst [vmem:[%s3319_s13 + $0xa8] sm:$0xff] %v1760_v54  ;;  %v3418_v34 = vadd.f32 %v1250_v7, %v866_v43  ;;  %v1536_v15 = vadd.f32 %v2082_v12, %v3257_v39  ;;  %v1252_v27 = vpop.f32.mrb[87].mxu0  ;;  %v1530_v38 = vpop.f32.mrb[119].mxu1 }
 0x210   : > { %1823 = vst [vmem:[%s3319_s13 + $0xa0] sm:$0xff] %v1759_v31  ;;  %v1531_v20 = vadd.f32 %v1530_v38, %v3251_v33  ;;  %v876_v33 = vadd.f32 %v3205_v32, %v3196_v14 }
 0x211   : > { %v1762_v59 = vmax.f32 %v1536_v15, 0.0 }
 0x212   : > { %v1761_v28 = vmax.f32 %v1531_v20, 0.0  ;;  %v1255_v58 = vpop.f32.mrb[88].mxu0  ;;  %v2085_v10 = vpop.f32.mrb[120].mxu1 }
 0x213   : > { %1826 = vst [vmem:[%s3319_s13 + $0xb8] sm:$0xff] %v1762_v59  ;;  %v3426_v52 = vadd.f32 %v1255_v58, %v871_v21  ;;  %v1546_v61 = vadd.f32 %v2085_v10, %v3269_v51  ;;  %v1257_v39 = vpop.f32.mrb[89].mxu0  ;;  %v1540_v62 = vpop.f32.mrb[121].mxu1 }
 0x214   : > { %1825 = vst [vmem:[%s3319_s13 + $0xb0] sm:$0xff] %v1761_v28  ;;  %v1541_v25 = vadd.f32 %v1540_v62, %v3263_v45  ;;  %v881_v45 = vadd.f32 %v3205_v32, %v3200_v22 }
 0x215   : > { %v1764_v4 = vmax.f32 %v1546_v61, 0.0 }
 0x216   : > { %v1763_v8 = vmax.f32 %v1541_v25, 0.0  ;;  %v1260_v6 = vpop.f32.mrb[90].mxu0  ;;  %v2088_v9 = vpop.f32.mrb[122].mxu1 }
 0x217   : > { %1828 = vst [vmem:[%s3319_s13 + $0xc8] sm:$0xff] %v1764_v4  ;;  %v3434_v49 = vadd.f32 %v1260_v6, %v876_v33  ;;  %v1556_v18 = vadd.f32 %v2088_v9, %v3281_v63  ;;  %v1262_v51 = vpop.f32.mrb[91].mxu0  ;;  %v1550_v0 = vpop.f32.mrb[123].mxu1 }
 0x218   : > { %1827 = vst [vmem:[%s3319_s13 + $0xc0] sm:$0xff] %v1763_v8  ;;  %v1551_v13 = vadd.f32 %v1550_v0, %v3275_v57  ;;  %v886_v57 = vadd.f32 %v3205_v32, %v3209_v35 }
 0x219   : > { %v1766_v14 = vmax.f32 %v1556_v18, 0.0 }
 0x21a   : > { %v1765_v55 = vmax.f32 %v1551_v13, 0.0  ;;  %v1265_v42 = vpop.f32.mrb[92].mxu0  ;;  %v2091_v46 = vpop.f32.mrb[124].mxu1 }
 0x21b   : > { %1830 = vst [vmem:[%s3319_s13 + $0xd8] sm:$0xff] %v1766_v14  ;;  %v3442_v2 = vadd.f32 %v1265_v42, %v881_v45  ;;  %v1566_v40 = vadd.f32 %v2091_v46, %v3293_v11  ;;  %v1267_v63 = vpop.f32.mrb[93].mxu0  ;;  %v1560_v37 = vpop.f32.mrb[125].mxu1 }
 0x21c   : > { %1829 = vst [vmem:[%s3319_s13 + $0xd0] sm:$0xff] %v1765_v55  ;;  %v1561_v1 = vadd.f32 %v1560_v37, %v3287_v5  ;;  %v891_v5 = vadd.f32 %v3205_v32, %v3213_v48 }
 0x21d   : > { %v1768_v22 = vmax.f32 %v1566_v40, 0.0 }
 0x21e   : > { %v1767_v23 = vmax.f32 %v1561_v1, 0.0  ;;  %v1270_v47 = vpop.f32.mrb[94].mxu0  ;;  %v2094_v43 = vpop.f32.mrb[126].mxu1 }
 0x21f   : > { %1832 = vst [vmem:[%s3319_s13 + $0xe8] sm:$0xff] %v1768_v22  ;;  %v3450_v54 = vadd.f32 %v1270_v47, %v886_v57  ;;  %v1576_v31 = vadd.f32 %v2094_v43, %v3305_v24  ;;  %v1272_v11 = vpop.f32.mrb[95].mxu0  ;;  %v1570_v7 = vpop.f32.mrb[127].mxu1 }
 0x220   : > { %1831 = vst [vmem:[%s3319_s13 + $0xe0] sm:$0xff] %v1767_v23  ;;  %v1571_v12 = vadd.f32 %v1570_v7, %v3299_v17  ;;  %v3575_v17 = vld [vmem:[#allocation2_spill] sm:$0xff] }
 0x221   : > { %v1770_v35 = vmax.f32 %v1576_v31, 0.0  ;;  %v896_v58 = vadd.f32 %v3205_v32, %v3575_v17 }
 0x222   : > { %v1769_v15 = vmax.f32 %v1571_v12, 0.0  ;;  %v1275_v27 = vpop.f32.mrb[96].mxu0  ;;  %v2097_v38 = vpop.f32.mrb[128].mxu1 }
 0x223   : > { %1834 = vst [vmem:[%s3319_s13 + $0xf8] sm:$0xff] %v1770_v35  ;;  %v3458_v20 = vadd.f32 %v1275_v27, %v891_v5  ;;  %v1586_v21 = vadd.f32 %v2097_v38, %v3328_v30  ;;  %v1277_v24 = vpop.f32.mrb[97].mxu0  ;;  %v1580_v59 = vpop.f32.mrb[129].mxu1 }
 0x224   : > { %1833 = vst [vmem:[%s3319_s13 + $0xf0] sm:$0xff] %v1769_v15  ;;  %v1581_v28 = vadd.f32 %v1580_v59, %v3314_v53  ;;  %v3576_v53 = vld [vmem:[#allocation3_spill] sm:$0xff] }
 0x225   : > { %v1772_v48 = vmax.f32 %v1586_v21, 0.0  ;;  %v901_v8 = vadd.f32 %v3205_v32, %v3576_v53 }
 0x226   : > { %v1771_v10 = vmax.f32 %v1581_v28, 0.0  ;;  %v1280_v61 = vpop.f32.mrb[98].mxu0  ;;  %v2100_v39 = vpop.f32.mrb[130].mxu1 }
 0x227   : > { %1836 = vst [vmem:[%s3319_s13 + $0x108] sm:$0xff] %v1772_v48  ;;  %v3466_v62 = vadd.f32 %v1280_v61, %v896_v58  ;;  %v1596_v25 = vadd.f32 %v2100_v39, %v3348_v26  ;;  %v1282_v30 = vpop.f32.mrb[99].mxu0  ;;  %v1590_v33 = vpop.f32.mrb[131].mxu1  ;;  %v3580_v48 = vld [vmem:[#allocation7_spill] sm:$0xff] }
 0x228   : > { %1835 = vst [vmem:[%s3319_s13 + $0x100] sm:$0xff] %v1771_v10  ;;  %v1591_v4 = vadd.f32 %v1590_v33, %v3338_v60  ;;  %v3577_v60 = vld [vmem:[#allocation4_spill] sm:$0xff] }
 0x229   : > { %v1774_v6 = vmax.f32 %v1596_v25, 0.0  ;;  %v906_v55 = vadd.f32 %v3205_v32, %v3577_v60  ;;  %v3582_v60 = vld [vmem:[#allocation9_spill] sm:$0xff] }
 0x22a   : > { %v1773_v9 = vmax.f32 %v1591_v4, 0.0  ;;  %v1285_v18 = vpop.f32.mrb[100].mxu0  ;;  %v2103_v51 = vpop.f32.mrb[132].mxu1 }
 0x22b   : > { %1838 = vst [vmem:[%s3319_s13 + $0x118] sm:$0xff] %v1774_v6  ;;  %v3474_v0 = vadd.f32 %v1285_v18, %v901_v8  ;;  %v1606_v13 = vadd.f32 %v2103_v51, %v3368_v56  ;;  %v1287_v26 = vpop.f32.mrb[101].mxu0  ;;  %v1600_v45 = vpop.f32.mrb[133].mxu1 }
 0x22c   : > { %1837 = vst [vmem:[%s3319_s13 + $0x110] sm:$0xff] %v1773_v9  ;;  %v1601_v14 = vadd.f32 %v1600_v45, %v3358_v19  ;;  %v3578_v19 = vld [vmem:[#allocation5_spill] sm:$0xff] }
 0x22d   : > { %v1776_v42 = vmax.f32 %v1606_v13, 0.0  ;;  %v911_v23 = vadd.f32 %v3205_v32, %v3578_v19 }
 0x22e   : > { %v1775_v46 = vmax.f32 %v1601_v14, 0.0  ;;  %v1290_v40 = vpop.f32.mrb[102].mxu0  ;;  %v2106_v63 = vpop.f32.mrb[134].mxu1 }
 0x22f   : > { %1840 = vst [vmem:[%s3319_s13 + $0x128] sm:$0xff] %v1776_v42  ;;  %v3482_v37 = vadd.f32 %v1290_v40, %v906_v55  ;;  %v1616_v1 = vadd.f32 %v2106_v63, %v3388_v44  ;;  %v1292_v56 = vpop.f32.mrb[103].mxu0  ;;  %v1610_v57 = vpop.f32.mrb[135].mxu1 }
 0x230   : > { %1839 = vst [vmem:[%s3319_s13 + $0x120] sm:$0xff] %v1775_v46  ;;  %v1611_v22 = vadd.f32 %v1610_v57, %v3378_v29  ;;  %v3579_v29 = vld [vmem:[#allocation6_spill] sm:$0xff] }
 0x231   : > { %v1778_v47 = vmax.f32 %v1616_v1, 0.0  ;;  %v916_v15 = vadd.f32 %v3205_v32, %v3579_v29 }
 0x232   : > { %v1777_v43 = vmax.f32 %v1611_v22, 0.0  ;;  %v1295_v31 = vpop.f32.mrb[104].mxu0  ;;  %v2109_v11 = vpop.f32.mrb[136].mxu1  ;;  %v3583_v22 = vld [vmem:[#allocation10_spill] sm:$0xff] }
 0x233   : > { %1842 = vst [vmem:[%s3319_s13 + $0x138] sm:$0xff] %v1778_v47  ;;  %v3490_v7 = vadd.f32 %v1295_v31, %v911_v23  ;;  %v1626_v12 = vadd.f32 %v2109_v11, %v3402_v16  ;;  %v1297_v44 = vpop.f32.mrb[105].mxu0  ;;  %v1620_v5 = vpop.f32.mrb[137].mxu1 }
 0x234   : > { %1841 = vst [vmem:[%s3319_s13 + $0x130] sm:$0xff] %v1777_v43  ;;  %v1621_v35 = vadd.f32 %v1620_v5, %v3394_v50  ;;  %v921_v50 = vadd.f32 %v3205_v32, %v3580_v48  ;;  %v3584_v5 = vld [vmem:[#allocation11_spill] sm:$0xff] }
 0x235   : > { %v1780_v27 = vmax.f32 %v1626_v12, 0.0 }
 0x236   : > { %v1779_v38 = vmax.f32 %v1621_v35, 0.0  ;;  %v1300_v21 = vpop.f32.mrb[106].mxu0  ;;  %v2112_v24 = vpop.f32.mrb[138].mxu1 }
 0x237   : > { %1844 = vst [vmem:[%s3319_s13 + $0x148] sm:$0xff] %v1780_v27  ;;  %v1301_v59 = vadd.f32 %v1300_v21, %v916_v15  ;;  %v1636_v28 = vadd.f32 %v2112_v24, %v3418_v34  ;;  %v1302_v17 = vpop.f32.mrb[107].mxu0  ;;  %v1630_v16 = vpop.f32.mrb[139].mxu1 }
 0x238   : > { %1843 = vst [vmem:[%s3319_s13 + $0x140] sm:$0xff] %v1779_v38  ;;  %v1631_v58 = vadd.f32 %v1630_v16, %v3410_v41  ;;  %v3581_v41 = vld [vmem:[#allocation8_spill] sm:$0xff] }
 0x239   : > { %v1782_v10 = vmax.f32 %v1636_v28, 0.0  ;;  %v926_v8 = vadd.f32 %v3205_v32, %v3581_v41 }
 0x23a   : > { %v1781_v61 = vmax.f32 %v1631_v58, 0.0  ;;  %v1305_v39 = vpop.f32.mrb[108].mxu0  ;;  %v2115_v25 = vpop.f32.mrb[140].mxu1 }
 0x23b   : > { %1846 = vst [vmem:[%s3319_s13 + $0x158] sm:$0xff] %v1782_v10  ;;  %v3504_v30 = vadd.f32 %v1305_v39, %v921_v50  ;;  %v1646_v33 = vadd.f32 %v2115_v25, %v3434_v49  ;;  %v1307_v34 = vpop.f32.mrb[109].mxu0  ;;  %v1640_v4 = vpop.f32.mrb[141].mxu1  ;;  %v3585_v25 = vld [vmem:[#allocation12_spill] sm:$0xff] }
 0x23c   : > { %1845 = vst [vmem:[%s3319_s13 + $0x150] sm:$0xff] %v1781_v61  ;;  %v1641_v53 = vadd.f32 %v1640_v4, %v3426_v52  ;;  %v931_v52 = vadd.f32 %v3205_v32, %v3582_v60 }
 0x23d   : > { %v1784_v6 = vmax.f32 %v1646_v33, 0.0 }
 0x23e   : > { %v1783_v9 = vmax.f32 %v1641_v53, 0.0  ;;  %v1310_v18 = vpop.f32.mrb[110].mxu0  ;;  %v2118_v51 = vpop.f32.mrb[142].mxu1 }
 0x23f   : > { %1848 = vst [vmem:[%s3319_s13 + $0x168] sm:$0xff] %v1784_v6  ;;  %v1311_v13 = vadd.f32 %v1310_v18, %v926_v8  ;;  %v1656_v26 = vadd.f32 %v2118_v51, %v3450_v54  ;;  %v1312_v45 = vpop.f32.mrb[111].mxu0  ;;  %v1650_v49 = vpop.f32.mrb[143].mxu1  ;;  %v3586_v18 = vld [vmem:[#allocation13_spill] sm:$0xff] }
 0x240   : > { %1847 = vst [vmem:[%s3319_s13 + $0x160] sm:$0xff] %v1783_v9  ;;  %v1651_v14 = vadd.f32 %v1650_v49, %v3442_v2  ;;  %v936_v2 = vadd.f32 %v3205_v32, %v3583_v22  ;;  %v956_v51 = vadd.f32 %v3205_v32, %v3586_v18 }
 0x241   : > { %v1786_v55 = vmax.f32 %v1656_v26, 0.0 }
 0x242   : > { %v1785_v42 = vmax.f32 %v1651_v14, 0.0  ;;  %v1315_v46 = vpop.f32.mrb[112].mxu0  ;;  %v2121_v40 = vpop.f32.mrb[144].mxu1 }
 0x243   : > { %1850 = vst [vmem:[%s3319_s13 + $0x178] sm:$0xff] %v1786_v55  ;;  %v1316_v63 = vadd.f32 %v1315_v46, %v931_v52  ;;  %v1666_v1 = vadd.f32 %v2121_v40, %v3466_v62  ;;  %v1317_v56 = vpop.f32.mrb[113].mxu0  ;;  %v1660_v54 = vpop.f32.mrb[145].mxu1 }
 0x244   : > { %1849 = vst [vmem:[%s3319_s13 + $0x170] sm:$0xff] %v1785_v42  ;;  %v1661_v57 = vadd.f32 %v1660_v54, %v3458_v20  ;;  %v941_v20 = vadd.f32 %v3205_v32, %v3584_v5  ;;  %v961_v42 = vadd.f32 %v3205_v32, %v3297_v3 }
 0x245   : > { %v1788_v19 = vmax.f32 %v1666_v1, 0.0 }
 0x246   : > { %v1787_v23 = vmax.f32 %v1661_v57, 0.0  ;;  %v1320_v47 = vpop.f32.mrb[114].mxu0  ;;  %v2124_v43 = vpop.f32.mrb[146].mxu1 }
 0x247   : > { %1852 = vst [vmem:[%s3319_s13 + $0x188] sm:$0xff] %v1788_v19  ;;  %v1321_v31 = vadd.f32 %v1320_v47, %v936_v2  ;;  %v1676_v11 = vadd.f32 %v2124_v43, %v3482_v37  ;;  %v1322_v12 = vpop.f32.mrb[115].mxu0  ;;  %v1670_v62 = vpop.f32.mrb[147].mxu1  ;;  %v3587_v19 = vld [vmem:[#allocation14_spill] sm:$0xff] }
 0x248   : > { %1851 = vst [vmem:[%s3319_s13 + $0x180] sm:$0xff] %v1787_v23  ;;  %v1671_v44 = vadd.f32 %v1670_v62, %v3474_v0  ;;  %v946_v0 = vadd.f32 %v3205_v32, %v3279_v36  ;;  %v966_v23 = vadd.f32 %v3205_v32, %v3587_v19 }
 0x249   : > { %v1790_v35 = vmax.f32 %v1676_v11, 0.0 }
 0x24a   : > { %v1789_v29 = vmax.f32 %v1671_v44, 0.0  ;;  %v1325_v15 = vpop.f32.mrb[116].mxu0  ;;  %v2127_v27 = vpop.f32.mrb[148].mxu1 }
 0x24b   : > { %1854 = vst [vmem:[%s3319_s13 + $0x198] sm:$0xff] %v1790_v35  ;;  %v1326_v38 = vadd.f32 %v1325_v15, %v941_v20  ;;  %v1686_v21 = vadd.f32 %v2127_v27, %v1301_v59  ;;  %v1327_v24 = vpop.f32.mrb[117].mxu0  ;;  %v1680_v28 = vpop.f32.mrb[149].mxu1 }
 0x24c   : > { %1853 = vst [vmem:[%s3319_s13 + $0x190] sm:$0xff] %v1789_v29  ;;  %v1681_v37 = vadd.f32 %v1680_v28, %v3490_v7  ;;  %v951_v7 = vadd.f32 %v3205_v32, %v3585_v25 }
 0x24d   : > { %v1792_v17 = vmax.f32 %v1686_v21, 0.0 }
 0x24e   : > { %v1791_v16 = vmax.f32 %v1681_v37, 0.0  ;;  %v1330_v58 = vpop.f32.mrb[118].mxu0  ;;  %v2130_v48 = vpop.f32.mrb[150].mxu1 }
 0x24f   : > { %1856 = vst [vmem:[%s3319_s13 + $0x1a8] sm:$0xff] %v1792_v17  ;;  %v1331_v50 = vadd.f32 %v1330_v58, %v946_v0  ;;  %v1696_v10 = vadd.f32 %v2130_v48, %v1311_v13  ;;  %v1332_v61 = vpop.f32.mrb[119].mxu0  ;;  %v1690_v39 = vpop.f32.mrb[151].mxu1 }
 0x250   : > { %1855 = vst [vmem:[%s3319_s13 + $0x1a0] sm:$0xff] %v1791_v16  ;;  %v1691_v59 = vadd.f32 %v1690_v39, %v3504_v30 }
 0x251   : > { %v1794_v33 = vmax.f32 %v1696_v10, 0.0 }
 0x252   : > { %v1793_v36 = vmax.f32 %v1691_v59, 0.0  ;;  %v1335_v34 = vpop.f32.mrb[120].mxu0  ;;  %v2133_v4 = vpop.f32.mrb[152].mxu1 }
 0x253   : > { %1858 = vst [vmem:[%s3319_s13 + $0x1b8] sm:$0xff] %v1794_v33  ;;  %v1336_v53 = vadd.f32 %v1335_v34, %v951_v7  ;;  %v1706_v41 = vadd.f32 %v2133_v4, %v1321_v31  ;;  %v1337_v8 = vpop.f32.mrb[121].mxu0  ;;  %v1700_v6 = vpop.f32.mrb[153].mxu1 }
 0x254   : > { %1857 = vst [vmem:[%s3319_s13 + $0x1b0] sm:$0xff] %v1793_v36  ;;  %v1701_v9 = vadd.f32 %v1700_v6, %v1316_v63 }
 0x255   : > { %v1796_v30 = vmax.f32 %v1706_v41, 0.0 }
 0x256   : > { %v1795_v13 = vmax.f32 %v1701_v9, 0.0  ;;  %v1340_v26 = vpop.f32.mrb[122].mxu0  ;;  %v2136_v45 = vpop.f32.mrb[154].mxu1 }
 0x257   : > { %1860 = vst [vmem:[%s3319_s13 + $0x1c8] sm:$0xff] %v1796_v30  ;;  %v1341_v49 = vadd.f32 %v1340_v26, %v956_v51  ;;  %v1716_v14 = vadd.f32 %v2136_v45, %v1331_v50  ;;  %v1342_v60 = vpop.f32.mrb[123].mxu0  ;;  %v1710_v52 = vpop.f32.mrb[155].mxu1 }
 0x258   : > { %1859 = vst [vmem:[%s3319_s13 + $0x1c0] sm:$0xff] %v1795_v13  ;;  %v1711_v55 = vadd.f32 %v1710_v52, %v1326_v38 }
 0x259   : > { %v1798_v46 = vmax.f32 %v1716_v14, 0.0 }
 0x25a   : > { %v1797_v40 = vmax.f32 %v1711_v55, 0.0  ;;  %v1345_v63 = vpop.f32.mrb[124].mxu0  ;;  %v2139_v1 = vpop.f32.mrb[156].mxu1 }
 0x25b   : > { %1862 = vst [vmem:[%s3319_s13 + $0x1d8] sm:$0xff] %v1798_v46  ;;  %v1346_v56 = vadd.f32 %v1345_v63, %v961_v42  ;;  %v1726_v54 = vadd.f32 %v2139_v1, %v1341_v49  ;;  %v1347_v57 = vpop.f32.mrb[125].mxu0  ;;  %v1720_v22 = vpop.f32.mrb[157].mxu1 }
 0x25c   : > { %1861 = vst [vmem:[%s3319_s13 + $0x1d0] sm:$0xff] %v1797_v40  ;;  %v1721_v2 = vadd.f32 %v1720_v22, %v1336_v53 }
 0x25d   : > { %v1800_v47 = vmax.f32 %v1726_v54, 0.0 }
 0x25e   : > { %v1799_v3 = vmax.f32 %v1721_v2, 0.0  ;;  %v1350_v43 = vpop.f32.mrb[126].mxu0  ;;  %v2142_v31 = vpop.f32.mrb[158].mxu1 }
 0x25f   : > { %1864 = vst [vmem:[%s3319_s13 + $0x1e8] sm:$0xff] %v1800_v47  ;;  %v1351_v11 = vadd.f32 %v1350_v43, %v966_v23  ;;  %v1352_v12 = vpop.f32.mrb[127].mxu0  ;;  %v1730_v62 = vpop.f32.mrb[159].mxu1 }
 0x260   : > { %1863 = vst [vmem:[%s3319_s13 + $0x1e0] sm:$0xff] %v1799_v3  ;;  %v1731_v44 = vadd.f32 %v1730_v62, %v1346_v56 }
 0x261   : > { %v1736_v5 = vadd.f32 %v2142_v31, %v1351_v11 }
 0x262   : > { %v1801_v20 = vmax.f32 %v1731_v44, 0.0 }
 0x263   : > { %v1802_v35 = vmax.f32 %v1736_v5, 0.0 }
 0x264   : > { %1865 = vst [vmem:[%s3319_s13 + $0x1f0] sm:$0xff] %v1801_v20 }
 0x265   : > { %1866 = vst [vmem:[%s3319_s13 + $0x1f8] sm:$0xff] %v1802_v35 }
 0x266 PF: > { %s13_s12 = sadd.s32 1, %s2463_s12  }
 0x267   : > { %p10_p4 = scmp.ge.s32.totalorder %s13_s12, 5  }
 0x269   :  { %12 = sbr.rel (!%p10_p4) target bundleno = 1 (0x1), region = 62 }

// kernel: pilotnet_forward.8
= control target key start
LH: loop header
LB: loop body
LE: loop exit
PB: predicated region body
PF: predicated region fallthrough
CT: control target
= control target key end

     0   :  { %s1520_s12 = smov 0   ;;  %s2122_s0 = inlined_call_operand.vmem [shape: f32[224,1024], index: 0, kind: input, shape index: {}]   ;;  %s2123_s1 = inlined_call_operand.vmem [shape: f32[1024,128], index: 1, kind: input, shape index: {}]   ;;  %s2124_s2 = inlined_call_operand.vmem [shape: f32[1,128], index: 2, kind: input, shape index: {}]   ;;  %s2125_s3 = inlined_call_operand.vmem [shape: f32[224,128], index: 3, kind: output, shape index: {}]  }
   0x1 LB: > { %s1048_s13 = sadd.s32 4294967295, %s1498_s12   ;;  %p1052_p0 = scmp.ge.s32.totalorder %s1498_s12, 1  ;;  %s1498_s12 = sphi %s1520_s12, %s13_s12  }
   0x2   : > { %p139_p1 = scmp.lt.s32.totalorder %s1498_s12, 3 }
   0x4   : > { %p140_p2 = pnand %p1052_p0, %p139_p1 }
   0x5   : > { %v305_v0 = vld [vmem:[%s2123_s1 + $0x80] sm:$0xff] (!%p140_p2)  ;;  %v306_v1 = vld [vmem:[%s2123_s1 + $0x88] sm:$0xff] (!%p140_p2)  ;;  %v307_v11 = vld [vmem:[%s2123_s1 + $0x90] sm:$0xff] (!%p140_p2)  ;;  %s1555_s5 = smul.u32 (!%p140_p2), 14, %s1048_s13 }
   0x6   : > { %143 = sbr.rel (%p140_p2) target bundleno = 370 (0x172), region = 32  ;;  %v289_v2 = vld [vmem:[%s2123_s1] sm:$0xff] (!%p140_p2)  ;;  %v1356_v3 = vpack.c.bf16 (!%p140_p2), %v306_v1, %v305_v0  ;;  %v290_v4 = vld [vmem:[%s2123_s1 + $0x8] sm:$0xff] (!%p140_p2)  ;;  %v308_v13 = vld [vmem:[%s2123_s1 + $0x98] sm:$0xff] (!%p140_p2) }
   0x7   : > { %v337_v5 = vld [vmem:[%s2123_s1 + $0x180] sm:$0xff] (!%p140_p2)  ;;  %v338_v6 = vld [vmem:[%s2123_s1 + $0x188] sm:$0xff] (!%p140_p2)  ;;  %v1358_v7 = vpack.c.bf16 (!%p140_p2), %v290_v4, %v289_v2  ;;  %v291_v14 = vld [vmem:[%s2123_s1 + $0x10] sm:$0xff] (!%p140_p2)  ;;  %v1360_v16 = vpack.c.bf16 (!%p140_p2), %v308_v13, %v307_v11  ;;  %p165_p3 = scmp.lt.s32.totalorder (!%p140_p2), %s1555_s5, 27 }
   0x8   : > { %v1388_v8 = vpack.c.bf16 (!%p140_p2), %v338_v6, %v337_v5  ;;  %v321_v9 = vld [vmem:[%s2123_s1 + $0x100] sm:$0xff] (!%p140_p2)  ;;  %v322_v10 = vld [vmem:[%s2123_s1 + $0x108] sm:$0xff] (!%p140_p2)  ;;  %1357 = vmatprep.subr.bf16.mxu0 (!%p140_p2), %v1356_v3  ;;  %v292_v15 = vld [vmem:[%s2123_s1 + $0x18] sm:$0xff] (!%p140_p2) }
   0x9   : > { %v1390_v12 = vpack.c.bf16 (!%p140_p2), %v322_v10, %v321_v9  ;;  %1359 = vmatpush3.bf16.msra.mxu0 (!%p140_p2), %v1358_v7  ;;  %v1362_v17 = vpack.c.bf16 (!%p140_p2), %v292_v15, %v291_v14  ;;  %v339_v18 = vld [vmem:[%s2123_s1 + $0x190] sm:$0xff] (!%p140_p2)  ;;  %v340_v19 = vld [vmem:[%s2123_s1 + $0x198] sm:$0xff] (!%p140_p2)  ;;  %v309_v23 = vld [vmem:[%s2123_s1 + $0xa0] sm:$0xff] (!%p140_p2) }
   0xa   : > { %1389 = vmatprep.subr.bf16.mxu1 (!%p140_p2), %v1388_v8  ;;  %v323_v20 = vld [vmem:[%s2123_s1 + $0x110] sm:$0xff] (!%p140_p2)  ;;  %v1392_v21 = vpack.c.bf16 (!%p140_p2), %v340_v19, %v339_v18  ;;  %v324_v22 = vld [vmem:[%s2123_s1 + $0x118] sm:$0xff] (!%p140_p2)  ;;  %v310_v24 = vld [vmem:[%s2123_s1 + $0xa8] sm:$0xff] (!%p140_p2)  ;;  %1361 = vmatprep.subr.bf16.mxu0 (!%p140_p2), %v1360_v16 }
   0xb   : > { %1391 = vmatpush3.bf16.msra.mxu1 (!%p140_p2), %v1390_v12  ;;  %v1394_v25 = vpack.c.bf16 (!%p140_p2), %v324_v22, %v323_v20  ;;  %v1364_v26 = vpack.c.bf16 (!%p140_p2), %v310_v24, %v309_v23  ;;  %v293_v27 = vld [vmem:[%s2123_s1 + $0x20] sm:$0xff] (!%p140_p2)  ;;  %v294_v28 = vld [vmem:[%s2123_s1 + $0x28] sm:$0xff] (!%p140_p2)  ;;  %v311_v35 = vld [vmem:[%s2123_s1 + $0xb0] sm:$0xff] (!%p140_p2) }
   0xc   : > { %v341_v29 = vld [vmem:[%s2123_s1 + $0x1a0] sm:$0xff] (!%p140_p2)  ;;  %1393 = vmatprep.subr.bf16.mxu1 (!%p140_p2), %v1392_v21  ;;  %v342_v30 = vld [vmem:[%s2123_s1 + $0x1a8] sm:$0xff] (!%p140_p2)  ;;  %v1366_v33 = vpack.c.bf16 (!%p140_p2), %v294_v28, %v293_v27  ;;  %v312_v36 = vld [vmem:[%s2123_s1 + $0xb8] sm:$0xff] (!%p140_p2) }
   0xd   : > { %v325_v31 = vld [vmem:[%s2123_s1 + $0x120] sm:$0xff]  ;;  %v326_v32 = vld [vmem:[%s2123_s1 + $0x128] sm:$0xff]  ;;  %1363 = vmatpush3.bf16.msra.mxu0 %v1362_v17  ;;  %v1396_v34 = vpack.c.bf16 %v342_v30, %v341_v29  ;;  %v295_v37 = vld [vmem:[%s2123_s1 + $0x30] sm:$0xff]  ;;  %v1368_v39 = vpack.c.bf16 %v312_v36, %v311_v35  ;;  %s2127_s5 = smov (!%p165_p3, %s1555_s5), 27 }
   0xe   : > { %1365 = vmatprep.subr.bf16.mxu0 %v1364_v26  ;;  %v1398_v38 = vpack.c.bf16 %v326_v32, %v325_v31  ;;  %v296_v40 = vld [vmem:[%s2123_s1 + $0x38] sm:$0xff]  ;;  %v343_v41 = vld [vmem:[%s2123_s1 + $0x1b0] sm:$0xff]  ;;  %v313_v46 = vld [vmem:[%s2123_s1 + $0xc0] sm:$0xff]  ;;  %s1059_s23 = sshll.u32 %s2127_s5, 6 }
   0xf   : > { %1395 = vmatpush3.bf16.msra.mxu1 %v1394_v25  ;;  %v344_v42 = vld [vmem:[%s2123_s1 + $0x1b8] sm:$0xff]  ;;  %v327_v44 = vld [vmem:[%s2123_s1 + $0x130] sm:$0xff]  ;;  %v314_v47 = vld [vmem:[%s2123_s1 + $0xc8] sm:$0xff]  ;;  %v1370_v48 = vpack.c.bf16 %v296_v40, %v295_v37  ;;  %s1681_s10 = scalar_lea.vmem %s2122_s0, %s1059_s23 }
  0x10   : > { %1397 = vmatprep.subr.bf16.mxu1 %v1396_v34  ;;  %v1400_v43 = vpack.c.bf16 %v344_v42, %v343_v41  ;;  %v328_v45 = vld [vmem:[%s2123_s1 + $0x138] sm:$0xff]  ;;  %v345_v49 = vld [vmem:[%s2123_s1 + $0x1c0] sm:$0xff]  ;;  %v346_v50 = vld [vmem:[%s2123_s1 + $0x1c8] sm:$0xff]  ;;  %v1372_v52 = vpack.c.bf16 %v314_v47, %v313_v46 }
  0x11   : > { %1367 = vmatpush3.bf16.msra.mxu0 %v1366_v33  ;;  %v1402_v51 = vpack.c.bf16 %v328_v45, %v327_v44  ;;  %v297_v53 = vld [vmem:[%s2123_s1 + $0x40] sm:$0xff]  ;;  %v298_v54 = vld [vmem:[%s2123_s1 + $0x48] sm:$0xff]  ;;  %v1404_v56 = vpack.c.bf16 %v346_v50, %v345_v49  ;;  %v315_v58 = vld [vmem:[%s2123_s1 + $0xd0] sm:$0xff] }
  0x12   : > { %1369 = vmatprep.subr.bf16.mxu0 %v1368_v39  ;;  %v329_v55 = vld [vmem:[%s2123_s1 + $0x140] sm:$0xff]  ;;  %v330_v57 = vld [vmem:[%s2123_s1 + $0x148] sm:$0xff]  ;;  %v316_v59 = vld [vmem:[%s2123_s1 + $0xd8] sm:$0xff]  ;;  %v1374_v62 = vpack.c.bf16 %v298_v54, %v297_v53 }
  0x13   : > { %1399 = vmatpush3.bf16.msra.mxu1 %v1398_v38  ;;  %v347_v60 = vld [vmem:[%s2123_s1 + $0x1d0] sm:$0xff]  ;;  %v348_v61 = vld [vmem:[%s2123_s1 + $0x1d8] sm:$0xff]  ;;  %v1406_v63 = vpack.c.bf16 %v330_v57, %v329_v55  ;;  %v1376_v0 = vpack.c.bf16 %v316_v59, %v315_v58  ;;  %v317_v6 = vld [vmem:[%s2123_s1 + $0xe0] sm:$0xff] }
  0x14   : > { %1401 = vmatprep.subr.bf16.mxu1 %v1400_v43  ;;  %v299_v1 = vld [vmem:[%s2123_s1 + $0x50] sm:$0xff]  ;;  %v300_v2 = vld [vmem:[%s2123_s1 + $0x58] sm:$0xff]  ;;  %v1408_v4 = vpack.c.bf16 %v348_v61, %v347_v60  ;;  %v318_v7 = vld [vmem:[%s2123_s1 + $0xe8] sm:$0xff] }
  0x15   : > { %1371 = vmatpush3.bf16.msra.mxu0 %v1370_v48  ;;  %v331_v3 = vld [vmem:[%s2123_s1 + $0x150] sm:$0xff]  ;;  %v332_v5 = vld [vmem:[%s2123_s1 + $0x158] sm:$0xff]  ;;  %v349_v8 = vld [vmem:[%s2123_s1 + $0x1e0] sm:$0xff]  ;;  %v1378_v10 = vpack.c.bf16 %v300_v2, %v299_v1  ;;  %v1380_v14 = vpack.c.bf16 %v318_v7, %v317_v6 }
  0x16   : > { %1373 = vmatprep.subr.bf16.mxu0 %v1372_v52  ;;  %v350_v9 = vld [vmem:[%s2123_s1 + $0x1e8] sm:$0xff]  ;;  %v301_v11 = vld [vmem:[%s2123_s1 + $0x60] sm:$0xff]  ;;  %v1410_v13 = vpack.c.bf16 %v332_v5, %v331_v3  ;;  %v319_v19 = vld [vmem:[%s2123_s1 + $0xf0] sm:$0xff] }
  0x17   : > { %1403 = vmatpush3.bf16.msra.mxu1 %v1402_v51  ;;  %v178_v12 = vld [vmem:[%s1681_s10 + $0x8] sm:$0xff]  ;;  %v333_v16 = vld [vmem:[%s2123_s1 + $0x160] sm:$0xff]  ;;  %v1412_v18 = vpack.c.bf16 %v350_v9, %v349_v8  ;;  %v320_v20 = vld [vmem:[%s2123_s1 + $0xf8] sm:$0xff] }
  0x18   : > { %1405 = vmatprep.subr.bf16.mxu1 %v1404_v56  ;;  %v302_v15 = vld [vmem:[%s2123_s1 + $0x68] sm:$0xff]  ;;  %488 = vmatprep.mubr.f32.mxu0 %v178_v12  ;;  %v180_v21 = vld [vmem:[%s1681_s10 + $0x18] sm:$0xff]  ;;  %v351_v22 = vld [vmem:[%s2123_s1 + $0x1f0] sm:$0xff]  ;;  %v1384_v26 = vpack.c.bf16 %v320_v20, %v319_v19 }
  0x19   : > { %1375 = vmatpush3.bf16.msra.mxu0 %v1374_v62  ;;  %v334_v17 = vld [vmem:[%s2123_s1 + $0x168] sm:$0xff]  ;;  %v352_v23 = vld [vmem:[%s2123_s1 + $0x1f8] sm:$0xff]  ;;  %623 = vmatprep.mubr.f32.mxu1 %v180_v21  ;;  %v1382_v24 = vpack.c.bf16 %v302_v15, %v301_v11  ;;  %v303_v27 = vld [vmem:[%s2123_s1 + $0x70] sm:$0xff] }
  0x1a   : > { %1377 = vmatprep.subr.bf16.mxu0 %v1376_v0  ;;  %v1414_v25 = vpack.c.bf16 %v334_v17, %v333_v16  ;;  %v304_v28 = vld [vmem:[%s2123_s1 + $0x78] sm:$0xff]  ;;  %v335_v29 = vld [vmem:[%s2123_s1 + $0x170] sm:$0xff]  ;;  %v1416_v30 = vpack.c.bf16 %v352_v23, %v351_v22  ;;  %v369_v32 = vld [vmem:[%s2123_s1 + $0x280] sm:$0xff] }
  0x1b   : > { %1407 = vmatpush3.bf16.msra.mxu1 %v1406_v63  ;;  %v336_v31 = vld [vmem:[%s2123_s1 + $0x178] sm:$0xff]  ;;  %v370_v33 = vld [vmem:[%s2123_s1 + $0x288] sm:$0xff]  ;;  %v401_v34 = vld [vmem:[%s2123_s1 + $0x380] sm:$0xff]  ;;  %v1386_v36 = vpack.c.bf16 %v304_v28, %v303_v27 }
  0x1c   : > { %1409 = vmatprep.subr.bf16.mxu1 %v1408_v4  ;;  %v402_v35 = vld [vmem:[%s2123_s1 + $0x388] sm:$0xff]  ;;  %v1418_v37 = vpack.c.bf16 %v336_v31, %v335_v29  ;;  %v1420_v38 = vpack.c.bf16 %v370_v33, %v369_v32  ;;  %v353_v39 = vld [vmem:[%s2123_s1 + $0x200] sm:$0xff]  ;;  %v371_v44 = vld [vmem:[%s2123_s1 + $0x290] sm:$0xff] }
  0x1d   : > { %1379 = vmatpush3.bf16.msra.mxu0 %v1378_v10  ;;  %v354_v40 = vld [vmem:[%s2123_s1 + $0x208] sm:$0xff]  ;;  %v1452_v41 = vpack.c.bf16 %v402_v35, %v401_v34  ;;  %v385_v42 = vld [vmem:[%s2123_s1 + $0x300] sm:$0xff]  ;;  %v372_v45 = vld [vmem:[%s2123_s1 + $0x298] sm:$0xff] }
  0x1e   : > { %1381 = vmatprep.subr.bf16.mxu0 %v1380_v14  ;;  %v386_v43 = vld [vmem:[%s2123_s1 + $0x308] sm:$0xff]  ;;  %v177_v46 = vld [vmem:[%s1681_s10] sm:$0xff]  ;;  %v1422_v47 = vpack.c.bf16 %v354_v40, %v353_v39  ;;  %v403_v48 = vld [vmem:[%s2123_s1 + $0x390] sm:$0xff]  ;;  %v1424_v54 = vpack.c.bf16 %v372_v45, %v371_v44 }
  0x1f   : > { %1411 = vmatpush3.bf16.msra.mxu1 %v1410_v13  ;;  %v404_v49 = vld [vmem:[%s2123_s1 + $0x398] sm:$0xff]  ;;  %v179_v50 = vld [vmem:[%s1681_s10 + $0x10] sm:$0xff]  ;;  %v186_v51 = vld [vmem:[%s1681_s10 + $0x48] sm:$0xff]  ;;  %v1454_v52 = vpack.c.bf16 %v386_v43, %v385_v42 }
  0x20   : > { %1413 = vmatprep.subr.bf16.mxu1 %v1412_v18  ;;  %v188_v53 = vld [vmem:[%s1681_s10 + $0x58] sm:$0xff]  ;;  %v355_v55 = vld [vmem:[%s2123_s1 + $0x210] sm:$0xff]  ;;  %v1456_v58 = vpack.c.bf16 %v404_v49, %v403_v48  ;;  %v373_v60 = vld [vmem:[%s2123_s1 + $0x2a0] sm:$0xff] }
  0x21   : > { %1383 = vmatpush3.bf16.msra.mxu0 %v1382_v24  ;;  %v356_v56 = vld [vmem:[%s2123_s1 + $0x218] sm:$0xff]  ;;  %v387_v57 = vld [vmem:[%s2123_s1 + $0x310] sm:$0xff]  ;;  %v374_v61 = vld [vmem:[%s2123_s1 + $0x2a8] sm:$0xff] }
  0x22   : > { %1385 = vmatprep.subr.bf16.mxu0 %v1384_v26  ;;  %v388_v59 = vld [vmem:[%s2123_s1 + $0x318] sm:$0xff]  ;;  %v185_v62 = vld [vmem:[%s1681_s10 + $0x40] sm:$0xff]  ;;  %v406_v0 = vld [vmem:[%s2123_s1 + $0x3a8] sm:$0xff]  ;;  %v1426_v3 = vpack.c.bf16 %v356_v56, %v355_v55  ;;  %v1428_v6 = vpack.c.bf16 %v374_v61, %v373_v60 }
  0x23   : > { %1415 = vmatpush3.bf16.msra.mxu1 %v1414_v25  ;;  %v405_v63 = vld [vmem:[%s2123_s1 + $0x3a0] sm:$0xff]  ;;  %v187_v1 = vld [vmem:[%s1681_s10 + $0x50] sm:$0xff]  ;;  %v194_v2 = vld [vmem:[%s1681_s10 + $0x88] sm:$0xff]  ;;  %v1458_v5 = vpack.c.bf16 %v388_v59, %v387_v57 }
  0x24   : > { %1417 = vmatprep.subr.bf16.mxu1 %v1416_v30  ;;  %v196_v4 = vld [vmem:[%s1681_s10 + $0x98] sm:$0xff]  ;;  %v357_v7 = vld [vmem:[%s2123_s1 + $0x220] sm:$0xff]  ;;  %v358_v8 = vld [vmem:[%s2123_s1 + $0x228] sm:$0xff]  ;;  %v1460_v10 = vpack.c.bf16 %v406_v0, %v405_v63 }
  0x25   : > { %1387 = vmatpush3.bf16.msra.mxu0 %v1386_v36  ;;  %v389_v9 = vld [vmem:[%s2123_s1 + $0x320] sm:$0xff]  ;;  %v390_v11 = vld [vmem:[%s2123_s1 + $0x328] sm:$0xff]  ;;  %v375_v12 = vld [vmem:[%s2123_s1 + $0x2b0] sm:$0xff]  ;;  %v1430_v20 = vpack.c.bf16 %v358_v8, %v357_v7 }
  0x26   : > { %1421 = vmatprep.subr.bf16.mxu0 %v1420_v38  ;;  %v376_v13 = vld [vmem:[%s2123_s1 + $0x2b8] sm:$0xff]  ;;  %v193_v14 = vld [vmem:[%s1681_s10 + $0x80] sm:$0xff]  ;;  %v407_v15 = vld [vmem:[%s2123_s1 + $0x3b0] sm:$0xff]  ;;  %v1462_v21 = vpack.c.bf16 %v390_v11, %v389_v9 }
  0x27   : > { %1419 = vmatpush3.bf16.msra.mxu1 %v1418_v37  ;;  %v408_v16 = vld [vmem:[%s2123_s1 + $0x3b8] sm:$0xff]  ;;  %v195_v17 = vld [vmem:[%s1681_s10 + $0x90] sm:$0xff]  ;;  %v202_v18 = vld [vmem:[%s1681_s10 + $0xc8] sm:$0xff]  ;;  %v1432_v22 = vpack.c.bf16 %v376_v13, %v375_v12 }
  0x28   : > { %1453 = vmatprep.subr.bf16.mxu1 %v1452_v41  ;;  %489 = vmatmul.mubr.f32.vlgmr.msra.gmra.mrb[0].mxu0 %v177_v46  ;;  %v204_v19 = vld [vmem:[%s1681_s10 + $0xd8] sm:$0xff]  ;;  %v359_v23 = vld [vmem:[%s2123_s1 + $0x230] sm:$0xff]  ;;  %v1464_v26 = vpack.c.bf16 %v408_v16, %v407_v15  ;;  %v377_v28 = vld [vmem:[%s2123_s1 + $0x2c0] sm:$0xff] }
  0x29   : > { %1423 = vmatpush3.bf16.msra.mxu0 %v1422_v47  ;;  %493 = vmatprep.mubr.f32.mxu0 %v186_v51  ;;  %v360_v24 = vld [vmem:[%s2123_s1 + $0x238] sm:$0xff]  ;;  %v391_v25 = vld [vmem:[%s2123_s1 + $0x330] sm:$0xff]  ;;  %v378_v29 = vld [vmem:[%s2123_s1 + $0x2c8] sm:$0xff] }
  0x2a   : > { %624 = vmatmul.mubr.f32.vlgmr.msra.gmra.mrb[0].mxu1 %v179_v50  ;;  %1425 = vmatprep.subr.bf16.mxu0 %v1424_v54  ;;  %v392_v27 = vld [vmem:[%s2123_s1 + $0x338] sm:$0xff]  ;;  %v201_v30 = vld [vmem:[%s1681_s10 + $0xc0] sm:$0xff]  ;;  %v410_v32 = vld [vmem:[%s2123_s1 + $0x3c8] sm:$0xff]  ;;  %v1434_v36 = vpack.c.bf16 %v360_v24, %v359_v23  ;;  %v1436_v38 = vpack.c.bf16 %v378_v29, %v377_v28 }
  0x2b   : > { %1455 = vmatpush3.bf16.msra.mxu1 %v1454_v52  ;;  %628 = vmatprep.mubr.f32.mxu1 %v188_v53  ;;  %v409_v31 = vld [vmem:[%s2123_s1 + $0x3c0] sm:$0xff]  ;;  %v203_v33 = vld [vmem:[%s1681_s10 + $0xd0] sm:$0xff]  ;;  %v210_v34 = vld [vmem:[%s1681_s10 + $0x108] sm:$0xff]  ;;  %v1466_v37 = vpack.c.bf16 %v392_v27, %v391_v25 }
  0x2c   : > { %494 = vmatmul.mubr.f32.gmra.mrb[2].mxu0 %v185_v62  ;;  %1457 = vmatprep.subr.bf16.mxu1 %v1456_v58  ;;  %v212_v35 = vld [vmem:[%s1681_s10 + $0x118] sm:$0xff]  ;;  %v361_v39 = vld [vmem:[%s2123_s1 + $0x240] sm:$0xff]  ;;  %v362_v40 = vld [vmem:[%s2123_s1 + $0x248] sm:$0xff]  ;;  %v1468_v42 = vpack.c.bf16 %v410_v32, %v409_v31 }
  0x2d   : > { %498 = vmatprep.mubr.f32.mxu0 %v194_v2  ;;  %1427 = vmatpush3.bf16.msra.mxu0 %v1426_v3  ;;  %v393_v41 = vld [vmem:[%s2123_s1 + $0x340] sm:$0xff]  ;;  %v394_v43 = vld [vmem:[%s2123_s1 + $0x348] sm:$0xff]  ;;  %v379_v44 = vld [vmem:[%s2123_s1 + $0x2d0] sm:$0xff]  ;;  %v1438_v49 = vpack.c.bf16 %v362_v40, %v361_v39 }
  0x2e   : > { %629 = vmatmul.mubr.f32.gmra.mrb[2].mxu1 %v187_v1  ;;  %1429 = vmatprep.subr.bf16.mxu0 %v1428_v6  ;;  %v380_v45 = vld [vmem:[%s2123_s1 + $0x2d8] sm:$0xff]  ;;  %v209_v46 = vld [vmem:[%s1681_s10 + $0x100] sm:$0xff]  ;;  %v211_v47 = vld [vmem:[%s1681_s10 + $0x110] sm:$0xff]  ;;  %v1470_v53 = vpack.c.bf16 %v394_v43, %v393_v41 }
  0x2f   : > { %633 = vmatprep.mubr.f32.mxu1 %v196_v4  ;;  %1459 = vmatpush3.bf16.msra.mxu1 %v1458_v5  ;;  %v218_v48 = vld [vmem:[%s1681_s10 + $0x148] sm:$0xff]  ;;  %v411_v50 = vld [vmem:[%s2123_s1 + $0x3d0] sm:$0xff]  ;;  %v412_v51 = vld [vmem:[%s2123_s1 + $0x3d8] sm:$0xff]  ;;  %v1440_v54 = vpack.c.bf16 %v380_v45, %v379_v44 }
  0x30   : > { %499 = vmatmul.mubr.f32.gmra.mrb[4].mxu0 %v193_v14  ;;  %1461 = vmatprep.subr.bf16.mxu1 %v1460_v10  ;;  %v220_v52 = vld [vmem:[%s1681_s10 + $0x158] sm:$0xff]  ;;  %v363_v55 = vld [vmem:[%s2123_s1 + $0x250] sm:$0xff]  ;;  %v217_v57 = vld [vmem:[%s1681_s10 + $0x140] sm:$0xff]  ;;  %v1472_v58 = vpack.c.bf16 %v412_v51, %v411_v50 }
  0x31   : > { %503 = vmatprep.mubr.f32.mxu0 %v202_v18  ;;  %1431 = vmatpush3.bf16.msra.mxu0 %v1430_v20  ;;  %v364_v56 = vld [vmem:[%s2123_s1 + $0x258] sm:$0xff]  ;;  %v395_v59 = vld [vmem:[%s2123_s1 + $0x350] sm:$0xff]  ;;  %v381_v62 = vld [vmem:[%s2123_s1 + $0x2e0] sm:$0xff] }
  0x32   : > { %634 = vmatmul.mubr.f32.gmra.mrb[4].mxu1 %v195_v17  ;;  %1433 = vmatprep.subr.bf16.mxu0 %v1432_v22  ;;  %v396_v60 = vld [vmem:[%s2123_s1 + $0x358] sm:$0xff]  ;;  %v219_v61 = vld [vmem:[%s1681_s10 + $0x150] sm:$0xff]  ;;  %v382_v63 = vld [vmem:[%s2123_s1 + $0x2e8] sm:$0xff]  ;;  %v1442_v2 = vpack.c.bf16 %v364_v56, %v363_v55 }
  0x33   : > { %638 = vmatprep.mubr.f32.mxu1 %v204_v19  ;;  %1463 = vmatpush3.bf16.msra.mxu1 %v1462_v21  ;;  %v226_v0 = vld [vmem:[%s1681_s10 + $0x188] sm:$0xff]  ;;  %v228_v1 = vld [vmem:[%s1681_s10 + $0x198] sm:$0xff]  ;;  %v365_v3 = vld [vmem:[%s2123_s1 + $0x260] sm:$0xff]  ;;  %v1474_v4 = vpack.c.bf16 %v396_v60, %v395_v59  ;;  %v1444_v5 = vpack.c.bf16 %v382_v63, %v381_v62 }
  0x34   : > { %504 = vmatmul.mubr.f32.gmra.mrb[6].mxu0 %v201_v30  ;;  %1465 = vmatprep.subr.bf16.mxu1 %v1464_v26  ;;  %v366_v6 = vld [vmem:[%s2123_s1 + $0x268] sm:$0xff]  ;;  %v413_v7 = vld [vmem:[%s2123_s1 + $0x3e0] sm:$0xff]  ;;  %v227_v13 = vld [vmem:[%s1681_s10 + $0x190] sm:$0xff] }
  0x35   : > { %508 = vmatprep.mubr.f32.mxu0 %v210_v34  ;;  %1435 = vmatpush3.bf16.msra.mxu0 %v1434_v36  ;;  %v414_v8 = vld [vmem:[%s2123_s1 + $0x3e8] sm:$0xff]  ;;  %v397_v10 = vld [vmem:[%s2123_s1 + $0x360] sm:$0xff]  ;;  %v1446_v15 = vpack.c.bf16 %v366_v6, %v365_v3  ;;  %v383_v16 = vld [vmem:[%s2123_s1 + $0x2f0] sm:$0xff] }
  0x36   : > { %639 = vmatmul.mubr.f32.gmra.mrb[6].mxu1 %v203_v33  ;;  %1437 = vmatprep.subr.bf16.mxu0 %v1436_v38  ;;  %v1476_v9 = vpack.c.bf16 %v414_v8, %v413_v7  ;;  %v398_v11 = vld [vmem:[%s2123_s1 + $0x368] sm:$0xff]  ;;  %v225_v12 = vld [vmem:[%s1681_s10 + $0x180] sm:$0xff]  ;;  %v384_v17 = vld [vmem:[%s2123_s1 + $0x2f8] sm:$0xff] }
  0x37   : > { %643 = vmatprep.mubr.f32.mxu1 %v212_v35  ;;  %1467 = vmatpush3.bf16.msra.mxu1 %v1466_v37  ;;  %v234_v14 = vld [vmem:[%s1681_s10 + $0x1c8] sm:$0xff]  ;;  %v236_v18 = vld [vmem:[%s1681_s10 + $0x1d8] sm:$0xff]  ;;  %v1478_v19 = vpack.c.bf16 %v398_v11, %v397_v10  ;;  %v1448_v20 = vpack.c.bf16 %v384_v17, %v383_v16  ;;  %v367_v21 = vld [vmem:[%s2123_s1 + $0x270] sm:$0xff] }
  0x38   : > { %509 = vmatmul.mubr.f32.gmra.mrb[8].mxu0 %v209_v46  ;;  %1469 = vmatprep.subr.bf16.mxu1 %v1468_v42  ;;  %v368_v22 = vld [vmem:[%s2123_s1 + $0x278] sm:$0xff]  ;;  %v415_v23 = vld [vmem:[%s2123_s1 + $0x3f0] sm:$0xff]  ;;  %v233_v25 = vld [vmem:[%s1681_s10 + $0x1c0] sm:$0xff] }
  0x39   : > { %513 = vmatprep.mubr.f32.mxu0 %v218_v48  ;;  %1439 = vmatpush3.bf16.msra.mxu0 %v1438_v49  ;;  %v416_v24 = vld [vmem:[%s2123_s1 + $0x3f8] sm:$0xff]  ;;  %v399_v27 = vld [vmem:[%s2123_s1 + $0x370] sm:$0xff]  ;;  %v242_v30 = vld [vmem:[%s1681_s10 + $0x208] sm:$0xff]  ;;  %v1450_v31 = vpack.c.bf16 %v368_v22, %v367_v21 }
  0x3a   : > { %644 = vmatmul.mubr.f32.gmra.mrb[8].mxu1 %v211_v47  ;;  %1441 = vmatprep.subr.bf16.mxu0 %v1440_v54  ;;  %v1480_v26 = vpack.c.bf16 %v416_v24, %v415_v23  ;;  %v400_v28 = vld [vmem:[%s2123_s1 + $0x378] sm:$0xff]  ;;  %v235_v29 = vld [vmem:[%s1681_s10 + $0x1d0] sm:$0xff]  ;;  %v241_v34 = vld [vmem:[%s1681_s10 + $0x200] sm:$0xff] }
  0x3b   : > { %648 = vmatprep.mubr.f32.mxu1 %v220_v52  ;;  %1471 = vmatpush3.bf16.msra.mxu1 %v1470_v53  ;;  %v244_v32 = vld [vmem:[%s1681_s10 + $0x218] sm:$0xff]  ;;  %v1482_v33 = vpack.c.bf16 %v400_v28, %v399_v27  ;;  %v243_v35 = vld [vmem:[%s1681_s10 + $0x210] sm:$0xff]  ;;  %v250_v36 = vld [vmem:[%s1681_s10 + $0x248] sm:$0xff] }
  0x3c   : > { %514 = vmatmul.mubr.f32.gmra.mrb[10].mxu0 %v217_v57  ;;  %1473 = vmatprep.subr.bf16.mxu1 %v1472_v58  ;;  %v252_v37 = vld [vmem:[%s1681_s10 + $0x258] sm:$0xff]  ;;  %v249_v38 = vld [vmem:[%s1681_s10 + $0x240] sm:$0xff]  ;;  %v251_v39 = vld [vmem:[%s1681_s10 + $0x250] sm:$0xff] }
  0x3d   : > { %518 = vmatprep.mubr.f32.mxu0 %v226_v0  ;;  %1443 = vmatpush3.bf16.msra.mxu0 %v1442_v2  ;;  %v258_v40 = vld [vmem:[%s1681_s10 + $0x288] sm:$0xff]  ;;  %v260_v41 = vld [vmem:[%s1681_s10 + $0x298] sm:$0xff]  ;;  %v257_v42 = vld [vmem:[%s1681_s10 + $0x280] sm:$0xff] }
  0x3e   : > { %649 = vmatmul.mubr.f32.gmra.mrb[10].mxu1 %v219_v61  ;;  %1445 = vmatprep.subr.bf16.mxu0 %v1444_v5  ;;  %v259_v43 = vld [vmem:[%s1681_s10 + $0x290] sm:$0xff]  ;;  %v266_v44 = vld [vmem:[%s1681_s10 + $0x2c8] sm:$0xff]  ;;  %v268_v45 = vld [vmem:[%s1681_s10 + $0x2d8] sm:$0xff] }
  0x3f   : > { %653 = vmatprep.mubr.f32.mxu1 %v228_v1  ;;  %1475 = vmatpush3.bf16.msra.mxu1 %v1474_v4  ;;  %v265_v46 = vld [vmem:[%s1681_s10 + $0x2c0] sm:$0xff]  ;;  %v267_v47 = vld [vmem:[%s1681_s10 + $0x2d0] sm:$0xff]  ;;  %v274_v48 = vld [vmem:[%s1681_s10 + $0x308] sm:$0xff] }
  0x40   : > { %519 = vmatmul.mubr.f32.gmra.mrb[12].mxu0 %v225_v12  ;;  %1477 = vmatprep.subr.bf16.mxu1 %v1476_v9  ;;  %v276_v49 = vld [vmem:[%s1681_s10 + $0x318] sm:$0xff]  ;;  %v273_v50 = vld [vmem:[%s1681_s10 + $0x300] sm:$0xff]  ;;  %v275_v51 = vld [vmem:[%s1681_s10 + $0x310] sm:$0xff] }
  0x41   : > { %523 = vmatprep.mubr.f32.mxu0 %v234_v14  ;;  %1447 = vmatpush3.bf16.msra.mxu0 %v1446_v15  ;;  %v282_v52 = vld [vmem:[%s1681_s10 + $0x348] sm:$0xff]  ;;  %v284_v53 = vld [vmem:[%s1681_s10 + $0x358] sm:$0xff]  ;;  %v281_v54 = vld [vmem:[%s1681_s10 + $0x340] sm:$0xff] }
  0x42   : > { %654 = vmatmul.mubr.f32.gmra.mrb[12].mxu1 %v227_v13  ;;  %1449 = vmatprep.subr.bf16.mxu0 %v1448_v20  ;;  %v283_v55 = vld [vmem:[%s1681_s10 + $0x350] sm:$0xff]  ;;  %v182_v56 = vld [vmem:[%s1681_s10 + $0x28] sm:$0xff]  ;;  %v184_v57 = vld [vmem:[%s1681_s10 + $0x38] sm:$0xff] }
  0x43   : > { %658 = vmatprep.mubr.f32.mxu1 %v236_v18  ;;  %1479 = vmatpush3.bf16.msra.mxu1 %v1478_v19  ;;  %v181_v58 = vld [vmem:[%s1681_s10 + $0x20] sm:$0xff]  ;;  %v183_v59 = vld [vmem:[%s1681_s10 + $0x30] sm:$0xff]  ;;  %v190_v60 = vld [vmem:[%s1681_s10 + $0x68] sm:$0xff] }
  0x44   : > { %524 = vmatmul.mubr.f32.gmra.mrb[14].mxu0 %v233_v25  ;;  %1481 = vmatprep.subr.bf16.mxu1 %v1480_v26  ;;  %v192_v61 = vld [vmem:[%s1681_s10 + $0x78] sm:$0xff]  ;;  %v189_v62 = vld [vmem:[%s1681_s10 + $0x60] sm:$0xff]  ;;  %v191_v63 = vld [vmem:[%s1681_s10 + $0x70] sm:$0xff] }
  0x45   : > { %528 = vmatprep.mubr.f32.mxu0 %v242_v30  ;;  %1451 = vmatpush3.bf16.msra.mxu0 %v1450_v31  ;;  %v198_v0 = vld [vmem:[%s1681_s10 + $0xa8] sm:$0xff]  ;;  %v200_v1 = vld [vmem:[%s1681_s10 + $0xb8] sm:$0xff]  ;;  %v197_v2 = vld [vmem:[%s1681_s10 + $0xa0] sm:$0xff] }
  0x46   : > { %659 = vmatmul.mubr.f32.gmra.mrb[14].mxu1 %v235_v29  ;;  %v199_v3 = vld [vmem:[%s1681_s10 + $0xb0] sm:$0xff]  ;;  %v206_v4 = vld [vmem:[%s1681_s10 + $0xe8] sm:$0xff]  ;;  %v208_v5 = vld [vmem:[%s1681_s10 + $0xf8] sm:$0xff] }
  0x47   : > { %663 = vmatprep.mubr.f32.mxu1 %v244_v32  ;;  %1483 = vmatpush3.bf16.msra.mxu1 %v1482_v33  ;;  %v205_v6 = vld [vmem:[%s1681_s10 + $0xe0] sm:$0xff]  ;;  %v207_v7 = vld [vmem:[%s1681_s10 + $0xf0] sm:$0xff]  ;;  %v214_v8 = vld [vmem:[%s1681_s10 + $0x128] sm:$0xff] }
  0x48   : > { %529 = vmatmul.mubr.f32.gmra.mrb[16].mxu0 %v241_v34  ;;  %v216_v9 = vld [vmem:[%s1681_s10 + $0x138] sm:$0xff]  ;;  %v213_v10 = vld [vmem:[%s1681_s10 + $0x120] sm:$0xff]  ;;  %v215_v11 = vld [vmem:[%s1681_s10 + $0x130] sm:$0xff] }
  0x49   : > { %533 = vmatprep.mubr.f32.mxu0 %v250_v36  ;;  %v222_v12 = vld [vmem:[%s1681_s10 + $0x168] sm:$0xff]  ;;  %v224_v13 = vld [vmem:[%s1681_s10 + $0x178] sm:$0xff]  ;;  %v221_v14 = vld [vmem:[%s1681_s10 + $0x160] sm:$0xff] }
  0x4a   : > { %664 = vmatmul.mubr.f32.gmra.mrb[16].mxu1 %v243_v35  ;;  %v223_v15 = vld [vmem:[%s1681_s10 + $0x170] sm:$0xff]  ;;  %v230_v16 = vld [vmem:[%s1681_s10 + $0x1a8] sm:$0xff]  ;;  %v232_v17 = vld [vmem:[%s1681_s10 + $0x1b8] sm:$0xff] }
  0x4b   : > { %668 = vmatprep.mubr.f32.mxu1 %v252_v37  ;;  %v229_v18 = vld [vmem:[%s1681_s10 + $0x1a0] sm:$0xff]  ;;  %v231_v19 = vld [vmem:[%s1681_s10 + $0x1b0] sm:$0xff]  ;;  %v238_v20 = vld [vmem:[%s1681_s10 + $0x1e8] sm:$0xff] }
  0x4c   : > { %534 = vmatmul.mubr.f32.gmra.mrb[18].mxu0 %v249_v38  ;;  %v240_v21 = vld [vmem:[%s1681_s10 + $0x1f8] sm:$0xff]  ;;  %v237_v22 = vld [vmem:[%s1681_s10 + $0x1e0] sm:$0xff]  ;;  %v239_v23 = vld [vmem:[%s1681_s10 + $0x1f0] sm:$0xff] }
  0x4d   : > { %538 = vmatprep.mubr.f32.mxu0 %v258_v40  ;;  %v246_v24 = vld [vmem:[%s1681_s10 + $0x228] sm:$0xff]  ;;  %v248_v25 = vld [vmem:[%s1681_s10 + $0x238] sm:$0xff]  ;;  %v245_v26 = vld [vmem:[%s1681_s10 + $0x220] sm:$0xff] }
  0x4e   : > { %669 = vmatmul.mubr.f32.gmra.mrb[18].mxu1 %v251_v39  ;;  %v247_v27 = vld [vmem:[%s1681_s10 + $0x230] sm:$0xff]  ;;  %v254_v28 = vld [vmem:[%s1681_s10 + $0x268] sm:$0xff]  ;;  %v256_v29 = vld [vmem:[%s1681_s10 + $0x278] sm:$0xff] }
  0x4f   : > { %673 = vmatprep.mubr.f32.mxu1 %v260_v41  ;;  %v253_v30 = vld [vmem:[%s1681_s10 + $0x260] sm:$0xff]  ;;  %v255_v31 = vld [vmem:[%s1681_s10 + $0x270] sm:$0xff]  ;;  %v262_v32 = vld [vmem:[%s1681_s10 + $0x2a8] sm:$0xff] }
  0x50   : > { %539 = vmatmul.mubr.f32.gmra.mrb[20].mxu0 %v257_v42  ;;  %v264_v33 = vld [vmem:[%s1681_s10 + $0x2b8] sm:$0xff]  ;;  %v261_v34 = vld [vmem:[%s1681_s10 + $0x2a0] sm:$0xff]  ;;  %v263_v35 = vld [vmem:[%s1681_s10 + $0x2b0] sm:$0xff] }
  0x51   : > { %543 = vmatprep.mubr.f32.mxu0 %v266_v44  ;;  %v270_v36 = vld [vmem:[%s1681_s10 + $0x2e8] sm:$0xff]  ;;  %v272_v37 = vld [vmem:[%s1681_s10 + $0x2f8] sm:$0xff]  ;;  %v269_v38 = vld [vmem:[%s1681_s10 + $0x2e0] sm:$0xff] }
  0x52   : > { %674 = vmatmul.mubr.f32.gmra.mrb[20].mxu1 %v259_v43  ;;  %v271_v39 = vld [vmem:[%s1681_s10 + $0x2f0] sm:$0xff]  ;;  %v278_v40 = vld [vmem:[%s1681_s10 + $0x328] sm:$0xff]  ;;  %v280_v41 = vld [vmem:[%s1681_s10 + $0x338] sm:$0xff] }
  0x53   : > { %678 = vmatprep.mubr.f32.mxu1 %v268_v45  ;;  %v277_v42 = vld [vmem:[%s1681_s10 + $0x320] sm:$0xff]  ;;  %v279_v43 = vld [vmem:[%s1681_s10 + $0x330] sm:$0xff]  ;;  %v286_v44 = vld [vmem:[%s1681_s10 + $0x368] sm:$0xff] }
  0x54   : > { %544 = vmatmul.mubr.f32.gmra.mrb[22].mxu0 %v265_v46  ;;  %v288_v45 = vld [vmem:[%s1681_s10 + $0x378] sm:$0xff]  ;;  %v285_v46 = vld [vmem:[%s1681_s10 + $0x360] sm:$0xff] }
  0x55   : > { %548 = vmatprep.mubr.f32.mxu0 %v274_v48 }
  0x56   : > { %679 = vmatmul.mubr.f32.gmra.mrb[22].mxu1 %v267_v47  ;;  %v287_v47 = vld [vmem:[%s1681_s10 + $0x370] sm:$0xff]  ;;  %s1055_s10 = sshll.u32 %s2127_s5, 3 }
  0x57   : > { %683 = vmatprep.mubr.f32.mxu1 %v276_v49  ;;  %v2041_v49 = vld [vmem:[%s2124_s2] ss:$0 sm:$0xff]  ;;  %s2090_s8 = scalar_lea.vmem %s2125_s3, %s1055_s10 }
  0x58   : > { %549 = vmatmul.mubr.f32.gmra.mrb[24].mxu0 %v273_v50 }
  0x59   : > { %553 = vmatprep.mubr.f32.mxu0 %v282_v52 }
  0x5a   : > { %684 = vmatmul.mubr.f32.gmra.mrb[24].mxu1 %v275_v51 }
  0x5b   : > { %688 = vmatprep.mubr.f32.mxu1 %v284_v53 }
  0x5c   : > { %554 = vmatmul.mubr.f32.gmra.mrb[26].mxu0 %v281_v54 }
  0x5d   : > { %758 = vmatprep.mubr.f32.mxu0 %v182_v56 }
  0x5e   : > { %689 = vmatmul.mubr.f32.gmra.mrb[26].mxu1 %v283_v55 }
  0x5f   : > { %893 = vmatprep.mubr.f32.mxu1 %v184_v57 }
  0x60   : > { %759 = vmatmul.mubr.f32.vlgmr.msra.gmra.mrb[28].mxu0 %v181_v58 }
  0x61   : > { %763 = vmatprep.mubr.f32.mxu0 %v190_v60 }
  0x62   : > { %894 = vmatmul.mubr.f32.vlgmr.msra.gmra.mrb[28].mxu1 %v183_v59 }
  0x63   : > { %898 = vmatprep.mubr.f32.mxu1 %v192_v61 }
  0x64   : > { %764 = vmatmul.mubr.f32.gmra.mrb[30].mxu0 %v189_v62 }
  0x65   : > { %768 = vmatprep.mubr.f32.mxu0 %v198_v0 }
  0x66   : > { %899 = vmatmul.mubr.f32.gmra.mrb[30].mxu1 %v191_v63 }
  0x67   : > { %903 = vmatprep.mubr.f32.mxu1 %v200_v1 }
  0x68   : > { %769 = vmatmul.mubr.f32.gmra.mrb[32].mxu0 %v197_v2 }
  0x69   : > { %773 = vmatprep.mubr.f32.mxu0 %v206_v4 }
  0x6a   : > { %904 = vmatmul.mubr.f32.gmra.mrb[32].mxu1 %v199_v3 }
  0x6b   : > { %908 = vmatprep.mubr.f32.mxu1 %v208_v5 }
  0x6c   : > { %774 = vmatmul.mubr.f32.gmra.mrb[34].mxu0 %v205_v6 }
  0x6d   : > { %778 = vmatprep.mubr.f32.mxu0 %v214_v8 }
  0x6e   : > { %909 = vmatmul.mubr.f32.gmra.mrb[34].mxu1 %v207_v7 }
  0x6f   : > { %913 = vmatprep.mubr.f32.mxu1 %v216_v9 }
  0x70   : > { %779 = vmatmul.mubr.f32.gmra.mrb[36].mxu0 %v213_v10 }
  0x71   : > { %783 = vmatprep.mubr.f32.mxu0 %v222_v12 }
  0x72   : > { %914 = vmatmul.mubr.f32.gmra.mrb[36].mxu1 %v215_v11 }
  0x73   : > { %918 = vmatprep.mubr.f32.mxu1 %v224_v13 }
  0x74   : > { %784 = vmatmul.mubr.f32.gmra.mrb[38].mxu0 %v221_v14 }
  0x75   : > { %788 = vmatprep.mubr.f32.mxu0 %v230_v16 }
  0x76   : > { %919 = vmatmul.mubr.f32.gmra.mrb[38].mxu1 %v223_v15 }
  0x77   : > { %923 = vmatprep.mubr.f32.mxu1 %v232_v17 }
  0x78   : > { %789 = vmatmul.mubr.f32.gmra.mrb[40].mxu0 %v229_v18 }
  0x79   : > { %793 = vmatprep.mubr.f32.mxu0 %v238_v20 }
  0x7a   : > { %924 = vmatmul.mubr.f32.gmra.mrb[40].mxu1 %v231_v19 }
  0x7b   : > { %928 = vmatprep.mubr.f32.mxu1 %v240_v21 }
  0x7c   : > { %794 = vmatmul.mubr.f32.gmra.mrb[42].mxu0 %v237_v22 }
  0x7d   : > { %798 = vmatprep.mubr.f32.mxu0 %v246_v24 }
  0x7e   : > { %929 = vmatmul.mubr.f32.gmra.mrb[42].mxu1 %v239_v23 }
  0x7f   : > { %933 = vmatprep.mubr.f32.mxu1 %v248_v25 }
  0x80   : > { %799 = vmatmul.mubr.f32.gmra.mrb[44].mxu0 %v245_v26 }
  0x81   : > { %803 = vmatprep.mubr.f32.mxu0 %v254_v28 }
  0x82   : > { %934 = vmatmul.mubr.f32.gmra.mrb[44].mxu1 %v247_v27 }
  0x83   : > { %938 = vmatprep.mubr.f32.mxu1 %v256_v29 }
  0x84   : > { %804 = vmatmul.mubr.f32.gmra.mrb[46].mxu0 %v253_v30 }
  0x85   : > { %808 = vmatprep.mubr.f32.mxu0 %v262_v32 }
  0x86   : > { %939 = vmatmul.mubr.f32.gmra.mrb[46].mxu1 %v255_v31 }
  0x87   : > { %943 = vmatprep.mubr.f32.mxu1 %v264_v33 }
  0x88   : > { %809 = vmatmul.mubr.f32.gmra.mrb[48].mxu0 %v261_v34 }
  0x89   : > { %813 = vmatprep.mubr.f32.mxu0 %v270_v36 }
  0x8a   : > { %944 = vmatmul.mubr.f32.gmra.mrb[48].mxu1 %v263_v35 }
  0x8b   : > { %948 = vmatprep.mubr.f32.mxu1 %v272_v37 }
  0x8c   : > { %814 = vmatmul.mubr.f32.gmra.mrb[50].mxu0 %v269_v38 }
  0x8d   : > { %818 = vmatprep.mubr.f32.mxu0 %v278_v40 }
  0x8e   : > { %949 = vmatmul.mubr.f32.gmra.mrb[50].mxu1 %v271_v39 }
  0x8f   : > { %953 = vmatprep.mubr.f32.mxu1 %v280_v41 }
  0x90   : > { %819 = vmatmul.mubr.f32.gmra.mrb[52].mxu0 %v277_v42 }
  0x91   : > { %823 = vmatprep.mubr.f32.mxu0 %v286_v44 }
  0x92   : > { %954 = vmatmul.mubr.f32.gmra.mrb[52].mxu1 %v279_v43 }
  0x93   : > { %958 = vmatprep.mubr.f32.mxu1 %v288_v45 }
  0x94   : > { %824 = vmatmul.mubr.f32.gmra.mrb[54].mxu0 %v285_v46 }
  0x96   : > { %959 = vmatmul.mubr.f32.gmra.mrb[54].mxu1 %v287_v47 }
  0xfb   : > { %v1092_v48 = vpop.f32.mrb[0].mxu0 }
  0xfc   : > { %v1093_v50 = vpop.f32.mrb[1].mxu0 }
  0xfd   : > { %v1166_v51 = vpop.f32.mrb[0].mxu1  ;;  %v1094_v52 = vadd.f32 %v1093_v50, %v1092_v48 }
  0xfe   : > { %v1167_v53 = vpop.f32.mrb[1].mxu1 }
  0xff   : > { %v1168_v54 = vadd.f32 %v1167_v53, %v1166_v51  ;;  %v491_v55 = vadd.f32 %v1094_v52, %v2041_v49  ;;  %v1095_v56 = vpop.f32.mrb[2].mxu0 }
 0x100   : > { %v1096_v57 = vpop.f32.mrb[3].mxu0 }
 0x101   : > { %v1169_v58 = vpop.f32.mrb[2].mxu1  ;;  %v2044_v59 = vadd.f32 %v1168_v54, %v491_v55  ;;  %v1097_v60 = vadd.f32 %v1096_v57, %v1095_v56 }
 0x102   : > { %v1170_v61 = vpop.f32.mrb[3].mxu1 }
 0x103   : > { %v1171_v62 = vadd.f32 %v1170_v61, %v1169_v58  ;;  %v496_v63 = vadd.f32 %v1097_v60, %v2041_v49  ;;  %v1098_v0 = vpop.f32.mrb[4].mxu0 }
 0x104   : > { %v1099_v1 = vpop.f32.mrb[5].mxu0 }
 0x105   : > { %v1172_v2 = vpop.f32.mrb[4].mxu1  ;;  %v2047_v3 = vadd.f32 %v1171_v62, %v496_v63  ;;  %v1100_v4 = vadd.f32 %v1099_v1, %v1098_v0 }
 0x106   : > { %v1173_v5 = vpop.f32.mrb[5].mxu1 }
 0x107   : > { %v1174_v6 = vadd.f32 %v1173_v5, %v1172_v2  ;;  %v501_v7 = vadd.f32 %v1100_v4, %v2041_v49  ;;  %v1101_v8 = vpop.f32.mrb[6].mxu0 }
 0x108   : > { %v1102_v9 = vpop.f32.mrb[7].mxu0 }
 0x109   : > { %v1175_v10 = vpop.f32.mrb[6].mxu1  ;;  %v2050_v11 = vadd.f32 %v1174_v6, %v501_v7  ;;  %v1103_v12 = vadd.f32 %v1102_v9, %v1101_v8 }
 0x10a   : > { %v1176_v13 = vpop.f32.mrb[7].mxu1 }
 0x10b   : > { %v1177_v14 = vadd.f32 %v1176_v13, %v1175_v10  ;;  %v506_v15 = vadd.f32 %v1103_v12, %v2041_v49  ;;  %v1104_v16 = vpop.f32.mrb[8].mxu0 }
 0x10c   : > { %v1105_v17 = vpop.f32.mrb[9].mxu0 }
 0x10d   : > { %v1178_v18 = vpop.f32.mrb[8].mxu1  ;;  %v2053_v19 = vadd.f32 %v1177_v14, %v506_v15  ;;  %v1106_v20 = vadd.f32 %v1105_v17, %v1104_v16 }
 0x10e   : > { %v1179_v21 = vpop.f32.mrb[9].mxu1 }
 0x10f   : > { %v1180_v22 = vadd.f32 %v1179_v21, %v1178_v18  ;;  %v511_v23 = vadd.f32 %v1106_v20, %v2041_v49  ;;  %v1107_v24 = vpop.f32.mrb[10].mxu0 }
 0x110   : > { %v1108_v25 = vpop.f32.mrb[11].mxu0 }
 0x111   : > { %v1181_v26 = vpop.f32.mrb[10].mxu1  ;;  %v2056_v27 = vadd.f32 %v1180_v22, %v511_v23  ;;  %v1109_v28 = vadd.f32 %v1108_v25, %v1107_v24 }
 0x112   : > { %v1182_v29 = vpop.f32.mrb[11].mxu1 }
 0x113   : > { %v1183_v30 = vadd.f32 %v1182_v29, %v1181_v26  ;;  %v516_v31 = vadd.f32 %v1109_v28, %v2041_v49  ;;  %v1110_v32 = vpop.f32.mrb[12].mxu0 }
 0x114   : > { %v1111_v33 = vpop.f32.mrb[13].mxu0 }
 0x115   : > { %v1184_v34 = vpop.f32.mrb[12].mxu1  ;;  %v2059_v35 = vadd.f32 %v1183_v30, %v516_v31  ;;  %v1112_v36 = vadd.f32 %v1111_v33, %v1110_v32 }
 0x116   : > { %v1185_v37 = vpop.f32.mrb[13].mxu1 }
 0x117   : > { %v1186_v38 = vadd.f32 %v1185_v37, %v1184_v34  ;;  %v521_v39 = vadd.f32 %v1112_v36, %v2041_v49  ;;  %v1113_v40 = vpop.f32.mrb[14].mxu0 }
 0x118   : > { %v1114_v41 = vpop.f32.mrb[15].mxu0 }
 0x119   : > { %v1187_v42 = vpop.f32.mrb[14].mxu1  ;;  %v2062_v43 = vadd.f32 %v1186_v38, %v521_v39  ;;  %v1115_v44 = vadd.f32 %v1114_v41, %v1113_v40 }
 0x11a   : > { %v1188_v45 = vpop.f32.mrb[15].mxu1 }
 0x11b   : > { %v1189_v46 = vadd.f32 %v1188_v45, %v1187_v42  ;;  %v526_v47 = vadd.f32 %v1115_v44, %v2041_v49  ;;  %v1116_v48 = vpop.f32.mrb[16].mxu0 }
 0x11c   : > { %v1117_v50 = vpop.f32.mrb[17].mxu0 }
 0x11d   : > { %v1190_v51 = vpop.f32.mrb[16].mxu1  ;;  %v2065_v52 = vadd.f32 %v1189_v46, %v526_v47  ;;  %v1118_v53 = vadd.f32 %v1117_v50, %v1116_v48 }
 0x11e   : > { %v1191_v54 = vpop.f32.mrb[17].mxu1 }
 0x11f   : > { %v1192_v55 = vadd.f32 %v1191_v54, %v1190_v51  ;;  %v531_v56 = vadd.f32 %v1118_v53, %v2041_v49  ;;  %v1119_v57 = vpop.f32.mrb[18].mxu0 }
 0x120   : > { %v1120_v58 = vpop.f32.mrb[19].mxu0 }
 0x121   : > { %v1193_v60 = vpop.f32.mrb[18].mxu1  ;;  %v2068_v61 = vadd.f32 %v1192_v55, %v531_v56  ;;  %v1121_v62 = vadd.f32 %v1120_v58, %v1119_v57 }
 0x122   : > { %v1194_v63 = vpop.f32.mrb[19].mxu1 }
 0x123   : > { %v1195_v0 = vadd.f32 %v1194_v63, %v1193_v60  ;;  %v536_v1 = vadd.f32 %v1121_v62, %v2041_v49  ;;  %v1122_v2 = vpop.f32.mrb[20].mxu0 }
 0x124   : > { %v1123_v4 = vpop.f32.mrb[21].mxu0 }
 0x125   : > { %v1196_v5 = vpop.f32.mrb[20].mxu1  ;;  %v2071_v6 = vadd.f32 %v1195_v0, %v536_v1  ;;  %v1124_v7 = vadd.f32 %v1123_v4, %v1122_v2 }
 0x126   : > { %v1197_v8 = vpop.f32.mrb[21].mxu1 }
 0x127   : > { %v1198_v9 = vadd.f32 %v1197_v8, %v1196_v5  ;;  %v541_v10 = vadd.f32 %v1124_v7, %v2041_v49  ;;  %v1125_v12 = vpop.f32.mrb[22].mxu0 }
 0x128   : > { %v1126_v13 = vpop.f32.mrb[23].mxu0 }
 0x129   : > { %v1199_v14 = vpop.f32.mrb[22].mxu1  ;;  %v2074_v15 = vadd.f32 %v1198_v9, %v541_v10  ;;  %v1127_v16 = vadd.f32 %v1126_v13, %v1125_v12 }
 0x12a   : > { %v1200_v17 = vpop.f32.mrb[23].mxu1 }
 0x12b   : > { %v1201_v18 = vadd.f32 %v1200_v17, %v1199_v14  ;;  %v546_v20 = vadd.f32 %v1127_v16, %v2041_v49  ;;  %v1128_v21 = vpop.f32.mrb[24].mxu0 }
 0x12c   : > { %v1129_v22 = vpop.f32.mrb[25].mxu0 }
 0x12d   : > { %v1202_v23 = vpop.f32.mrb[24].mxu1  ;;  %v2077_v24 = vadd.f32 %v1201_v18, %v546_v20  ;;  %v1130_v25 = vadd.f32 %v1129_v22, %v1128_v21 }
 0x12e   : > { %v1203_v26 = vpop.f32.mrb[25].mxu1 }
 0x12f   : > { %v1204_v28 = vadd.f32 %v1203_v26, %v1202_v23  ;;  %v551_v29 = vadd.f32 %v1130_v25, %v2041_v49  ;;  %v1131_v30 = vpop.f32.mrb[26].mxu0 }
 0x130   : > { %v1132_v31 = vpop.f32.mrb[27].mxu0 }
 0x131   : > { %v1205_v32 = vpop.f32.mrb[26].mxu1  ;;  %v2080_v33 = vadd.f32 %v1204_v28, %v551_v29  ;;  %v1133_v34 = vadd.f32 %v1132_v31, %v1131_v30 }
 0x132   : > { %v1206_v36 = vpop.f32.mrb[27].mxu1 }
 0x133   : > { %v1207_v37 = vadd.f32 %v1206_v36, %v1205_v32  ;;  %v556_v38 = vadd.f32 %v1133_v34, %v2041_v49  ;;  %v1240_v39 = vpop.f32.mrb[28].mxu0 }
 0x134   : > { %v1241_v40 = vpop.f32.mrb[29].mxu0 }
 0x135   : > { %v1314_v41 = vpop.f32.mrb[28].mxu1  ;;  %v2083_v42 = vadd.f32 %v1207_v37, %v556_v38  ;;  %v1242_v44 = vadd.f32 %v1241_v40, %v1240_v39 }
 0x136   : > { %v1315_v45 = vpop.f32.mrb[29].mxu1 }
 0x137   : > { %v1316_v46 = vadd.f32 %v1315_v45, %v1314_v41  ;;  %v761_v47 = vadd.f32 %v1242_v44, %v2044_v59  ;;  %v1243_v48 = vpop.f32.mrb[30].mxu0 }
 0x138   : > { %v1244_v50 = vpop.f32.mrb[31].mxu0 }
 0x139   : > { %v1317_v51 = vpop.f32.mrb[30].mxu1  ;;  %v896_v53 = vadd.f32 %v1316_v46, %v761_v47  ;;  %v1245_v54 = vadd.f32 %v1244_v50, %v1243_v48 }
 0x13a   : > { %v1318_v55 = vpop.f32.mrb[31].mxu1 }
 0x13b   : > { %v1319_v49 = vadd.f32 %v1318_v55, %v1317_v51  ;;  %v964_v56 = vmax.f32 %v896_v53, 0.0  ;;  %v766_v57 = vadd.f32 %v1245_v54, %v2047_v3  ;;  %v1246_v58 = vpop.f32.mrb[32].mxu0 }
 0x13c   : > { %v1247_v59 = vpop.f32.mrb[33].mxu0 }
 0x13d   : > { %v1320_v60 = vpop.f32.mrb[32].mxu1  ;;  %978 = vst [vmem:[%s2090_s8] sm:$0xff] %v964_v56  ;;  %v901_v62 = vadd.f32 %v1319_v49, %v766_v57  ;;  %v1248_v63 = vadd.f32 %v1247_v59, %v1246_v58 }
 0x13e   : > { %v1321_v0 = vpop.f32.mrb[33].mxu1 }
 0x13f   : > { %v1322_v1 = vadd.f32 %v1321_v0, %v1320_v60  ;;  %v965_v2 = vmax.f32 %v901_v62, 0.0  ;;  %v771_v4 = vadd.f32 %v1248_v63, %v2050_v11  ;;  %v1249_v5 = vpop.f32.mrb[34].mxu0 }
 0x140   : > { %v1250_v7 = vpop.f32.mrb[35].mxu0 }
 0x141   : > { %v1323_v8 = vpop.f32.mrb[34].mxu1  ;;  %979 = vst [vmem:[%s2090_s8 + $0x8] sm:$0xff] %v965_v2  ;;  %v906_v9 = vadd.f32 %v1322_v1, %v771_v4  ;;  %v1251_v10 = vadd.f32 %v1250_v7, %v1249_v5 }
 0x142   : > { %v1324_v12 = vpop.f32.mrb[35].mxu1 }
 0x143   : > { %v1325_v3 = vadd.f32 %v1324_v12, %v1323_v8  ;;  %v966_v13 = vmax.f32 %v906_v9, 0.0  ;;  %v776_v14 = vadd.f32 %v1251_v10, %v2053_v19  ;;  %v1252_v16 = vpop.f32.mrb[36].mxu0 }
 0x144   : > { %v1253_v17 = vpop.f32.mrb[37].mxu0 }
 0x145   : > { %v1326_v18 = vpop.f32.mrb[36].mxu1  ;;  %980 = vst [vmem:[%s2090_s8 + $0x10] sm:$0xff] %v966_v13  ;;  %v911_v20 = vadd.f32 %v1325_v3, %v776_v14  ;;  %v1254_v21 = vadd.f32 %v1253_v17, %v1252_v16 }
 0x146   : > { %v1327_v22 = vpop.f32.mrb[37].mxu1 }
 0x147   : > { %v1328_v11 = vadd.f32 %v1327_v22, %v1326_v18  ;;  %v967_v23 = vmax.f32 %v911_v20, 0.0  ;;  %v781_v25 = vadd.f32 %v1254_v21, %v2056_v27  ;;  %v1255_v26 = vpop.f32.mrb[38].mxu0 }
 0x148   : > { %v1256_v28 = vpop.f32.mrb[39].mxu0 }
 0x149   : > { %v1329_v29 = vpop.f32.mrb[38].mxu1  ;;  %981 = vst [vmem:[%s2090_s8 + $0x18] sm:$0xff] %v967_v23  ;;  %v916_v30 = vadd.f32 %v1328_v11, %v781_v25  ;;  %v1257_v31 = vadd.f32 %v1256_v28, %v1255_v26 }
 0x14a   : > { %v1330_v32 = vpop.f32.mrb[39].mxu1 }
 0x14b   : > { %v1331_v19 = vadd.f32 %v1330_v32, %v1329_v29  ;;  %v968_v34 = vmax.f32 %v916_v30, 0.0  ;;  %v786_v36 = vadd.f32 %v1257_v31, %v2059_v35  ;;  %v1258_v37 = vpop.f32.mrb[40].mxu0 }
 0x14c   : > { %v1259_v38 = vpop.f32.mrb[41].mxu0 }
 0x14d   : > { %v1332_v39 = vpop.f32.mrb[40].mxu1  ;;  %982 = vst [vmem:[%s2090_s8 + $0x20] sm:$0xff] %v968_v34  ;;  %v921_v40 = vadd.f32 %v1331_v19, %v786_v36  ;;  %v1260_v41 = vadd.f32 %v1259_v38, %v1258_v37 }
 0x14e   : > { %v1333_v44 = vpop.f32.mrb[41].mxu1 }
 0x14f   : > { %v1334_v27 = vadd.f32 %v1333_v44, %v1332_v39  ;;  %v969_v45 = vmax.f32 %v921_v40, 0.0  ;;  %v791_v46 = vadd.f32 %v1260_v41, %v2062_v43  ;;  %v1261_v47 = vpop.f32.mrb[42].mxu0 }
 0x150   : > { %v1262_v48 = vpop.f32.mrb[43].mxu0 }
 0x151   : > { %v1335_v50 = vpop.f32.mrb[42].mxu1  ;;  %983 = vst [vmem:[%s2090_s8 + $0x28] sm:$0xff] %v969_v45  ;;  %v926_v51 = vadd.f32 %v1334_v27, %v791_v46  ;;  %v1263_v53 = vadd.f32 %v1262_v48, %v1261_v47 }
 0x152   : > { %v1336_v54 = vpop.f32.mrb[43].mxu1 }
 0x153   : > { %v1337_v35 = vadd.f32 %v1336_v54, %v1335_v50  ;;  %v970_v55 = vmax.f32 %v926_v51, 0.0  ;;  %v796_v49 = vadd.f32 %v1263_v53, %v2065_v52  ;;  %v1264_v56 = vpop.f32.mrb[44].mxu0 }
 0x154   : > { %v1265_v57 = vpop.f32.mrb[45].mxu0 }
 0x155   : > { %v1338_v58 = vpop.f32.mrb[44].mxu1  ;;  %984 = vst [vmem:[%s2090_s8 + $0x30] sm:$0xff] %v970_v55  ;;  %v931_v59 = vadd.f32 %v1337_v35, %v796_v49  ;;  %v1266_v60 = vadd.f32 %v1265_v57, %v1264_v56 }
 0x156   : > { %v1339_v62 = vpop.f32.mrb[45].mxu1 }
 0x157   : > { %v1340_v43 = vadd.f32 %v1339_v62, %v1338_v58  ;;  %v971_v63 = vmax.f32 %v931_v59, 0.0  ;;  %v801_v0 = vadd.f32 %v1266_v60, %v2068_v61  ;;  %v1267_v1 = vpop.f32.mrb[46].mxu0 }
 0x158   : > { %v1268_v2 = vpop.f32.mrb[47].mxu0 }
 0x159   : > { %v1341_v4 = vpop.f32.mrb[46].mxu1  ;;  %985 = vst [vmem:[%s2090_s8 + $0x38] sm:$0xff] %v971_v63  ;;  %v936_v5 = vadd.f32 %v1340_v43, %v801_v0  ;;  %v1269_v7 = vadd.f32 %v1268_v2, %v1267_v1 }
 0x15a   : > { %v1342_v8 = vpop.f32.mrb[47].mxu1 }
 0x15b   : > { %v1343_v52 = vadd.f32 %v1342_v8, %v1341_v4  ;;  %v972_v9 = vmax.f32 %v936_v5, 0.0  ;;  %v806_v10 = vadd.f32 %v1269_v7, %v2071_v6  ;;  %v1270_v12 = vpop.f32.mrb[48].mxu0 }
 0x15c   : > { %v1271_v3 = vpop.f32.mrb[49].mxu0 }
 0x15d   : > { %v1344_v13 = vpop.f32.mrb[48].mxu1  ;;  %986 = vst [vmem:[%s2090_s8 + $0x40] sm:$0xff] %v972_v9  ;;  %v941_v14 = vadd.f32 %v1343_v52, %v806_v10  ;;  %v1272_v16 = vadd.f32 %v1271_v3, %v1270_v12 }
 0x15e   : > { %v1345_v17 = vpop.f32.mrb[49].mxu1 }
 0x15f   : > { %v1346_v61 = vadd.f32 %v1345_v17, %v1344_v13  ;;  %v973_v18 = vmax.f32 %v941_v14, 0.0  ;;  %v811_v20 = vadd.f32 %v1272_v16, %v2074_v15  ;;  %v1273_v21 = vpop.f32.mrb[50].mxu0 }
 0x160   : > { %v1274_v22 = vpop.f32.mrb[51].mxu0 }
 0x161   : > { %v1347_v11 = vpop.f32.mrb[50].mxu1  ;;  %987 = vst [vmem:[%s2090_s8 + $0x48] sm:$0xff] %v973_v18  ;;  %v946_v23 = vadd.f32 %v1346_v61, %v811_v20  ;;  %v1275_v25 = vadd.f32 %v1274_v22, %v1273_v21 }
 0x162   : > { %v1348_v26 = vpop.f32.mrb[51].mxu1 }
 0x163   : > { %v1349_v6 = vadd.f32 %v1348_v26, %v1347_v11  ;;  %v974_v28 = vmax.f32 %v946_v23, 0.0  ;;  %v816_v29 = vadd.f32 %v1275_v25, %v2077_v24  ;;  %v1276_v30 = vpop.f32.mrb[52].mxu0 }
 0x164   : > { %v1277_v31 = vpop.f32.mrb[53].mxu0 }
 0x165   : > { %v1350_v32 = vpop.f32.mrb[52].mxu1  ;;  %988 = vst [vmem:[%s2090_s8 + $0x50] sm:$0xff] %v974_v28  ;;  %v951_v19 = vadd.f32 %v1349_v6, %v816_v29  ;;  %v1278_v34 = vadd.f32 %v1277_v31, %v1276_v30 }
 0x166   : > { %v1351_v15 = vpop.f32.mrb[53].mxu1 }
 0x167   : > { %v1352_v36 = vadd.f32 %v1351_v15, %v1350_v32  ;;  %v975_v37 = vmax.f32 %v951_v19, 0.0  ;;  %v821_v38 = vadd.f32 %v1278_v34, %v2080_v33  ;;  %v1279_v39 = vpop.f32.mrb[54].mxu0 }
 0x168   : > { %v1280_v40 = vpop.f32.mrb[55].mxu0 }
 0x169   : > { %v1353_v41 = vpop.f32.mrb[54].mxu1  ;;  %989 = vst [vmem:[%s2090_s8 + $0x58] sm:$0xff] %v975_v37  ;;  %v956_v44 = vadd.f32 %v1352_v36, %v821_v38  ;;  %v1281_v27 = vadd.f32 %v1280_v40, %v1279_v39 }
 0x16a   : > { %v1354_v24 = vpop.f32.mrb[55].mxu1 }
 0x16b   : > { %v1355_v45 = vadd.f32 %v1354_v24, %v1353_v41  ;;  %v976_v46 = vmax.f32 %v956_v44, 0.0  ;;  %v826_v47 = vadd.f32 %v1281_v27, %v2083_v42 }
 0x16d   : > { %990 = vst [vmem:[%s2090_s8 + $0x60] sm:$0xff] %v976_v46  ;;  %v961_v48 = vadd.f32 %v1355_v45, %v826_v47 }
 0x16f   : > { %v977_v50 = vmax.f32 %v961_v48, 0.0 }
 0x171   : > { %991 = vst [vmem:[%s2090_s8 + $0x68] sm:$0xff] %v977_v50 }
 0x172 PF: > { %s13_s12 = sadd.s32 1, %s1498_s12  }
 0x173   : > { %p10_p4 = scmp.ge.s32.totalorder %s13_s12, 4  }
 0x175   :  { %12 = sbr.rel (!%p10_p4) target bundleno = 1 (0x1), region = 62 }

// kernel: pilotnet_forward.9
= control target key start
LH: loop header
LB: loop body
LE: loop exit
PB: predicated region body
PF: predicated region fallthrough
CT: control target
= control target key end

     0   :  { %s788_s12 = smov 0   ;;  %s1064_s0 = inlined_call_operand.vmem [shape: f32[128,512], index: 0, kind: input, shape index: {}]   ;;  %s1065_s1 = inlined_call_operand.vmem [shape: f32[512,128], index: 1, kind: input, shape index: {}]   ;;  %s1066_s2 = inlined_call_operand.vmem [shape: f32[1,128], index: 2, kind: input, shape index: {}]   ;;  %s1067_s3 = inlined_call_operand.vmem [shape: f32[128,128], index: 3, kind: output, shape index: {}]  }
   0x1 LB: > { %s562_s13 = sadd.s32 4294967295, %s766_s12   ;;  %p566_p0 = scmp.ge.s32.totalorder %s766_s12, 1  ;;  %s766_s12 = sphi %s788_s12, %s13_s12  }
   0x2   : > { %p139_p1 = scmp.lt.s32.totalorder %s766_s12, 3 }
   0x4   : > { %p140_p2 = pnand %p566_p0, %p139_p1 }
   0x5   : > { %v225_v0 = vld [vmem:[%s1065_s1 + $0x80] sm:$0xff] (!%p140_p2)  ;;  %v226_v1 = vld [vmem:[%s1065_s1 + $0x88] sm:$0xff] (!%p140_p2)  ;;  %v227_v11 = vld [vmem:[%s1065_s1 + $0x90] sm:$0xff] (!%p140_p2)  ;;  %s841_s19 = sshll.u32 (!%p140_p2), %s562_s13, 3 }
   0x6   : > { %143 = sbr.rel (%p140_p2) target bundleno = 290 (0x122), region = 32  ;;  %v209_v2 = vld [vmem:[%s1065_s1] sm:$0xff] (!%p140_p2)  ;;  %v688_v3 = vpack.c.bf16 (!%p140_p2), %v226_v1, %v225_v0  ;;  %v210_v4 = vld [vmem:[%s1065_s1 + $0x8] sm:$0xff] (!%p140_p2)  ;;  %v228_v13 = vld [vmem:[%s1065_s1 + $0x98] sm:$0xff] (!%p140_p2)  ;;  %p165_p3 = scmp.lt.s32.totalorder (!%p140_p2), %s841_s19, 15 }
   0x7   : > { %v257_v5 = vld [vmem:[%s1065_s1 + $0x180] sm:$0xff] (!%p140_p2)  ;;  %v258_v6 = vld [vmem:[%s1065_s1 + $0x188] sm:$0xff] (!%p140_p2)  ;;  %v690_v7 = vpack.c.bf16 (!%p140_p2), %v210_v4, %v209_v2  ;;  %v211_v14 = vld [vmem:[%s1065_s1 + $0x10] sm:$0xff] (!%p140_p2)  ;;  %v692_v16 = vpack.c.bf16 (!%p140_p2), %v228_v13, %v227_v11 }
   0x8   : > { %v720_v8 = vpack.c.bf16 (!%p140_p2), %v258_v6, %v257_v5  ;;  %v241_v9 = vld [vmem:[%s1065_s1 + $0x100] sm:$0xff] (!%p140_p2)  ;;  %v242_v10 = vld [vmem:[%s1065_s1 + $0x108] sm:$0xff] (!%p140_p2)  ;;  %689 = vmatprep.subr.bf16.mxu0 (!%p140_p2), %v688_v3  ;;  %v212_v15 = vld [vmem:[%s1065_s1 + $0x18] sm:$0xff] (!%p140_p2) }
   0x9   : > { %v722_v12 = vpack.c.bf16 (!%p140_p2), %v242_v10, %v241_v9  ;;  %691 = vmatpush3.bf16.msra.mxu0 (!%p140_p2), %v690_v7  ;;  %v694_v17 = vpack.c.bf16 (!%p140_p2), %v212_v15, %v211_v14  ;;  %v259_v18 = vld [vmem:[%s1065_s1 + $0x190] sm:$0xff] (!%p140_p2)  ;;  %v260_v19 = vld [vmem:[%s1065_s1 + $0x198] sm:$0xff] (!%p140_p2)  ;;  %v229_v23 = vld [vmem:[%s1065_s1 + $0xa0] sm:$0xff] (!%p140_p2) }
   0xa   : > { %721 = vmatprep.subr.bf16.mxu1 (!%p140_p2), %v720_v8  ;;  %v243_v20 = vld [vmem:[%s1065_s1 + $0x110] sm:$0xff] (!%p140_p2)  ;;  %v724_v21 = vpack.c.bf16 (!%p140_p2), %v260_v19, %v259_v18  ;;  %v244_v22 = vld [vmem:[%s1065_s1 + $0x118] sm:$0xff] (!%p140_p2)  ;;  %v230_v24 = vld [vmem:[%s1065_s1 + $0xa8] sm:$0xff] (!%p140_p2)  ;;  %693 = vmatprep.subr.bf16.mxu0 (!%p140_p2), %v692_v16 }
   0xb   : > { %723 = vmatpush3.bf16.msra.mxu1 (!%p140_p2), %v722_v12  ;;  %v726_v25 = vpack.c.bf16 (!%p140_p2), %v244_v22, %v243_v20  ;;  %v696_v26 = vpack.c.bf16 (!%p140_p2), %v230_v24, %v229_v23  ;;  %v213_v27 = vld [vmem:[%s1065_s1 + $0x20] sm:$0xff] (!%p140_p2)  ;;  %v214_v28 = vld [vmem:[%s1065_s1 + $0x28] sm:$0xff] (!%p140_p2)  ;;  %v231_v35 = vld [vmem:[%s1065_s1 + $0xb0] sm:$0xff] (!%p140_p2) }
   0xc   : > { %v261_v29 = vld [vmem:[%s1065_s1 + $0x1a0] sm:$0xff] (!%p140_p2)  ;;  %725 = vmatprep.subr.bf16.mxu1 (!%p140_p2), %v724_v21  ;;  %v262_v30 = vld [vmem:[%s1065_s1 + $0x1a8] sm:$0xff] (!%p140_p2)  ;;  %v698_v33 = vpack.c.bf16 (!%p140_p2), %v214_v28, %v213_v27  ;;  %v232_v36 = vld [vmem:[%s1065_s1 + $0xb8] sm:$0xff] (!%p140_p2) }
   0xd   : > { %v245_v31 = vld [vmem:[%s1065_s1 + $0x120] sm:$0xff]  ;;  %v246_v32 = vld [vmem:[%s1065_s1 + $0x128] sm:$0xff]  ;;  %695 = vmatpush3.bf16.msra.mxu0 %v694_v17  ;;  %v728_v34 = vpack.c.bf16 %v262_v30, %v261_v29  ;;  %v215_v37 = vld [vmem:[%s1065_s1 + $0x30] sm:$0xff]  ;;  %v700_v39 = vpack.c.bf16 %v232_v36, %v231_v35  ;;  %s1069_s19 = smov (!%p165_p3, %s841_s19), 15 }
   0xe   : > { %697 = vmatprep.subr.bf16.mxu0 %v696_v26  ;;  %v730_v38 = vpack.c.bf16 %v246_v32, %v245_v31  ;;  %v216_v40 = vld [vmem:[%s1065_s1 + $0x38] sm:$0xff]  ;;  %v263_v41 = vld [vmem:[%s1065_s1 + $0x1b0] sm:$0xff]  ;;  %v233_v46 = vld [vmem:[%s1065_s1 + $0xc0] sm:$0xff]  ;;  %s575_s27 = sshll.u32 %s1069_s19, 5  ;;  %s571_s25 = sshll.u32 %s1069_s19, 3 }
   0xf   : > { %727 = vmatpush3.bf16.msra.mxu1 %v726_v25  ;;  %v264_v42 = vld [vmem:[%s1065_s1 + $0x1b8] sm:$0xff]  ;;  %v247_v44 = vld [vmem:[%s1065_s1 + $0x130] sm:$0xff]  ;;  %v234_v47 = vld [vmem:[%s1065_s1 + $0xc8] sm:$0xff]  ;;  %v702_v48 = vpack.c.bf16 %v216_v40, %v215_v37  ;;  %s958_s17 = scalar_lea.vmem %s1064_s0, %s575_s27  ;;  %s1044_s26 = scalar_lea.vmem %s1067_s3, %s571_s25 }
  0x10   : > { %729 = vmatprep.subr.bf16.mxu1 %v728_v34  ;;  %v732_v43 = vpack.c.bf16 %v264_v42, %v263_v41  ;;  %v248_v45 = vld [vmem:[%s1065_s1 + $0x138] sm:$0xff]  ;;  %v265_v49 = vld [vmem:[%s1065_s1 + $0x1c0] sm:$0xff]  ;;  %v266_v50 = vld [vmem:[%s1065_s1 + $0x1c8] sm:$0xff]  ;;  %v704_v52 = vpack.c.bf16 %v234_v47, %v233_v46 }
  0x11   : > { %699 = vmatpush3.bf16.msra.mxu0 %v698_v33  ;;  %v734_v51 = vpack.c.bf16 %v248_v45, %v247_v44  ;;  %v217_v53 = vld [vmem:[%s1065_s1 + $0x40] sm:$0xff]  ;;  %v218_v54 = vld [vmem:[%s1065_s1 + $0x48] sm:$0xff]  ;;  %v736_v56 = vpack.c.bf16 %v266_v50, %v265_v49  ;;  %v235_v58 = vld [vmem:[%s1065_s1 + $0xd0] sm:$0xff] }
  0x12   : > { %701 = vmatprep.subr.bf16.mxu0 %v700_v39  ;;  %v249_v55 = vld [vmem:[%s1065_s1 + $0x140] sm:$0xff]  ;;  %v250_v57 = vld [vmem:[%s1065_s1 + $0x148] sm:$0xff]  ;;  %v236_v59 = vld [vmem:[%s1065_s1 + $0xd8] sm:$0xff]  ;;  %v706_v62 = vpack.c.bf16 %v218_v54, %v217_v53 }
  0x13   : > { %731 = vmatpush3.bf16.msra.mxu1 %v730_v38  ;;  %v267_v60 = vld [vmem:[%s1065_s1 + $0x1d0] sm:$0xff]  ;;  %v268_v61 = vld [vmem:[%s1065_s1 + $0x1d8] sm:$0xff]  ;;  %v738_v63 = vpack.c.bf16 %v250_v57, %v249_v55  ;;  %v708_v0 = vpack.c.bf16 %v236_v59, %v235_v58  ;;  %v237_v6 = vld [vmem:[%s1065_s1 + $0xe0] sm:$0xff] }
  0x14   : > { %733 = vmatprep.subr.bf16.mxu1 %v732_v43  ;;  %v219_v1 = vld [vmem:[%s1065_s1 + $0x50] sm:$0xff]  ;;  %v220_v2 = vld [vmem:[%s1065_s1 + $0x58] sm:$0xff]  ;;  %v740_v4 = vpack.c.bf16 %v268_v61, %v267_v60  ;;  %v238_v7 = vld [vmem:[%s1065_s1 + $0xe8] sm:$0xff] }
  0x15   : > { %703 = vmatpush3.bf16.msra.mxu0 %v702_v48  ;;  %v251_v3 = vld [vmem:[%s1065_s1 + $0x150] sm:$0xff]  ;;  %v252_v5 = vld [vmem:[%s1065_s1 + $0x158] sm:$0xff]  ;;  %v269_v8 = vld [vmem:[%s1065_s1 + $0x1e0] sm:$0xff]  ;;  %v710_v10 = vpack.c.bf16 %v220_v2, %v219_v1  ;;  %v712_v14 = vpack.c.bf16 %v238_v7, %v237_v6 }
  0x16   : > { %705 = vmatprep.subr.bf16.mxu0 %v704_v52  ;;  %v270_v9 = vld [vmem:[%s1065_s1 + $0x1e8] sm:$0xff]  ;;  %v221_v11 = vld [vmem:[%s1065_s1 + $0x60] sm:$0xff]  ;;  %v742_v13 = vpack.c.bf16 %v252_v5, %v251_v3  ;;  %v239_v19 = vld [vmem:[%s1065_s1 + $0xf0] sm:$0xff] }
  0x17   : > { %735 = vmatpush3.bf16.msra.mxu1 %v734_v51  ;;  %v222_v12 = vld [vmem:[%s1065_s1 + $0x68] sm:$0xff]  ;;  %v253_v15 = vld [vmem:[%s1065_s1 + $0x160] sm:$0xff]  ;;  %v744_v18 = vpack.c.bf16 %v270_v9, %v269_v8  ;;  %v240_v20 = vld [vmem:[%s1065_s1 + $0xf8] sm:$0xff] }
  0x18   : > { %737 = vmatprep.subr.bf16.mxu1 %v736_v56  ;;  %v254_v16 = vld [vmem:[%s1065_s1 + $0x168] sm:$0xff]  ;;  %v180_v21 = vld [vmem:[%s958_s17 + $0x18] sm:$0xff]  ;;  %v271_v22 = vld [vmem:[%s1065_s1 + $0x1f0] sm:$0xff]  ;;  %v714_v24 = vpack.c.bf16 %v222_v12, %v221_v11  ;;  %v716_v26 = vpack.c.bf16 %v240_v20, %v239_v19 }
  0x19   : > { %707 = vmatpush3.bf16.msra.mxu0 %v706_v62  ;;  %v178_v17 = vld [vmem:[%s958_s17 + $0x8] sm:$0xff]  ;;  %v272_v23 = vld [vmem:[%s1065_s1 + $0x1f8] sm:$0xff]  ;;  %449 = vmatprep.mubr.f32.mxu1 %v180_v21  ;;  %v746_v25 = vpack.c.bf16 %v254_v16, %v253_v15  ;;  %v223_v27 = vld [vmem:[%s1065_s1 + $0x70] sm:$0xff] }
  0x1a   : > { %709 = vmatprep.subr.bf16.mxu0 %v708_v0  ;;  %344 = vmatprep.mubr.f32.mxu0 %v178_v17  ;;  %v224_v28 = vld [vmem:[%s1065_s1 + $0x78] sm:$0xff]  ;;  %v748_v29 = vpack.c.bf16 %v272_v23, %v271_v22  ;;  %v255_v30 = vld [vmem:[%s1065_s1 + $0x170] sm:$0xff]  ;;  %v177_v34 = vld [vmem:[%s958_s17] sm:$0xff] }
  0x1b   : > { %739 = vmatpush3.bf16.msra.mxu1 %v738_v63  ;;  %v256_v31 = vld [vmem:[%s1065_s1 + $0x178] sm:$0xff]  ;;  %v718_v32 = vpack.c.bf16 %v224_v28, %v223_v27  ;;  %v179_v35 = vld [vmem:[%s958_s17 + $0x10] sm:$0xff]  ;;  %v182_v36 = vld [vmem:[%s958_s17 + $0x28] sm:$0xff] }
  0x1c   : > { %741 = vmatprep.subr.bf16.mxu1 %v740_v4  ;;  %v750_v33 = vpack.c.bf16 %v256_v31, %v255_v30  ;;  %v184_v37 = vld [vmem:[%s958_s17 + $0x38] sm:$0xff]  ;;  %v181_v38 = vld [vmem:[%s958_s17 + $0x20] sm:$0xff]  ;;  %v183_v39 = vld [vmem:[%s958_s17 + $0x30] sm:$0xff] }
  0x1d   : > { %711 = vmatpush3.bf16.msra.mxu0 %v710_v10  ;;  %v186_v40 = vld [vmem:[%s958_s17 + $0x48] sm:$0xff]  ;;  %v188_v41 = vld [vmem:[%s958_s17 + $0x58] sm:$0xff]  ;;  %v185_v42 = vld [vmem:[%s958_s17 + $0x40] sm:$0xff] }
  0x1e   : > { %713 = vmatprep.subr.bf16.mxu0 %v712_v14  ;;  %v187_v43 = vld [vmem:[%s958_s17 + $0x50] sm:$0xff]  ;;  %v190_v44 = vld [vmem:[%s958_s17 + $0x68] sm:$0xff]  ;;  %v192_v45 = vld [vmem:[%s958_s17 + $0x78] sm:$0xff] }
  0x1f   : > { %743 = vmatpush3.bf16.msra.mxu1 %v742_v13  ;;  %v189_v46 = vld [vmem:[%s958_s17 + $0x60] sm:$0xff]  ;;  %v191_v47 = vld [vmem:[%s958_s17 + $0x70] sm:$0xff]  ;;  %v194_v48 = vld [vmem:[%s958_s17 + $0x88] sm:$0xff] }
  0x20   : > { %745 = vmatprep.subr.bf16.mxu1 %v744_v18  ;;  %v196_v49 = vld [vmem:[%s958_s17 + $0x98] sm:$0xff]  ;;  %v193_v50 = vld [vmem:[%s958_s17 + $0x80] sm:$0xff]  ;;  %v195_v51 = vld [vmem:[%s958_s17 + $0x90] sm:$0xff] }
  0x21   : > { %715 = vmatpush3.bf16.msra.mxu0 %v714_v24  ;;  %v198_v52 = vld [vmem:[%s958_s17 + $0xa8] sm:$0xff]  ;;  %v200_v53 = vld [vmem:[%s958_s17 + $0xb8] sm:$0xff]  ;;  %v197_v54 = vld [vmem:[%s958_s17 + $0xa0] sm:$0xff] }
  0x22   : > { %717 = vmatprep.subr.bf16.mxu0 %v716_v26  ;;  %v199_v55 = vld [vmem:[%s958_s17 + $0xb0] sm:$0xff]  ;;  %v202_v56 = vld [vmem:[%s958_s17 + $0xc8] sm:$0xff]  ;;  %v204_v57 = vld [vmem:[%s958_s17 + $0xd8] sm:$0xff] }
  0x23   : > { %747 = vmatpush3.bf16.msra.mxu1 %v746_v25  ;;  %v201_v58 = vld [vmem:[%s958_s17 + $0xc0] sm:$0xff]  ;;  %v203_v59 = vld [vmem:[%s958_s17 + $0xd0] sm:$0xff]  ;;  %v206_v60 = vld [vmem:[%s958_s17 + $0xe8] sm:$0xff] }
  0x24   : > { %749 = vmatprep.subr.bf16.mxu1 %v748_v29  ;;  %v208_v61 = vld [vmem:[%s958_s17 + $0xf8] sm:$0xff]  ;;  %v205_v62 = vld [vmem:[%s958_s17 + $0xe0] sm:$0xff]  ;;  %v207_v63 = vld [vmem:[%s958_s17 + $0xf0] sm:$0xff] }
  0x25   : > { %719 = vmatpush3.bf16.msra.mxu0 %v718_v32  ;;  %v1037_v1 = vld [vmem:[%s1066_s2] ss:$0 sm:$0xff] }
  0x27   : > { %751 = vmatpush3.bf16.msra.mxu1 %v750_v33 }
  0x28   : > { %345 = vmatmul.mubr.f32.vlgmr.msra.gmra.mrb[0].mxu0 %v177_v34 }
  0x29   : > { %349 = vmatprep.mubr.f32.mxu0 %v182_v36 }
  0x2a   : > { %450 = vmatmul.mubr.f32.vlgmr.msra.gmra.mrb[0].mxu1 %v179_v35 }
  0x2b   : > { %454 = vmatprep.mubr.f32.mxu1 %v184_v37 }
  0x2c   : > { %350 = vmatmul.mubr.f32.gmra.mrb[2].mxu0 %v181_v38 }
  0x2d   : > { %354 = vmatprep.mubr.f32.mxu0 %v186_v40 }
  0x2e   : > { %455 = vmatmul.mubr.f32.gmra.mrb[2].mxu1 %v183_v39 }
  0x2f   : > { %459 = vmatprep.mubr.f32.mxu1 %v188_v41 }
  0x30   : > { %355 = vmatmul.mubr.f32.gmra.mrb[4].mxu0 %v185_v42 }
  0x31   : > { %359 = vmatprep.mubr.f32.mxu0 %v190_v44 }
  0x32   : > { %460 = vmatmul.mubr.f32.gmra.mrb[4].mxu1 %v187_v43 }
  0x33   : > { %464 = vmatprep.mubr.f32.mxu1 %v192_v45 }
  0x34   : > { %360 = vmatmul.mubr.f32.gmra.mrb[6].mxu0 %v189_v46 }
  0x35   : > { %364 = vmatprep.mubr.f32.mxu0 %v194_v48 }
  0x36   : > { %465 = vmatmul.mubr.f32.gmra.mrb[6].mxu1 %v191_v47 }
  0x37   : > { %469 = vmatprep.mubr.f32.mxu1 %v196_v49 }
  0x38   : > { %365 = vmatmul.mubr.f32.gmra.mrb[8].mxu0 %v193_v50 }
  0x39   : > { %369 = vmatprep.mubr.f32.mxu0 %v198_v52 }
  0x3a   : > { %470 = vmatmul.mubr.f32.gmra.mrb[8].mxu1 %v195_v51 }
  0x3b   : > { %474 = vmatprep.mubr.f32.mxu1 %v200_v53 }
  0x3c   : > { %370 = vmatmul.mubr.f32.gmra.mrb[10].mxu0 %v197_v54 }
  0x3d   : > { %374 = vmatprep.mubr.f32.mxu0 %v202_v56 }
  0x3e   : > { %475 = vmatmul.mubr.f32.gmra.mrb[10].mxu1 %v199_v55 }
  0x3f   : > { %479 = vmatprep.mubr.f32.mxu1 %v204_v57 }
  0x40   : > { %375 = vmatmul.mubr.f32.gmra.mrb[12].mxu0 %v201_v58 }
  0x41   : > { %379 = vmatprep.mubr.f32.mxu0 %v206_v60 }
  0x42   : > { %480 = vmatmul.mubr.f32.gmra.mrb[12].mxu1 %v203_v59 }
  0x43   : > { %484 = vmatprep.mubr.f32.mxu1 %v208_v61 }
  0x44   : > { %380 = vmatmul.mubr.f32.gmra.mrb[14].mxu0 %v205_v62 }
  0x46   : > { %485 = vmatmul.mubr.f32.gmra.mrb[14].mxu1 %v207_v63 }
  0xfb   : > { %v608_v0 = vpop.f32.mrb[0].mxu0 }
  0xfc   : > { %v609_v2 = vpop.f32.mrb[1].mxu0 }
  0xfd   : > { %v664_v3 = vpop.f32.mrb[0].mxu1  ;;  %v610_v4 = vadd.f32 %v609_v2, %v608_v0 }
  0xfe   : > { %v665_v5 = vpop.f32.mrb[1].mxu1 }
  0xff   : > { %v666_v6 = vadd.f32 %v665_v5, %v664_v3  ;;  %v347_v7 = vadd.f32 %v610_v4, %v1037_v1  ;;  %v611_v8 = vpop.f32.mrb[2].mxu0 }
 0x100   : > { %v612_v9 = vpop.f32.mrb[3].mxu0 }
 0x101   : > { %v667_v10 = vpop.f32.mrb[2].mxu1  ;;  %v452_v11 = vadd.f32 %v666_v6, %v347_v7  ;;  %v613_v12 = vadd.f32 %v612_v9, %v611_v8 }
 0x102   : > { %v668_v13 = vpop.f32.mrb[3].mxu1 }
 0x103   : > { %v669_v14 = vadd.f32 %v668_v13, %v667_v10  ;;  %v490_v15 = vmax.f32 %v452_v11, 0.0  ;;  %v352_v16 = vadd.f32 %v613_v12, %v1037_v1  ;;  %v614_v17 = vpop.f32.mrb[4].mxu0 }
 0x104   : > { %v615_v18 = vpop.f32.mrb[5].mxu0 }
 0x105   : > { %v670_v19 = vpop.f32.mrb[4].mxu1  ;;  %498 = vst [vmem:[%s1044_s26] sm:$0xff] %v490_v15  ;;  %v457_v20 = vadd.f32 %v669_v14, %v352_v16  ;;  %v616_v21 = vadd.f32 %v615_v18, %v614_v17 }
 0x106   : > { %v671_v22 = vpop.f32.mrb[5].mxu1 }
 0x107   : > { %v672_v23 = vadd.f32 %v671_v22, %v670_v19  ;;  %v491_v24 = vmax.f32 %v457_v20, 0.0  ;;  %v357_v25 = vadd.f32 %v616_v21, %v1037_v1  ;;  %v617_v26 = vpop.f32.mrb[6].mxu0 }
 0x108   : > { %v618_v27 = vpop.f32.mrb[7].mxu0 }
 0x109   : > { %v673_v28 = vpop.f32.mrb[6].mxu1  ;;  %499 = vst [vmem:[%s1044_s26 + $0x8] sm:$0xff] %v491_v24  ;;  %v462_v29 = vadd.f32 %v672_v23, %v357_v25  ;;  %v619_v30 = vadd.f32 %v618_v27, %v617_v26 }
 0x10a   : > { %v674_v31 = vpop.f32.mrb[7].mxu1 }
 0x10b   : > { %v675_v32 = vadd.f32 %v674_v31, %v673_v28  ;;  %v492_v33 = vmax.f32 %v462_v29, 0.0  ;;  %v362_v34 = vadd.f32 %v619_v30, %v1037_v1  ;;  %v620_v35 = vpop.f32.mrb[8].mxu0 }
 0x10c   : > { %v621_v36 = vpop.f32.mrb[9].mxu0 }
 0x10d   : > { %v676_v37 = vpop.f32.mrb[8].mxu1  ;;  %500 = vst [vmem:[%s1044_s26 + $0x10] sm:$0xff] %v492_v33  ;;  %v467_v38 = vadd.f32 %v675_v32, %v362_v34  ;;  %v622_v39 = vadd.f32 %v621_v36, %v620_v35 }
 0x10e   : > { %v677_v40 = vpop.f32.mrb[9].mxu1 }
 0x10f   : > { %v678_v41 = vadd.f32 %v677_v40, %v676_v37  ;;  %v493_v42 = vmax.f32 %v467_v38, 0.0  ;;  %v367_v43 = vadd.f32 %v622_v39, %v1037_v1  ;;  %v623_v44 = vpop.f32.mrb[10].mxu0 }
 0x110   : > { %v624_v45 = vpop.f32.mrb[11].mxu0 }
 0x111   : > { %v679_v46 = vpop.f32.mrb[10].mxu1  ;;  %501 = vst [vmem:[%s1044_s26 + $0x18] sm:$0xff] %v493_v42  ;;  %v472_v47 = vadd.f32 %v678_v41, %v367_v43  ;;  %v625_v48 = vadd.f32 %v624_v45, %v623_v44 }
 0x112   : > { %v680_v49 = vpop.f32.mrb[11].mxu1 }
 0x113   : > { %v681_v50 = vadd.f32 %v680_v49, %v679_v46  ;;  %v494_v51 = vmax.f32 %v472_v47, 0.0  ;;  %v372_v52 = vadd.f32 %v625_v48, %v1037_v1  ;;  %v626_v53 = vpop.f32.mrb[12].mxu0 }
 0x114   : > { %v627_v54 = vpop.f32.mrb[13].mxu0 }
 0x115   : > { %v682_v55 = vpop.f32.mrb[12].mxu1  ;;  %502 = vst [vmem:[%s1044_s26 + $0x20] sm:$0xff] %v494_v51  ;;  %v477_v56 = vadd.f32 %v681_v50, %v372_v52  ;;  %v628_v57 = vadd.f32 %v627_v54, %v626_v53 }
 0x116   : > { %v683_v58 = vpop.f32.mrb[13].mxu1 }
 0x117   : > { %v684_v59 = vadd.f32 %v683_v58, %v682_v55  ;;  %v495_v60 = vmax.f32 %v477_v56, 0.0  ;;  %v377_v61 = vadd.f32 %v628_v57, %v1037_v1  ;;  %v629_v62 = vpop.f32.mrb[14].mxu0 }
 0x118   : > { %v630_v63 = vpop.f32.mrb[15].mxu0 }
 0x119   : > { %v685_v0 = vpop.f32.mrb[14].mxu1  ;;  %503 = vst [vmem:[%s1044_s26 + $0x28] sm:$0xff] %v495_v60  ;;  %v482_v2 = vadd.f32 %v684_v59, %v377_v61  ;;  %v631_v3 = vadd.f32 %v630_v63, %v629_v62 }
 0x11a   : > { %v686_v4 = vpop.f32.mrb[15].mxu1 }
 0x11b   : > { %v687_v5 = vadd.f32 %v686_v4, %v685_v0  ;;  %v496_v6 = vmax.f32 %v482_v2, 0.0  ;;  %v382_v7 = vadd.f32 %v631_v3, %v1037_v1 }
 0x11d   : > { %504 = vst [vmem:[%s1044_s26 + $0x30] sm:$0xff] %v496_v6  ;;  %v487_v8 = vadd.f32 %v687_v5, %v382_v7 }
 0x11f   : > { %v497_v9 = vmax.f32 %v487_v8, 0.0 }
 0x121   : > { %505 = vst [vmem:[%s1044_s26 + $0x38] sm:$0xff] %v497_v9 }
 0x122 PF: > { %s13_s12 = sadd.s32 1, %s766_s12  }
 0x123   : > { %p10_p4 = scmp.ge.s32.totalorder %s13_s12, 4  }
 0x125   :  { %12 = sbr.rel (!%p10_p4) target bundleno = 1 (0x1), region = 62 }

// kernel: pilotnet_forward.10
= control target key start
LH: loop header
LB: loop body
LE: loop exit
PB: predicated region body
PF: predicated region fallthrough
CT: control target
= control target key end

     0   :  { %s880_s12 = smov 0   ;;  %s1186_s0 = inlined_call_operand.vmem [shape: f32[48,640], index: 0, kind: input, shape index: {}]   ;;  %s1187_s1 = inlined_call_operand.vmem [shape: f32[640,128], index: 1, kind: input, shape index: {}]   ;;  %s1188_s2 = inlined_call_operand.vmem [shape: f32[1,128], index: 2, kind: input, shape index: {}]   ;;  %s1189_s3 = inlined_call_operand.vmem [shape: f32[48,128], index: 3, kind: output, shape index: {}]  }
   0x1 LB: > { %s581_s13 = sadd.s32 4294967295, %s855_s12   ;;  %p585_p0 = scmp.ge.s32.totalorder %s855_s12, 1  ;;  %s855_s12 = sphi %s880_s12, %s13_s12  }
   0x2   : > { %p139_p1 = scmp.lt.s32.totalorder %s855_s12, 3 }
   0x4   : > { %p140_p2 = pnand %p585_p0, %p139_p1 }
   0x5   : > { %v208_v0 = vld [vmem:[%s1187_s1 + $0x80] sm:$0xff] (!%p140_p2)  ;;  %v209_v1 = vld [vmem:[%s1187_s1 + $0x88] sm:$0xff] (!%p140_p2)  ;;  %v210_v11 = vld [vmem:[%s1187_s1 + $0x90] sm:$0xff] (!%p140_p2)  ;;  %s915_s5 = smul.u32 (!%p140_p2), 3, %s581_s13  ;;  %vm858_vm0 = vmmov (!%p140_p2), 0  }
   0x6   : > { %143 = sbr.rel (%p140_p2) target bundleno = 295 (0x127), region = 32  ;;  %v240_v2 = vld [vmem:[%s1187_s1 + $0x180] sm:$0xff] (!%p140_p2)  ;;  %v733_v3 = vpack.c.bf16 (!%p140_p2), %v209_v1, %v208_v0  ;;  %v241_v4 = vld [vmem:[%s1187_s1 + $0x188] sm:$0xff] (!%p140_p2)  ;;  %v211_v13 = vld [vmem:[%s1187_s1 + $0x98] sm:$0xff] (!%p140_p2) }
   0x7   : > { %v192_v5 = vld [vmem:[%s1187_s1] sm:$0xff] (!%p140_p2)  ;;  %v193_v6 = vld [vmem:[%s1187_s1 + $0x8] sm:$0xff] (!%p140_p2)  ;;  %v765_v7 = vpack.c.bf16 (!%p140_p2), %v241_v4, %v240_v2  ;;  %v242_v14 = vld [vmem:[%s1187_s1 + $0x190] sm:$0xff] (!%p140_p2)  ;;  %v737_v16 = vpack.c.bf16 (!%p140_p2), %v211_v13, %v210_v11  ;;  %p165_p3 = scmp.lt.s32.totalorder (!%p140_p2), %s915_s5, 5 }
   0x8   : > { %v735_v8 = vpack.c.bf16 (!%p140_p2), %v193_v6, %v192_v5  ;;  %v224_v9 = vld [vmem:[%s1187_s1 + $0x100] sm:$0xff] (!%p140_p2)  ;;  %v225_v10 = vld [vmem:[%s1187_s1 + $0x108] sm:$0xff] (!%p140_p2)  ;;  %734 = vmatprep.subr.bf16.mxu0 (!%p140_p2), %v733_v3  ;;  %v243_v15 = vld [vmem:[%s1187_s1 + $0x198] sm:$0xff] (!%p140_p2) }
   0x9   : > { %v767_v12 = vpack.c.bf16 (!%p140_p2), %v225_v10, %v224_v9  ;;  %766 = vmatprep.subr.bf16.mxu1 (!%p140_p2), %v765_v7  ;;  %v769_v17 = vpack.c.bf16 (!%p140_p2), %v243_v15, %v242_v14  ;;  %v194_v18 = vld [vmem:[%s1187_s1 + $0x10] sm:$0xff] (!%p140_p2)  ;;  %v195_v19 = vld [vmem:[%s1187_s1 + $0x18] sm:$0xff] (!%p140_p2)  ;;  %v212_v23 = vld [vmem:[%s1187_s1 + $0xa0] sm:$0xff] (!%p140_p2) }
   0xa   : > { %736 = vmatpush3.bf16.msra.mxu0 (!%p140_p2), %v735_v8  ;;  %v226_v20 = vld [vmem:[%s1187_s1 + $0x110] sm:$0xff] (!%p140_p2)  ;;  %v739_v21 = vpack.c.bf16 (!%p140_p2), %v195_v19, %v194_v18  ;;  %v227_v22 = vld [vmem:[%s1187_s1 + $0x118] sm:$0xff] (!%p140_p2)  ;;  %v213_v24 = vld [vmem:[%s1187_s1 + $0xa8] sm:$0xff] (!%p140_p2) }
   0xb   : > { %768 = vmatpush3.bf16.msra.mxu1 (!%p140_p2), %v767_v12  ;;  %738 = vmatprep.subr.bf16.mxu0 (!%p140_p2), %v737_v16  ;;  %v771_v25 = vpack.c.bf16 (!%p140_p2), %v227_v22, %v226_v20  ;;  %v741_v26 = vpack.c.bf16 (!%p140_p2), %v213_v24, %v212_v23  ;;  %v244_v27 = vld [vmem:[%s1187_s1 + $0x1a0] sm:$0xff] (!%p140_p2)  ;;  %v245_v28 = vld [vmem:[%s1187_s1 + $0x1a8] sm:$0xff] (!%p140_p2)  ;;  %v214_v35 = vld [vmem:[%s1187_s1 + $0xb0] sm:$0xff] (!%p140_p2) }
   0xc   : > { %770 = vmatprep.subr.bf16.mxu1 (!%p140_p2), %v769_v17  ;;  %v196_v29 = vld [vmem:[%s1187_s1 + $0x20] sm:$0xff] (!%p140_p2)  ;;  %v773_v30 = vpack.c.bf16 (!%p140_p2), %v245_v28, %v244_v27  ;;  %v197_v31 = vld [vmem:[%s1187_s1 + $0x28] sm:$0xff] (!%p140_p2)  ;;  %v215_v36 = vld [vmem:[%s1187_s1 + $0xb8] sm:$0xff] (!%p140_p2) }
   0xd   : > { %v228_v32 = vld [vmem:[%s1187_s1 + $0x120] sm:$0xff]  ;;  %v229_v33 = vld [vmem:[%s1187_s1 + $0x128] sm:$0xff]  ;;  %v743_v34 = vpack.c.bf16 %v197_v31, %v196_v29  ;;  %v246_v37 = vld [vmem:[%s1187_s1 + $0x1b0] sm:$0xff]  ;;  %v745_v39 = vpack.c.bf16 %v215_v36, %v214_v35  ;;  %s1191_s5 = smov (!%p165_p3, %s915_s5), 5 }
   0xe   : > { %740 = vmatpush3.bf16.msra.mxu0 %v739_v21  ;;  %v775_v38 = vpack.c.bf16 %v229_v33, %v228_v32  ;;  %v247_v40 = vld [vmem:[%s1187_s1 + $0x1b8] sm:$0xff]  ;;  %v198_v41 = vld [vmem:[%s1187_s1 + $0x30] sm:$0xff]  ;;  %v216_v46 = vld [vmem:[%s1187_s1 + $0xc0] sm:$0xff]  ;;  %s837_s23 = smul.u32 40, %s1191_s5 }
   0xf   : > { %772 = vmatpush3.bf16.msra.mxu1 %v771_v25  ;;  %742 = vmatprep.subr.bf16.mxu0 %v741_v26  ;;  %v199_v42 = vld [vmem:[%s1187_s1 + $0x38] sm:$0xff]  ;;  %v777_v43 = vpack.c.bf16 %v247_v40, %v246_v37  ;;  %v230_v44 = vld [vmem:[%s1187_s1 + $0x130] sm:$0xff]  ;;  %v217_v47 = vld [vmem:[%s1187_s1 + $0xc8] sm:$0xff] }
  0x10   : > { %774 = vmatprep.subr.bf16.mxu1 %v773_v30  ;;  %v231_v45 = vld [vmem:[%s1187_s1 + $0x138] sm:$0xff]  ;;  %v248_v48 = vld [vmem:[%s1187_s1 + $0x1c0] sm:$0xff]  ;;  %v249_v49 = vld [vmem:[%s1187_s1 + $0x1c8] sm:$0xff]  ;;  %v747_v50 = vpack.c.bf16 %v199_v42, %v198_v41  ;;  %v749_v52 = vpack.c.bf16 %v217_v47, %v216_v46  ;;  %s1050_s17 = scalar_lea.vmem %s1186_s0, %s837_s23 }
  0x11   : > { %v779_v51 = vpack.c.bf16 %v231_v45, %v230_v44  ;;  %v200_v53 = vld [vmem:[%s1187_s1 + $0x40] sm:$0xff]  ;;  %v201_v54 = vld [vmem:[%s1187_s1 + $0x48] sm:$0xff]  ;;  %v781_v56 = vpack.c.bf16 %v249_v49, %v248_v48  ;;  %v218_v58 = vld [vmem:[%s1187_s1 + $0xd0] sm:$0xff] }
  0x12   : > { %744 = vmatpush3.bf16.msra.mxu0 %v743_v34  ;;  %v232_v55 = vld [vmem:[%s1187_s1 + $0x140] sm:$0xff]  ;;  %v233_v57 = vld [vmem:[%s1187_s1 + $0x148] sm:$0xff]  ;;  %v219_v59 = vld [vmem:[%s1187_s1 + $0xd8] sm:$0xff]  ;;  %v751_v62 = vpack.c.bf16 %v201_v54, %v200_v53 }
  0x13   : > { %776 = vmatpush3.bf16.msra.mxu1 %v775_v38  ;;  %746 = vmatprep.subr.bf16.mxu0 %v745_v39  ;;  %v250_v60 = vld [vmem:[%s1187_s1 + $0x1d0] sm:$0xff]  ;;  %v251_v61 = vld [vmem:[%s1187_s1 + $0x1d8] sm:$0xff]  ;;  %v783_v63 = vpack.c.bf16 %v233_v57, %v232_v55  ;;  %v753_v0 = vpack.c.bf16 %v219_v59, %v218_v58  ;;  %v220_v6 = vld [vmem:[%s1187_s1 + $0xe0] sm:$0xff]  ;;  %v857_v39 = vmov 0.0|0.0   ;;  %v859_v59 = vmov 0.0  }
  0x14   : > { %778 = vmatprep.subr.bf16.mxu1 %v777_v43  ;;  %v202_v1 = vld [vmem:[%s1187_s1 + $0x50] sm:$0xff]  ;;  %v203_v2 = vld [vmem:[%s1187_s1 + $0x58] sm:$0xff]  ;;  %v785_v4 = vpack.c.bf16 %v251_v61, %v250_v60  ;;  %v221_v7 = vld [vmem:[%s1187_s1 + $0xe8] sm:$0xff] }
  0x15   : > { %v234_v3 = vld [vmem:[%s1187_s1 + $0x150] sm:$0xff]  ;;  %v235_v5 = vld [vmem:[%s1187_s1 + $0x158] sm:$0xff]  ;;  %v252_v8 = vld [vmem:[%s1187_s1 + $0x1e0] sm:$0xff]  ;;  %v755_v10 = vpack.c.bf16 %v203_v2, %v202_v1  ;;  %v757_v14 = vpack.c.bf16 %v221_v7, %v220_v6 }
  0x16   : > { %748 = vmatpush3.bf16.msra.mxu0 %v747_v50  ;;  %v253_v9 = vld [vmem:[%s1187_s1 + $0x1e8] sm:$0xff]  ;;  %v204_v11 = vld [vmem:[%s1187_s1 + $0x60] sm:$0xff]  ;;  %v787_v13 = vpack.c.bf16 %v235_v5, %v234_v3  ;;  %v180_v17 = vld [vmem:[%s1050_s17 + $0x18] sm:$0xff] }
  0x17   : > { %780 = vmatpush3.bf16.msra.mxu1 %v779_v51  ;;  %750 = vmatprep.subr.bf16.mxu0 %v749_v52  ;;  %v205_v12 = vld [vmem:[%s1187_s1 + $0x68] sm:$0xff]  ;;  %v236_v15 = vld [vmem:[%s1187_s1 + $0x160] sm:$0xff]  ;;  %v789_v18 = vpack.c.bf16 %v253_v9, %v252_v8  ;;  %v222_v20 = vld [vmem:[%s1187_s1 + $0xf0] sm:$0xff] }
  0x18   : > { %782 = vmatprep.subr.bf16.mxu1 %v781_v56  ;;  %v178_v16 = vld [vmem:[%s1050_s17 + $0x8] sm:$0xff]  ;;  %v223_v21 = vld [vmem:[%s1187_s1 + $0xf8] sm:$0xff]  ;;  %v254_v22 = vld [vmem:[%s1187_s1 + $0x1f0] sm:$0xff]  ;;  %423 = vmatprep.mubr.f32.mxu1 %v180_v17  ;;  %v759_v24 = vpack.c.bf16 %v205_v12, %v204_v11 }
  0x19   : > { %v237_v19 = vld [vmem:[%s1187_s1 + $0x168] sm:$0xff]  ;;  %343 = vmatprep.mubr.f32.mxu0 %v178_v16  ;;  %v255_v23 = vld [vmem:[%s1187_s1 + $0x1f8] sm:$0xff]  ;;  %v761_v26 = vpack.c.bf16 %v223_v21, %v222_v20  ;;  %v206_v27 = vld [vmem:[%s1187_s1 + $0x70] sm:$0xff] }
  0x1a   : > { %752 = vmatpush3.bf16.msra.mxu0 %v751_v62  ;;  %v791_v25 = vpack.c.bf16 %v237_v19, %v236_v15  ;;  %v207_v28 = vld [vmem:[%s1187_s1 + $0x78] sm:$0xff]  ;;  %v793_v29 = vpack.c.bf16 %v255_v23, %v254_v22  ;;  %v238_v30 = vld [vmem:[%s1187_s1 + $0x170] sm:$0xff]  ;;  %v256_v34 = vld [vmem:[%s1187_s1 + $0x200] sm:$0xff] }
  0x1b   : > { %784 = vmatpush3.bf16.msra.mxu1 %v783_v63  ;;  %754 = vmatprep.subr.bf16.mxu0 %v753_v0  ;;  %v239_v31 = vld [vmem:[%s1187_s1 + $0x178] sm:$0xff]  ;;  %v763_v32 = vpack.c.bf16 %v207_v28, %v206_v27  ;;  %v257_v35 = vld [vmem:[%s1187_s1 + $0x208] sm:$0xff]  ;;  %v177_v36 = vld [vmem:[%s1050_s17] sm:$0xff] }
  0x1c   : > { %786 = vmatprep.subr.bf16.mxu1 %v785_v4  ;;  %v795_v33 = vpack.c.bf16 %v239_v31, %v238_v30  ;;  %v798_v37 = vpack.c.bf16 %v257_v35, %v256_v34  ;;  %v179_v38 = vld [vmem:[%s1050_s17 + $0x10] sm:$0xff]  ;;  %v259_v41 = vld [vmem:[%s1187_s1 + $0x218] sm:$0xff]  ;;  %v182_v44 = vld [vmem:[%s1050_s17 + $0x28] sm:$0xff] }
  0x1d   : > { %v258_v40 = vld [vmem:[%s1187_s1 + $0x210] sm:$0xff]  ;;  %v185_v45 = vld [vmem:[%s1050_s17 + $0x40] sm:$0xff]  ;;  %v261_v47 = vld [vmem:[%s1187_s1 + $0x228] sm:$0xff] }
  0x1e   : > { %756 = vmatpush3.bf16.msra.mxu0 %v755_v10  ;;  %v183_v42 = vld [vmem:[%s1050_s17 + $0x30] sm:$0xff]  ;;  %v801_v43 = vpack.c.bf16 %v259_v41, %v258_v40  ;;  %v260_v46 = vld [vmem:[%s1187_s1 + $0x220] sm:$0xff]  ;;  %v184_v48 = vld [vmem:[%s1050_s17 + $0x38] sm:$0xff] }
  0x1f   : > { %788 = vmatpush3.bf16.msra.mxu1 %v787_v13  ;;  %758 = vmatprep.subr.bf16.mxu0 %v757_v14  ;;  %v188_v49 = vld [vmem:[%s1050_s17 + $0x58] sm:$0xff]  ;;  %v804_v50 = vpack.c.bf16 %v261_v47, %v260_v46  ;;  %v187_v51 = vld [vmem:[%s1050_s17 + $0x50] sm:$0xff]  ;;  %v190_v52 = vld [vmem:[%s1050_s17 + $0x68] sm:$0xff] }
  0x20   : > { %790 = vmatprep.subr.bf16.mxu1 %v789_v18  ;;  %v262_v53 = vld [vmem:[%s1187_s1 + $0x230] sm:$0xff]  ;;  %v263_v54 = vld [vmem:[%s1187_s1 + $0x238] sm:$0xff]  ;;  %v189_v55 = vld [vmem:[%s1050_s17 + $0x60] sm:$0xff] }
  0x21   : > { %v807_v56 = vpack.c.bf16 %v263_v54, %v262_v53  ;;  %v264_v57 = vld [vmem:[%s1187_s1 + $0x240] sm:$0xff]  ;;  %v265_v58 = vld [vmem:[%s1187_s1 + $0x248] sm:$0xff]  ;;  %v266_v61 = vld [vmem:[%s1187_s1 + $0x250] sm:$0xff] }
  0x22   : > { %760 = vmatpush3.bf16.msra.mxu0 %v759_v24  ;;  %v810_v60 = vpack.c.bf16 %v265_v58, %v264_v57  ;;  %v267_v62 = vld [vmem:[%s1187_s1 + $0x258] sm:$0xff]  ;;  %v268_v0 = vld [vmem:[%s1187_s1 + $0x260] sm:$0xff]  ;;  %v269_v1 = vld [vmem:[%s1187_s1 + $0x268] sm:$0xff] }
  0x23   : > { %792 = vmatpush3.bf16.msra.mxu1 %v791_v25  ;;  %762 = vmatprep.subr.bf16.mxu0 %v761_v26  ;;  %v813_v63 = vpack.c.bf16 %v267_v62, %v266_v61  ;;  %v816_v2 = vpack.c.bf16 %v269_v1, %v268_v0  ;;  %v270_v3 = vld [vmem:[%s1187_s1 + $0x270] sm:$0xff]  ;;  %v271_v4 = vld [vmem:[%s1187_s1 + $0x278] sm:$0xff]  ;;  %v181_v6 = vld [vmem:[%s1050_s17 + $0x20] sm:$0xff] }
  0x24   : > { %794 = vmatprep.subr.bf16.mxu1 %v793_v29  ;;  %v819_v5 = vpack.c.bf16 %v271_v4, %v270_v3  ;;  %v186_v7 = vld [vmem:[%s1050_s17 + $0x48] sm:$0xff]  ;;  %v191_v8 = vld [vmem:[%s1050_s17 + $0x70] sm:$0xff]  ;;  %v588_v11 = vld [vmem:[%s1188_s2] ss:$0 sm:$0xff]  ;;  %s587_s17 = sshll.u32 %s1191_s5, 3 }
  0x25   : > { %s175_s8 = scalar_lea.vmem %s1189_s3, %s587_s17 }
  0x26   : > { %764 = vmatpush3.bf16.msra.mxu0 %v763_v32 }
  0x27   : > { %796 = vmatpush3.bf16.msra.mxu1 %v795_v33  ;;  %797 = vmatprep.subr.bf16.mxu0 %v857_v39 }
  0x28   : > { %821 = vmatprep.subr.bf16.mxu1 %v857_v39 }
  0x29   : > { %344 = vmatmul.mubr.f32.vlgmr.msra.gmra.mrb[0].mxu0 %v177_v36 }
  0x2a   : > { %424 = vmatmul.mubr.f32.vlgmr.msra.gmra.mrb[0].mxu1 %v179_v38  ;;  %799 = vmatpush3.bf16.msra.mxu0 %v798_v37 }
  0x2b   : > { %829 = vmatpush3.bf16.msra.mxu1 %v798_v37  ;;  %800 = vmatprep.subr.bf16.mxu0 %v857_v39 }
  0x2c   : > { %822 = vmatprep.subr.bf16.mxu1 %v857_v39  ;;  %348 = vmatprep.mubr.f32.mxu0 %v183_v42 }
  0x2d   : > { %349 = vmatmul.mubr.f32.gmra.mrb[2].mxu0 %v182_v44  ;;  %428 = vmatprep.mubr.f32.mxu1 %v185_v45 }
  0x2e   : > { %802 = vmatpush3.bf16.msra.mxu0 %v801_v43  ;;  %429 = vmatmul.mubr.f32.gmra.mrb[2].mxu1 %v184_v48 }
  0x2f   : > { %830 = vmatpush3.bf16.msra.mxu1 %v801_v43  ;;  %803 = vmatprep.subr.bf16.mxu0 %v857_v39 }
  0x30   : > { %823 = vmatprep.subr.bf16.mxu1 %v857_v39  ;;  %353 = vmatprep.mubr.f32.mxu0 %v188_v49 }
  0x31   : > { %354 = vmatmul.mubr.f32.gmra.mrb[4].mxu0 %v187_v51  ;;  %433 = vmatprep.mubr.f32.mxu1 %v190_v52 }
  0x32   : > { %805 = vmatpush3.bf16.msra.mxu0 %v804_v50  ;;  %434 = vmatmul.mubr.f32.gmra.mrb[4].mxu1 %v189_v55 }
  0x33   : > { %831 = vmatpush3.bf16.msra.mxu1 %v804_v50  ;;  %806 = vmatprep.subr.bf16.mxu0 %v857_v39 }
  0x34   : > { %824 = vmatprep.subr.bf16.mxu1 %v857_v39  ;;  %724 = vmatprep.mubr.msk.f32.mxu0 %vm858_vm0, %v859_v59 }
  0x35   : > { %727 = vmatprep.mubr.msk.f32.mxu1 %vm858_vm0, %v859_v59 }
  0x36   : > { %808 = vmatpush3.bf16.msra.mxu0 %v807_v56 }
  0x37   : > { %832 = vmatpush3.bf16.msra.mxu1 %v807_v56  ;;  %809 = vmatprep.subr.bf16.mxu0 %v857_v39 }
  0x38   : > { %825 = vmatprep.subr.bf16.mxu1 %v857_v39 }
  0x3a   : > { %811 = vmatpush3.bf16.msra.mxu0 %v810_v60 }
  0x3b   : > { %833 = vmatpush3.bf16.msra.mxu1 %v810_v60  ;;  %812 = vmatprep.subr.bf16.mxu0 %v857_v39 }
  0x3c   : > { %826 = vmatprep.subr.bf16.mxu1 %v857_v39 }
  0x3e   : > { %814 = vmatpush3.bf16.msra.mxu0 %v813_v63 }
  0x3f   : > { %834 = vmatpush3.bf16.msra.mxu1 %v813_v63  ;;  %815 = vmatprep.subr.bf16.mxu0 %v857_v39 }
  0x40   : > { %827 = vmatprep.subr.bf16.mxu1 %v857_v39 }
  0x42   : > { %817 = vmatpush3.bf16.msra.mxu0 %v816_v2 }
  0x43   : > { %835 = vmatpush3.bf16.msra.mxu1 %v816_v2  ;;  %818 = vmatprep.subr.bf16.mxu0 %v857_v39 }
  0x44   : > { %828 = vmatprep.subr.bf16.mxu1 %v857_v39 }
  0x46   : > { %820 = vmatpush3.bf16.msra.mxu0 %v819_v5 }
  0x47   : > { %836 = vmatpush3.bf16.msra.mxu1 %v819_v5 }
  0x49   : > { %725 = vmatmul.mubr.f32.vlgmr.msra.gmra.mrb[6].mxu0 %v181_v6 }
  0x4a   : > { %728 = vmatmul.mubr.f32.vlgmr.msra.gmra.mrb[6].mxu1 %v186_v7 }
  0x4b   : > { %730 = vmatprep.mubr.msk.f32.mxu1 %vm858_vm0, %v859_v59 }
  0x4e   : > { %731 = vmatmul.mubr.f32.gmra.mrb[8].mxu1 %v191_v8 }
  0xfc   : > { %v623_v9 = vpop.f32.mrb[0].mxu0 }
  0xfd   : > { %v664_v10 = vpop.f32.mrb[0].mxu1  ;;  %v624_v12 = vpop.f32.mrb[1].mxu0 }
  0xfe   : > { %v625_v13 = vadd.f32 %v624_v12, %v623_v9  ;;  %v665_v14 = vpop.f32.mrb[1].mxu1 }
  0xff   : > { %v666_v15 = vadd.f32 %v665_v14, %v664_v10 }
 0x100   : > { %v346_v16 = vadd.f32 %v625_v13, %v588_v11  ;;  %v626_v17 = vpop.f32.mrb[2].mxu0 }
 0x101   : > { %v627_v18 = vpop.f32.mrb[3].mxu0  ;;  %v667_v19 = vpop.f32.mrb[2].mxu1 }
 0x102   : > { %v628_v20 = vadd.f32 %v627_v18, %v626_v17  ;;  %v668_v21 = vpop.f32.mrb[3].mxu1  ;;  %v426_v22 = vadd.f32 %v666_v15, %v346_v16 }
 0x103   : > { %v669_v23 = vadd.f32 %v668_v21, %v667_v19 }
 0x104   : > { %v351_v24 = vadd.f32 %v628_v20, %v588_v11  ;;  %v629_v25 = vpop.f32.mrb[4].mxu0 }
 0x105   : > { %v630_v26 = vpop.f32.mrb[5].mxu0  ;;  %v670_v27 = vpop.f32.mrb[4].mxu1 }
 0x106   : > { %v631_v28 = vadd.f32 %v630_v26, %v629_v25  ;;  %v671_v29 = vpop.f32.mrb[5].mxu1  ;;  %v431_v30 = vadd.f32 %v669_v23, %v351_v24 }
 0x107   : > { %v672_v31 = vadd.f32 %v671_v29, %v670_v27 }
 0x108   : > { %v356_v32 = vadd.f32 %v631_v28, %v588_v11 }
 0x10a   : > { %v436_v33 = vadd.f32 %v672_v31, %v356_v32 }
 0x11c   : > { %v505_v34 = vpop.f32.mrb[6].mxu0 }
 0x11d   : > { %v506_v35 = vadd.f32 %v505_v34, %v426_v22  ;;  %v510_v36 = vpop.f32.mrb[6].mxu1  ;;  %v726_v37 = vpop.f32.mrb[7].mxu0 }
 0x11e   : > { %v511_v38 = vadd.f32 %v510_v36, %v431_v30  ;;  %v729_v39 = vpop.f32.mrb[7].mxu1 }
 0x11f   : > { %v519_v40 = vmax.f32 %v506_v35, 0.0 }
 0x120   : > { %v520_v41 = vmax.f32 %v511_v38, 0.0 }
 0x121   : > { %522 = vst [vmem:[%s175_s8] sm:$0xff] %v519_v40  ;;  %v515_v42 = vpop.f32.mrb[8].mxu1 }
 0x122   : > { %523 = vst [vmem:[%s175_s8 + $0x8] sm:$0xff] %v520_v41  ;;  %v516_v43 = vadd.f32 %v515_v42, %v436_v33  ;;  %v732_v44 = vpop.f32.mrb[9].mxu1 }
 0x124   : > { %v521_v45 = vmax.f32 %v516_v43, 0.0 }
 0x126   : > { %524 = vst [vmem:[%s175_s8 + $0x10] sm:$0xff] %v521_v45 }
 0x127 PF: > { %s13_s12 = sadd.s32 1, %s855_s12  }
 0x128   : > { %p10_p4 = scmp.ge.s32.totalorder %s13_s12, 4  }
 0x12a   :  { %12 = sbr.rel (!%p10_p4) target bundleno = 1 (0x1), region = 62 }

// kernel: pilotnet_forward.11
= control target key start
LH: loop header
LB: loop body
LE: loop exit
PB: predicated region body
PF: predicated region fallthrough
CT: control target
= control target key end

     0   :  { %vm6211_vm0 = vmmov 0   ;;  %s11407_s1 = inlined_call_operand.vmem [shape: f32[1152,1280], index: 1, kind: input, shape index: {}]   ;;  %s11408_s0 = inlined_call_operand.vmem [shape: f32[8,1152], index: 0, kind: input, shape index: {}]   ;;  %s11409_s2 = inlined_call_operand.vmem [shape: f32[1,1280], index: 2, kind: input, shape index: {}]   ;;  %s11410_s3 = inlined_call_operand.vmem [shape: f32[1280,128], index: 3, kind: input, shape index: {}]   ;;  %s11411_s4 = inlined_call_operand.vmem [shape: f32[1,128], index: 4, kind: input, shape index: {}]   ;;  %s11412_s5 = inlined_call_operand.vmem [shape: f32[128,128], index: 5, kind: input, shape index: {}]   ;;  %s11413_s7 = inlined_call_operand.vmem [shape: f32[128,128], index: 7, kind: input, shape index: {}]   ;;  %s11414_s6 = inlined_call_operand.vmem [shape: f32[1,128], index: 6, kind: input, shape index: {}]   ;;  %s11415_s9 = inlined_call_operand.vmem [shape: f32[128,128], index: 9, kind: input, shape index: {}]   ;;  %s11416_s8 = inlined_call_operand.vmem [shape: f32[1,128], index: 8, kind: input, shape index: {}]   ;;  %s11417_s10 = inlined_call_operand.vmem [shape: f32[1,128], index: 10, kind: input, shape index: {}]   ;;  %s11418_s11 = inlined_call_operand.vmem [shape: f32[8,128], index: 11, kind: output, shape index: {}]  }
   0x1   :  { %v48_v0 = vld [vmem:[%s11407_s1 + $0x8] sm:$0xff]  ;;  %v58_v1 = vld [vmem:[%s11407_s1 + $0x58] sm:$0xff]  ;;  %v47_v5 = vld [vmem:[%s11407_s1] sm:$0xff] }
   0x2   :  { %v50_v2 = vld [vmem:[%s11407_s1 + $0x18] sm:$0xff]  ;;  %v4465_v3 = vpack.c.bf16 %v58_v1, %v48_v0  ;;  %v60_v4 = vld [vmem:[%s11407_s1 + $0x68] sm:$0xff]  ;;  %v57_v6 = vld [vmem:[%s11407_s1 + $0x50] sm:$0xff] }
   0x3   :  { %v4753_v7 = vpack.c.bf16 %v60_v4, %v50_v2  ;;  %v4467_v8 = vpack.c.bf16 %v57_v6, %v47_v5  ;;  %v49_v9 = vld [vmem:[%s11407_s1 + $0x10] sm:$0xff]  ;;  %v59_v10 = vld [vmem:[%s11407_s1 + $0x60] sm:$0xff]  ;;  %v68_v11 = vld [vmem:[%s11407_s1 + $0xa8] sm:$0xff] }
   0x4   :  { %4466 = vmatprep.subr.bf16.mxu0 %v4465_v3  ;;  %v4755_v12 = vpack.c.bf16 %v59_v10, %v49_v9  ;;  %v78_v13 = vld [vmem:[%s11407_s1 + $0xf8] sm:$0xff]  ;;  %v80_v15 = vld [vmem:[%s11407_s1 + $0x108] sm:$0xff]  ;;  %v67_v18 = vld [vmem:[%s11407_s1 + $0xa0] sm:$0xff] }
   0x5   :  { %v70_v14 = vld [vmem:[%s11407_s1 + $0xb8] sm:$0xff]  ;;  %4754 = vmatprep.subr.bf16.mxu1 %v4753_v7  ;;  %4468 = vmatpush1.bf16.msra.mxu0 %v4467_v8  ;;  %v4469_v16 = vpack.c.bf16 %v78_v13, %v68_v11  ;;  %v77_v19 = vld [vmem:[%s11407_s1 + $0xf0] sm:$0xff]  ;;  %v79_v22 = vld [vmem:[%s11407_s1 + $0x100] sm:$0xff] }
   0x6   :  { %v4757_v17 = vpack.c.bf16 %v80_v15, %v70_v14  ;;  %v69_v20 = vld [vmem:[%s11407_s1 + $0xb0] sm:$0xff]  ;;  %4756 = vmatpush1.bf16.msra.mxu1 %v4755_v12  ;;  %v4471_v21 = vpack.c.bf16 %v77_v19, %v67_v18  ;;  %v88_v23 = vld [vmem:[%s11407_s1 + $0x148] sm:$0xff]  ;;  %v98_v24 = vld [vmem:[%s11407_s1 + $0x198] sm:$0xff] }
   0x7   :  { %4470 = vmatprep.subr.bf16.mxu0 %v4469_v16  ;;  %v4759_v25 = vpack.c.bf16 %v79_v22, %v69_v20  ;;  %v4473_v26 = vpack.c.bf16 %v98_v24, %v88_v23  ;;  %v90_v27 = vld [vmem:[%s11407_s1 + $0x158] sm:$0xff]  ;;  %v100_v28 = vld [vmem:[%s11407_s1 + $0x1a8] sm:$0xff]  ;;  %v87_v29 = vld [vmem:[%s11407_s1 + $0x140] sm:$0xff] }
   0x8   :  { %4758 = vmatprep.subr.bf16.mxu1 %v4757_v17  ;;  %v4761_v30 = vpack.c.bf16 %v100_v28, %v90_v27  ;;  %v97_v31 = vld [vmem:[%s11407_s1 + $0x190] sm:$0xff]  ;;  %v99_v33 = vld [vmem:[%s11407_s1 + $0x1a0] sm:$0xff]  ;;  %v108_v35 = vld [vmem:[%s11407_s1 + $0x1e8] sm:$0xff] }
   0x9   :  { %v89_v32 = vld [vmem:[%s11407_s1 + $0x150] sm:$0xff]  ;;  %4472 = vmatpush1.bf16.msra.mxu0 %v4471_v21  ;;  %v4475_v34 = vpack.c.bf16 %v97_v31, %v87_v29  ;;  %v118_v36 = vld [vmem:[%s11407_s1 + $0x238] sm:$0xff]  ;;  %v120_v40 = vld [vmem:[%s11407_s1 + $0x248] sm:$0xff] }
   0xa   :  { %v110_v37 = vld [vmem:[%s11407_s1 + $0x1f8] sm:$0xff]  ;;  %4760 = vmatpush1.bf16.msra.mxu1 %v4759_v25  ;;  %4474 = vmatprep.subr.bf16.mxu0 %v4473_v26  ;;  %v4763_v38 = vpack.c.bf16 %v99_v33, %v89_v32  ;;  %v4477_v39 = vpack.c.bf16 %v118_v36, %v108_v35  ;;  %v107_v41 = vld [vmem:[%s11407_s1 + $0x1e0] sm:$0xff]  ;;  %v117_v42 = vld [vmem:[%s11407_s1 + $0x230] sm:$0xff] }
   0xb   :  { %4762 = vmatprep.subr.bf16.mxu1 %v4761_v30  ;;  %v4765_v43 = vpack.c.bf16 %v120_v40, %v110_v37  ;;  %v109_v44 = vld [vmem:[%s11407_s1 + $0x1f0] sm:$0xff]  ;;  %v119_v45 = vld [vmem:[%s11407_s1 + $0x240] sm:$0xff]  ;;  %v128_v46 = vld [vmem:[%s11407_s1 + $0x288] sm:$0xff]  ;;  %v4479_v50 = vpack.c.bf16 %v117_v42, %v107_v41 }
   0xc   :  { %v138_v47 = vld [vmem:[%s11407_s1 + $0x2d8] sm:$0xff]  ;;  %v140_v49 = vld [vmem:[%s11407_s1 + $0x2e8] sm:$0xff]  ;;  %v4767_v51 = vpack.c.bf16 %v119_v45, %v109_v44  ;;  %v127_v53 = vld [vmem:[%s11407_s1 + $0x280] sm:$0xff] }
   0xd   :  { %v130_v48 = vld [vmem:[%s11407_s1 + $0x298] sm:$0xff]  ;;  %4476 = vmatpush1.bf16.msra.mxu0 %v4475_v34  ;;  %v4481_v52 = vpack.c.bf16 %v138_v47, %v128_v46  ;;  %v137_v54 = vld [vmem:[%s11407_s1 + $0x2d0] sm:$0xff]  ;;  %v139_v57 = vld [vmem:[%s11407_s1 + $0x2e0] sm:$0xff] }
   0xe   :  { %4764 = vmatpush1.bf16.msra.mxu1 %v4763_v38  ;;  %4478 = vmatprep.subr.bf16.mxu0 %v4477_v39  ;;  %v129_v55 = vld [vmem:[%s11407_s1 + $0x290] sm:$0xff]  ;;  %v4769_v56 = vpack.c.bf16 %v140_v49, %v130_v48  ;;  %v148_v58 = vld [vmem:[%s11407_s1 + $0x328] sm:$0xff]  ;;  %v158_v59 = vld [vmem:[%s11407_s1 + $0x378] sm:$0xff]  ;;  %v4483_v62 = vpack.c.bf16 %v137_v54, %v127_v53 }
   0xf   :  { %4766 = vmatprep.subr.bf16.mxu1 %v4765_v43  ;;  %v150_v60 = vld [vmem:[%s11407_s1 + $0x338] sm:$0xff]  ;;  %v160_v61 = vld [vmem:[%s11407_s1 + $0x388] sm:$0xff]  ;;  %v4771_v63 = vpack.c.bf16 %v139_v57, %v129_v55  ;;  %v4485_v0 = vpack.c.bf16 %v158_v59, %v148_v58  ;;  %v147_v1 = vld [vmem:[%s11407_s1 + $0x320] sm:$0xff] }
  0x10   :  { %v157_v2 = vld [vmem:[%s11407_s1 + $0x370] sm:$0xff]  ;;  %v4773_v4 = vpack.c.bf16 %v160_v61, %v150_v60  ;;  %v159_v5 = vld [vmem:[%s11407_s1 + $0x380] sm:$0xff]  ;;  %v168_v6 = vld [vmem:[%s11407_s1 + $0x3c8] sm:$0xff] }
  0x11   :  { %4480 = vmatpush1.bf16.msra.mxu0 %v4479_v50  ;;  %v149_v3 = vld [vmem:[%s11407_s1 + $0x330] sm:$0xff]  ;;  %v178_v7 = vld [vmem:[%s11407_s1 + $0x418] sm:$0xff]  ;;  %v180_v9 = vld [vmem:[%s11407_s1 + $0x428] sm:$0xff]  ;;  %v4487_v10 = vpack.c.bf16 %v157_v2, %v147_v1 }
  0x12   :  { %4768 = vmatpush1.bf16.msra.mxu1 %v4767_v51  ;;  %4482 = vmatprep.subr.bf16.mxu0 %v4481_v52  ;;  %v170_v8 = vld [vmem:[%s11407_s1 + $0x3d8] sm:$0xff]  ;;  %v4775_v11 = vpack.c.bf16 %v159_v5, %v149_v3  ;;  %v4489_v12 = vpack.c.bf16 %v178_v7, %v168_v6  ;;  %v167_v13 = vld [vmem:[%s11407_s1 + $0x3c0] sm:$0xff]  ;;  %v177_v14 = vld [vmem:[%s11407_s1 + $0x410] sm:$0xff] }
  0x13   :  { %4770 = vmatprep.subr.bf16.mxu1 %v4769_v56  ;;  %v169_v15 = vld [vmem:[%s11407_s1 + $0x3d0] sm:$0xff]  ;;  %v4777_v16 = vpack.c.bf16 %v180_v9, %v170_v8  ;;  %v179_v17 = vld [vmem:[%s11407_s1 + $0x420] sm:$0xff]  ;;  %v188_v18 = vld [vmem:[%s11407_s1 + $0x468] sm:$0xff]  ;;  %v4491_v22 = vpack.c.bf16 %v177_v14, %v167_v13 }
  0x14   :  { %v198_v19 = vld [vmem:[%s11407_s1 + $0x4b8] sm:$0xff]  ;;  %v200_v21 = vld [vmem:[%s11407_s1 + $0x4c8] sm:$0xff]  ;;  %v4779_v23 = vpack.c.bf16 %v179_v17, %v169_v15  ;;  %v187_v25 = vld [vmem:[%s11407_s1 + $0x460] sm:$0xff] }
  0x15   :  { %4484 = vmatpush1.bf16.msra.mxu0 %v4483_v62  ;;  %v190_v20 = vld [vmem:[%s11407_s1 + $0x478] sm:$0xff]  ;;  %v4493_v24 = vpack.c.bf16 %v198_v19, %v188_v18  ;;  %v197_v26 = vld [vmem:[%s11407_s1 + $0x4b0] sm:$0xff]  ;;  %v199_v29 = vld [vmem:[%s11407_s1 + $0x4c0] sm:$0xff] }
  0x16   :  { %4772 = vmatpush1.bf16.msra.mxu1 %v4771_v63  ;;  %4486 = vmatprep.subr.bf16.mxu0 %v4485_v0  ;;  %v189_v27 = vld [vmem:[%s11407_s1 + $0x470] sm:$0xff]  ;;  %v4781_v28 = vpack.c.bf16 %v200_v21, %v190_v20  ;;  %v208_v30 = vld [vmem:[%s11407_s1 + $0x508] sm:$0xff]  ;;  %v218_v31 = vld [vmem:[%s11407_s1 + $0x558] sm:$0xff]  ;;  %v4495_v34 = vpack.c.bf16 %v197_v26, %v187_v25 }
  0x17   :  { %4774 = vmatprep.subr.bf16.mxu1 %v4773_v4  ;;  %v210_v32 = vld [vmem:[%s11407_s1 + $0x518] sm:$0xff]  ;;  %v220_v33 = vld [vmem:[%s11407_s1 + $0x568] sm:$0xff]  ;;  %v4783_v35 = vpack.c.bf16 %v199_v29, %v189_v27  ;;  %v4497_v36 = vpack.c.bf16 %v218_v31, %v208_v30  ;;  %v207_v37 = vld [vmem:[%s11407_s1 + $0x500] sm:$0xff] }
  0x18   :  { %v217_v38 = vld [vmem:[%s11407_s1 + $0x550] sm:$0xff]  ;;  %v4785_v40 = vpack.c.bf16 %v220_v33, %v210_v32  ;;  %v219_v41 = vld [vmem:[%s11407_s1 + $0x560] sm:$0xff]  ;;  %v228_v42 = vld [vmem:[%s11407_s1 + $0x5a8] sm:$0xff] }
  0x19   :  { %4488 = vmatpush1.bf16.msra.mxu0 %v4487_v10  ;;  %v209_v39 = vld [vmem:[%s11407_s1 + $0x510] sm:$0xff]  ;;  %v238_v43 = vld [vmem:[%s11407_s1 + $0x5f8] sm:$0xff]  ;;  %v240_v45 = vld [vmem:[%s11407_s1 + $0x608] sm:$0xff]  ;;  %v4499_v46 = vpack.c.bf16 %v217_v38, %v207_v37 }
  0x1a   :  { %4776 = vmatpush1.bf16.msra.mxu1 %v4775_v11  ;;  %4490 = vmatprep.subr.bf16.mxu0 %v4489_v12  ;;  %v230_v44 = vld [vmem:[%s11407_s1 + $0x5b8] sm:$0xff]  ;;  %v4787_v47 = vpack.c.bf16 %v219_v41, %v209_v39  ;;  %v4501_v48 = vpack.c.bf16 %v238_v43, %v228_v42  ;;  %v227_v49 = vld [vmem:[%s11407_s1 + $0x5a0] sm:$0xff]  ;;  %v237_v50 = vld [vmem:[%s11407_s1 + $0x5f0] sm:$0xff] }
  0x1b   :  { %4778 = vmatprep.subr.bf16.mxu1 %v4777_v16  ;;  %v229_v51 = vld [vmem:[%s11407_s1 + $0x5b0] sm:$0xff]  ;;  %v4789_v52 = vpack.c.bf16 %v240_v45, %v230_v44  ;;  %v239_v53 = vld [vmem:[%s11407_s1 + $0x600] sm:$0xff]  ;;  %v248_v54 = vld [vmem:[%s11407_s1 + $0x648] sm:$0xff]  ;;  %v4503_v58 = vpack.c.bf16 %v237_v50, %v227_v49 }
  0x1c   :  { %v258_v55 = vld [vmem:[%s11407_s1 + $0x698] sm:$0xff]  ;;  %v260_v57 = vld [vmem:[%s11407_s1 + $0x6a8] sm:$0xff]  ;;  %v4791_v59 = vpack.c.bf16 %v239_v53, %v229_v51  ;;  %v247_v61 = vld [vmem:[%s11407_s1 + $0x640] sm:$0xff] }
  0x1d   :  { %4492 = vmatpush1.bf16.msra.mxu0 %v4491_v22  ;;  %v250_v56 = vld [vmem:[%s11407_s1 + $0x658] sm:$0xff]  ;;  %v4505_v60 = vpack.c.bf16 %v258_v55, %v248_v54  ;;  %v257_v62 = vld [vmem:[%s11407_s1 + $0x690] sm:$0xff]  ;;  %v259_v1 = vld [vmem:[%s11407_s1 + $0x6a0] sm:$0xff] }
  0x1e   :  { %4780 = vmatpush1.bf16.msra.mxu1 %v4779_v23  ;;  %4494 = vmatprep.subr.bf16.mxu0 %v4493_v24  ;;  %v249_v63 = vld [vmem:[%s11407_s1 + $0x650] sm:$0xff]  ;;  %v4793_v0 = vpack.c.bf16 %v260_v57, %v250_v56  ;;  %v268_v2 = vld [vmem:[%s11407_s1 + $0x6e8] sm:$0xff]  ;;  %v278_v3 = vld [vmem:[%s11407_s1 + $0x738] sm:$0xff]  ;;  %v4507_v6 = vpack.c.bf16 %v257_v62, %v247_v61 }
  0x1f   :  { %4782 = vmatprep.subr.bf16.mxu1 %v4781_v28  ;;  %v270_v4 = vld [vmem:[%s11407_s1 + $0x6f8] sm:$0xff]  ;;  %v280_v5 = vld [vmem:[%s11407_s1 + $0x748] sm:$0xff]  ;;  %v267_v7 = vld [vmem:[%s11407_s1 + $0x6e0] sm:$0xff]  ;;  %v4795_v8 = vpack.c.bf16 %v259_v1, %v249_v63  ;;  %v4509_v9 = vpack.c.bf16 %v278_v3, %v268_v2 }
  0x20   :  { %v277_v10 = vld [vmem:[%s11407_s1 + $0x730] sm:$0xff]  ;;  %v279_v12 = vld [vmem:[%s11407_s1 + $0x740] sm:$0xff]  ;;  %v4797_v13 = vpack.c.bf16 %v280_v5, %v270_v4  ;;  %v288_v14 = vld [vmem:[%s11407_s1 + $0x788] sm:$0xff] }
  0x21   :  { %4496 = vmatpush1.bf16.msra.mxu0 %v4495_v34  ;;  %v269_v11 = vld [vmem:[%s11407_s1 + $0x6f0] sm:$0xff]  ;;  %v298_v15 = vld [vmem:[%s11407_s1 + $0x7d8] sm:$0xff]  ;;  %v39_v16 = vld [vmem:[%s11408_s0 + $0x8] sm:$0xff]  ;;  %v4511_v19 = vpack.c.bf16 %v277_v10, %v267_v7 }
  0x22   :  { %4784 = vmatpush1.bf16.msra.mxu1 %v4783_v35  ;;  %4498 = vmatprep.subr.bf16.mxu0 %v4497_v36  ;;  %v290_v17 = vld [vmem:[%s11407_s1 + $0x798] sm:$0xff]  ;;  %v300_v18 = vld [vmem:[%s11407_s1 + $0x7e8] sm:$0xff]  ;;  %v4799_v20 = vpack.c.bf16 %v279_v12, %v269_v11  ;;  %v4513_v21 = vpack.c.bf16 %v298_v15, %v288_v14  ;;  %v287_v22 = vld [vmem:[%s11407_s1 + $0x780] sm:$0xff] }
  0x23   :  { %4786 = vmatprep.subr.bf16.mxu1 %v4785_v40  ;;  %1605 = vmatprep.mubr.f32.mxu0 %v39_v16  ;;  %v297_v23 = vld [vmem:[%s11407_s1 + $0x7d0] sm:$0xff]  ;;  %v4801_v25 = vpack.c.bf16 %v300_v18, %v290_v17  ;;  %v299_v26 = vld [vmem:[%s11407_s1 + $0x7e0] sm:$0xff]  ;;  %v308_v27 = vld [vmem:[%s11407_s1 + $0x828] sm:$0xff] }
  0x24   :  { %1960 = vmatprep.mubr.f32.mxu1 %v39_v16  ;;  %v289_v24 = vld [vmem:[%s11407_s1 + $0x790] sm:$0xff]  ;;  %v318_v28 = vld [vmem:[%s11407_s1 + $0x878] sm:$0xff]  ;;  %v320_v30 = vld [vmem:[%s11407_s1 + $0x888] sm:$0xff]  ;;  %v4515_v31 = vpack.c.bf16 %v297_v23, %v287_v22 }
  0x25   :  { %4500 = vmatpush1.bf16.msra.mxu0 %v4499_v46  ;;  %v310_v29 = vld [vmem:[%s11407_s1 + $0x838] sm:$0xff]  ;;  %v4803_v32 = vpack.c.bf16 %v299_v26, %v289_v24  ;;  %v4517_v33 = vpack.c.bf16 %v318_v28, %v308_v27  ;;  %v307_v34 = vld [vmem:[%s11407_s1 + $0x820] sm:$0xff]  ;;  %v317_v35 = vld [vmem:[%s11407_s1 + $0x870] sm:$0xff] }
  0x26   :  { %4788 = vmatpush1.bf16.msra.mxu1 %v4787_v47  ;;  %4502 = vmatprep.subr.bf16.mxu0 %v4501_v48  ;;  %v309_v36 = vld [vmem:[%s11407_s1 + $0x830] sm:$0xff]  ;;  %v4805_v37 = vpack.c.bf16 %v320_v30, %v310_v29  ;;  %v319_v38 = vld [vmem:[%s11407_s1 + $0x880] sm:$0xff]  ;;  %v328_v39 = vld [vmem:[%s11407_s1 + $0x8c8] sm:$0xff]  ;;  %v4519_v43 = vpack.c.bf16 %v317_v35, %v307_v34 }
  0x27   :  { %4790 = vmatprep.subr.bf16.mxu1 %v4789_v52  ;;  %v338_v40 = vld [vmem:[%s11407_s1 + $0x918] sm:$0xff]  ;;  %v340_v42 = vld [vmem:[%s11407_s1 + $0x928] sm:$0xff]  ;;  %v4807_v44 = vpack.c.bf16 %v319_v38, %v309_v36  ;;  %v327_v46 = vld [vmem:[%s11407_s1 + $0x8c0] sm:$0xff] }
  0x28   :  { %v330_v41 = vld [vmem:[%s11407_s1 + $0x8d8] sm:$0xff]  ;;  %v4521_v45 = vpack.c.bf16 %v338_v40, %v328_v39  ;;  %v337_v47 = vld [vmem:[%s11407_s1 + $0x910] sm:$0xff]  ;;  %v339_v50 = vld [vmem:[%s11407_s1 + $0x920] sm:$0xff] }
  0x29   :  { %4504 = vmatpush1.bf16.msra.mxu0 %v4503_v58  ;;  %v329_v48 = vld [vmem:[%s11407_s1 + $0x8d0] sm:$0xff]  ;;  %v4809_v49 = vpack.c.bf16 %v340_v42, %v330_v41  ;;  %v348_v51 = vld [vmem:[%s11407_s1 + $0x968] sm:$0xff]  ;;  %v358_v52 = vld [vmem:[%s11407_s1 + $0x9b8] sm:$0xff]  ;;  %v4523_v55 = vpack.c.bf16 %v337_v47, %v327_v46 }
  0x2a   :  { %4792 = vmatpush1.bf16.msra.mxu1 %v4791_v59  ;;  %4506 = vmatprep.subr.bf16.mxu0 %v4505_v60  ;;  %v350_v53 = vld [vmem:[%s11407_s1 + $0x978] sm:$0xff]  ;;  %v360_v54 = vld [vmem:[%s11407_s1 + $0x9c8] sm:$0xff]  ;;  %v4811_v56 = vpack.c.bf16 %v339_v50, %v329_v48  ;;  %v4525_v57 = vpack.c.bf16 %v358_v52, %v348_v51  ;;  %v347_v58 = vld [vmem:[%s11407_s1 + $0x960] sm:$0xff] }
  0x2b   :  { %4794 = vmatprep.subr.bf16.mxu1 %v4793_v0  ;;  %v357_v59 = vld [vmem:[%s11407_s1 + $0x9b0] sm:$0xff]  ;;  %v4813_v61 = vpack.c.bf16 %v360_v54, %v350_v53  ;;  %v359_v62 = vld [vmem:[%s11407_s1 + $0x9c0] sm:$0xff]  ;;  %v368_v63 = vld [vmem:[%s11407_s1 + $0xa08] sm:$0xff] }
  0x2c   :  { %v349_v60 = vld [vmem:[%s11407_s1 + $0x970] sm:$0xff]  ;;  %v378_v0 = vld [vmem:[%s11407_s1 + $0xa58] sm:$0xff]  ;;  %v380_v2 = vld [vmem:[%s11407_s1 + $0xa68] sm:$0xff]  ;;  %v4527_v3 = vpack.c.bf16 %v357_v59, %v347_v58 }
  0x2d   :  { %4508 = vmatpush1.bf16.msra.mxu0 %v4507_v6  ;;  %v370_v1 = vld [vmem:[%s11407_s1 + $0xa18] sm:$0xff]  ;;  %v4815_v4 = vpack.c.bf16 %v359_v62, %v349_v60  ;;  %v4529_v5 = vpack.c.bf16 %v378_v0, %v368_v63  ;;  %v367_v6 = vld [vmem:[%s11407_s1 + $0xa00] sm:$0xff]  ;;  %v377_v7 = vld [vmem:[%s11407_s1 + $0xa50] sm:$0xff] }
  0x2e   :  { %4796 = vmatpush1.bf16.msra.mxu1 %v4795_v8  ;;  %4510 = vmatprep.subr.bf16.mxu0 %v4509_v9  ;;  %v369_v8 = vld [vmem:[%s11407_s1 + $0xa10] sm:$0xff]  ;;  %v4817_v9 = vpack.c.bf16 %v380_v2, %v370_v1  ;;  %v379_v10 = vld [vmem:[%s11407_s1 + $0xa60] sm:$0xff]  ;;  %v388_v11 = vld [vmem:[%s11407_s1 + $0xaa8] sm:$0xff]  ;;  %v4531_v16 = vpack.c.bf16 %v377_v7, %v367_v6 }
  0x2f   :  { %4798 = vmatprep.subr.bf16.mxu1 %v4797_v13  ;;  %v398_v12 = vld [vmem:[%s11407_s1 + $0xaf8] sm:$0xff]  ;;  %v400_v14 = vld [vmem:[%s11407_s1 + $0xb08] sm:$0xff]  ;;  %v38_v15 = vld [vmem:[%s11408_s0] sm:$0xff]  ;;  %v4819_v17 = vpack.c.bf16 %v379_v10, %v369_v8 }
  0x30   :  { %v390_v13 = vld [vmem:[%s11407_s1 + $0xab8] sm:$0xff]  ;;  %v4533_v18 = vpack.c.bf16 %v398_v12, %v388_v11  ;;  %v399_v23 = vld [vmem:[%s11407_s1 + $0xb00] sm:$0xff]  ;;  %v408_v24 = vld [vmem:[%s11407_s1 + $0xb48] sm:$0xff] }
  0x31   :  { %4512 = vmatpush1.bf16.msra.mxu0 %v4511_v19  ;;  %v387_v19 = vld [vmem:[%s11407_s1 + $0xaa0] sm:$0xff]  ;;  %v4821_v22 = vpack.c.bf16 %v400_v14, %v390_v13  ;;  %v410_v26 = vld [vmem:[%s11407_s1 + $0xb58] sm:$0xff]  ;;  %v420_v27 = vld [vmem:[%s11407_s1 + $0xba8] sm:$0xff] }
  0x32   :  { %4800 = vmatpush1.bf16.msra.mxu1 %v4799_v20  ;;  %4514 = vmatprep.subr.bf16.mxu0 %v4513_v21  ;;  %v397_v20 = vld [vmem:[%s11407_s1 + $0xaf0] sm:$0xff]  ;;  %v4825_v34 = vpack.c.bf16 %v420_v27, %v410_v26  ;;  %v419_v35 = vld [vmem:[%s11407_s1 + $0xba0] sm:$0xff]  ;;  %v428_v36 = vld [vmem:[%s11407_s1 + $0xbe8] sm:$0xff] }
  0x33   :  { %4802 = vmatprep.subr.bf16.mxu1 %v4801_v25  ;;  %v389_v21 = vld [vmem:[%s11407_s1 + $0xab0] sm:$0xff]  ;;  %v418_v25 = vld [vmem:[%s11407_s1 + $0xb98] sm:$0xff]  ;;  %v4535_v28 = vpack.c.bf16 %v397_v20, %v387_v19  ;;  %v440_v39 = vld [vmem:[%s11407_s1 + $0xc48] sm:$0xff] }
  0x34   :  { %v4823_v29 = vpack.c.bf16 %v399_v23, %v389_v21  ;;  %v4537_v30 = vpack.c.bf16 %v418_v25, %v408_v24  ;;  %v430_v38 = vld [vmem:[%s11407_s1 + $0xbf8] sm:$0xff]  ;;  %v439_v47 = vld [vmem:[%s11407_s1 + $0xc40] sm:$0xff]  ;;  %v448_v48 = vld [vmem:[%s11407_s1 + $0xc88] sm:$0xff] }
  0x35   :  { %4516 = vmatpush1.bf16.msra.mxu0 %v4515_v31  ;;  %v407_v31 = vld [vmem:[%s11407_s1 + $0xb40] sm:$0xff]  ;;  %v4829_v46 = vpack.c.bf16 %v440_v39, %v430_v38  ;;  %v450_v50 = vld [vmem:[%s11407_s1 + $0xc98] sm:$0xff]  ;;  %v460_v51 = vld [vmem:[%s11407_s1 + $0xce8] sm:$0xff] }
  0x36   :  { %4804 = vmatpush1.bf16.msra.mxu1 %v4803_v32  ;;  %4518 = vmatprep.subr.bf16.mxu0 %v4517_v33  ;;  %v417_v32 = vld [vmem:[%s11407_s1 + $0xb90] sm:$0xff]  ;;  %v4833_v58 = vpack.c.bf16 %v460_v51, %v450_v50  ;;  %v459_v59 = vld [vmem:[%s11407_s1 + $0xce0] sm:$0xff]  ;;  %v468_v60 = vld [vmem:[%s11407_s1 + $0xd28] sm:$0xff] }
  0x37   :  { %4806 = vmatprep.subr.bf16.mxu1 %v4805_v37  ;;  %v409_v33 = vld [vmem:[%s11407_s1 + $0xb50] sm:$0xff]  ;;  %v438_v37 = vld [vmem:[%s11407_s1 + $0xc38] sm:$0xff]  ;;  %v4539_v40 = vpack.c.bf16 %v417_v32, %v407_v31  ;;  %v480_v63 = vld [vmem:[%s11407_s1 + $0xd88] sm:$0xff] }
  0x38   :  { %v4827_v41 = vpack.c.bf16 %v419_v35, %v409_v33  ;;  %v4541_v42 = vpack.c.bf16 %v438_v37, %v428_v36  ;;  %v470_v62 = vld [vmem:[%s11407_s1 + $0xd38] sm:$0xff]  ;;  %v479_v7 = vld [vmem:[%s11407_s1 + $0xd80] sm:$0xff]  ;;  %v488_v8 = vld [vmem:[%s11407_s1 + $0xdc8] sm:$0xff] }
  0x39   :  { %4520 = vmatpush1.bf16.msra.mxu0 %v4519_v43  ;;  %v427_v43 = vld [vmem:[%s11407_s1 + $0xbe0] sm:$0xff]  ;;  %v4837_v6 = vpack.c.bf16 %v480_v63, %v470_v62  ;;  %v490_v10 = vld [vmem:[%s11407_s1 + $0xdd8] sm:$0xff]  ;;  %v500_v11 = vld [vmem:[%s11407_s1 + $0xe28] sm:$0xff] }
  0x3a   :  { %4808 = vmatpush1.bf16.msra.mxu1 %v4807_v44  ;;  %4522 = vmatprep.subr.bf16.mxu0 %v4521_v45  ;;  %v437_v44 = vld [vmem:[%s11407_s1 + $0xc30] sm:$0xff]  ;;  %v487_v13 = vld [vmem:[%s11407_s1 + $0xdc0] sm:$0xff]  ;;  %v4841_v19 = vpack.c.bf16 %v500_v11, %v490_v10  ;;  %v508_v20 = vld [vmem:[%s11407_s1 + $0xe68] sm:$0xff] }
  0x3b   :  { %4810 = vmatprep.subr.bf16.mxu1 %v4809_v49  ;;  %v429_v45 = vld [vmem:[%s11407_s1 + $0xbf0] sm:$0xff]  ;;  %v458_v49 = vld [vmem:[%s11407_s1 + $0xcd8] sm:$0xff]  ;;  %v4543_v52 = vpack.c.bf16 %v437_v44, %v427_v43  ;;  %v520_v24 = vld [vmem:[%s11407_s1 + $0xec8] sm:$0xff] }
  0x3c   :  { %v4831_v53 = vpack.c.bf16 %v439_v47, %v429_v45  ;;  %v4545_v54 = vpack.c.bf16 %v458_v49, %v448_v48  ;;  %v518_v21 = vld [vmem:[%s11407_s1 + $0xeb8] sm:$0xff]  ;;  %v519_v32 = vld [vmem:[%s11407_s1 + $0xec0] sm:$0xff]  ;;  %v528_v33 = vld [vmem:[%s11407_s1 + $0xf08] sm:$0xff] }
  0x3d   :  { %4524 = vmatpush1.bf16.msra.mxu0 %v4523_v55  ;;  %v447_v55 = vld [vmem:[%s11407_s1 + $0xc80] sm:$0xff]  ;;  %v510_v23 = vld [vmem:[%s11407_s1 + $0xe78] sm:$0xff]  ;;  %v4557_v27 = vpack.c.bf16 %v518_v21, %v508_v20  ;;  %v540_v36 = vld [vmem:[%s11407_s1 + $0xf68] sm:$0xff] }
  0x3e   :  { %4812 = vmatpush1.bf16.msra.mxu1 %v4811_v56  ;;  %4526 = vmatprep.subr.bf16.mxu0 %v4525_v57  ;;  %v457_v56 = vld [vmem:[%s11407_s1 + $0xcd0] sm:$0xff]  ;;  %v4845_v31 = vpack.c.bf16 %v520_v24, %v510_v23  ;;  %v530_v35 = vld [vmem:[%s11407_s1 + $0xf18] sm:$0xff]  ;;  %v539_v44 = vld [vmem:[%s11407_s1 + $0xf60] sm:$0xff] }
  0x3f   :  { %4814 = vmatprep.subr.bf16.mxu1 %v4813_v61  ;;  %v449_v57 = vld [vmem:[%s11407_s1 + $0xc90] sm:$0xff]  ;;  %v478_v61 = vld [vmem:[%s11407_s1 + $0xd78] sm:$0xff]  ;;  %v4547_v0 = vpack.c.bf16 %v457_v56, %v447_v55  ;;  %v4849_v43 = vpack.c.bf16 %v540_v36, %v530_v35  ;;  %v548_v45 = vld [vmem:[%s11407_s1 + $0xfa8] sm:$0xff] }
  0x40   :  { %v4835_v1 = vpack.c.bf16 %v459_v59, %v449_v57  ;;  %v4549_v2 = vpack.c.bf16 %v478_v61, %v468_v60  ;;  %v550_v47 = vld [vmem:[%s11407_s1 + $0xfb8] sm:$0xff]  ;;  %v560_v48 = vld [vmem:[%s11407_s1 + $0x1008] sm:$0xff]  ;;  %v559_v56 = vld [vmem:[%s11407_s1 + $0x1000] sm:$0xff] }
  0x41   :  { %4528 = vmatpush1.bf16.msra.mxu0 %v4527_v3  ;;  %v467_v3 = vld [vmem:[%s11407_s1 + $0xd20] sm:$0xff]  ;;  %v4853_v55 = vpack.c.bf16 %v560_v48, %v550_v47  ;;  %v568_v57 = vld [vmem:[%s11407_s1 + $0x1048] sm:$0xff]  ;;  %v570_v59 = vld [vmem:[%s11407_s1 + $0x1058] sm:$0xff] }
  0x42   :  { %4816 = vmatpush1.bf16.msra.mxu1 %v4815_v4  ;;  %4530 = vmatprep.subr.bf16.mxu0 %v4529_v5  ;;  %v477_v4 = vld [vmem:[%s11407_s1 + $0xd70] sm:$0xff]  ;;  %v580_v60 = vld [vmem:[%s11407_s1 + $0x10a8] sm:$0xff]  ;;  %v607_v24 = vld [vmem:[%s11407_s1 + $0x1180] sm:$0xff] }
  0x43   :  { %4818 = vmatprep.subr.bf16.mxu1 %v4817_v9  ;;  %v469_v5 = vld [vmem:[%s11407_s1 + $0xd30] sm:$0xff]  ;;  %v498_v9 = vld [vmem:[%s11407_s1 + $0xe18] sm:$0xff]  ;;  %v4551_v12 = vpack.c.bf16 %v477_v4, %v467_v3  ;;  %v4857_v3 = vpack.c.bf16 %v580_v60, %v570_v59  ;;  %v579_v4 = vld [vmem:[%s11407_s1 + $0x10a0] sm:$0xff] }
  0x44   :  { %1606 = vmatmul.mubr.f32.vlgmr.msra.gmra.mrb[0].mxu0 %v38_v15  ;;  %v4839_v14 = vpack.c.bf16 %v479_v7, %v469_v5  ;;  %v588_v5 = vld [vmem:[%s11407_s1 + $0x10e8] sm:$0xff]  ;;  %v590_v7 = vld [vmem:[%s11407_s1 + $0x10f8] sm:$0xff]  ;;  %v627_v36 = vld [vmem:[%s11407_s1 + $0x1220] sm:$0xff] }
  0x45   :  { %4532 = vmatpush1.bf16.msra.mxu0 %v4531_v16  ;;  %1961 = vmatmul.mubr.f32.vlgmr.msra.gmra.mrb[0].mxu1 %v38_v15  ;;  %v4553_v15 = vpack.c.bf16 %v498_v9, %v488_v8  ;;  %v497_v16 = vld [vmem:[%s11407_s1 + $0xe10] sm:$0xff]  ;;  %v600_v8 = vld [vmem:[%s11407_s1 + $0x1148] sm:$0xff]  ;;  %v647_v48 = vld [vmem:[%s11407_s1 + $0x12c0] sm:$0xff] }
  0x46   :  { %4820 = vmatpush1.bf16.msra.mxu1 %v4819_v17  ;;  %4534 = vmatprep.subr.bf16.mxu0 %v4533_v18  ;;  %v489_v17 = vld [vmem:[%s11407_s1 + $0xdd0] sm:$0xff]  ;;  %v499_v18 = vld [vmem:[%s11407_s1 + $0xe20] sm:$0xff]  ;;  %v4555_v25 = vpack.c.bf16 %v497_v16, %v487_v13  ;;  %v620_v20 = vld [vmem:[%s11407_s1 + $0x11e8] sm:$0xff] }
  0x47   :  { %4822 = vmatprep.subr.bf16.mxu1 %v4821_v22  ;;  %v41_v22 = vld [vmem:[%s11408_s0 + $0x18] sm:$0xff]  ;;  %v4843_v26 = vpack.c.bf16 %v499_v18, %v489_v17  ;;  %v597_v13 = vld [vmem:[%s11407_s1 + $0x1130] sm:$0xff]  ;;  %v599_v16 = vld [vmem:[%s11407_s1 + $0x1140] sm:$0xff] }
  0x48   :  { %1676 = vmatprep.mubr.f32.mxu0 %v41_v22  ;;  %2031 = vmatprep.mubr.f32.mxu1 %v41_v22  ;;  %v608_v17 = vld [vmem:[%s11407_s1 + $0x1188] sm:$0xff]  ;;  %v618_v18 = vld [vmem:[%s11407_s1 + $0x11d8] sm:$0xff]  ;;  %v667_v60 = vld [vmem:[%s11407_s1 + $0x1360] sm:$0xff] }
  0x49   :  { %4536 = vmatpush1.bf16.msra.mxu0 %v4535_v28  ;;  %v507_v28 = vld [vmem:[%s11407_s1 + $0xe60] sm:$0xff]  ;;  %v4577_v23 = vpack.c.bf16 %v618_v18, %v608_v17  ;;  %v40_v17 = vld [vmem:[%s11408_s0 + $0x10] sm:$0xff] }
  0x4a   :  { %4824 = vmatpush1.bf16.msra.mxu1 %v4823_v29  ;;  %4538 = vmatprep.subr.bf16.mxu0 %v4537_v30  ;;  %v517_v29 = vld [vmem:[%s11407_s1 + $0xeb0] sm:$0xff] }
  0x4b   :  { %4826 = vmatprep.subr.bf16.mxu1 %v4825_v34  ;;  %v509_v30 = vld [vmem:[%s11407_s1 + $0xe70] sm:$0xff]  ;;  %v538_v34 = vld [vmem:[%s11407_s1 + $0xf58] sm:$0xff]  ;;  %v4559_v37 = vpack.c.bf16 %v517_v29, %v507_v28  ;;  %v619_v28 = vld [vmem:[%s11407_s1 + $0x11e0] sm:$0xff] }
  0x4c   :  { %v4847_v38 = vpack.c.bf16 %v519_v32, %v509_v30  ;;  %v4561_v39 = vpack.c.bf16 %v538_v34, %v528_v33  ;;  %v628_v29 = vld [vmem:[%s11407_s1 + $0x1228] sm:$0xff]  ;;  %v638_v30 = vld [vmem:[%s11407_s1 + $0x1278] sm:$0xff] }
  0x4d   :  { %4540 = vmatpush1.bf16.msra.mxu0 %v4539_v40  ;;  %v527_v40 = vld [vmem:[%s11407_s1 + $0xf00] sm:$0xff]  ;;  %v640_v32 = vld [vmem:[%s11407_s1 + $0x1288] sm:$0xff]  ;;  %v4581_v35 = vpack.c.bf16 %v638_v30, %v628_v29 }
  0x4e   :  { %4828 = vmatpush1.bf16.msra.mxu1 %v4827_v41  ;;  %4542 = vmatprep.subr.bf16.mxu0 %v4541_v42  ;;  %v537_v41 = vld [vmem:[%s11407_s1 + $0xf50] sm:$0xff]  ;;  %v740_v29 = vld [vmem:[%s11407_s1 + $0x15a8] sm:$0xff] }
  0x4f   :  { %4830 = vmatprep.subr.bf16.mxu1 %v4829_v46  ;;  %v529_v42 = vld [vmem:[%s11407_s1 + $0xf10] sm:$0xff]  ;;  %v558_v46 = vld [vmem:[%s11407_s1 + $0xff8] sm:$0xff]  ;;  %v4563_v49 = vpack.c.bf16 %v537_v41, %v527_v40  ;;  %v639_v40 = vld [vmem:[%s11407_s1 + $0x1280] sm:$0xff] }
  0x50   :  { %v4851_v50 = vpack.c.bf16 %v539_v44, %v529_v42  ;;  %v4565_v51 = vpack.c.bf16 %v558_v46, %v548_v45  ;;  %v648_v41 = vld [vmem:[%s11407_s1 + $0x12c8] sm:$0xff]  ;;  %v658_v42 = vld [vmem:[%s11407_s1 + $0x1318] sm:$0xff] }
  0x51   :  { %4544 = vmatpush1.bf16.msra.mxu0 %v4543_v52  ;;  %v547_v52 = vld [vmem:[%s11407_s1 + $0xfa0] sm:$0xff]  ;;  %v660_v44 = vld [vmem:[%s11407_s1 + $0x1328] sm:$0xff]  ;;  %v4585_v47 = vpack.c.bf16 %v658_v42, %v648_v41  ;;  %v750_v41 = vld [vmem:[%s11407_s1 + $0x15f8] sm:$0xff] }
  0x52   :  { %4832 = vmatpush1.bf16.msra.mxu1 %v4831_v53  ;;  %4546 = vmatprep.subr.bf16.mxu0 %v4545_v54  ;;  %v557_v53 = vld [vmem:[%s11407_s1 + $0xff0] sm:$0xff]  ;;  %v43_v30 = vld [vmem:[%s11408_s0 + $0x28] sm:$0xff] }
  0x53   :  { %4834 = vmatprep.subr.bf16.mxu1 %v4833_v58  ;;  %v549_v54 = vld [vmem:[%s11407_s1 + $0xfb0] sm:$0xff]  ;;  %v578_v58 = vld [vmem:[%s11407_s1 + $0x1098] sm:$0xff]  ;;  %v4567_v61 = vpack.c.bf16 %v557_v53, %v547_v52  ;;  %v659_v52 = vld [vmem:[%s11407_s1 + $0x1320] sm:$0xff] }
  0x54   :  { %v4855_v62 = vpack.c.bf16 %v559_v56, %v549_v54  ;;  %v4569_v63 = vpack.c.bf16 %v578_v58, %v568_v57  ;;  %v668_v53 = vld [vmem:[%s11407_s1 + $0x1368] sm:$0xff]  ;;  %v678_v54 = vld [vmem:[%s11407_s1 + $0x13b8] sm:$0xff] }
  0x55   :  { %4548 = vmatpush1.bf16.msra.mxu0 %v4547_v0  ;;  %v567_v0 = vld [vmem:[%s11407_s1 + $0x1040] sm:$0xff]  ;;  %v680_v56 = vld [vmem:[%s11407_s1 + $0x13c8] sm:$0xff]  ;;  %v4589_v59 = vpack.c.bf16 %v678_v54, %v668_v53  ;;  %v770_v53 = vld [vmem:[%s11407_s1 + $0x1698] sm:$0xff] }
  0x56   :  { %4836 = vmatpush1.bf16.msra.mxu1 %v4835_v1  ;;  %4550 = vmatprep.subr.bf16.mxu0 %v4549_v2  ;;  %v577_v1 = vld [vmem:[%s11407_s1 + $0x1090] sm:$0xff]  ;;  %v760_v42 = vld [vmem:[%s11407_s1 + $0x1648] sm:$0xff] }
  0x57   :  { %4838 = vmatprep.subr.bf16.mxu1 %v4837_v6  ;;  %v569_v2 = vld [vmem:[%s11407_s1 + $0x1050] sm:$0xff]  ;;  %v598_v6 = vld [vmem:[%s11407_s1 + $0x1138] sm:$0xff]  ;;  %v4571_v9 = vpack.c.bf16 %v577_v1, %v567_v0  ;;  %v679_v0 = vld [vmem:[%s11407_s1 + $0x13c0] sm:$0xff] }
  0x58   :  { %v4859_v10 = vpack.c.bf16 %v579_v4, %v569_v2  ;;  %v4573_v11 = vpack.c.bf16 %v598_v6, %v588_v5  ;;  %v688_v1 = vld [vmem:[%s11407_s1 + $0x1408] sm:$0xff]  ;;  %v698_v2 = vld [vmem:[%s11407_s1 + $0x1458] sm:$0xff] }
  0x59   :  { %4552 = vmatpush1.bf16.msra.mxu0 %v4551_v12  ;;  %v587_v12 = vld [vmem:[%s11407_s1 + $0x10e0] sm:$0xff]  ;;  %v700_v4 = vld [vmem:[%s11407_s1 + $0x1468] sm:$0xff] }
  0x5a   :  { %4840 = vmatpush1.bf16.msra.mxu1 %v4839_v14  ;;  %4554 = vmatprep.subr.bf16.mxu0 %v4553_v15  ;;  %v589_v14 = vld [vmem:[%s11407_s1 + $0x10f0] sm:$0xff]  ;;  %v4861_v15 = vpack.c.bf16 %v600_v8, %v590_v7  ;;  %v4575_v21 = vpack.c.bf16 %v597_v13, %v587_v12  ;;  %v4593_v7 = vpack.c.bf16 %v698_v2, %v688_v1  ;;  %v687_v8 = vld [vmem:[%s11407_s1 + $0x1400] sm:$0xff]  ;;  %v708_v13 = vld [vmem:[%s11407_s1 + $0x14a8] sm:$0xff] }
  0x5b   :  { %4842 = vmatprep.subr.bf16.mxu1 %v4841_v19  ;;  %v610_v19 = vld [vmem:[%s11407_s1 + $0x1198] sm:$0xff]  ;;  %v4863_v22 = vpack.c.bf16 %v599_v16, %v589_v14  ;;  %v699_v12 = vld [vmem:[%s11407_s1 + $0x1460] sm:$0xff]  ;;  %v720_v16 = vld [vmem:[%s11407_s1 + $0x1508] sm:$0xff] }
  0x5c   :  { %v718_v14 = vld [vmem:[%s11407_s1 + $0x14f8] sm:$0xff]  ;;  %v780_v54 = vld [vmem:[%s11407_s1 + $0x16e8] sm:$0xff] }
  0x5d   :  { %4556 = vmatpush1.bf16.msra.mxu0 %v4555_v25  ;;  %v617_v25 = vld [vmem:[%s11407_s1 + $0x11d0] sm:$0xff]  ;;  %v790_v1 = vld [vmem:[%s11407_s1 + $0x1738] sm:$0xff]  ;;  %v800_v2 = vld [vmem:[%s11407_s1 + $0x1788] sm:$0xff] }
  0x5e   :  { %4844 = vmatpush1.bf16.msra.mxu1 %v4843_v26  ;;  %4558 = vmatprep.subr.bf16.mxu0 %v4557_v27  ;;  %v609_v26 = vld [vmem:[%s11407_s1 + $0x1190] sm:$0xff]  ;;  %v4865_v27 = vpack.c.bf16 %v620_v20, %v610_v19  ;;  %v4579_v33 = vpack.c.bf16 %v617_v25, %v607_v24  ;;  %v4597_v20 = vpack.c.bf16 %v718_v14, %v708_v13  ;;  %v719_v25 = vld [vmem:[%s11407_s1 + $0x1500] sm:$0xff]  ;;  %v810_v13 = vld [vmem:[%s11407_s1 + $0x17d8] sm:$0xff] }
  0x5f   :  { %4846 = vmatprep.subr.bf16.mxu1 %v4845_v31  ;;  %v630_v31 = vld [vmem:[%s11407_s1 + $0x1238] sm:$0xff]  ;;  %v4867_v34 = vpack.c.bf16 %v619_v28, %v609_v26  ;;  %v728_v26 = vld [vmem:[%s11407_s1 + $0x1548] sm:$0xff] }
  0x60   :  { %v730_v28 = vld [vmem:[%s11407_s1 + $0x1558] sm:$0xff]  ;;  %v820_v14 = vld [vmem:[%s11407_s1 + $0x1828] sm:$0xff] }
  0x61   :  { %4560 = vmatpush1.bf16.msra.mxu0 %v4559_v37  ;;  %v637_v37 = vld [vmem:[%s11407_s1 + $0x1270] sm:$0xff] }
  0x62   :  { %4848 = vmatpush1.bf16.msra.mxu1 %v4847_v38  ;;  %4562 = vmatprep.subr.bf16.mxu0 %v4561_v39  ;;  %v629_v38 = vld [vmem:[%s11407_s1 + $0x1230] sm:$0xff]  ;;  %v4869_v39 = vpack.c.bf16 %v640_v32, %v630_v31  ;;  %v4583_v45 = vpack.c.bf16 %v637_v37, %v627_v36  ;;  %v4889_v37 = vpack.c.bf16 %v740_v29, %v730_v28 }
  0x63   :  { %4850 = vmatprep.subr.bf16.mxu1 %v4849_v43  ;;  %v650_v43 = vld [vmem:[%s11407_s1 + $0x12d8] sm:$0xff]  ;;  %v4871_v46 = vpack.c.bf16 %v639_v40, %v629_v38  ;;  %v729_v36 = vld [vmem:[%s11407_s1 + $0x1550] sm:$0xff]  ;;  %v739_v38 = vld [vmem:[%s11407_s1 + $0x15a0] sm:$0xff] }
  0x64   :  { %v758_v40 = vld [vmem:[%s11407_s1 + $0x1638] sm:$0xff] }
  0x65   :  { %4564 = vmatpush1.bf16.msra.mxu0 %v4563_v49  ;;  %v657_v49 = vld [vmem:[%s11407_s1 + $0x1310] sm:$0xff] }
  0x66   :  { %4852 = vmatpush1.bf16.msra.mxu1 %v4851_v50  ;;  %4566 = vmatprep.subr.bf16.mxu0 %v4565_v51  ;;  %v649_v50 = vld [vmem:[%s11407_s1 + $0x12d0] sm:$0xff]  ;;  %v4873_v51 = vpack.c.bf16 %v660_v44, %v650_v43  ;;  %v4587_v57 = vpack.c.bf16 %v657_v49, %v647_v48  ;;  %v4891_v44 = vpack.c.bf16 %v739_v38, %v729_v36  ;;  %v858_v36 = vld [vmem:[%s11407_s1 + $0x1958] sm:$0xff]  ;;  %v860_v38 = vld [vmem:[%s11407_s1 + $0x1968] sm:$0xff] }
  0x67   :  { %4854 = vmatprep.subr.bf16.mxu1 %v4853_v55  ;;  %v670_v55 = vld [vmem:[%s11407_s1 + $0x1378] sm:$0xff]  ;;  %v4875_v58 = vpack.c.bf16 %v659_v52, %v649_v50  ;;  %v749_v48 = vld [vmem:[%s11407_s1 + $0x15f0] sm:$0xff]  ;;  %v4893_v49 = vpack.c.bf16 %v760_v42, %v750_v41  ;;  %v759_v50 = vld [vmem:[%s11407_s1 + $0x1640] sm:$0xff] }
  0x68   :  { %v778_v52 = vld [vmem:[%s11407_s1 + $0x16d8] sm:$0xff]  ;;  %v847_v42 = vld [vmem:[%s11407_s1 + $0x1900] sm:$0xff] }
  0x69   :  { %4568 = vmatpush1.bf16.msra.mxu0 %v4567_v61  ;;  %v677_v61 = vld [vmem:[%s11407_s1 + $0x13b0] sm:$0xff] }
  0x6a   :  { %4856 = vmatpush1.bf16.msra.mxu1 %v4855_v62  ;;  %4570 = vmatprep.subr.bf16.mxu0 %v4569_v63  ;;  %v669_v62 = vld [vmem:[%s11407_s1 + $0x1370] sm:$0xff]  ;;  %v4877_v63 = vpack.c.bf16 %v680_v56, %v670_v55  ;;  %v4591_v5 = vpack.c.bf16 %v677_v61, %v667_v60  ;;  %v4895_v56 = vpack.c.bf16 %v759_v50, %v749_v48  ;;  %v878_v48 = vld [vmem:[%s11407_s1 + $0x19f8] sm:$0xff]  ;;  %v880_v50 = vld [vmem:[%s11407_s1 + $0x1a08] sm:$0xff] }
  0x6b   :  { %4858 = vmatprep.subr.bf16.mxu1 %v4857_v3  ;;  %v690_v3 = vld [vmem:[%s11407_s1 + $0x1418] sm:$0xff]  ;;  %v4879_v6 = vpack.c.bf16 %v679_v0, %v669_v62  ;;  %v769_v60 = vld [vmem:[%s11407_s1 + $0x1690] sm:$0xff]  ;;  %v4897_v61 = vpack.c.bf16 %v780_v54, %v770_v53  ;;  %v779_v62 = vld [vmem:[%s11407_s1 + $0x16e0] sm:$0xff] }
  0x6c   :  { %v798_v0 = vld [vmem:[%s11407_s1 + $0x1778] sm:$0xff]  ;;  %v867_v54 = vld [vmem:[%s11407_s1 + $0x19a0] sm:$0xff] }
  0x6d   :  { %4572 = vmatpush1.bf16.msra.mxu0 %v4571_v9  ;;  %v697_v9 = vld [vmem:[%s11407_s1 + $0x1450] sm:$0xff] }
  0x6e   :  { %4860 = vmatpush1.bf16.msra.mxu1 %v4859_v10  ;;  %4574 = vmatprep.subr.bf16.mxu0 %v4573_v11  ;;  %v689_v10 = vld [vmem:[%s11407_s1 + $0x1410] sm:$0xff]  ;;  %v4881_v11 = vpack.c.bf16 %v700_v4, %v690_v3  ;;  %v4595_v18 = vpack.c.bf16 %v697_v9, %v687_v8  ;;  %v4899_v4 = vpack.c.bf16 %v779_v62, %v769_v60  ;;  %v898_v60 = vld [vmem:[%s11407_s1 + $0x1a98] sm:$0xff]  ;;  %v900_v62 = vld [vmem:[%s11407_s1 + $0x1aa8] sm:$0xff] }
  0x6f   :  { %4862 = vmatprep.subr.bf16.mxu1 %v4861_v15  ;;  %v710_v15 = vld [vmem:[%s11407_s1 + $0x14b8] sm:$0xff]  ;;  %v4883_v19 = vpack.c.bf16 %v699_v12, %v689_v10  ;;  %v789_v8 = vld [vmem:[%s11407_s1 + $0x1730] sm:$0xff]  ;;  %v4901_v9 = vpack.c.bf16 %v800_v2, %v790_v1  ;;  %v799_v10 = vld [vmem:[%s11407_s1 + $0x1780] sm:$0xff] }
  0x70   :  { %v4885_v24 = vpack.c.bf16 %v720_v16, %v710_v15  ;;  %v818_v12 = vld [vmem:[%s11407_s1 + $0x1818] sm:$0xff]  ;;  %v4903_v16 = vpack.c.bf16 %v799_v10, %v789_v8  ;;  %v887_v2 = vld [vmem:[%s11407_s1 + $0x1a40] sm:$0xff]  ;;  %v920_v10 = vld [vmem:[%s11407_s1 + $0x1b48] sm:$0xff] }
  0x71   :  { %4576 = vmatpush1.bf16.msra.mxu0 %v4575_v21  ;;  %v707_v21 = vld [vmem:[%s11407_s1 + $0x14a0] sm:$0xff]  ;;  %v918_v8 = vld [vmem:[%s11407_s1 + $0x1b38] sm:$0xff] }
  0x72   :  { %4864 = vmatpush1.bf16.msra.mxu1 %v4863_v22  ;;  %4578 = vmatprep.subr.bf16.mxu0 %v4577_v23  ;;  %v717_v22 = vld [vmem:[%s11407_s1 + $0x14f0] sm:$0xff] }
  0x73   :  { %4866 = vmatprep.subr.bf16.mxu1 %v4865_v27  ;;  %v709_v23 = vld [vmem:[%s11407_s1 + $0x14b0] sm:$0xff]  ;;  %v738_v27 = vld [vmem:[%s11407_s1 + $0x1598] sm:$0xff]  ;;  %v4599_v31 = vpack.c.bf16 %v717_v22, %v707_v21  ;;  %v4905_v21 = vpack.c.bf16 %v820_v14, %v810_v13  ;;  %v819_v22 = vld [vmem:[%s11407_s1 + $0x1820] sm:$0xff] }
  0x74   :  { %v4887_v32 = vpack.c.bf16 %v719_v25, %v709_v23  ;;  %v828_v23 = vld [vmem:[%s11407_s1 + $0x1868] sm:$0xff]  ;;  %v830_v25 = vld [vmem:[%s11407_s1 + $0x1878] sm:$0xff]  ;;  %v907_v14 = vld [vmem:[%s11407_s1 + $0x1ae0] sm:$0xff] }
  0x75   :  { %4580 = vmatpush1.bf16.msra.mxu0 %v4579_v33  ;;  %v4601_v33 = vpack.c.bf16 %v738_v27, %v728_v26  ;;  %v840_v26 = vld [vmem:[%s11407_s1 + $0x18c8] sm:$0xff] }
  0x76   :  { %4868 = vmatpush1.bf16.msra.mxu1 %v4867_v34  ;;  %4582 = vmatprep.subr.bf16.mxu0 %v4581_v35  ;;  %v727_v34 = vld [vmem:[%s11407_s1 + $0x1540] sm:$0xff]  ;;  %v737_v35 = vld [vmem:[%s11407_s1 + $0x1590] sm:$0xff] }
  0x77   :  { %4870 = vmatprep.subr.bf16.mxu1 %v4869_v39  ;;  %v748_v39 = vld [vmem:[%s11407_s1 + $0x15e8] sm:$0xff]  ;;  %v4603_v43 = vpack.c.bf16 %v737_v35, %v727_v34  ;;  %v839_v34 = vld [vmem:[%s11407_s1 + $0x18c0] sm:$0xff] }
  0x78   :  { %v848_v35 = vld [vmem:[%s11407_s1 + $0x1908] sm:$0xff] }
  0x79   :  { %4584 = vmatpush1.bf16.msra.mxu0 %v4583_v45  ;;  %v4605_v45 = vpack.c.bf16 %v758_v40, %v748_v39  ;;  %v4625_v41 = vpack.c.bf16 %v858_v36, %v848_v35 }
  0x7a   :  { %4872 = vmatpush1.bf16.msra.mxu1 %v4871_v46  ;;  %4586 = vmatprep.subr.bf16.mxu0 %v4585_v47  ;;  %v747_v46 = vld [vmem:[%s11407_s1 + $0x15e0] sm:$0xff]  ;;  %v757_v47 = vld [vmem:[%s11407_s1 + $0x1630] sm:$0xff] }
  0x7b   :  { %4874 = vmatprep.subr.bf16.mxu1 %v4873_v51  ;;  %v768_v51 = vld [vmem:[%s11407_s1 + $0x1688] sm:$0xff]  ;;  %v4607_v55 = vpack.c.bf16 %v757_v47, %v747_v46  ;;  %v859_v46 = vld [vmem:[%s11407_s1 + $0x1960] sm:$0xff] }
  0x7c   :  { %v868_v47 = vld [vmem:[%s11407_s1 + $0x19a8] sm:$0xff] }
  0x7d   :  { %4588 = vmatpush1.bf16.msra.mxu0 %v4587_v57  ;;  %v4609_v57 = vpack.c.bf16 %v778_v52, %v768_v51  ;;  %v4629_v53 = vpack.c.bf16 %v878_v48, %v868_v47 }
  0x7e   :  { %4876 = vmatpush1.bf16.msra.mxu1 %v4875_v58  ;;  %4590 = vmatprep.subr.bf16.mxu0 %v4589_v59  ;;  %v767_v58 = vld [vmem:[%s11407_s1 + $0x1680] sm:$0xff]  ;;  %v777_v59 = vld [vmem:[%s11407_s1 + $0x16d0] sm:$0xff] }
  0x7f   :  { %4878 = vmatprep.subr.bf16.mxu1 %v4877_v63  ;;  %v788_v63 = vld [vmem:[%s11407_s1 + $0x1728] sm:$0xff]  ;;  %v4611_v3 = vpack.c.bf16 %v777_v59, %v767_v58  ;;  %v879_v58 = vld [vmem:[%s11407_s1 + $0x1a00] sm:$0xff] }
  0x80   :  { %v888_v59 = vld [vmem:[%s11407_s1 + $0x1a48] sm:$0xff] }
  0x81   :  { %4592 = vmatpush1.bf16.msra.mxu0 %v4591_v5  ;;  %v4613_v5 = vpack.c.bf16 %v798_v0, %v788_v63  ;;  %v4633_v1 = vpack.c.bf16 %v898_v60, %v888_v59 }
  0x82   :  { %4880 = vmatpush1.bf16.msra.mxu1 %v4879_v6  ;;  %4594 = vmatprep.subr.bf16.mxu0 %v4593_v7  ;;  %v787_v6 = vld [vmem:[%s11407_s1 + $0x1720] sm:$0xff]  ;;  %v797_v7 = vld [vmem:[%s11407_s1 + $0x1770] sm:$0xff] }
  0x83   :  { %4882 = vmatprep.subr.bf16.mxu1 %v4881_v11  ;;  %v808_v11 = vld [vmem:[%s11407_s1 + $0x17c8] sm:$0xff]  ;;  %v4615_v15 = vpack.c.bf16 %v797_v7, %v787_v6  ;;  %v899_v6 = vld [vmem:[%s11407_s1 + $0x1aa0] sm:$0xff] }
  0x84   :  { %1677 = vmatmul.mubr.f32.vlgmr.msra.gmra.mrb[0].mxu0 %v40_v17  ;;  %v908_v7 = vld [vmem:[%s11407_s1 + $0x1ae8] sm:$0xff] }
  0x85   :  { %4596 = vmatpush1.bf16.msra.mxu0 %v4595_v18  ;;  %2032 = vmatmul.mubr.f32.vlgmr.msra.gmra.mrb[0].mxu1 %v40_v17  ;;  %v4617_v17 = vpack.c.bf16 %v818_v12, %v808_v11  ;;  %v807_v18 = vld [vmem:[%s11407_s1 + $0x17c0] sm:$0xff]  ;;  %v4637_v13 = vpack.c.bf16 %v918_v8, %v908_v7 }
  0x86   :  { %4884 = vmatpush1.bf16.msra.mxu1 %v4883_v19  ;;  %4598 = vmatprep.subr.bf16.mxu0 %v4597_v20  ;;  %v817_v19 = vld [vmem:[%s11407_s1 + $0x1810] sm:$0xff] }
  0x87   :  { %4886 = vmatprep.subr.bf16.mxu1 %v4885_v24  ;;  %1747 = vmatprep.mubr.f32.mxu0 %v43_v30  ;;  %v809_v20 = vld [vmem:[%s11407_s1 + $0x17d0] sm:$0xff]  ;;  %v838_v24 = vld [vmem:[%s11407_s1 + $0x18b8] sm:$0xff]  ;;  %v4619_v27 = vpack.c.bf16 %v817_v19, %v807_v18  ;;  %v919_v18 = vld [vmem:[%s11407_s1 + $0x1b40] sm:$0xff] }
  0x88   :  { %2102 = vmatprep.mubr.f32.mxu1 %v43_v30  ;;  %v4907_v28 = vpack.c.bf16 %v819_v22, %v809_v20  ;;  %v4621_v29 = vpack.c.bf16 %v838_v24, %v828_v23  ;;  %v827_v30 = vld [vmem:[%s11407_s1 + $0x1860] sm:$0xff]  ;;  %v928_v19 = vld [vmem:[%s11407_s1 + $0x1b88] sm:$0xff]  ;;  %v938_v20 = vld [vmem:[%s11407_s1 + $0x1bd8] sm:$0xff] }
  0x89   :  { %4600 = vmatpush1.bf16.msra.mxu0 %v4599_v31  ;;  %v837_v31 = vld [vmem:[%s11407_s1 + $0x18b0] sm:$0xff]  ;;  %v940_v22 = vld [vmem:[%s11407_s1 + $0x1be8] sm:$0xff] }
  0x8a   :  { %4888 = vmatpush1.bf16.msra.mxu1 %v4887_v32  ;;  %4602 = vmatprep.subr.bf16.mxu0 %v4601_v33  ;;  %v829_v32 = vld [vmem:[%s11407_s1 + $0x1870] sm:$0xff]  ;;  %v4909_v33 = vpack.c.bf16 %v840_v26, %v830_v25  ;;  %v4623_v39 = vpack.c.bf16 %v837_v31, %v827_v30  ;;  %v4641_v25 = vpack.c.bf16 %v938_v20, %v928_v19  ;;  %v927_v26 = vld [vmem:[%s11407_s1 + $0x1b80] sm:$0xff]  ;;  %v948_v31 = vld [vmem:[%s11407_s1 + $0x1c28] sm:$0xff] }
  0x8b   :  { %4890 = vmatprep.subr.bf16.mxu1 %v4889_v37  ;;  %v850_v37 = vld [vmem:[%s11407_s1 + $0x1918] sm:$0xff]  ;;  %v4911_v40 = vpack.c.bf16 %v839_v34, %v829_v32  ;;  %v939_v30 = vld [vmem:[%s11407_s1 + $0x1be0] sm:$0xff]  ;;  %v960_v34 = vld [vmem:[%s11407_s1 + $0x1c88] sm:$0xff] }
  0x8c   :  { %v958_v32 = vld [vmem:[%s11407_s1 + $0x1c78] sm:$0xff]  ;;  %v42_v19 = vld [vmem:[%s11408_s0 + $0x20] sm:$0xff] }
  0x8d   :  { %4604 = vmatpush1.bf16.msra.mxu0 %v4603_v43  ;;  %v857_v43 = vld [vmem:[%s11407_s1 + $0x1950] sm:$0xff] }
  0x8e   :  { %4892 = vmatpush1.bf16.msra.mxu1 %v4891_v44  ;;  %4606 = vmatprep.subr.bf16.mxu0 %v4605_v45  ;;  %v849_v44 = vld [vmem:[%s11407_s1 + $0x1910] sm:$0xff]  ;;  %v4913_v45 = vpack.c.bf16 %v860_v38, %v850_v37  ;;  %v4627_v51 = vpack.c.bf16 %v857_v43, %v847_v42  ;;  %v4645_v37 = vpack.c.bf16 %v958_v32, %v948_v31  ;;  %v947_v38 = vld [vmem:[%s11407_s1 + $0x1c20] sm:$0xff]  ;;  %v968_v43 = vld [vmem:[%s11407_s1 + $0x1cc8] sm:$0xff] }
  0x8f   :  { %4894 = vmatprep.subr.bf16.mxu1 %v4893_v49  ;;  %v870_v49 = vld [vmem:[%s11407_s1 + $0x19b8] sm:$0xff]  ;;  %v4915_v52 = vpack.c.bf16 %v859_v46, %v849_v44  ;;  %v959_v42 = vld [vmem:[%s11407_s1 + $0x1c80] sm:$0xff]  ;;  %v980_v46 = vld [vmem:[%s11407_s1 + $0x1d28] sm:$0xff] }
  0x90   :  { %v978_v44 = vld [vmem:[%s11407_s1 + $0x1d18] sm:$0xff]  ;;  %v1060_v31 = vld [vmem:[%s11407_s1 + $0x1fa8] sm:$0xff] }
  0x91   :  { %4608 = vmatpush1.bf16.msra.mxu0 %v4607_v55  ;;  %v877_v55 = vld [vmem:[%s11407_s1 + $0x19f0] sm:$0xff]  ;;  %v45_v32 = vld [vmem:[%s11408_s0 + $0x38] sm:$0xff] }
  0x92   :  { %4896 = vmatpush1.bf16.msra.mxu1 %v4895_v56  ;;  %4610 = vmatprep.subr.bf16.mxu0 %v4609_v57  ;;  %v869_v56 = vld [vmem:[%s11407_s1 + $0x19b0] sm:$0xff]  ;;  %v4917_v57 = vpack.c.bf16 %v880_v50, %v870_v49  ;;  %v4631_v63 = vpack.c.bf16 %v877_v55, %v867_v54  ;;  %v4649_v49 = vpack.c.bf16 %v978_v44, %v968_v43  ;;  %v967_v50 = vld [vmem:[%s11407_s1 + $0x1cc0] sm:$0xff]  ;;  %v988_v55 = vld [vmem:[%s11407_s1 + $0x1d68] sm:$0xff] }
  0x93   :  { %4898 = vmatprep.subr.bf16.mxu1 %v4897_v61  ;;  %v890_v61 = vld [vmem:[%s11407_s1 + $0x1a58] sm:$0xff]  ;;  %v4919_v0 = vpack.c.bf16 %v879_v58, %v869_v56  ;;  %v979_v54 = vld [vmem:[%s11407_s1 + $0x1d20] sm:$0xff]  ;;  %v1000_v58 = vld [vmem:[%s11407_s1 + $0x1dc8] sm:$0xff] }
  0x94   :  { %v998_v56 = vld [vmem:[%s11407_s1 + $0x1db8] sm:$0xff]  ;;  %v1080_v44 = vld [vmem:[%s11407_s1 + $0x2048] sm:$0xff] }
  0x95   :  { %4612 = vmatpush1.bf16.msra.mxu0 %v4611_v3  ;;  %v897_v3 = vld [vmem:[%s11407_s1 + $0x1a90] sm:$0xff]  ;;  %v1070_v43 = vld [vmem:[%s11407_s1 + $0x1ff8] sm:$0xff] }
  0x96   :  { %4900 = vmatpush1.bf16.msra.mxu1 %v4899_v4  ;;  %4614 = vmatprep.subr.bf16.mxu0 %v4613_v5  ;;  %v889_v4 = vld [vmem:[%s11407_s1 + $0x1a50] sm:$0xff]  ;;  %v4921_v5 = vpack.c.bf16 %v900_v62, %v890_v61  ;;  %v4635_v11 = vpack.c.bf16 %v897_v3, %v887_v2  ;;  %v4653_v61 = vpack.c.bf16 %v998_v56, %v988_v55  ;;  %v987_v62 = vld [vmem:[%s11407_s1 + $0x1d60] sm:$0xff]  ;;  %v1008_v3 = vld [vmem:[%s11407_s1 + $0x1e08] sm:$0xff] }
  0x97   :  { %4902 = vmatprep.subr.bf16.mxu1 %v4901_v9  ;;  %v910_v9 = vld [vmem:[%s11407_s1 + $0x1af8] sm:$0xff]  ;;  %v4923_v12 = vpack.c.bf16 %v899_v6, %v889_v4  ;;  %v999_v2 = vld [vmem:[%s11407_s1 + $0x1dc0] sm:$0xff]  ;;  %v1020_v6 = vld [vmem:[%s11407_s1 + $0x1e68] sm:$0xff] }
  0x98   :  { %v1018_v4 = vld [vmem:[%s11407_s1 + $0x1e58] sm:$0xff]  ;;  %v1100_v56 = vld [vmem:[%s11407_s1 + $0x20e8] sm:$0xff] }
  0x99   :  { %4616 = vmatpush1.bf16.msra.mxu0 %v4615_v15  ;;  %v917_v15 = vld [vmem:[%s11407_s1 + $0x1b30] sm:$0xff]  ;;  %v1090_v55 = vld [vmem:[%s11407_s1 + $0x2098] sm:$0xff] }
  0x9a   :  { %4904 = vmatpush1.bf16.msra.mxu1 %v4903_v16  ;;  %4618 = vmatprep.subr.bf16.mxu0 %v4617_v17  ;;  %v909_v16 = vld [vmem:[%s11407_s1 + $0x1af0] sm:$0xff]  ;;  %v4925_v17 = vpack.c.bf16 %v920_v10, %v910_v9  ;;  %v4639_v23 = vpack.c.bf16 %v917_v15, %v907_v14  ;;  %v4657_v9 = vpack.c.bf16 %v1018_v4, %v1008_v3  ;;  %v1007_v10 = vld [vmem:[%s11407_s1 + $0x1e00] sm:$0xff]  ;;  %v1028_v15 = vld [vmem:[%s11407_s1 + $0x1ea8] sm:$0xff] }
  0x9b   :  { %4906 = vmatprep.subr.bf16.mxu1 %v4905_v21  ;;  %v930_v21 = vld [vmem:[%s11407_s1 + $0x1b98] sm:$0xff]  ;;  %v4927_v24 = vpack.c.bf16 %v919_v18, %v909_v16  ;;  %v1019_v14 = vld [vmem:[%s11407_s1 + $0x1e60] sm:$0xff]  ;;  %v1040_v18 = vld [vmem:[%s11407_s1 + $0x1f08] sm:$0xff] }
  0x9c   :  { %v1038_v16 = vld [vmem:[%s11407_s1 + $0x1ef8] sm:$0xff]  ;;  %v1120_v4 = vld [vmem:[%s11407_s1 + $0x2188] sm:$0xff] }
  0x9d   :  { %4620 = vmatpush1.bf16.msra.mxu0 %v4619_v27  ;;  %v937_v27 = vld [vmem:[%s11407_s1 + $0x1bd0] sm:$0xff]  ;;  %v1110_v3 = vld [vmem:[%s11407_s1 + $0x2138] sm:$0xff] }
  0x9e   :  { %4908 = vmatpush1.bf16.msra.mxu1 %v4907_v28  ;;  %4622 = vmatprep.subr.bf16.mxu0 %v4621_v29  ;;  %v929_v28 = vld [vmem:[%s11407_s1 + $0x1b90] sm:$0xff]  ;;  %v4929_v29 = vpack.c.bf16 %v940_v22, %v930_v21  ;;  %v4643_v35 = vpack.c.bf16 %v937_v27, %v927_v26  ;;  %v4661_v22 = vpack.c.bf16 %v1038_v16, %v1028_v15  ;;  %v1039_v27 = vld [vmem:[%s11407_s1 + $0x1f00] sm:$0xff]  ;;  %v1130_v15 = vld [vmem:[%s11407_s1 + $0x21d8] sm:$0xff] }
  0x9f   :  { %4910 = vmatprep.subr.bf16.mxu1 %v4909_v33  ;;  %v950_v33 = vld [vmem:[%s11407_s1 + $0x1c38] sm:$0xff]  ;;  %v4931_v36 = vpack.c.bf16 %v939_v30, %v929_v28  ;;  %v1048_v28 = vld [vmem:[%s11407_s1 + $0x1f48] sm:$0xff] }
  0xa0   :  { %v1050_v30 = vld [vmem:[%s11407_s1 + $0x1f58] sm:$0xff]  ;;  %v1140_v16 = vld [vmem:[%s11407_s1 + $0x2228] sm:$0xff] }
  0xa1   :  { %4624 = vmatpush1.bf16.msra.mxu0 %v4623_v39  ;;  %v957_v39 = vld [vmem:[%s11407_s1 + $0x1c70] sm:$0xff] }
  0xa2   :  { %4912 = vmatpush1.bf16.msra.mxu1 %v4911_v40  ;;  %4626 = vmatprep.subr.bf16.mxu0 %v4625_v41  ;;  %v949_v40 = vld [vmem:[%s11407_s1 + $0x1c30] sm:$0xff]  ;;  %v4933_v41 = vpack.c.bf16 %v960_v34, %v950_v33  ;;  %v4647_v47 = vpack.c.bf16 %v957_v39, %v947_v38  ;;  %v4953_v39 = vpack.c.bf16 %v1060_v31, %v1050_v30 }
  0xa3   :  { %4914 = vmatprep.subr.bf16.mxu1 %v4913_v45  ;;  %v970_v45 = vld [vmem:[%s11407_s1 + $0x1cd8] sm:$0xff]  ;;  %v4935_v48 = vpack.c.bf16 %v959_v42, %v949_v40  ;;  %v1049_v38 = vld [vmem:[%s11407_s1 + $0x1f50] sm:$0xff]  ;;  %v1059_v40 = vld [vmem:[%s11407_s1 + $0x1fa0] sm:$0xff] }
  0xa4   :  { %v1078_v42 = vld [vmem:[%s11407_s1 + $0x2038] sm:$0xff] }
  0xa5   :  { %4628 = vmatpush1.bf16.msra.mxu0 %v4627_v51  ;;  %v977_v51 = vld [vmem:[%s11407_s1 + $0x1d10] sm:$0xff] }
  0xa6   :  { %4916 = vmatpush1.bf16.msra.mxu1 %v4915_v52  ;;  %4630 = vmatprep.subr.bf16.mxu0 %v4629_v53  ;;  %v969_v52 = vld [vmem:[%s11407_s1 + $0x1cd0] sm:$0xff]  ;;  %v4937_v53 = vpack.c.bf16 %v980_v46, %v970_v45  ;;  %v4651_v59 = vpack.c.bf16 %v977_v51, %v967_v50  ;;  %v4955_v46 = vpack.c.bf16 %v1059_v40, %v1049_v38  ;;  %v1178_v38 = vld [vmem:[%s11407_s1 + $0x2358] sm:$0xff]  ;;  %v1180_v40 = vld [vmem:[%s11407_s1 + $0x2368] sm:$0xff] }
  0xa7   :  { %4918 = vmatprep.subr.bf16.mxu1 %v4917_v57  ;;  %v990_v57 = vld [vmem:[%s11407_s1 + $0x1d78] sm:$0xff]  ;;  %v4939_v60 = vpack.c.bf16 %v979_v54, %v969_v52  ;;  %v1069_v50 = vld [vmem:[%s11407_s1 + $0x1ff0] sm:$0xff]  ;;  %v4957_v51 = vpack.c.bf16 %v1080_v44, %v1070_v43  ;;  %v1079_v52 = vld [vmem:[%s11407_s1 + $0x2040] sm:$0xff] }
  0xa8   :  { %v1098_v54 = vld [vmem:[%s11407_s1 + $0x20d8] sm:$0xff]  ;;  %v1167_v44 = vld [vmem:[%s11407_s1 + $0x2300] sm:$0xff] }
  0xa9   :  { %4632 = vmatpush1.bf16.msra.mxu0 %v4631_v63  ;;  %v997_v63 = vld [vmem:[%s11407_s1 + $0x1db0] sm:$0xff] }
  0xaa   :  { %4920 = vmatpush1.bf16.msra.mxu1 %v4919_v0  ;;  %4634 = vmatprep.subr.bf16.mxu0 %v4633_v1  ;;  %v989_v0 = vld [vmem:[%s11407_s1 + $0x1d70] sm:$0xff]  ;;  %v4941_v1 = vpack.c.bf16 %v1000_v58, %v990_v57  ;;  %v4655_v7 = vpack.c.bf16 %v997_v63, %v987_v62  ;;  %v4959_v58 = vpack.c.bf16 %v1079_v52, %v1069_v50  ;;  %v1198_v50 = vld [vmem:[%s11407_s1 + $0x23f8] sm:$0xff]  ;;  %v1200_v52 = vld [vmem:[%s11407_s1 + $0x2408] sm:$0xff] }
  0xab   :  { %4922 = vmatprep.subr.bf16.mxu1 %v4921_v5  ;;  %v1010_v5 = vld [vmem:[%s11407_s1 + $0x1e18] sm:$0xff]  ;;  %v4943_v8 = vpack.c.bf16 %v999_v2, %v989_v0  ;;  %v1089_v62 = vld [vmem:[%s11407_s1 + $0x2090] sm:$0xff]  ;;  %v4961_v63 = vpack.c.bf16 %v1100_v56, %v1090_v55  ;;  %v1099_v0 = vld [vmem:[%s11407_s1 + $0x20e0] sm:$0xff] }
  0xac   :  { %v1118_v2 = vld [vmem:[%s11407_s1 + $0x2178] sm:$0xff]  ;;  %v1187_v56 = vld [vmem:[%s11407_s1 + $0x23a0] sm:$0xff] }
  0xad   :  { %4636 = vmatpush1.bf16.msra.mxu0 %v4635_v11  ;;  %v1017_v11 = vld [vmem:[%s11407_s1 + $0x1e50] sm:$0xff] }
  0xae   :  { %4924 = vmatpush1.bf16.msra.mxu1 %v4923_v12  ;;  %4638 = vmatprep.subr.bf16.mxu0 %v4637_v13  ;;  %v1009_v12 = vld [vmem:[%s11407_s1 + $0x1e10] sm:$0xff]  ;;  %v4945_v13 = vpack.c.bf16 %v1020_v6, %v1010_v5  ;;  %v4659_v20 = vpack.c.bf16 %v1017_v11, %v1007_v10  ;;  %v4963_v6 = vpack.c.bf16 %v1099_v0, %v1089_v62  ;;  %v1218_v62 = vld [vmem:[%s11407_s1 + $0x2498] sm:$0xff]  ;;  %v1220_v0 = vld [vmem:[%s11407_s1 + $0x24a8] sm:$0xff] }
  0xaf   :  { %4926 = vmatprep.subr.bf16.mxu1 %v4925_v17  ;;  %v1030_v17 = vld [vmem:[%s11407_s1 + $0x1eb8] sm:$0xff]  ;;  %v4947_v21 = vpack.c.bf16 %v1019_v14, %v1009_v12  ;;  %v1109_v10 = vld [vmem:[%s11407_s1 + $0x2130] sm:$0xff]  ;;  %v4965_v11 = vpack.c.bf16 %v1120_v4, %v1110_v3  ;;  %v1119_v12 = vld [vmem:[%s11407_s1 + $0x2180] sm:$0xff] }
  0xb0   :  { %v4949_v26 = vpack.c.bf16 %v1040_v18, %v1030_v17  ;;  %v1138_v14 = vld [vmem:[%s11407_s1 + $0x2218] sm:$0xff]  ;;  %v4967_v18 = vpack.c.bf16 %v1119_v12, %v1109_v10  ;;  %v1207_v4 = vld [vmem:[%s11407_s1 + $0x2440] sm:$0xff]  ;;  %v1240_v12 = vld [vmem:[%s11407_s1 + $0x2548] sm:$0xff] }
  0xb1   :  { %4640 = vmatpush1.bf16.msra.mxu0 %v4639_v23  ;;  %v1027_v23 = vld [vmem:[%s11407_s1 + $0x1ea0] sm:$0xff]  ;;  %v1238_v10 = vld [vmem:[%s11407_s1 + $0x2538] sm:$0xff] }
  0xb2   :  { %4928 = vmatpush1.bf16.msra.mxu1 %v4927_v24  ;;  %4642 = vmatprep.subr.bf16.mxu0 %v4641_v25  ;;  %v1037_v24 = vld [vmem:[%s11407_s1 + $0x1ef0] sm:$0xff] }
  0xb3   :  { %4930 = vmatprep.subr.bf16.mxu1 %v4929_v29  ;;  %v1029_v25 = vld [vmem:[%s11407_s1 + $0x1eb0] sm:$0xff]  ;;  %v1058_v29 = vld [vmem:[%s11407_s1 + $0x1f98] sm:$0xff]  ;;  %v4663_v33 = vpack.c.bf16 %v1037_v24, %v1027_v23  ;;  %v4969_v23 = vpack.c.bf16 %v1140_v16, %v1130_v15  ;;  %v1139_v24 = vld [vmem:[%s11407_s1 + $0x2220] sm:$0xff] }
  0xb4   :  { %v4951_v34 = vpack.c.bf16 %v1039_v27, %v1029_v25  ;;  %v1148_v25 = vld [vmem:[%s11407_s1 + $0x2268] sm:$0xff]  ;;  %v1150_v27 = vld [vmem:[%s11407_s1 + $0x2278] sm:$0xff]  ;;  %v1227_v16 = vld [vmem:[%s11407_s1 + $0x24e0] sm:$0xff] }
  0xb5   :  { %4644 = vmatpush1.bf16.msra.mxu0 %v4643_v35  ;;  %v4665_v35 = vpack.c.bf16 %v1058_v29, %v1048_v28  ;;  %v1160_v28 = vld [vmem:[%s11407_s1 + $0x22c8] sm:$0xff] }
  0xb6   :  { %4932 = vmatpush1.bf16.msra.mxu1 %v4931_v36  ;;  %4646 = vmatprep.subr.bf16.mxu0 %v4645_v37  ;;  %v1047_v36 = vld [vmem:[%s11407_s1 + $0x1f40] sm:$0xff]  ;;  %v1057_v37 = vld [vmem:[%s11407_s1 + $0x1f90] sm:$0xff] }
  0xb7   :  { %4934 = vmatprep.subr.bf16.mxu1 %v4933_v41  ;;  %v1068_v41 = vld [vmem:[%s11407_s1 + $0x1fe8] sm:$0xff]  ;;  %v4667_v45 = vpack.c.bf16 %v1057_v37, %v1047_v36  ;;  %v1159_v36 = vld [vmem:[%s11407_s1 + $0x22c0] sm:$0xff] }
  0xb8   :  { %v1168_v37 = vld [vmem:[%s11407_s1 + $0x2308] sm:$0xff] }
  0xb9   :  { %4648 = vmatpush1.bf16.msra.mxu0 %v4647_v47  ;;  %v4669_v47 = vpack.c.bf16 %v1078_v42, %v1068_v41  ;;  %v4689_v43 = vpack.c.bf16 %v1178_v38, %v1168_v37 }
  0xba   :  { %4936 = vmatpush1.bf16.msra.mxu1 %v4935_v48  ;;  %4650 = vmatprep.subr.bf16.mxu0 %v4649_v49  ;;  %v1067_v48 = vld [vmem:[%s11407_s1 + $0x1fe0] sm:$0xff]  ;;  %v1077_v49 = vld [vmem:[%s11407_s1 + $0x2030] sm:$0xff] }
  0xbb   :  { %4938 = vmatprep.subr.bf16.mxu1 %v4937_v53  ;;  %v1088_v53 = vld [vmem:[%s11407_s1 + $0x2088] sm:$0xff]  ;;  %v4671_v57 = vpack.c.bf16 %v1077_v49, %v1067_v48  ;;  %v1179_v48 = vld [vmem:[%s11407_s1 + $0x2360] sm:$0xff] }
  0xbc   :  { %v1188_v49 = vld [vmem:[%s11407_s1 + $0x23a8] sm:$0xff] }
  0xbd   :  { %4652 = vmatpush1.bf16.msra.mxu0 %v4651_v59  ;;  %v4673_v59 = vpack.c.bf16 %v1098_v54, %v1088_v53  ;;  %v4693_v55 = vpack.c.bf16 %v1198_v50, %v1188_v49 }
  0xbe   :  { %4940 = vmatpush1.bf16.msra.mxu1 %v4939_v60  ;;  %4654 = vmatprep.subr.bf16.mxu0 %v4653_v61  ;;  %v1087_v60 = vld [vmem:[%s11407_s1 + $0x2080] sm:$0xff]  ;;  %v1097_v61 = vld [vmem:[%s11407_s1 + $0x20d0] sm:$0xff] }
  0xbf   :  { %4942 = vmatprep.subr.bf16.mxu1 %v4941_v1  ;;  %v1108_v1 = vld [vmem:[%s11407_s1 + $0x2128] sm:$0xff]  ;;  %v4675_v5 = vpack.c.bf16 %v1097_v61, %v1087_v60  ;;  %v1199_v60 = vld [vmem:[%s11407_s1 + $0x2400] sm:$0xff] }
  0xc0   :  { %v1208_v61 = vld [vmem:[%s11407_s1 + $0x2448] sm:$0xff] }
  0xc1   :  { %4656 = vmatpush1.bf16.msra.mxu0 %v4655_v7  ;;  %v4677_v7 = vpack.c.bf16 %v1118_v2, %v1108_v1  ;;  %v4697_v3 = vpack.c.bf16 %v1218_v62, %v1208_v61 }
  0xc2   :  { %4944 = vmatpush1.bf16.msra.mxu1 %v4943_v8  ;;  %4658 = vmatprep.subr.bf16.mxu0 %v4657_v9  ;;  %v1107_v8 = vld [vmem:[%s11407_s1 + $0x2120] sm:$0xff]  ;;  %v1117_v9 = vld [vmem:[%s11407_s1 + $0x2170] sm:$0xff] }
  0xc3   :  { %4946 = vmatprep.subr.bf16.mxu1 %v4945_v13  ;;  %v1128_v13 = vld [vmem:[%s11407_s1 + $0x21c8] sm:$0xff]  ;;  %v4679_v17 = vpack.c.bf16 %v1117_v9, %v1107_v8  ;;  %v1219_v8 = vld [vmem:[%s11407_s1 + $0x24a0] sm:$0xff] }
  0xc4   :  { %1748 = vmatmul.mubr.f32.vlgmr.msra.gmra.mrb[0].mxu0 %v42_v19  ;;  %v1228_v9 = vld [vmem:[%s11407_s1 + $0x24e8] sm:$0xff] }
  0xc5   :  { %4660 = vmatpush1.bf16.msra.mxu0 %v4659_v20  ;;  %2103 = vmatmul.mubr.f32.vlgmr.msra.gmra.mrb[0].mxu1 %v42_v19  ;;  %v4681_v19 = vpack.c.bf16 %v1138_v14, %v1128_v13  ;;  %v1127_v20 = vld [vmem:[%s11407_s1 + $0x21c0] sm:$0xff]  ;;  %v4701_v15 = vpack.c.bf16 %v1238_v10, %v1228_v9 }
  0xc6   :  { %4948 = vmatpush1.bf16.msra.mxu1 %v4947_v21  ;;  %4662 = vmatprep.subr.bf16.mxu0 %v4661_v22  ;;  %v1137_v21 = vld [vmem:[%s11407_s1 + $0x2210] sm:$0xff] }
  0xc7   :  { %4950 = vmatprep.subr.bf16.mxu1 %v4949_v26  ;;  %1818 = vmatprep.mubr.f32.mxu0 %v45_v32  ;;  %v1129_v22 = vld [vmem:[%s11407_s1 + $0x21d0] sm:$0xff]  ;;  %v1158_v26 = vld [vmem:[%s11407_s1 + $0x22b8] sm:$0xff]  ;;  %v4683_v29 = vpack.c.bf16 %v1137_v21, %v1127_v20  ;;  %v1239_v20 = vld [vmem:[%s11407_s1 + $0x2540] sm:$0xff] }
  0xc8   :  { %2173 = vmatprep.mubr.f32.mxu1 %v45_v32  ;;  %v4971_v30 = vpack.c.bf16 %v1139_v24, %v1129_v22  ;;  %v4685_v31 = vpack.c.bf16 %v1158_v26, %v1148_v25  ;;  %v1147_v32 = vld [vmem:[%s11407_s1 + $0x2260] sm:$0xff]  ;;  %v1248_v21 = vld [vmem:[%s11407_s1 + $0x2588] sm:$0xff]  ;;  %v1258_v22 = vld [vmem:[%s11407_s1 + $0x25d8] sm:$0xff] }
  0xc9   :  { %4664 = vmatpush1.bf16.msra.mxu0 %v4663_v33  ;;  %v1157_v33 = vld [vmem:[%s11407_s1 + $0x22b0] sm:$0xff]  ;;  %v1260_v24 = vld [vmem:[%s11407_s1 + $0x25e8] sm:$0xff] }
  0xca   :  { %4952 = vmatpush1.bf16.msra.mxu1 %v4951_v34  ;;  %4666 = vmatprep.subr.bf16.mxu0 %v4665_v35  ;;  %v1149_v34 = vld [vmem:[%s11407_s1 + $0x2270] sm:$0xff]  ;;  %v4973_v35 = vpack.c.bf16 %v1160_v28, %v1150_v27  ;;  %v4687_v41 = vpack.c.bf16 %v1157_v33, %v1147_v32  ;;  %v4705_v27 = vpack.c.bf16 %v1258_v22, %v1248_v21  ;;  %v1247_v28 = vld [vmem:[%s11407_s1 + $0x2580] sm:$0xff]  ;;  %v1268_v33 = vld [vmem:[%s11407_s1 + $0x2628] sm:$0xff] }
  0xcb   :  { %4954 = vmatprep.subr.bf16.mxu1 %v4953_v39  ;;  %v1170_v39 = vld [vmem:[%s11407_s1 + $0x2318] sm:$0xff]  ;;  %v4975_v42 = vpack.c.bf16 %v1159_v36, %v1149_v34  ;;  %v1259_v32 = vld [vmem:[%s11407_s1 + $0x25e0] sm:$0xff]  ;;  %v1280_v36 = vld [vmem:[%s11407_s1 + $0x2688] sm:$0xff] }
  0xcc   :  { %v1278_v34 = vld [vmem:[%s11407_s1 + $0x2678] sm:$0xff]  ;;  %v44_v21 = vld [vmem:[%s11408_s0 + $0x30] sm:$0xff] }
  0xcd   :  { %4668 = vmatpush1.bf16.msra.mxu0 %v4667_v45  ;;  %v1177_v45 = vld [vmem:[%s11407_s1 + $0x2350] sm:$0xff] }
  0xce   :  { %4956 = vmatpush1.bf16.msra.mxu1 %v4955_v46  ;;  %4670 = vmatprep.subr.bf16.mxu0 %v4669_v47  ;;  %v1169_v46 = vld [vmem:[%s11407_s1 + $0x2310] sm:$0xff]  ;;  %v4977_v47 = vpack.c.bf16 %v1180_v40, %v1170_v39  ;;  %v4691_v53 = vpack.c.bf16 %v1177_v45, %v1167_v44  ;;  %v4709_v39 = vpack.c.bf16 %v1278_v34, %v1268_v33  ;;  %v1267_v40 = vld [vmem:[%s11407_s1 + $0x2620] sm:$0xff]  ;;  %v1288_v45 = vld [vmem:[%s11407_s1 + $0x26c8] sm:$0xff] }
  0xcf   :  { %4958 = vmatprep.subr.bf16.mxu1 %v4957_v51  ;;  %v1190_v51 = vld [vmem:[%s11407_s1 + $0x23b8] sm:$0xff]  ;;  %v4979_v54 = vpack.c.bf16 %v1179_v48, %v1169_v46  ;;  %v1279_v44 = vld [vmem:[%s11407_s1 + $0x2680] sm:$0xff]  ;;  %v1300_v48 = vld [vmem:[%s11407_s1 + $0x2728] sm:$0xff] }
  0xd0   :  { %v1298_v46 = vld [vmem:[%s11407_s1 + $0x2718] sm:$0xff]  ;;  %v1380_v33 = vld [vmem:[%s11407_s1 + $0x29a8] sm:$0xff] }
  0xd1   :  { %4672 = vmatpush1.bf16.msra.mxu0 %v4671_v57  ;;  %v1197_v57 = vld [vmem:[%s11407_s1 + $0x23f0] sm:$0xff] }
  0xd2   :  { %4960 = vmatpush1.bf16.msra.mxu1 %v4959_v58  ;;  %4674 = vmatprep.subr.bf16.mxu0 %v4673_v59  ;;  %v1189_v58 = vld [vmem:[%s11407_s1 + $0x23b0] sm:$0xff]  ;;  %v4981_v59 = vpack.c.bf16 %v1200_v52, %v1190_v51  ;;  %v4695_v1 = vpack.c.bf16 %v1197_v57, %v1187_v56  ;;  %v4713_v51 = vpack.c.bf16 %v1298_v46, %v1288_v45  ;;  %v1287_v52 = vld [vmem:[%s11407_s1 + $0x26c0] sm:$0xff]  ;;  %v1308_v57 = vld [vmem:[%s11407_s1 + $0x2768] sm:$0xff] }
  0xd3   :  { %4962 = vmatprep.subr.bf16.mxu1 %v4961_v63  ;;  %v1210_v63 = vld [vmem:[%s11407_s1 + $0x2458] sm:$0xff]  ;;  %v4983_v2 = vpack.c.bf16 %v1199_v60, %v1189_v58  ;;  %v1299_v56 = vld [vmem:[%s11407_s1 + $0x2720] sm:$0xff]  ;;  %v1320_v60 = vld [vmem:[%s11407_s1 + $0x27c8] sm:$0xff] }
  0xd4   :  { %v1318_v58 = vld [vmem:[%s11407_s1 + $0x27b8] sm:$0xff]  ;;  %v1400_v46 = vld [vmem:[%s11407_s1 + $0x2a48] sm:$0xff] }
  0xd5   :  { %4676 = vmatpush1.bf16.msra.mxu0 %v4675_v5  ;;  %v1217_v5 = vld [vmem:[%s11407_s1 + $0x2490] sm:$0xff]  ;;  %v1390_v45 = vld [vmem:[%s11407_s1 + $0x29f8] sm:$0xff] }
  0xd6   :  { %4964 = vmatpush1.bf16.msra.mxu1 %v4963_v6  ;;  %4678 = vmatprep.subr.bf16.mxu0 %v4677_v7  ;;  %v1209_v6 = vld [vmem:[%s11407_s1 + $0x2450] sm:$0xff]  ;;  %v4985_v7 = vpack.c.bf16 %v1220_v0, %v1210_v63  ;;  %v4699_v13 = vpack.c.bf16 %v1217_v5, %v1207_v4  ;;  %v4717_v63 = vpack.c.bf16 %v1318_v58, %v1308_v57  ;;  %v1307_v0 = vld [vmem:[%s11407_s1 + $0x2760] sm:$0xff]  ;;  %v1328_v5 = vld [vmem:[%s11407_s1 + $0x2808] sm:$0xff] }
  0xd7   :  { %4966 = vmatprep.subr.bf16.mxu1 %v4965_v11  ;;  %v1230_v11 = vld [vmem:[%s11407_s1 + $0x24f8] sm:$0xff]  ;;  %v4987_v14 = vpack.c.bf16 %v1219_v8, %v1209_v6  ;;  %v1319_v4 = vld [vmem:[%s11407_s1 + $0x27c0] sm:$0xff]  ;;  %v1340_v8 = vld [vmem:[%s11407_s1 + $0x2868] sm:$0xff] }
  0xd8   :  { %v1338_v6 = vld [vmem:[%s11407_s1 + $0x2858] sm:$0xff]  ;;  %v1420_v58 = vld [vmem:[%s11407_s1 + $0x2ae8] sm:$0xff] }
  0xd9   :  { %4680 = vmatpush1.bf16.msra.mxu0 %v4679_v17  ;;  %v1237_v17 = vld [vmem:[%s11407_s1 + $0x2530] sm:$0xff]  ;;  %v1410_v57 = vld [vmem:[%s11407_s1 + $0x2a98] sm:$0xff] }
  0xda   :  { %4968 = vmatpush1.bf16.msra.mxu1 %v4967_v18  ;;  %4682 = vmatprep.subr.bf16.mxu0 %v4681_v19  ;;  %v1229_v18 = vld [vmem:[%s11407_s1 + $0x24f0] sm:$0xff]  ;;  %v4989_v19 = vpack.c.bf16 %v1240_v12, %v1230_v11  ;;  %v4703_v25 = vpack.c.bf16 %v1237_v17, %v1227_v16  ;;  %v4721_v11 = vpack.c.bf16 %v1338_v6, %v1328_v5  ;;  %v1327_v12 = vld [vmem:[%s11407_s1 + $0x2800] sm:$0xff]  ;;  %v1348_v17 = vld [vmem:[%s11407_s1 + $0x28a8] sm:$0xff] }
  0xdb   :  { %4970 = vmatprep.subr.bf16.mxu1 %v4969_v23  ;;  %v1250_v23 = vld [vmem:[%s11407_s1 + $0x2598] sm:$0xff]  ;;  %v4991_v26 = vpack.c.bf16 %v1239_v20, %v1229_v18  ;;  %v1339_v16 = vld [vmem:[%s11407_s1 + $0x2860] sm:$0xff]  ;;  %v1360_v20 = vld [vmem:[%s11407_s1 + $0x2908] sm:$0xff] }
  0xdc   :  { %v1358_v18 = vld [vmem:[%s11407_s1 + $0x28f8] sm:$0xff]  ;;  %v1440_v6 = vld [vmem:[%s11407_s1 + $0x2b88] sm:$0xff] }
  0xdd   :  { %4684 = vmatpush1.bf16.msra.mxu0 %v4683_v29  ;;  %v1257_v29 = vld [vmem:[%s11407_s1 + $0x25d0] sm:$0xff]  ;;  %v1430_v5 = vld [vmem:[%s11407_s1 + $0x2b38] sm:$0xff] }
  0xde   :  { %4972 = vmatpush1.bf16.msra.mxu1 %v4971_v30  ;;  %4686 = vmatprep.subr.bf16.mxu0 %v4685_v31  ;;  %v1249_v30 = vld [vmem:[%s11407_s1 + $0x2590] sm:$0xff]  ;;  %v4993_v31 = vpack.c.bf16 %v1260_v24, %v1250_v23  ;;  %v4707_v37 = vpack.c.bf16 %v1257_v29, %v1247_v28  ;;  %v4725_v24 = vpack.c.bf16 %v1358_v18, %v1348_v17  ;;  %v1359_v29 = vld [vmem:[%s11407_s1 + $0x2900] sm:$0xff]  ;;  %v1450_v17 = vld [vmem:[%s11407_s1 + $0x2bd8] sm:$0xff] }
  0xdf   :  { %4974 = vmatprep.subr.bf16.mxu1 %v4973_v35  ;;  %v1270_v35 = vld [vmem:[%s11407_s1 + $0x2638] sm:$0xff]  ;;  %v4995_v38 = vpack.c.bf16 %v1259_v32, %v1249_v30  ;;  %v1368_v30 = vld [vmem:[%s11407_s1 + $0x2948] sm:$0xff] }
  0xe0   :  { %v1370_v32 = vld [vmem:[%s11407_s1 + $0x2958] sm:$0xff]  ;;  %v1460_v18 = vld [vmem:[%s11407_s1 + $0x2c28] sm:$0xff] }
  0xe1   :  { %4688 = vmatpush1.bf16.msra.mxu0 %v4687_v41  ;;  %v1277_v41 = vld [vmem:[%s11407_s1 + $0x2670] sm:$0xff] }
  0xe2   :  { %4976 = vmatpush1.bf16.msra.mxu1 %v4975_v42  ;;  %4690 = vmatprep.subr.bf16.mxu0 %v4689_v43  ;;  %v1269_v42 = vld [vmem:[%s11407_s1 + $0x2630] sm:$0xff]  ;;  %v4997_v43 = vpack.c.bf16 %v1280_v36, %v1270_v35  ;;  %v4711_v49 = vpack.c.bf16 %v1277_v41, %v1267_v40  ;;  %v5017_v40 = vpack.c.bf16 %v1380_v33, %v1370_v32  ;;  %v1379_v41 = vld [vmem:[%s11407_s1 + $0x29a0] sm:$0xff] }
  0xe3   :  { %4978 = vmatprep.subr.bf16.mxu1 %v4977_v47  ;;  %v1290_v47 = vld [vmem:[%s11407_s1 + $0x26d8] sm:$0xff]  ;;  %v4999_v50 = vpack.c.bf16 %v1279_v44, %v1269_v42  ;;  %v1388_v42 = vld [vmem:[%s11407_s1 + $0x29e8] sm:$0xff]  ;;  %v6209_v44 = vmov 0.0  }
  0xe5   :  { %4692 = vmatpush1.bf16.msra.mxu0 %v4691_v53  ;;  %v1297_v53 = vld [vmem:[%s11407_s1 + $0x2710] sm:$0xff] }
  0xe6   :  { %4980 = vmatpush1.bf16.msra.mxu1 %v4979_v54  ;;  %4694 = vmatprep.subr.bf16.mxu0 %v4693_v55  ;;  %v1289_v54 = vld [vmem:[%s11407_s1 + $0x26d0] sm:$0xff]  ;;  %v5001_v55 = vpack.c.bf16 %v1300_v48, %v1290_v47  ;;  %v4715_v61 = vpack.c.bf16 %v1297_v53, %v1287_v52  ;;  %v5021_v53 = vpack.c.bf16 %v1400_v46, %v1390_v45 }
  0xe7   :  { %4982 = vmatprep.subr.bf16.mxu1 %v4981_v59  ;;  %v1310_v59 = vld [vmem:[%s11407_s1 + $0x2778] sm:$0xff]  ;;  %v5003_v62 = vpack.c.bf16 %v1299_v56, %v1289_v54  ;;  %v1389_v52 = vld [vmem:[%s11407_s1 + $0x29f0] sm:$0xff]  ;;  %v1399_v54 = vld [vmem:[%s11407_s1 + $0x2a40] sm:$0xff] }
  0xe8   :  { %v1418_v56 = vld [vmem:[%s11407_s1 + $0x2ad8] sm:$0xff] }
  0xe9   :  { %4696 = vmatpush1.bf16.msra.mxu0 %v4695_v1  ;;  %v1317_v1 = vld [vmem:[%s11407_s1 + $0x27b0] sm:$0xff] }
  0xea   :  { %4984 = vmatpush1.bf16.msra.mxu1 %v4983_v2  ;;  %4698 = vmatprep.subr.bf16.mxu0 %v4697_v3  ;;  %v1309_v2 = vld [vmem:[%s11407_s1 + $0x2770] sm:$0xff]  ;;  %v5005_v3 = vpack.c.bf16 %v1320_v60, %v1310_v59  ;;  %v4719_v9 = vpack.c.bf16 %v1317_v1, %v1307_v0  ;;  %v5023_v60 = vpack.c.bf16 %v1399_v54, %v1389_v52  ;;  %v72_v52 = vld [vmem:[%s11407_s1 + $0xc8] sm:$0xff]  ;;  %v74_v54 = vld [vmem:[%s11407_s1 + $0xd8] sm:$0xff] }
  0xeb   :  { %4986 = vmatprep.subr.bf16.mxu1 %v4985_v7  ;;  %v1330_v7 = vld [vmem:[%s11407_s1 + $0x2818] sm:$0xff]  ;;  %v5007_v10 = vpack.c.bf16 %v1319_v4, %v1309_v2  ;;  %v1409_v0 = vld [vmem:[%s11407_s1 + $0x2a90] sm:$0xff]  ;;  %v5025_v1 = vpack.c.bf16 %v1420_v58, %v1410_v57  ;;  %v1419_v2 = vld [vmem:[%s11407_s1 + $0x2ae0] sm:$0xff] }
  0xec   :  { %v1438_v4 = vld [vmem:[%s11407_s1 + $0x2b78] sm:$0xff] }
  0xed   :  { %4700 = vmatpush1.bf16.msra.mxu0 %v4699_v13  ;;  %v1337_v13 = vld [vmem:[%s11407_s1 + $0x2850] sm:$0xff] }
  0xee   :  { %4988 = vmatpush1.bf16.msra.mxu1 %v4987_v14  ;;  %4702 = vmatprep.subr.bf16.mxu0 %v4701_v15  ;;  %v1329_v14 = vld [vmem:[%s11407_s1 + $0x2810] sm:$0xff]  ;;  %v5009_v15 = vpack.c.bf16 %v1340_v8, %v1330_v7  ;;  %v4723_v22 = vpack.c.bf16 %v1337_v13, %v1327_v12  ;;  %v5027_v8 = vpack.c.bf16 %v1419_v2, %v1409_v0  ;;  %v83_v0 = vld [vmem:[%s11407_s1 + $0x120] sm:$0xff]  ;;  %v102_v2 = vld [vmem:[%s11407_s1 + $0x1b8] sm:$0xff] }
  0xef   :  { %4990 = vmatprep.subr.bf16.mxu1 %v4989_v19  ;;  %v1350_v19 = vld [vmem:[%s11407_s1 + $0x28b8] sm:$0xff]  ;;  %v5011_v23 = vpack.c.bf16 %v1339_v16, %v1329_v14  ;;  %v1429_v12 = vld [vmem:[%s11407_s1 + $0x2b30] sm:$0xff]  ;;  %v5029_v13 = vpack.c.bf16 %v1440_v6, %v1430_v5  ;;  %v1439_v14 = vld [vmem:[%s11407_s1 + $0x2b80] sm:$0xff] }
  0xf0   :  { %v5013_v28 = vpack.c.bf16 %v1360_v20, %v1350_v19  ;;  %v1458_v16 = vld [vmem:[%s11407_s1 + $0x2c18] sm:$0xff]  ;;  %v5031_v20 = vpack.c.bf16 %v1439_v14, %v1429_v12  ;;  %v103_v12 = vld [vmem:[%s11407_s1 + $0x1c0] sm:$0xff] }
  0xf1   :  { %4704 = vmatpush1.bf16.msra.mxu0 %v4703_v25  ;;  %v1347_v25 = vld [vmem:[%s11407_s1 + $0x28a0] sm:$0xff]  ;;  %v122_v14 = vld [vmem:[%s11407_s1 + $0x258] sm:$0xff] }
  0xf2   :  { %4992 = vmatpush1.bf16.msra.mxu1 %v4991_v26  ;;  %4706 = vmatprep.subr.bf16.mxu0 %v4705_v27  ;;  %v1357_v26 = vld [vmem:[%s11407_s1 + $0x28f0] sm:$0xff] }
  0xf3   :  { %4994 = vmatprep.subr.bf16.mxu1 %v4993_v31  ;;  %v1349_v27 = vld [vmem:[%s11407_s1 + $0x28b0] sm:$0xff]  ;;  %v1378_v31 = vld [vmem:[%s11407_s1 + $0x2998] sm:$0xff]  ;;  %v4727_v34 = vpack.c.bf16 %v1357_v26, %v1347_v25  ;;  %v5033_v25 = vpack.c.bf16 %v1460_v18, %v1450_v17  ;;  %v1459_v26 = vld [vmem:[%s11407_s1 + $0x2c20] sm:$0xff] }
  0xf4   :  { %v5015_v35 = vpack.c.bf16 %v1359_v29, %v1349_v27  ;;  %v4729_v36 = vpack.c.bf16 %v1378_v31, %v1368_v30  ;;  %v1468_v27 = vld [vmem:[%s11407_s1 + $0x2c68] sm:$0xff]  ;;  %v1470_v29 = vld [vmem:[%s11407_s1 + $0x2c78] sm:$0xff] }
  0xf5   :  { %4708 = vmatpush1.bf16.msra.mxu0 %v4707_v37  ;;  %v1367_v37 = vld [vmem:[%s11407_s1 + $0x2940] sm:$0xff]  ;;  %v1480_v30 = vld [vmem:[%s11407_s1 + $0x2cc8] sm:$0xff] }
  0xf6   :  { %4996 = vmatpush1.bf16.msra.mxu1 %v4995_v38  ;;  %4710 = vmatprep.subr.bf16.mxu0 %v4709_v39  ;;  %v1377_v38 = vld [vmem:[%s11407_s1 + $0x2990] sm:$0xff]  ;;  %v124_v17 = vld [vmem:[%s11407_s1 + $0x268] sm:$0xff] }
  0xf7   :  { %4998 = vmatprep.subr.bf16.mxu1 %v4997_v43  ;;  %v1369_v39 = vld [vmem:[%s11407_s1 + $0x2950] sm:$0xff]  ;;  %v1398_v43 = vld [vmem:[%s11407_s1 + $0x2a38] sm:$0xff]  ;;  %v4731_v47 = vpack.c.bf16 %v1377_v38, %v1367_v37  ;;  %v5037_v37 = vpack.c.bf16 %v1480_v30, %v1470_v29  ;;  %v1479_v38 = vld [vmem:[%s11407_s1 + $0x2cc0] sm:$0xff] }
  0xf8   :  { %v5019_v48 = vpack.c.bf16 %v1379_v41, %v1369_v39  ;;  %v52_v39 = vld [vmem:[%s11407_s1 + $0x28] sm:$0xff]  ;;  %v54_v41 = vld [vmem:[%s11407_s1 + $0x38] sm:$0xff] }
  0xf9   :  { %4712 = vmatpush1.bf16.msra.mxu0 %v4711_v49  ;;  %v4733_v49 = vpack.c.bf16 %v1398_v43, %v1388_v42  ;;  %v64_v42 = vld [vmem:[%s11407_s1 + $0x88] sm:$0xff] }
  0xfa   :  { %5000 = vmatpush1.bf16.msra.mxu1 %v4999_v50  ;;  %4714 = vmatprep.subr.bf16.mxu0 %v4713_v51  ;;  %v1387_v50 = vld [vmem:[%s11407_s1 + $0x29e0] sm:$0xff]  ;;  %v1397_v51 = vld [vmem:[%s11407_s1 + $0x2a30] sm:$0xff]  ;;  %v144_v29 = vld [vmem:[%s11407_s1 + $0x308] sm:$0xff] }
  0xfb   :  { %5002 = vmatprep.subr.bf16.mxu1 %v5001_v55  ;;  %v1408_v55 = vld [vmem:[%s11407_s1 + $0x2a88] sm:$0xff]  ;;  %v4735_v59 = vpack.c.bf16 %v1397_v51, %v1387_v50  ;;  %v5329_v50 = vpack.c.bf16 %v64_v42, %v54_v41  ;;  %v63_v51 = vld [vmem:[%s11407_s1 + $0x80] sm:$0xff] }
  0xfc   :  { %v164_v41 = vld [vmem:[%s11407_s1 + $0x3a8] sm:$0xff] }
  0xfd   :  { %4716 = vmatpush1.bf16.msra.mxu0 %v4715_v61  ;;  %v4737_v61 = vpack.c.bf16 %v1418_v56, %v1408_v55  ;;  %v84_v55 = vld [vmem:[%s11407_s1 + $0x128] sm:$0xff]  ;;  %v46_v56 = vld [vmem:[%s11408_s0 + $0x40] sm:$0xff] }
  0xfe   :  { %5004 = vmatpush1.bf16.msra.mxu1 %v5003_v62  ;;  %4718 = vmatprep.subr.bf16.mxu0 %v4717_v63  ;;  %v1407_v62 = vld [vmem:[%s11407_s1 + $0x2a80] sm:$0xff]  ;;  %v1417_v63 = vld [vmem:[%s11407_s1 + $0x2ad0] sm:$0xff] }
  0xff   :  { %5006 = vmatprep.subr.bf16.mxu1 %v5005_v3  ;;  %v1428_v3 = vld [vmem:[%s11407_s1 + $0x2b28] sm:$0xff]  ;;  %v4739_v7 = vpack.c.bf16 %v1417_v63, %v1407_v62  ;;  %v73_v62 = vld [vmem:[%s11407_s1 + $0xd0] sm:$0xff]  ;;  %v5333_v63 = vpack.c.bf16 %v84_v55, %v74_v54 }
 0x100   :  { %v5335_v6 = vpack.c.bf16 %v83_v0, %v73_v62  ;;  %v184_v54 = vld [vmem:[%s11407_s1 + $0x448] sm:$0xff]  ;;  %v183_v62 = vld [vmem:[%s11407_s1 + $0x440] sm:$0xff]  ;;  %v202_v0 = vld [vmem:[%s11407_s1 + $0x4d8] sm:$0xff] }
 0x101   :  { %4720 = vmatpush1.bf16.msra.mxu0 %v4719_v9  ;;  %v4741_v9 = vpack.c.bf16 %v1438_v4, %v1428_v3  ;;  %v94_v3 = vld [vmem:[%s11407_s1 + $0x178] sm:$0xff]  ;;  %v104_v4 = vld [vmem:[%s11407_s1 + $0x1c8] sm:$0xff] }
 0x102   :  { %5008 = vmatpush1.bf16.msra.mxu1 %v5007_v10  ;;  %4722 = vmatprep.subr.bf16.mxu0 %v4721_v11  ;;  %v1427_v10 = vld [vmem:[%s11407_s1 + $0x2b20] sm:$0xff]  ;;  %v1437_v11 = vld [vmem:[%s11407_s1 + $0x2b70] sm:$0xff] }
 0x103   :  { %5010 = vmatprep.subr.bf16.mxu1 %v5009_v15  ;;  %v1448_v15 = vld [vmem:[%s11407_s1 + $0x2bc8] sm:$0xff]  ;;  %v4743_v19 = vpack.c.bf16 %v1437_v11, %v1427_v10  ;;  %v93_v10 = vld [vmem:[%s11407_s1 + $0x170] sm:$0xff]  ;;  %v5337_v11 = vpack.c.bf16 %v104_v4, %v94_v3 }
 0x104   :  { %1819 = vmatmul.mubr.f32.vlgmr.msra.gmra.mrb[0].mxu0 %v44_v21 }
 0x105   :  { %4724 = vmatpush1.bf16.msra.mxu0 %v4723_v22  ;;  %2174 = vmatmul.mubr.f32.vlgmr.msra.gmra.mrb[0].mxu1 %v44_v21  ;;  %v4745_v21 = vpack.c.bf16 %v1458_v16, %v1448_v15  ;;  %v1447_v22 = vld [vmem:[%s11407_s1 + $0x2bc0] sm:$0xff]  ;;  %v6190_v15 = vld [vmem:[%s11408_s0 + $0x8] sm:$0xff]  ;;  %v114_v16 = vld [vmem:[%s11407_s1 + $0x218] sm:$0xff] }
 0x106   :  { %5012 = vmatpush1.bf16.msra.mxu1 %v5011_v23  ;;  %4726 = vmatprep.subr.bf16.mxu0 %v4725_v24  ;;  %v1457_v23 = vld [vmem:[%s11407_s1 + $0x2c10] sm:$0xff] }
 0x107   :  { %5014 = vmatprep.subr.bf16.mxu1 %v5013_v28  ;;  %1889 = vmatprep.mubr.f32.mxu0 %v6209_v44  ;;  %v1449_v24 = vld [vmem:[%s11407_s1 + $0x2bd0] sm:$0xff]  ;;  %v1478_v28 = vld [vmem:[%s11407_s1 + $0x2cb8] sm:$0xff]  ;;  %v4747_v31 = vpack.c.bf16 %v1457_v23, %v1447_v22 }
 0x108   :  { %2244 = vmatprep.mubr.f32.mxu1 %v6209_v44  ;;  %v5035_v32 = vpack.c.bf16 %v1459_v26, %v1449_v24  ;;  %v4749_v33 = vpack.c.bf16 %v1478_v28, %v1468_v27  ;;  %v121_v22 = vld [vmem:[%s11407_s1 + $0x250] sm:$0xff]  ;;  %v5341_v24 = vpack.c.bf16 %v124_v17, %v114_v16  ;;  %v132_v26 = vld [vmem:[%s11407_s1 + $0x2a8] sm:$0xff]  ;;  %v142_v27 = vld [vmem:[%s11407_s1 + $0x2f8] sm:$0xff] }
 0x109   :  { %4728 = vmatpush1.bf16.msra.mxu0 %v4727_v34  ;;  %v1467_v34 = vld [vmem:[%s11407_s1 + $0x2c60] sm:$0xff]  ;;  %v113_v23 = vld [vmem:[%s11407_s1 + $0x210] sm:$0xff]  ;;  %v134_v28 = vld [vmem:[%s11407_s1 + $0x2b8] sm:$0xff] }
 0x10a   :  { %5016 = vmatpush1.bf16.msra.mxu1 %v5015_v35  ;;  %4730 = vmatprep.subr.bf16.mxu0 %v4729_v36  ;;  %v1477_v35 = vld [vmem:[%s11407_s1 + $0x2cb0] sm:$0xff] }
 0x10b   :  { %5018 = vmatprep.subr.bf16.mxu1 %v5017_v40  ;;  %v1469_v36 = vld [vmem:[%s11407_s1 + $0x2c70] sm:$0xff]  ;;  %v62_v40 = vld [vmem:[%s11407_s1 + $0x78] sm:$0xff]  ;;  %v4751_v43 = vpack.c.bf16 %v1477_v35, %v1467_v34 }
 0x10c   :  { %v5039_v45 = vpack.c.bf16 %v1479_v38, %v1469_v36  ;;  %v5041_v46 = vpack.c.bf16 %v62_v40, %v52_v39  ;;  %v141_v34 = vld [vmem:[%s11407_s1 + $0x2f0] sm:$0xff]  ;;  %v5345_v36 = vpack.c.bf16 %v144_v29, %v134_v28  ;;  %v152_v38 = vld [vmem:[%s11407_s1 + $0x348] sm:$0xff]  ;;  %v162_v39 = vld [vmem:[%s11407_s1 + $0x398] sm:$0xff] }
 0x10d   :  { %4732 = vmatpush1.bf16.msra.mxu0 %v4731_v47  ;;  %v51_v47 = vld [vmem:[%s11407_s1 + $0x20] sm:$0xff]  ;;  %v133_v35 = vld [vmem:[%s11407_s1 + $0x2b0] sm:$0xff]  ;;  %v154_v40 = vld [vmem:[%s11407_s1 + $0x358] sm:$0xff] }
 0x10e   :  { %5020 = vmatpush1.bf16.msra.mxu1 %v5019_v48  ;;  %4734 = vmatprep.subr.bf16.mxu0 %v4733_v49  ;;  %v61_v48 = vld [vmem:[%s11407_s1 + $0x70] sm:$0xff] }
 0x10f   :  { %5022 = vmatprep.subr.bf16.mxu1 %v5021_v53  ;;  %v53_v49 = vld [vmem:[%s11407_s1 + $0x30] sm:$0xff]  ;;  %v82_v53 = vld [vmem:[%s11407_s1 + $0x118] sm:$0xff]  ;;  %v5043_v57 = vpack.c.bf16 %v61_v48, %v51_v47 }
 0x110   :  { %v5331_v58 = vpack.c.bf16 %v63_v51, %v53_v49  ;;  %v161_v47 = vld [vmem:[%s11407_s1 + $0x390] sm:$0xff]  ;;  %v5349_v49 = vpack.c.bf16 %v164_v41, %v154_v40  ;;  %v172_v51 = vld [vmem:[%s11407_s1 + $0x3e8] sm:$0xff] }
 0x111   :  { %4736 = vmatpush1.bf16.msra.mxu0 %v4735_v59  ;;  %v5045_v59 = vpack.c.bf16 %v82_v53, %v72_v52  ;;  %v153_v48 = vld [vmem:[%s11407_s1 + $0x350] sm:$0xff]  ;;  %v182_v52 = vld [vmem:[%s11407_s1 + $0x438] sm:$0xff] }
 0x112   :  { %5024 = vmatpush1.bf16.msra.mxu1 %v5023_v60  ;;  %4738 = vmatprep.subr.bf16.mxu0 %v4737_v61  ;;  %v71_v60 = vld [vmem:[%s11407_s1 + $0xc0] sm:$0xff]  ;;  %v81_v61 = vld [vmem:[%s11407_s1 + $0x110] sm:$0xff]  ;;  %v174_v53 = vld [vmem:[%s11407_s1 + $0x3f8] sm:$0xff] }
 0x113   :  { %5026 = vmatprep.subr.bf16.mxu1 %v5025_v1  ;;  %v92_v1 = vld [vmem:[%s11407_s1 + $0x168] sm:$0xff]  ;;  %v5047_v5 = vpack.c.bf16 %v81_v61, %v71_v60  ;;  %v173_v60 = vld [vmem:[%s11407_s1 + $0x3f0] sm:$0xff]  ;;  %v5353_v61 = vpack.c.bf16 %v184_v54, %v174_v53 }
 0x114   :  { %v5355_v4 = vpack.c.bf16 %v183_v62, %v173_v60  ;;  %v292_v60 = vld [vmem:[%s11407_s1 + $0x7a8] sm:$0xff]  ;;  %v294_v62 = vld [vmem:[%s11407_s1 + $0x7b8] sm:$0xff] }
 0x115   :  { %4740 = vmatpush1.bf16.msra.mxu0 %v4739_v7  ;;  %v5049_v7 = vpack.c.bf16 %v102_v2, %v92_v1  ;;  %v194_v1 = vld [vmem:[%s11407_s1 + $0x498] sm:$0xff]  ;;  %v204_v2 = vld [vmem:[%s11407_s1 + $0x4e8] sm:$0xff] }
 0x116   :  { %5028 = vmatpush1.bf16.msra.mxu1 %v5027_v8  ;;  %4742 = vmatprep.subr.bf16.mxu0 %v4741_v9  ;;  %v91_v8 = vld [vmem:[%s11407_s1 + $0x160] sm:$0xff]  ;;  %v101_v9 = vld [vmem:[%s11407_s1 + $0x1b0] sm:$0xff] }
 0x117   :  { %5030 = vmatprep.subr.bf16.mxu1 %v5029_v13  ;;  %v112_v13 = vld [vmem:[%s11407_s1 + $0x208] sm:$0xff]  ;;  %v5051_v18 = vpack.c.bf16 %v101_v9, %v91_v8  ;;  %v193_v8 = vld [vmem:[%s11407_s1 + $0x490] sm:$0xff]  ;;  %v5357_v9 = vpack.c.bf16 %v204_v2, %v194_v1 }
 0x119   :  { %4744 = vmatpush1.bf16.msra.mxu0 %v4743_v19  ;;  %v5339_v19 = vpack.c.bf16 %v103_v12, %v93_v10  ;;  %v203_v10 = vld [vmem:[%s11407_s1 + $0x4e0] sm:$0xff]  ;;  %v222_v12 = vld [vmem:[%s11407_s1 + $0x578] sm:$0xff] }
 0x11a   :  { %5032 = vmatpush1.bf16.msra.mxu1 %v5031_v20  ;;  %4746 = vmatprep.subr.bf16.mxu0 %v4745_v21  ;;  %v5053_v20 = vpack.c.bf16 %v122_v14, %v112_v13  ;;  %v111_v21 = vld [vmem:[%s11407_s1 + $0x200] sm:$0xff]  ;;  %v214_v13 = vld [vmem:[%s11407_s1 + $0x538] sm:$0xff]  ;;  %v224_v14 = vld [vmem:[%s11407_s1 + $0x588] sm:$0xff]  ;;  %v5359_v16 = vpack.c.bf16 %v203_v10, %v193_v8 }
 0x11b   :  { %5034 = vmatprep.subr.bf16.mxu1 %v5033_v25  ;;  %v123_v25 = vld [vmem:[%s11407_s1 + $0x260] sm:$0xff]  ;;  %v5055_v30 = vpack.c.bf16 %v121_v22, %v111_v21  ;;  %v5361_v21 = vpack.c.bf16 %v224_v14, %v214_v13  ;;  %v312_v8 = vld [vmem:[%s11407_s1 + $0x848] sm:$0xff]  ;;  %v314_v10 = vld [vmem:[%s11407_s1 + $0x858] sm:$0xff] }
 0x11c   :  { %v223_v22 = vld [vmem:[%s11407_s1 + $0x580] sm:$0xff] }
 0x11d   :  { %4748 = vmatpush1.bf16.msra.mxu0 %v4747_v31  ;;  %v5343_v31 = vpack.c.bf16 %v123_v25, %v113_v23  ;;  %v232_v23 = vld [vmem:[%s11407_s1 + $0x5c8] sm:$0xff]  ;;  %v234_v25 = vld [vmem:[%s11407_s1 + $0x5d8] sm:$0xff] }
 0x11e   :  { %5036 = vmatpush1.bf16.msra.mxu1 %v5035_v32  ;;  %4750 = vmatprep.subr.bf16.mxu0 %v4749_v33  ;;  %v5057_v32 = vpack.c.bf16 %v142_v27, %v132_v26  ;;  %v131_v33 = vld [vmem:[%s11407_s1 + $0x2a0] sm:$0xff]  ;;  %v244_v26 = vld [vmem:[%s11407_s1 + $0x628] sm:$0xff] }
 0x11f   :  { %5038 = vmatprep.subr.bf16.mxu1 %v5037_v37  ;;  %v143_v37 = vld [vmem:[%s11407_s1 + $0x300] sm:$0xff]  ;;  %v5059_v42 = vpack.c.bf16 %v141_v34, %v131_v33  ;;  %v5365_v33 = vpack.c.bf16 %v244_v26, %v234_v25 }
 0x120   :  { %v243_v34 = vld [vmem:[%s11407_s1 + $0x620] sm:$0xff] }
 0x121   :  { %4752 = vmatpush1.bf16.msra.mxu0 %v4751_v43  ;;  %v5347_v43 = vpack.c.bf16 %v143_v37, %v133_v35  ;;  %v252_v35 = vld [vmem:[%s11407_s1 + $0x668] sm:$0xff]  ;;  %v254_v37 = vld [vmem:[%s11407_s1 + $0x678] sm:$0xff] }
 0x122   :  { %5040 = vmatpush1.bf16.msra.mxu1 %v5039_v45  ;;  %5042 = vmatprep.subr.bf16.mxu0 %v5041_v46  ;;  %v5061_v45 = vpack.c.bf16 %v162_v39, %v152_v38  ;;  %v151_v46 = vld [vmem:[%s11407_s1 + $0x340] sm:$0xff]  ;;  %v264_v38 = vld [vmem:[%s11407_s1 + $0x6c8] sm:$0xff] }
 0x123   :  { %5330 = vmatprep.subr.bf16.mxu1 %v5329_v50  ;;  %v163_v50 = vld [vmem:[%s11407_s1 + $0x3a0] sm:$0xff]  ;;  %v5063_v55 = vpack.c.bf16 %v161_v47, %v151_v46  ;;  %v5369_v46 = vpack.c.bf16 %v264_v38, %v254_v37 }
 0x124   :  { %1890 = vmatmul.mubr.f32.vlgmr.msra.gmra.mrb[0].mxu0 %v46_v56  ;;  %v263_v47 = vld [vmem:[%s11407_s1 + $0x6c0] sm:$0xff] }
 0x125   :  { %2245 = vmatmul.mubr.f32.vlgmr.msra.gmra.mrb[0].mxu1 %v46_v56  ;;  %5044 = vmatpush1.bf16.msra.mxu0 %v5043_v57  ;;  %v5351_v56 = vpack.c.bf16 %v163_v50, %v153_v48  ;;  %v5065_v57 = vpack.c.bf16 %v182_v52, %v172_v51  ;;  %v272_v48 = vld [vmem:[%s11407_s1 + $0x708] sm:$0xff]  ;;  %v274_v50 = vld [vmem:[%s11407_s1 + $0x718] sm:$0xff] }
 0x126   :  { %5332 = vmatpush1.bf16.msra.mxu1 %v5331_v58  ;;  %5046 = vmatprep.subr.bf16.mxu0 %v5045_v59  ;;  %v171_v58 = vld [vmem:[%s11407_s1 + $0x3e0] sm:$0xff]  ;;  %v181_v59 = vld [vmem:[%s11407_s1 + $0x430] sm:$0xff]  ;;  %v284_v51 = vld [vmem:[%s11407_s1 + $0x768] sm:$0xff] }
 0x127   :  { %5334 = vmatprep.subr.bf16.mxu1 %v5333_v63  ;;  %2315 = vmatprep.mubr.f32.mxu0 %v6190_v15  ;;  %v192_v63 = vld [vmem:[%s11407_s1 + $0x488] sm:$0xff]  ;;  %v5067_v3 = vpack.c.bf16 %v181_v59, %v171_v58  ;;  %v5373_v58 = vpack.c.bf16 %v284_v51, %v274_v50  ;;  %v283_v59 = vld [vmem:[%s11407_s1 + $0x760] sm:$0xff] }
 0x128   :  { %2670 = vmatprep.mubr.f32.mxu1 %v6190_v15 }
 0x129   :  { %5048 = vmatpush1.bf16.msra.mxu0 %v5047_v5  ;;  %v5069_v5 = vpack.c.bf16 %v202_v0, %v192_v63  ;;  %v304_v63 = vld [vmem:[%s11407_s1 + $0x808] sm:$0xff] }
 0x12a   :  { %5336 = vmatpush1.bf16.msra.mxu1 %v5335_v6  ;;  %5050 = vmatprep.subr.bf16.mxu0 %v5049_v7  ;;  %v191_v6 = vld [vmem:[%s11407_s1 + $0x480] sm:$0xff]  ;;  %v201_v7 = vld [vmem:[%s11407_s1 + $0x4d0] sm:$0xff] }
 0x12b   :  { %5338 = vmatprep.subr.bf16.mxu1 %v5337_v11  ;;  %v212_v11 = vld [vmem:[%s11407_s1 + $0x528] sm:$0xff]  ;;  %v5071_v15 = vpack.c.bf16 %v201_v7, %v191_v6  ;;  %v5377_v6 = vpack.c.bf16 %v304_v63, %v294_v62  ;;  %v303_v7 = vld [vmem:[%s11407_s1 + $0x800] sm:$0xff] }
 0x12c   :  { %v5073_v17 = vpack.c.bf16 %v222_v12, %v212_v11  ;;  %v324_v11 = vld [vmem:[%s11407_s1 + $0x8a8] sm:$0xff] }
 0x12d   :  { %5052 = vmatpush1.bf16.msra.mxu0 %v5051_v18  ;;  %v211_v18 = vld [vmem:[%s11407_s1 + $0x520] sm:$0xff] }
 0x12e   :  { %5340 = vmatpush1.bf16.msra.mxu1 %v5339_v19  ;;  %5054 = vmatprep.subr.bf16.mxu0 %v5053_v20  ;;  %v221_v19 = vld [vmem:[%s11407_s1 + $0x570] sm:$0xff] }
 0x12f   :  { %5342 = vmatprep.subr.bf16.mxu1 %v5341_v24  ;;  %v213_v20 = vld [vmem:[%s11407_s1 + $0x530] sm:$0xff]  ;;  %v242_v24 = vld [vmem:[%s11407_s1 + $0x618] sm:$0xff]  ;;  %v5075_v27 = vpack.c.bf16 %v221_v19, %v211_v18  ;;  %v5381_v18 = vpack.c.bf16 %v324_v11, %v314_v10  ;;  %v323_v19 = vld [vmem:[%s11407_s1 + $0x8a0] sm:$0xff] }
 0x130   :  { %v5363_v28 = vpack.c.bf16 %v223_v22, %v213_v20  ;;  %v5077_v29 = vpack.c.bf16 %v242_v24, %v232_v23  ;;  %v332_v20 = vld [vmem:[%s11407_s1 + $0x8e8] sm:$0xff]  ;;  %v334_v22 = vld [vmem:[%s11407_s1 + $0x8f8] sm:$0xff] }
 0x131   :  { %5056 = vmatpush1.bf16.msra.mxu0 %v5055_v30  ;;  %v231_v30 = vld [vmem:[%s11407_s1 + $0x5c0] sm:$0xff]  ;;  %v344_v23 = vld [vmem:[%s11407_s1 + $0x948] sm:$0xff] }
 0x132   :  { %5344 = vmatpush1.bf16.msra.mxu1 %v5343_v31  ;;  %5058 = vmatprep.subr.bf16.mxu0 %v5057_v32  ;;  %v241_v31 = vld [vmem:[%s11407_s1 + $0x610] sm:$0xff] }
 0x133   :  { %5346 = vmatprep.subr.bf16.mxu1 %v5345_v36  ;;  %v233_v32 = vld [vmem:[%s11407_s1 + $0x5d0] sm:$0xff]  ;;  %v262_v36 = vld [vmem:[%s11407_s1 + $0x6b8] sm:$0xff]  ;;  %v5079_v39 = vpack.c.bf16 %v241_v31, %v231_v30  ;;  %v5385_v30 = vpack.c.bf16 %v344_v23, %v334_v22  ;;  %v343_v31 = vld [vmem:[%s11407_s1 + $0x940] sm:$0xff] }
 0x134   :  { %v5367_v40 = vpack.c.bf16 %v243_v34, %v233_v32  ;;  %v5081_v41 = vpack.c.bf16 %v262_v36, %v252_v35  ;;  %v352_v32 = vld [vmem:[%s11407_s1 + $0x988] sm:$0xff]  ;;  %v354_v34 = vld [vmem:[%s11407_s1 + $0x998] sm:$0xff] }
 0x135   :  { %5060 = vmatpush1.bf16.msra.mxu0 %v5059_v42  ;;  %v251_v42 = vld [vmem:[%s11407_s1 + $0x660] sm:$0xff]  ;;  %v364_v35 = vld [vmem:[%s11407_s1 + $0x9e8] sm:$0xff] }
 0x136   :  { %5348 = vmatpush1.bf16.msra.mxu1 %v5347_v43  ;;  %5062 = vmatprep.subr.bf16.mxu0 %v5061_v45  ;;  %v261_v43 = vld [vmem:[%s11407_s1 + $0x6b0] sm:$0xff]  ;;  %v444_v22 = vld [vmem:[%s11407_s1 + $0xc68] sm:$0xff] }
 0x137   :  { %5350 = vmatprep.subr.bf16.mxu1 %v5349_v49  ;;  %v253_v45 = vld [vmem:[%s11407_s1 + $0x670] sm:$0xff]  ;;  %v282_v49 = vld [vmem:[%s11407_s1 + $0x758] sm:$0xff]  ;;  %v5083_v52 = vpack.c.bf16 %v261_v43, %v251_v42  ;;  %v5389_v42 = vpack.c.bf16 %v364_v35, %v354_v34  ;;  %v363_v43 = vld [vmem:[%s11407_s1 + $0x9e0] sm:$0xff] }
 0x138   :  { %v5371_v53 = vpack.c.bf16 %v263_v47, %v253_v45  ;;  %v5085_v54 = vpack.c.bf16 %v282_v49, %v272_v48  ;;  %v372_v45 = vld [vmem:[%s11407_s1 + $0xa28] sm:$0xff]  ;;  %v374_v47 = vld [vmem:[%s11407_s1 + $0xa38] sm:$0xff] }
 0x139   :  { %5064 = vmatpush1.bf16.msra.mxu0 %v5063_v55  ;;  %v271_v55 = vld [vmem:[%s11407_s1 + $0x700] sm:$0xff]  ;;  %v384_v48 = vld [vmem:[%s11407_s1 + $0xa88] sm:$0xff] }
 0x13a   :  { %5352 = vmatpush1.bf16.msra.mxu1 %v5351_v56  ;;  %5066 = vmatprep.subr.bf16.mxu0 %v5065_v57  ;;  %v281_v56 = vld [vmem:[%s11407_s1 + $0x750] sm:$0xff]  ;;  %v464_v34 = vld [vmem:[%s11407_s1 + $0xd08] sm:$0xff] }
 0x13b   :  { %5354 = vmatprep.subr.bf16.mxu1 %v5353_v61  ;;  %v273_v57 = vld [vmem:[%s11407_s1 + $0x710] sm:$0xff]  ;;  %v302_v61 = vld [vmem:[%s11407_s1 + $0x7f8] sm:$0xff]  ;;  %v5087_v0 = vpack.c.bf16 %v281_v56, %v271_v55  ;;  %v5393_v55 = vpack.c.bf16 %v384_v48, %v374_v47  ;;  %v383_v56 = vld [vmem:[%s11407_s1 + $0xa80] sm:$0xff] }
 0x13c   :  { %v5375_v1 = vpack.c.bf16 %v283_v59, %v273_v57  ;;  %v5089_v2 = vpack.c.bf16 %v302_v61, %v292_v60  ;;  %v392_v57 = vld [vmem:[%s11407_s1 + $0xac8] sm:$0xff]  ;;  %v394_v59 = vld [vmem:[%s11407_s1 + $0xad8] sm:$0xff] }
 0x13d   :  { %5068 = vmatpush1.bf16.msra.mxu0 %v5067_v3  ;;  %v291_v3 = vld [vmem:[%s11407_s1 + $0x7a0] sm:$0xff]  ;;  %v404_v60 = vld [vmem:[%s11407_s1 + $0xb28] sm:$0xff] }
 0x13e   :  { %5356 = vmatpush1.bf16.msra.mxu1 %v5355_v4  ;;  %5070 = vmatprep.subr.bf16.mxu0 %v5069_v5  ;;  %v301_v4 = vld [vmem:[%s11407_s1 + $0x7f0] sm:$0xff]  ;;  %v484_v47 = vld [vmem:[%s11407_s1 + $0xda8] sm:$0xff] }
 0x13f   :  { %5358 = vmatprep.subr.bf16.mxu1 %v5357_v9  ;;  %v293_v5 = vld [vmem:[%s11407_s1 + $0x7b0] sm:$0xff]  ;;  %v322_v9 = vld [vmem:[%s11407_s1 + $0x898] sm:$0xff]  ;;  %v5091_v12 = vpack.c.bf16 %v301_v4, %v291_v3  ;;  %v5397_v3 = vpack.c.bf16 %v404_v60, %v394_v59  ;;  %v403_v4 = vld [vmem:[%s11407_s1 + $0xb20] sm:$0xff] }
 0x140   :  { %v5379_v13 = vpack.c.bf16 %v303_v7, %v293_v5  ;;  %v5093_v14 = vpack.c.bf16 %v322_v9, %v312_v8  ;;  %v412_v5 = vld [vmem:[%s11407_s1 + $0xb68] sm:$0xff]  ;;  %v6191_v7 = vld [vmem:[%s11408_s0] sm:$0xff]  ;;  %v414_v8 = vld [vmem:[%s11407_s1 + $0xb78] sm:$0xff] }
 0x141   :  { %5072 = vmatpush1.bf16.msra.mxu0 %v5071_v15  ;;  %v311_v15 = vld [vmem:[%s11407_s1 + $0x840] sm:$0xff]  ;;  %v424_v9 = vld [vmem:[%s11407_s1 + $0xbc8] sm:$0xff] }
 0x142   :  { %5360 = vmatpush1.bf16.msra.mxu1 %v5359_v16  ;;  %5074 = vmatprep.subr.bf16.mxu0 %v5073_v17  ;;  %v321_v16 = vld [vmem:[%s11407_s1 + $0x890] sm:$0xff]  ;;  %v504_v59 = vld [vmem:[%s11407_s1 + $0xe48] sm:$0xff] }
 0x143   :  { %5362 = vmatprep.subr.bf16.mxu1 %v5361_v21  ;;  %v313_v17 = vld [vmem:[%s11407_s1 + $0x850] sm:$0xff]  ;;  %v342_v21 = vld [vmem:[%s11407_s1 + $0x938] sm:$0xff]  ;;  %v5095_v24 = vpack.c.bf16 %v321_v16, %v311_v15  ;;  %v5401_v16 = vpack.c.bf16 %v424_v9, %v414_v8 }
 0x144   :  { %v5383_v25 = vpack.c.bf16 %v323_v19, %v313_v17  ;;  %v5097_v26 = vpack.c.bf16 %v342_v21, %v332_v20  ;;  %v413_v15 = vld [vmem:[%s11407_s1 + $0xb70] sm:$0xff]  ;;  %v423_v17 = vld [vmem:[%s11407_s1 + $0xbc0] sm:$0xff]  ;;  %v442_v19 = vld [vmem:[%s11407_s1 + $0xc58] sm:$0xff] }
 0x145   :  { %5076 = vmatpush1.bf16.msra.mxu0 %v5075_v27  ;;  %v331_v27 = vld [vmem:[%s11407_s1 + $0x8e0] sm:$0xff]  ;;  %v6192_v20 = vld [vmem:[%s11408_s0 + $0x18] sm:$0xff] }
 0x146   :  { %5364 = vmatpush1.bf16.msra.mxu1 %v5363_v28  ;;  %5078 = vmatprep.subr.bf16.mxu0 %v5077_v29  ;;  %v341_v28 = vld [vmem:[%s11407_s1 + $0x930] sm:$0xff]  ;;  %v434_v21 = vld [vmem:[%s11407_s1 + $0xc18] sm:$0xff] }
 0x147   :  { %5366 = vmatprep.subr.bf16.mxu1 %v5365_v33  ;;  %v333_v29 = vld [vmem:[%s11407_s1 + $0x8f0] sm:$0xff]  ;;  %v362_v33 = vld [vmem:[%s11407_s1 + $0x9d8] sm:$0xff]  ;;  %v5099_v36 = vpack.c.bf16 %v341_v28, %v331_v27 }
 0x148   :  { %v5387_v37 = vpack.c.bf16 %v343_v31, %v333_v29  ;;  %v5101_v38 = vpack.c.bf16 %v362_v33, %v352_v32  ;;  %v441_v27 = vld [vmem:[%s11407_s1 + $0xc50] sm:$0xff]  ;;  %v5405_v29 = vpack.c.bf16 %v444_v22, %v434_v21  ;;  %v452_v31 = vld [vmem:[%s11407_s1 + $0xca8] sm:$0xff]  ;;  %v462_v32 = vld [vmem:[%s11407_s1 + $0xcf8] sm:$0xff] }
 0x149   :  { %5080 = vmatpush1.bf16.msra.mxu0 %v5079_v39  ;;  %v351_v39 = vld [vmem:[%s11407_s1 + $0x980] sm:$0xff]  ;;  %v433_v28 = vld [vmem:[%s11407_s1 + $0xc10] sm:$0xff]  ;;  %v454_v33 = vld [vmem:[%s11407_s1 + $0xcb8] sm:$0xff] }
 0x14a   :  { %5368 = vmatpush1.bf16.msra.mxu1 %v5367_v40  ;;  %5082 = vmatprep.subr.bf16.mxu0 %v5081_v41  ;;  %v361_v40 = vld [vmem:[%s11407_s1 + $0x9d0] sm:$0xff] }
 0x14b   :  { %5370 = vmatprep.subr.bf16.mxu1 %v5369_v46  ;;  %v353_v41 = vld [vmem:[%s11407_s1 + $0x990] sm:$0xff]  ;;  %v382_v46 = vld [vmem:[%s11407_s1 + $0xa78] sm:$0xff]  ;;  %v5103_v49 = vpack.c.bf16 %v361_v40, %v351_v39 }
 0x14c   :  { %v5391_v50 = vpack.c.bf16 %v363_v43, %v353_v41  ;;  %v5105_v51 = vpack.c.bf16 %v382_v46, %v372_v45  ;;  %v461_v39 = vld [vmem:[%s11407_s1 + $0xcf0] sm:$0xff]  ;;  %v5409_v41 = vpack.c.bf16 %v464_v34, %v454_v33  ;;  %v472_v43 = vld [vmem:[%s11407_s1 + $0xd48] sm:$0xff]  ;;  %v482_v45 = vld [vmem:[%s11407_s1 + $0xd98] sm:$0xff] }
 0x14d   :  { %5084 = vmatpush1.bf16.msra.mxu0 %v5083_v52  ;;  %v371_v52 = vld [vmem:[%s11407_s1 + $0xa20] sm:$0xff]  ;;  %v453_v40 = vld [vmem:[%s11407_s1 + $0xcb0] sm:$0xff]  ;;  %v474_v46 = vld [vmem:[%s11407_s1 + $0xd58] sm:$0xff] }
 0x14e   :  { %5372 = vmatpush1.bf16.msra.mxu1 %v5371_v53  ;;  %5086 = vmatprep.subr.bf16.mxu0 %v5085_v54  ;;  %v381_v53 = vld [vmem:[%s11407_s1 + $0xa70] sm:$0xff] }
 0x14f   :  { %5374 = vmatprep.subr.bf16.mxu1 %v5373_v58  ;;  %v373_v54 = vld [vmem:[%s11407_s1 + $0xa30] sm:$0xff]  ;;  %v402_v58 = vld [vmem:[%s11407_s1 + $0xb18] sm:$0xff]  ;;  %v5107_v61 = vpack.c.bf16 %v381_v53, %v371_v52 }
 0x150   :  { %v5395_v62 = vpack.c.bf16 %v383_v56, %v373_v54  ;;  %v5109_v63 = vpack.c.bf16 %v402_v58, %v392_v57  ;;  %v481_v52 = vld [vmem:[%s11407_s1 + $0xd90] sm:$0xff]  ;;  %v5413_v54 = vpack.c.bf16 %v484_v47, %v474_v46  ;;  %v492_v56 = vld [vmem:[%s11407_s1 + $0xde8] sm:$0xff]  ;;  %v502_v57 = vld [vmem:[%s11407_s1 + $0xe38] sm:$0xff] }
 0x151   :  { %5088 = vmatpush1.bf16.msra.mxu0 %v5087_v0  ;;  %v391_v0 = vld [vmem:[%s11407_s1 + $0xac0] sm:$0xff]  ;;  %v473_v53 = vld [vmem:[%s11407_s1 + $0xd50] sm:$0xff]  ;;  %v494_v58 = vld [vmem:[%s11407_s1 + $0xdf8] sm:$0xff] }
 0x152   :  { %5376 = vmatpush1.bf16.msra.mxu1 %v5375_v1  ;;  %5090 = vmatprep.subr.bf16.mxu0 %v5089_v2  ;;  %v401_v1 = vld [vmem:[%s11407_s1 + $0xb10] sm:$0xff] }
 0x153   :  { %5378 = vmatprep.subr.bf16.mxu1 %v5377_v6  ;;  %v393_v2 = vld [vmem:[%s11407_s1 + $0xad0] sm:$0xff]  ;;  %v422_v6 = vld [vmem:[%s11407_s1 + $0xbb8] sm:$0xff]  ;;  %v5111_v10 = vpack.c.bf16 %v401_v1, %v391_v0 }
 0x154   :  { %v5399_v11 = vpack.c.bf16 %v403_v4, %v393_v2  ;;  %v501_v0 = vld [vmem:[%s11407_s1 + $0xe30] sm:$0xff]  ;;  %v5417_v2 = vpack.c.bf16 %v504_v59, %v494_v58  ;;  %v512_v4 = vld [vmem:[%s11407_s1 + $0xe88] sm:$0xff] }
 0x155   :  { %5092 = vmatpush1.bf16.msra.mxu0 %v5091_v12  ;;  %v5113_v12 = vpack.c.bf16 %v422_v6, %v412_v5  ;;  %v493_v1 = vld [vmem:[%s11407_s1 + $0xdf0] sm:$0xff]  ;;  %v522_v5 = vld [vmem:[%s11407_s1 + $0xed8] sm:$0xff] }
 0x156   :  { %5380 = vmatpush1.bf16.msra.mxu1 %v5379_v13  ;;  %5094 = vmatprep.subr.bf16.mxu0 %v5093_v14  ;;  %v411_v13 = vld [vmem:[%s11407_s1 + $0xb60] sm:$0xff]  ;;  %v421_v14 = vld [vmem:[%s11407_s1 + $0xbb0] sm:$0xff]  ;;  %v514_v6 = vld [vmem:[%s11407_s1 + $0xe98] sm:$0xff] }
 0x157   :  { %5382 = vmatprep.subr.bf16.mxu1 %v5381_v18  ;;  %v432_v18 = vld [vmem:[%s11407_s1 + $0xc08] sm:$0xff]  ;;  %v5115_v23 = vpack.c.bf16 %v421_v14, %v411_v13  ;;  %v513_v13 = vld [vmem:[%s11407_s1 + $0xe90] sm:$0xff] }
 0x159   :  { %5096 = vmatpush1.bf16.msra.mxu0 %v5095_v24  ;;  %v5403_v24 = vpack.c.bf16 %v423_v17, %v413_v15  ;;  %v523_v15 = vld [vmem:[%s11407_s1 + $0xee0] sm:$0xff]  ;;  %v542_v17 = vld [vmem:[%s11407_s1 + $0xf78] sm:$0xff] }
 0x15a   :  { %5384 = vmatpush1.bf16.msra.mxu1 %v5383_v25  ;;  %5098 = vmatprep.subr.bf16.mxu0 %v5097_v26  ;;  %v5117_v25 = vpack.c.bf16 %v442_v19, %v432_v18  ;;  %v431_v26 = vld [vmem:[%s11407_s1 + $0xc00] sm:$0xff]  ;;  %v534_v18 = vld [vmem:[%s11407_s1 + $0xf38] sm:$0xff]  ;;  %v544_v19 = vld [vmem:[%s11407_s1 + $0xf88] sm:$0xff]  ;;  %v5423_v21 = vpack.c.bf16 %v523_v15, %v513_v13 }
 0x15b   :  { %5386 = vmatprep.subr.bf16.mxu1 %v5385_v30  ;;  %v443_v30 = vld [vmem:[%s11407_s1 + $0xc60] sm:$0xff]  ;;  %v5119_v35 = vpack.c.bf16 %v441_v27, %v431_v26  ;;  %v5425_v26 = vpack.c.bf16 %v544_v19, %v534_v18  ;;  %v632_v13 = vld [vmem:[%s11407_s1 + $0x1248] sm:$0xff]  ;;  %v634_v15 = vld [vmem:[%s11407_s1 + $0x1258] sm:$0xff] }
 0x15c   :  { %v543_v27 = vld [vmem:[%s11407_s1 + $0xf80] sm:$0xff] }
 0x15d   :  { %5100 = vmatpush1.bf16.msra.mxu0 %v5099_v36  ;;  %v5407_v36 = vpack.c.bf16 %v443_v30, %v433_v28  ;;  %v552_v28 = vld [vmem:[%s11407_s1 + $0xfc8] sm:$0xff]  ;;  %v554_v30 = vld [vmem:[%s11407_s1 + $0xfd8] sm:$0xff] }
 0x15e   :  { %5388 = vmatpush1.bf16.msra.mxu1 %v5387_v37  ;;  %5102 = vmatprep.subr.bf16.mxu0 %v5101_v38  ;;  %v5121_v37 = vpack.c.bf16 %v462_v32, %v452_v31  ;;  %v451_v38 = vld [vmem:[%s11407_s1 + $0xca0] sm:$0xff]  ;;  %v564_v31 = vld [vmem:[%s11407_s1 + $0x1028] sm:$0xff] }
 0x15f   :  { %5390 = vmatprep.subr.bf16.mxu1 %v5389_v42  ;;  %v463_v42 = vld [vmem:[%s11407_s1 + $0xd00] sm:$0xff]  ;;  %v5123_v48 = vpack.c.bf16 %v461_v39, %v451_v38  ;;  %v5429_v38 = vpack.c.bf16 %v564_v31, %v554_v30 }
 0x160   :  { %v563_v39 = vld [vmem:[%s11407_s1 + $0x1020] sm:$0xff] }
 0x161   :  { %5104 = vmatpush1.bf16.msra.mxu0 %v5103_v49  ;;  %v5411_v49 = vpack.c.bf16 %v463_v42, %v453_v40  ;;  %v572_v40 = vld [vmem:[%s11407_s1 + $0x1068] sm:$0xff]  ;;  %v574_v42 = vld [vmem:[%s11407_s1 + $0x1078] sm:$0xff] }
 0x162   :  { %5392 = vmatpush1.bf16.msra.mxu1 %v5391_v50  ;;  %5106 = vmatprep.subr.bf16.mxu0 %v5105_v51  ;;  %v5125_v50 = vpack.c.bf16 %v482_v45, %v472_v43  ;;  %v471_v51 = vld [vmem:[%s11407_s1 + $0xd40] sm:$0xff]  ;;  %v584_v43 = vld [vmem:[%s11407_s1 + $0x10c8] sm:$0xff] }
 0x163   :  { %5394 = vmatprep.subr.bf16.mxu1 %v5393_v55  ;;  %v483_v55 = vld [vmem:[%s11407_s1 + $0xda0] sm:$0xff]  ;;  %v5127_v60 = vpack.c.bf16 %v481_v52, %v471_v51  ;;  %v5433_v51 = vpack.c.bf16 %v584_v43, %v574_v42 }
 0x164   :  { %2316 = vmatmul.mubr.f32.vlgmr.msra.gmra.mrb[2].mxu0 %v6191_v7  ;;  %v583_v52 = vld [vmem:[%s11407_s1 + $0x10c0] sm:$0xff] }
 0x165   :  { %5108 = vmatpush1.bf16.msra.mxu0 %v5107_v61  ;;  %2671 = vmatmul.mubr.f32.vlgmr.msra.gmra.mrb[2].mxu1 %v6191_v7  ;;  %v5415_v61 = vpack.c.bf16 %v483_v55, %v473_v53  ;;  %v524_v7 = vld [vmem:[%s11407_s1 + $0xee8] sm:$0xff]  ;;  %v594_v55 = vld [vmem:[%s11407_s1 + $0x1118] sm:$0xff] }
 0x166   :  { %5396 = vmatpush1.bf16.msra.mxu1 %v5395_v62  ;;  %5110 = vmatprep.subr.bf16.mxu0 %v5109_v63  ;;  %v5129_v62 = vpack.c.bf16 %v502_v57, %v492_v56  ;;  %v491_v63 = vld [vmem:[%s11407_s1 + $0xde0] sm:$0xff]  ;;  %v5421_v14 = vpack.c.bf16 %v524_v7, %v514_v6  ;;  %v592_v53 = vld [vmem:[%s11407_s1 + $0x1108] sm:$0xff] }
 0x167   :  { %5398 = vmatprep.subr.bf16.mxu1 %v5397_v3  ;;  %2386 = vmatprep.mubr.f32.mxu0 %v6192_v20  ;;  %v503_v3 = vld [vmem:[%s11407_s1 + $0xe40] sm:$0xff]  ;;  %v5131_v8 = vpack.c.bf16 %v501_v0, %v491_v63  ;;  %v604_v56 = vld [vmem:[%s11407_s1 + $0x1168] sm:$0xff] }
 0x168   :  { %2741 = vmatprep.mubr.f32.mxu1 %v6192_v20  ;;  %v5419_v9 = vpack.c.bf16 %v503_v3, %v493_v1  ;;  %v5437_v63 = vpack.c.bf16 %v604_v56, %v594_v55  ;;  %v603_v0 = vld [vmem:[%s11407_s1 + $0x1160] sm:$0xff]  ;;  %v612_v1 = vld [vmem:[%s11407_s1 + $0x11a8] sm:$0xff]  ;;  %v614_v3 = vld [vmem:[%s11407_s1 + $0x11b8] sm:$0xff] }
 0x169   :  { %5112 = vmatpush1.bf16.msra.mxu0 %v5111_v10  ;;  %v5133_v10 = vpack.c.bf16 %v522_v5, %v512_v4  ;;  %v624_v4 = vld [vmem:[%s11407_s1 + $0x1208] sm:$0xff] }
 0x16a   :  { %5400 = vmatpush1.bf16.msra.mxu1 %v5399_v11  ;;  %5114 = vmatprep.subr.bf16.mxu0 %v5113_v12  ;;  %v511_v11 = vld [vmem:[%s11407_s1 + $0xe80] sm:$0xff]  ;;  %v521_v12 = vld [vmem:[%s11407_s1 + $0xed0] sm:$0xff] }
 0x16b   :  { %5402 = vmatprep.subr.bf16.mxu1 %v5401_v16  ;;  %v532_v16 = vld [vmem:[%s11407_s1 + $0xf28] sm:$0xff]  ;;  %v5135_v20 = vpack.c.bf16 %v521_v12, %v511_v11  ;;  %v5441_v11 = vpack.c.bf16 %v624_v4, %v614_v3  ;;  %v623_v12 = vld [vmem:[%s11407_s1 + $0x1200] sm:$0xff] }
 0x16c   :  { %v5137_v22 = vpack.c.bf16 %v542_v17, %v532_v16  ;;  %v644_v16 = vld [vmem:[%s11407_s1 + $0x12a8] sm:$0xff] }
 0x16d   :  { %5116 = vmatpush1.bf16.msra.mxu0 %v5115_v23  ;;  %v531_v23 = vld [vmem:[%s11407_s1 + $0xf20] sm:$0xff] }
 0x16e   :  { %5404 = vmatpush1.bf16.msra.mxu1 %v5403_v24  ;;  %5118 = vmatprep.subr.bf16.mxu0 %v5117_v25  ;;  %v541_v24 = vld [vmem:[%s11407_s1 + $0xf70] sm:$0xff] }
 0x16f   :  { %5406 = vmatprep.subr.bf16.mxu1 %v5405_v29  ;;  %v533_v25 = vld [vmem:[%s11407_s1 + $0xf30] sm:$0xff]  ;;  %v562_v29 = vld [vmem:[%s11407_s1 + $0x1018] sm:$0xff]  ;;  %v5139_v32 = vpack.c.bf16 %v541_v24, %v531_v23  ;;  %v5445_v23 = vpack.c.bf16 %v644_v16, %v634_v15  ;;  %v643_v24 = vld [vmem:[%s11407_s1 + $0x12a0] sm:$0xff] }
 0x170   :  { %v5427_v33 = vpack.c.bf16 %v543_v27, %v533_v25  ;;  %v5141_v34 = vpack.c.bf16 %v562_v29, %v552_v28  ;;  %v652_v25 = vld [vmem:[%s11407_s1 + $0x12e8] sm:$0xff]  ;;  %v654_v27 = vld [vmem:[%s11407_s1 + $0x12f8] sm:$0xff] }
 0x171   :  { %5120 = vmatpush1.bf16.msra.mxu0 %v5119_v35  ;;  %v551_v35 = vld [vmem:[%s11407_s1 + $0xfc0] sm:$0xff]  ;;  %v664_v28 = vld [vmem:[%s11407_s1 + $0x1348] sm:$0xff] }
 0x172   :  { %5408 = vmatpush1.bf16.msra.mxu1 %v5407_v36  ;;  %5122 = vmatprep.subr.bf16.mxu0 %v5121_v37  ;;  %v561_v36 = vld [vmem:[%s11407_s1 + $0x1010] sm:$0xff] }
 0x173   :  { %5410 = vmatprep.subr.bf16.mxu1 %v5409_v41  ;;  %v553_v37 = vld [vmem:[%s11407_s1 + $0xfd0] sm:$0xff]  ;;  %v582_v41 = vld [vmem:[%s11407_s1 + $0x10b8] sm:$0xff]  ;;  %v5143_v45 = vpack.c.bf16 %v561_v36, %v551_v35  ;;  %v5449_v35 = vpack.c.bf16 %v664_v28, %v654_v27  ;;  %v663_v36 = vld [vmem:[%s11407_s1 + $0x1340] sm:$0xff] }
 0x174   :  { %v5431_v46 = vpack.c.bf16 %v563_v39, %v553_v37  ;;  %v5145_v47 = vpack.c.bf16 %v582_v41, %v572_v40  ;;  %v672_v37 = vld [vmem:[%s11407_s1 + $0x1388] sm:$0xff]  ;;  %v674_v39 = vld [vmem:[%s11407_s1 + $0x1398] sm:$0xff] }
 0x175   :  { %5124 = vmatpush1.bf16.msra.mxu0 %v5123_v48  ;;  %v571_v48 = vld [vmem:[%s11407_s1 + $0x1060] sm:$0xff]  ;;  %v684_v40 = vld [vmem:[%s11407_s1 + $0x13e8] sm:$0xff] }
 0x176   :  { %5412 = vmatpush1.bf16.msra.mxu1 %v5411_v49  ;;  %5126 = vmatprep.subr.bf16.mxu0 %v5125_v50  ;;  %v581_v49 = vld [vmem:[%s11407_s1 + $0x10b0] sm:$0xff]  ;;  %v764_v27 = vld [vmem:[%s11407_s1 + $0x1668] sm:$0xff] }
 0x177   :  { %5414 = vmatprep.subr.bf16.mxu1 %v5413_v54  ;;  %v573_v50 = vld [vmem:[%s11407_s1 + $0x1070] sm:$0xff]  ;;  %v602_v54 = vld [vmem:[%s11407_s1 + $0x1158] sm:$0xff]  ;;  %v5147_v57 = vpack.c.bf16 %v581_v49, %v571_v48  ;;  %v5453_v48 = vpack.c.bf16 %v684_v40, %v674_v39  ;;  %v683_v49 = vld [vmem:[%s11407_s1 + $0x13e0] sm:$0xff] }
 0x178   :  { %v5435_v58 = vpack.c.bf16 %v583_v52, %v573_v50  ;;  %v5149_v59 = vpack.c.bf16 %v602_v54, %v592_v53  ;;  %v692_v50 = vld [vmem:[%s11407_s1 + $0x1428] sm:$0xff]  ;;  %v694_v52 = vld [vmem:[%s11407_s1 + $0x1438] sm:$0xff] }
 0x179   :  { %5128 = vmatpush1.bf16.msra.mxu0 %v5127_v60  ;;  %v591_v60 = vld [vmem:[%s11407_s1 + $0x1100] sm:$0xff]  ;;  %v704_v53 = vld [vmem:[%s11407_s1 + $0x1488] sm:$0xff] }
 0x17a   :  { %5416 = vmatpush1.bf16.msra.mxu1 %v5415_v61  ;;  %5130 = vmatprep.subr.bf16.mxu0 %v5129_v62  ;;  %v601_v61 = vld [vmem:[%s11407_s1 + $0x1150] sm:$0xff]  ;;  %v784_v39 = vld [vmem:[%s11407_s1 + $0x1708] sm:$0xff] }
 0x17b   :  { %5418 = vmatprep.subr.bf16.mxu1 %v5417_v2  ;;  %v593_v62 = vld [vmem:[%s11407_s1 + $0x1110] sm:$0xff]  ;;  %v622_v2 = vld [vmem:[%s11407_s1 + $0x11f8] sm:$0xff]  ;;  %v5151_v5 = vpack.c.bf16 %v601_v61, %v591_v60  ;;  %v5457_v60 = vpack.c.bf16 %v704_v53, %v694_v52  ;;  %v703_v61 = vld [vmem:[%s11407_s1 + $0x1480] sm:$0xff] }
 0x17c   :  { %v5439_v6 = vpack.c.bf16 %v603_v0, %v593_v62  ;;  %v5153_v7 = vpack.c.bf16 %v622_v2, %v612_v1  ;;  %v712_v62 = vld [vmem:[%s11407_s1 + $0x14c8] sm:$0xff]  ;;  %v714_v0 = vld [vmem:[%s11407_s1 + $0x14d8] sm:$0xff] }
 0x17d   :  { %5132 = vmatpush1.bf16.msra.mxu0 %v5131_v8  ;;  %v611_v8 = vld [vmem:[%s11407_s1 + $0x11a0] sm:$0xff]  ;;  %v724_v1 = vld [vmem:[%s11407_s1 + $0x1528] sm:$0xff] }
 0x17e   :  { %5420 = vmatpush1.bf16.msra.mxu1 %v5419_v9  ;;  %5134 = vmatprep.subr.bf16.mxu0 %v5133_v10  ;;  %v621_v9 = vld [vmem:[%s11407_s1 + $0x11f0] sm:$0xff]  ;;  %v804_v52 = vld [vmem:[%s11407_s1 + $0x17a8] sm:$0xff] }
 0x17f   :  { %5422 = vmatprep.subr.bf16.mxu1 %v5421_v14  ;;  %v613_v10 = vld [vmem:[%s11407_s1 + $0x11b0] sm:$0xff]  ;;  %v642_v14 = vld [vmem:[%s11407_s1 + $0x1298] sm:$0xff]  ;;  %v5155_v17 = vpack.c.bf16 %v621_v9, %v611_v8  ;;  %v5461_v8 = vpack.c.bf16 %v724_v1, %v714_v0  ;;  %v723_v9 = vld [vmem:[%s11407_s1 + $0x1520] sm:$0xff] }
 0x180   :  { %v5443_v18 = vpack.c.bf16 %v623_v12, %v613_v10  ;;  %v5157_v19 = vpack.c.bf16 %v642_v14, %v632_v13  ;;  %v732_v10 = vld [vmem:[%s11407_s1 + $0x1568] sm:$0xff]  ;;  %v6193_v12 = vld [vmem:[%s11408_s0 + $0x10] sm:$0xff]  ;;  %v734_v13 = vld [vmem:[%s11407_s1 + $0x1578] sm:$0xff] }
 0x181   :  { %5136 = vmatpush1.bf16.msra.mxu0 %v5135_v20  ;;  %v631_v20 = vld [vmem:[%s11407_s1 + $0x1240] sm:$0xff]  ;;  %v744_v14 = vld [vmem:[%s11407_s1 + $0x15c8] sm:$0xff] }
 0x182   :  { %5424 = vmatpush1.bf16.msra.mxu1 %v5423_v21  ;;  %5138 = vmatprep.subr.bf16.mxu0 %v5137_v22  ;;  %v641_v21 = vld [vmem:[%s11407_s1 + $0x1290] sm:$0xff]  ;;  %v824_v0 = vld [vmem:[%s11407_s1 + $0x1848] sm:$0xff] }
 0x183   :  { %5426 = vmatprep.subr.bf16.mxu1 %v5425_v26  ;;  %v633_v22 = vld [vmem:[%s11407_s1 + $0x1250] sm:$0xff]  ;;  %v662_v26 = vld [vmem:[%s11407_s1 + $0x1338] sm:$0xff]  ;;  %v5159_v29 = vpack.c.bf16 %v641_v21, %v631_v20  ;;  %v5465_v21 = vpack.c.bf16 %v744_v14, %v734_v13 }
 0x184   :  { %v5447_v30 = vpack.c.bf16 %v643_v24, %v633_v22  ;;  %v5161_v31 = vpack.c.bf16 %v662_v26, %v652_v25  ;;  %v733_v20 = vld [vmem:[%s11407_s1 + $0x1570] sm:$0xff]  ;;  %v743_v22 = vld [vmem:[%s11407_s1 + $0x15c0] sm:$0xff]  ;;  %v762_v24 = vld [vmem:[%s11407_s1 + $0x1658] sm:$0xff] }
 0x185   :  { %5140 = vmatpush1.bf16.msra.mxu0 %v5139_v32  ;;  %v651_v32 = vld [vmem:[%s11407_s1 + $0x12e0] sm:$0xff]  ;;  %v6194_v25 = vld [vmem:[%s11408_s0 + $0x28] sm:$0xff]  ;;  %v754_v26 = vld [vmem:[%s11407_s1 + $0x1618] sm:$0xff] }
 0x186   :  { %5428 = vmatpush1.bf16.msra.mxu1 %v5427_v33  ;;  %5142 = vmatprep.subr.bf16.mxu0 %v5141_v34  ;;  %v661_v33 = vld [vmem:[%s11407_s1 + $0x1330] sm:$0xff] }
 0x187   :  { %5430 = vmatprep.subr.bf16.mxu1 %v5429_v38  ;;  %v653_v34 = vld [vmem:[%s11407_s1 + $0x12f0] sm:$0xff]  ;;  %v682_v38 = vld [vmem:[%s11407_s1 + $0x13d8] sm:$0xff]  ;;  %v5163_v41 = vpack.c.bf16 %v661_v33, %v651_v32 }
 0x188   :  { %v5451_v42 = vpack.c.bf16 %v663_v36, %v653_v34  ;;  %v5165_v43 = vpack.c.bf16 %v682_v38, %v672_v37  ;;  %v761_v32 = vld [vmem:[%s11407_s1 + $0x1650] sm:$0xff]  ;;  %v5469_v34 = vpack.c.bf16 %v764_v27, %v754_v26  ;;  %v772_v36 = vld [vmem:[%s11407_s1 + $0x16a8] sm:$0xff]  ;;  %v782_v37 = vld [vmem:[%s11407_s1 + $0x16f8] sm:$0xff] }
 0x189   :  { %5144 = vmatpush1.bf16.msra.mxu0 %v5143_v45  ;;  %v671_v45 = vld [vmem:[%s11407_s1 + $0x1380] sm:$0xff]  ;;  %v753_v33 = vld [vmem:[%s11407_s1 + $0x1610] sm:$0xff]  ;;  %v774_v38 = vld [vmem:[%s11407_s1 + $0x16b8] sm:$0xff] }
 0x18a   :  { %5432 = vmatpush1.bf16.msra.mxu1 %v5431_v46  ;;  %5146 = vmatprep.subr.bf16.mxu0 %v5145_v47  ;;  %v681_v46 = vld [vmem:[%s11407_s1 + $0x13d0] sm:$0xff] }
 0x18b   :  { %5434 = vmatprep.subr.bf16.mxu1 %v5433_v51  ;;  %v673_v47 = vld [vmem:[%s11407_s1 + $0x1390] sm:$0xff]  ;;  %v702_v51 = vld [vmem:[%s11407_s1 + $0x1478] sm:$0xff]  ;;  %v5167_v54 = vpack.c.bf16 %v681_v46, %v671_v45 }
 0x18c   :  { %v5455_v55 = vpack.c.bf16 %v683_v49, %v673_v47  ;;  %v5169_v56 = vpack.c.bf16 %v702_v51, %v692_v50  ;;  %v781_v45 = vld [vmem:[%s11407_s1 + $0x16f0] sm:$0xff]  ;;  %v5473_v47 = vpack.c.bf16 %v784_v39, %v774_v38  ;;  %v792_v49 = vld [vmem:[%s11407_s1 + $0x1748] sm:$0xff]  ;;  %v802_v50 = vld [vmem:[%s11407_s1 + $0x1798] sm:$0xff] }
 0x18d   :  { %5148 = vmatpush1.bf16.msra.mxu0 %v5147_v57  ;;  %v691_v57 = vld [vmem:[%s11407_s1 + $0x1420] sm:$0xff]  ;;  %v773_v46 = vld [vmem:[%s11407_s1 + $0x16b0] sm:$0xff]  ;;  %v794_v51 = vld [vmem:[%s11407_s1 + $0x1758] sm:$0xff] }
 0x18e   :  { %5436 = vmatpush1.bf16.msra.mxu1 %v5435_v58  ;;  %5150 = vmatprep.subr.bf16.mxu0 %v5149_v59  ;;  %v701_v58 = vld [vmem:[%s11407_s1 + $0x1470] sm:$0xff] }
 0x18f   :  { %5438 = vmatprep.subr.bf16.mxu1 %v5437_v63  ;;  %v693_v59 = vld [vmem:[%s11407_s1 + $0x1430] sm:$0xff]  ;;  %v722_v63 = vld [vmem:[%s11407_s1 + $0x1518] sm:$0xff]  ;;  %v5171_v2 = vpack.c.bf16 %v701_v58, %v691_v57 }
 0x190   :  { %v5459_v3 = vpack.c.bf16 %v703_v61, %v693_v59  ;;  %v5173_v4 = vpack.c.bf16 %v722_v63, %v712_v62  ;;  %v801_v57 = vld [vmem:[%s11407_s1 + $0x1790] sm:$0xff]  ;;  %v5477_v59 = vpack.c.bf16 %v804_v52, %v794_v51  ;;  %v812_v61 = vld [vmem:[%s11407_s1 + $0x17e8] sm:$0xff]  ;;  %v822_v62 = vld [vmem:[%s11407_s1 + $0x1838] sm:$0xff] }
 0x191   :  { %5152 = vmatpush1.bf16.msra.mxu0 %v5151_v5  ;;  %v711_v5 = vld [vmem:[%s11407_s1 + $0x14c0] sm:$0xff]  ;;  %v793_v58 = vld [vmem:[%s11407_s1 + $0x1750] sm:$0xff]  ;;  %v814_v63 = vld [vmem:[%s11407_s1 + $0x17f8] sm:$0xff] }
 0x192   :  { %5440 = vmatpush1.bf16.msra.mxu1 %v5439_v6  ;;  %5154 = vmatprep.subr.bf16.mxu0 %v5153_v7  ;;  %v721_v6 = vld [vmem:[%s11407_s1 + $0x1510] sm:$0xff] }
 0x193   :  { %5442 = vmatprep.subr.bf16.mxu1 %v5441_v11  ;;  %v713_v7 = vld [vmem:[%s11407_s1 + $0x14d0] sm:$0xff]  ;;  %v742_v11 = vld [vmem:[%s11407_s1 + $0x15b8] sm:$0xff]  ;;  %v5175_v15 = vpack.c.bf16 %v721_v6, %v711_v5 }
 0x194   :  { %v5463_v16 = vpack.c.bf16 %v723_v9, %v713_v7  ;;  %v821_v5 = vld [vmem:[%s11407_s1 + $0x1830] sm:$0xff]  ;;  %v5481_v7 = vpack.c.bf16 %v824_v0, %v814_v63  ;;  %v832_v9 = vld [vmem:[%s11407_s1 + $0x1888] sm:$0xff] }
 0x195   :  { %5156 = vmatpush1.bf16.msra.mxu0 %v5155_v17  ;;  %v5177_v17 = vpack.c.bf16 %v742_v11, %v732_v10  ;;  %v813_v6 = vld [vmem:[%s11407_s1 + $0x17f0] sm:$0xff]  ;;  %v842_v10 = vld [vmem:[%s11407_s1 + $0x18d8] sm:$0xff] }
 0x196   :  { %5444 = vmatpush1.bf16.msra.mxu1 %v5443_v18  ;;  %5158 = vmatprep.subr.bf16.mxu0 %v5157_v19  ;;  %v731_v18 = vld [vmem:[%s11407_s1 + $0x1560] sm:$0xff]  ;;  %v741_v19 = vld [vmem:[%s11407_s1 + $0x15b0] sm:$0xff]  ;;  %v834_v11 = vld [vmem:[%s11407_s1 + $0x1898] sm:$0xff] }
 0x197   :  { %5446 = vmatprep.subr.bf16.mxu1 %v5445_v23  ;;  %v752_v23 = vld [vmem:[%s11407_s1 + $0x1608] sm:$0xff]  ;;  %v5179_v28 = vpack.c.bf16 %v741_v19, %v731_v18  ;;  %v833_v18 = vld [vmem:[%s11407_s1 + $0x1890] sm:$0xff] }
 0x199   :  { %5160 = vmatpush1.bf16.msra.mxu0 %v5159_v29  ;;  %v5467_v29 = vpack.c.bf16 %v743_v22, %v733_v20  ;;  %v843_v20 = vld [vmem:[%s11407_s1 + $0x18e0] sm:$0xff]  ;;  %v862_v22 = vld [vmem:[%s11407_s1 + $0x1978] sm:$0xff] }
 0x19a   :  { %5448 = vmatpush1.bf16.msra.mxu1 %v5447_v30  ;;  %5162 = vmatprep.subr.bf16.mxu0 %v5161_v31  ;;  %v5181_v30 = vpack.c.bf16 %v762_v24, %v752_v23  ;;  %v751_v31 = vld [vmem:[%s11407_s1 + $0x1600] sm:$0xff]  ;;  %v854_v23 = vld [vmem:[%s11407_s1 + $0x1938] sm:$0xff]  ;;  %v864_v24 = vld [vmem:[%s11407_s1 + $0x1988] sm:$0xff]  ;;  %v5487_v26 = vpack.c.bf16 %v843_v20, %v833_v18 }
 0x19b   :  { %5450 = vmatprep.subr.bf16.mxu1 %v5449_v35  ;;  %v763_v35 = vld [vmem:[%s11407_s1 + $0x1660] sm:$0xff]  ;;  %v5183_v40 = vpack.c.bf16 %v761_v32, %v751_v31  ;;  %v5489_v31 = vpack.c.bf16 %v864_v24, %v854_v23  ;;  %v952_v18 = vld [vmem:[%s11407_s1 + $0x1c48] sm:$0xff]  ;;  %v954_v20 = vld [vmem:[%s11407_s1 + $0x1c58] sm:$0xff] }
 0x19c   :  { %v863_v32 = vld [vmem:[%s11407_s1 + $0x1980] sm:$0xff] }
 0x19d   :  { %5164 = vmatpush1.bf16.msra.mxu0 %v5163_v41  ;;  %v5471_v41 = vpack.c.bf16 %v763_v35, %v753_v33  ;;  %v872_v33 = vld [vmem:[%s11407_s1 + $0x19c8] sm:$0xff]  ;;  %v874_v35 = vld [vmem:[%s11407_s1 + $0x19d8] sm:$0xff] }
 0x19e   :  { %5452 = vmatpush1.bf16.msra.mxu1 %v5451_v42  ;;  %5166 = vmatprep.subr.bf16.mxu0 %v5165_v43  ;;  %v5185_v42 = vpack.c.bf16 %v782_v37, %v772_v36  ;;  %v771_v43 = vld [vmem:[%s11407_s1 + $0x16a0] sm:$0xff]  ;;  %v884_v36 = vld [vmem:[%s11407_s1 + $0x1a28] sm:$0xff] }
 0x19f   :  { %5454 = vmatprep.subr.bf16.mxu1 %v5453_v48  ;;  %v783_v48 = vld [vmem:[%s11407_s1 + $0x1700] sm:$0xff]  ;;  %v5187_v53 = vpack.c.bf16 %v781_v45, %v771_v43  ;;  %v5493_v43 = vpack.c.bf16 %v884_v36, %v874_v35 }
 0x1a0   :  { %v883_v45 = vld [vmem:[%s11407_s1 + $0x1a20] sm:$0xff] }
 0x1a1   :  { %5168 = vmatpush1.bf16.msra.mxu0 %v5167_v54  ;;  %v5475_v54 = vpack.c.bf16 %v783_v48, %v773_v46  ;;  %v892_v46 = vld [vmem:[%s11407_s1 + $0x1a68] sm:$0xff]  ;;  %v894_v48 = vld [vmem:[%s11407_s1 + $0x1a78] sm:$0xff] }
 0x1a2   :  { %5456 = vmatpush1.bf16.msra.mxu1 %v5455_v55  ;;  %5170 = vmatprep.subr.bf16.mxu0 %v5169_v56  ;;  %v5189_v55 = vpack.c.bf16 %v802_v50, %v792_v49  ;;  %v791_v56 = vld [vmem:[%s11407_s1 + $0x1740] sm:$0xff]  ;;  %v904_v49 = vld [vmem:[%s11407_s1 + $0x1ac8] sm:$0xff] }
 0x1a3   :  { %5458 = vmatprep.subr.bf16.mxu1 %v5457_v60  ;;  %v803_v60 = vld [vmem:[%s11407_s1 + $0x17a0] sm:$0xff]  ;;  %v5191_v1 = vpack.c.bf16 %v801_v57, %v791_v56  ;;  %v5497_v56 = vpack.c.bf16 %v904_v49, %v894_v48 }
 0x1a4   :  { %2387 = vmatmul.mubr.f32.vlgmr.msra.gmra.mrb[2].mxu0 %v6193_v12  ;;  %v903_v57 = vld [vmem:[%s11407_s1 + $0x1ac0] sm:$0xff] }
 0x1a5   :  { %5172 = vmatpush1.bf16.msra.mxu0 %v5171_v2  ;;  %2742 = vmatmul.mubr.f32.vlgmr.msra.gmra.mrb[2].mxu1 %v6193_v12  ;;  %v5479_v2 = vpack.c.bf16 %v803_v60, %v793_v58  ;;  %v844_v12 = vld [vmem:[%s11407_s1 + $0x18e8] sm:$0xff]  ;;  %v914_v60 = vld [vmem:[%s11407_s1 + $0x1b18] sm:$0xff] }
 0x1a6   :  { %5460 = vmatpush1.bf16.msra.mxu1 %v5459_v3  ;;  %5174 = vmatprep.subr.bf16.mxu0 %v5173_v4  ;;  %v5193_v3 = vpack.c.bf16 %v822_v62, %v812_v61  ;;  %v811_v4 = vld [vmem:[%s11407_s1 + $0x17e0] sm:$0xff]  ;;  %v5485_v19 = vpack.c.bf16 %v844_v12, %v834_v11  ;;  %v912_v58 = vld [vmem:[%s11407_s1 + $0x1b08] sm:$0xff] }
 0x1a7   :  { %5462 = vmatprep.subr.bf16.mxu1 %v5461_v8  ;;  %2457 = vmatprep.mubr.f32.mxu0 %v6194_v25  ;;  %v823_v8 = vld [vmem:[%s11407_s1 + $0x1840] sm:$0xff]  ;;  %v5195_v13 = vpack.c.bf16 %v821_v5, %v811_v4  ;;  %v924_v61 = vld [vmem:[%s11407_s1 + $0x1b68] sm:$0xff] }
 0x1a8   :  { %2812 = vmatprep.mubr.f32.mxu1 %v6194_v25  ;;  %v5483_v14 = vpack.c.bf16 %v823_v8, %v813_v6  ;;  %v5501_v4 = vpack.c.bf16 %v924_v61, %v914_v60  ;;  %v923_v5 = vld [vmem:[%s11407_s1 + $0x1b60] sm:$0xff]  ;;  %v932_v6 = vld [vmem:[%s11407_s1 + $0x1ba8] sm:$0xff]  ;;  %v934_v8 = vld [vmem:[%s11407_s1 + $0x1bb8] sm:$0xff] }
 0x1a9   :  { %5176 = vmatpush1.bf16.msra.mxu0 %v5175_v15  ;;  %v5197_v15 = vpack.c.bf16 %v842_v10, %v832_v9  ;;  %v944_v9 = vld [vmem:[%s11407_s1 + $0x1c08] sm:$0xff] }
 0x1aa   :  { %5464 = vmatpush1.bf16.msra.mxu1 %v5463_v16  ;;  %5178 = vmatprep.subr.bf16.mxu0 %v5177_v17  ;;  %v831_v16 = vld [vmem:[%s11407_s1 + $0x1880] sm:$0xff]  ;;  %v841_v17 = vld [vmem:[%s11407_s1 + $0x18d0] sm:$0xff] }
 0x1ab   :  { %5466 = vmatprep.subr.bf16.mxu1 %v5465_v21  ;;  %v852_v21 = vld [vmem:[%s11407_s1 + $0x1928] sm:$0xff]  ;;  %v5199_v25 = vpack.c.bf16 %v841_v17, %v831_v16  ;;  %v5505_v16 = vpack.c.bf16 %v944_v9, %v934_v8  ;;  %v943_v17 = vld [vmem:[%s11407_s1 + $0x1c00] sm:$0xff] }
 0x1ac   :  { %v5201_v27 = vpack.c.bf16 %v862_v22, %v852_v21  ;;  %v964_v21 = vld [vmem:[%s11407_s1 + $0x1ca8] sm:$0xff] }
 0x1ad   :  { %5180 = vmatpush1.bf16.msra.mxu0 %v5179_v28  ;;  %v851_v28 = vld [vmem:[%s11407_s1 + $0x1920] sm:$0xff] }
 0x1ae   :  { %5468 = vmatpush1.bf16.msra.mxu1 %v5467_v29  ;;  %5182 = vmatprep.subr.bf16.mxu0 %v5181_v30  ;;  %v861_v29 = vld [vmem:[%s11407_s1 + $0x1970] sm:$0xff] }
 0x1af   :  { %5470 = vmatprep.subr.bf16.mxu1 %v5469_v34  ;;  %v853_v30 = vld [vmem:[%s11407_s1 + $0x1930] sm:$0xff]  ;;  %v882_v34 = vld [vmem:[%s11407_s1 + $0x1a18] sm:$0xff]  ;;  %v5203_v37 = vpack.c.bf16 %v861_v29, %v851_v28  ;;  %v5509_v28 = vpack.c.bf16 %v964_v21, %v954_v20  ;;  %v963_v29 = vld [vmem:[%s11407_s1 + $0x1ca0] sm:$0xff] }
 0x1b0   :  { %v5491_v38 = vpack.c.bf16 %v863_v32, %v853_v30  ;;  %v5205_v39 = vpack.c.bf16 %v882_v34, %v872_v33  ;;  %v972_v30 = vld [vmem:[%s11407_s1 + $0x1ce8] sm:$0xff]  ;;  %v974_v32 = vld [vmem:[%s11407_s1 + $0x1cf8] sm:$0xff] }
 0x1b1   :  { %5184 = vmatpush1.bf16.msra.mxu0 %v5183_v40  ;;  %v871_v40 = vld [vmem:[%s11407_s1 + $0x19c0] sm:$0xff]  ;;  %v984_v33 = vld [vmem:[%s11407_s1 + $0x1d48] sm:$0xff] }
 0x1b2   :  { %5472 = vmatpush1.bf16.msra.mxu1 %v5471_v41  ;;  %5186 = vmatprep.subr.bf16.mxu0 %v5185_v42  ;;  %v881_v41 = vld [vmem:[%s11407_s1 + $0x1a10] sm:$0xff] }
 0x1b3   :  { %5474 = vmatprep.subr.bf16.mxu1 %v5473_v47  ;;  %v873_v42 = vld [vmem:[%s11407_s1 + $0x19d0] sm:$0xff]  ;;  %v902_v47 = vld [vmem:[%s11407_s1 + $0x1ab8] sm:$0xff]  ;;  %v5207_v50 = vpack.c.bf16 %v881_v41, %v871_v40  ;;  %v5513_v40 = vpack.c.bf16 %v984_v33, %v974_v32  ;;  %v983_v41 = vld [vmem:[%s11407_s1 + $0x1d40] sm:$0xff] }
 0x1b4   :  { %v5495_v51 = vpack.c.bf16 %v883_v45, %v873_v42  ;;  %v5209_v52 = vpack.c.bf16 %v902_v47, %v892_v46  ;;  %v992_v42 = vld [vmem:[%s11407_s1 + $0x1d88] sm:$0xff]  ;;  %v994_v45 = vld [vmem:[%s11407_s1 + $0x1d98] sm:$0xff] }
 0x1b5   :  { %5188 = vmatpush1.bf16.msra.mxu0 %v5187_v53  ;;  %v891_v53 = vld [vmem:[%s11407_s1 + $0x1a60] sm:$0xff]  ;;  %v1004_v46 = vld [vmem:[%s11407_s1 + $0x1de8] sm:$0xff] }
 0x1b6   :  { %5476 = vmatpush1.bf16.msra.mxu1 %v5475_v54  ;;  %5190 = vmatprep.subr.bf16.mxu0 %v5189_v55  ;;  %v901_v54 = vld [vmem:[%s11407_s1 + $0x1ab0] sm:$0xff]  ;;  %v1084_v32 = vld [vmem:[%s11407_s1 + $0x2068] sm:$0xff] }
 0x1b7   :  { %5478 = vmatprep.subr.bf16.mxu1 %v5477_v59  ;;  %v893_v55 = vld [vmem:[%s11407_s1 + $0x1a70] sm:$0xff]  ;;  %v922_v59 = vld [vmem:[%s11407_s1 + $0x1b58] sm:$0xff]  ;;  %v5211_v62 = vpack.c.bf16 %v901_v54, %v891_v53  ;;  %v5517_v53 = vpack.c.bf16 %v1004_v46, %v994_v45  ;;  %v1003_v54 = vld [vmem:[%s11407_s1 + $0x1de0] sm:$0xff] }
 0x1b8   :  { %v5499_v63 = vpack.c.bf16 %v903_v57, %v893_v55  ;;  %v5213_v0 = vpack.c.bf16 %v922_v59, %v912_v58  ;;  %v1012_v55 = vld [vmem:[%s11407_s1 + $0x1e28] sm:$0xff]  ;;  %v1014_v57 = vld [vmem:[%s11407_s1 + $0x1e38] sm:$0xff] }
 0x1b9   :  { %5192 = vmatpush1.bf16.msra.mxu0 %v5191_v1  ;;  %v911_v1 = vld [vmem:[%s11407_s1 + $0x1b00] sm:$0xff]  ;;  %v1024_v58 = vld [vmem:[%s11407_s1 + $0x1e88] sm:$0xff] }
 0x1ba   :  { %5480 = vmatpush1.bf16.msra.mxu1 %v5479_v2  ;;  %5194 = vmatprep.subr.bf16.mxu0 %v5193_v3  ;;  %v921_v2 = vld [vmem:[%s11407_s1 + $0x1b50] sm:$0xff]  ;;  %v1104_v45 = vld [vmem:[%s11407_s1 + $0x2108] sm:$0xff] }
 0x1bb   :  { %5482 = vmatprep.subr.bf16.mxu1 %v5481_v7  ;;  %v913_v3 = vld [vmem:[%s11407_s1 + $0x1b10] sm:$0xff]  ;;  %v942_v7 = vld [vmem:[%s11407_s1 + $0x1bf8] sm:$0xff]  ;;  %v5215_v10 = vpack.c.bf16 %v921_v2, %v911_v1  ;;  %v5521_v1 = vpack.c.bf16 %v1024_v58, %v1014_v57  ;;  %v1023_v2 = vld [vmem:[%s11407_s1 + $0x1e80] sm:$0xff] }
 0x1bc   :  { %v5503_v11 = vpack.c.bf16 %v923_v5, %v913_v3  ;;  %v5217_v12 = vpack.c.bf16 %v942_v7, %v932_v6  ;;  %v1032_v3 = vld [vmem:[%s11407_s1 + $0x1ec8] sm:$0xff]  ;;  %v1034_v5 = vld [vmem:[%s11407_s1 + $0x1ed8] sm:$0xff] }
 0x1bd   :  { %5196 = vmatpush1.bf16.msra.mxu0 %v5195_v13  ;;  %v931_v13 = vld [vmem:[%s11407_s1 + $0x1ba0] sm:$0xff]  ;;  %v1044_v6 = vld [vmem:[%s11407_s1 + $0x1f28] sm:$0xff] }
 0x1be   :  { %5484 = vmatpush1.bf16.msra.mxu1 %v5483_v14  ;;  %5198 = vmatprep.subr.bf16.mxu0 %v5197_v15  ;;  %v941_v14 = vld [vmem:[%s11407_s1 + $0x1bf0] sm:$0xff]  ;;  %v1124_v57 = vld [vmem:[%s11407_s1 + $0x21a8] sm:$0xff] }
 0x1bf   :  { %5486 = vmatprep.subr.bf16.mxu1 %v5485_v19  ;;  %v933_v15 = vld [vmem:[%s11407_s1 + $0x1bb0] sm:$0xff]  ;;  %v962_v19 = vld [vmem:[%s11407_s1 + $0x1c98] sm:$0xff]  ;;  %v5219_v22 = vpack.c.bf16 %v941_v14, %v931_v13  ;;  %v5525_v13 = vpack.c.bf16 %v1044_v6, %v1034_v5  ;;  %v1043_v14 = vld [vmem:[%s11407_s1 + $0x1f20] sm:$0xff] }
 0x1c0   :  { %v5507_v23 = vpack.c.bf16 %v943_v17, %v933_v15  ;;  %v5221_v24 = vpack.c.bf16 %v962_v19, %v952_v18  ;;  %v1052_v15 = vld [vmem:[%s11407_s1 + $0x1f68] sm:$0xff]  ;;  %v6195_v17 = vld [vmem:[%s11408_s0 + $0x20] sm:$0xff]  ;;  %v1054_v18 = vld [vmem:[%s11407_s1 + $0x1f78] sm:$0xff] }
 0x1c1   :  { %5200 = vmatpush1.bf16.msra.mxu0 %v5199_v25  ;;  %v951_v25 = vld [vmem:[%s11407_s1 + $0x1c40] sm:$0xff]  ;;  %v1064_v19 = vld [vmem:[%s11407_s1 + $0x1fc8] sm:$0xff] }
 0x1c2   :  { %5488 = vmatpush1.bf16.msra.mxu1 %v5487_v26  ;;  %5202 = vmatprep.subr.bf16.mxu0 %v5201_v27  ;;  %v961_v26 = vld [vmem:[%s11407_s1 + $0x1c90] sm:$0xff]  ;;  %v1144_v5 = vld [vmem:[%s11407_s1 + $0x2248] sm:$0xff] }
 0x1c3   :  { %5490 = vmatprep.subr.bf16.mxu1 %v5489_v31  ;;  %v953_v27 = vld [vmem:[%s11407_s1 + $0x1c50] sm:$0xff]  ;;  %v982_v31 = vld [vmem:[%s11407_s1 + $0x1d38] sm:$0xff]  ;;  %v5223_v34 = vpack.c.bf16 %v961_v26, %v951_v25  ;;  %v5529_v26 = vpack.c.bf16 %v1064_v19, %v1054_v18  ;;  %v1164_v19 = vld [vmem:[%s11407_s1 + $0x22e8] sm:$0xff] }
 0x1c4   :  { %v5511_v35 = vpack.c.bf16 %v963_v29, %v953_v27  ;;  %v5225_v36 = vpack.c.bf16 %v982_v31, %v972_v30  ;;  %v1053_v25 = vld [vmem:[%s11407_s1 + $0x1f70] sm:$0xff]  ;;  %v1063_v27 = vld [vmem:[%s11407_s1 + $0x1fc0] sm:$0xff]  ;;  %v1082_v29 = vld [vmem:[%s11407_s1 + $0x2058] sm:$0xff] }
 0x1c5   :  { %5204 = vmatpush1.bf16.msra.mxu0 %v5203_v37  ;;  %v971_v37 = vld [vmem:[%s11407_s1 + $0x1ce0] sm:$0xff]  ;;  %v6196_v30 = vld [vmem:[%s11408_s0 + $0x38] sm:$0xff] }
 0x1c6   :  { %5492 = vmatpush1.bf16.msra.mxu1 %v5491_v38  ;;  %5206 = vmatprep.subr.bf16.mxu0 %v5205_v39  ;;  %v981_v38 = vld [vmem:[%s11407_s1 + $0x1d30] sm:$0xff]  ;;  %v1074_v31 = vld [vmem:[%s11407_s1 + $0x2018] sm:$0xff] }
 0x1c7   :  { %5494 = vmatprep.subr.bf16.mxu1 %v5493_v43  ;;  %v973_v39 = vld [vmem:[%s11407_s1 + $0x1cf0] sm:$0xff]  ;;  %v1002_v43 = vld [vmem:[%s11407_s1 + $0x1dd8] sm:$0xff]  ;;  %v5227_v47 = vpack.c.bf16 %v981_v38, %v971_v37 }
 0x1c8   :  { %v5515_v48 = vpack.c.bf16 %v983_v41, %v973_v39  ;;  %v5229_v49 = vpack.c.bf16 %v1002_v43, %v992_v42  ;;  %v1081_v37 = vld [vmem:[%s11407_s1 + $0x2050] sm:$0xff]  ;;  %v5533_v39 = vpack.c.bf16 %v1084_v32, %v1074_v31  ;;  %v1092_v41 = vld [vmem:[%s11407_s1 + $0x20a8] sm:$0xff]  ;;  %v1102_v42 = vld [vmem:[%s11407_s1 + $0x20f8] sm:$0xff] }
 0x1c9   :  { %5208 = vmatpush1.bf16.msra.mxu0 %v5207_v50  ;;  %v991_v50 = vld [vmem:[%s11407_s1 + $0x1d80] sm:$0xff]  ;;  %v1073_v38 = vld [vmem:[%s11407_s1 + $0x2010] sm:$0xff]  ;;  %v1094_v43 = vld [vmem:[%s11407_s1 + $0x20b8] sm:$0xff] }
 0x1ca   :  { %5496 = vmatpush1.bf16.msra.mxu1 %v5495_v51  ;;  %5210 = vmatprep.subr.bf16.mxu0 %v5209_v52  ;;  %v1001_v51 = vld [vmem:[%s11407_s1 + $0x1dd0] sm:$0xff]  ;;  %v1154_v18 = vld [vmem:[%s11407_s1 + $0x2298] sm:$0xff] }
 0x1cb   :  { %5498 = vmatprep.subr.bf16.mxu1 %v5497_v56  ;;  %v993_v52 = vld [vmem:[%s11407_s1 + $0x1d90] sm:$0xff]  ;;  %v1022_v56 = vld [vmem:[%s11407_s1 + $0x1e78] sm:$0xff]  ;;  %v5231_v59 = vpack.c.bf16 %v1001_v51, %v991_v50 }
 0x1cc   :  { %v5519_v60 = vpack.c.bf16 %v1003_v54, %v993_v52  ;;  %v5233_v61 = vpack.c.bf16 %v1022_v56, %v1012_v55  ;;  %v1101_v50 = vld [vmem:[%s11407_s1 + $0x20f0] sm:$0xff]  ;;  %v5537_v52 = vpack.c.bf16 %v1104_v45, %v1094_v43  ;;  %v1112_v54 = vld [vmem:[%s11407_s1 + $0x2148] sm:$0xff]  ;;  %v1122_v55 = vld [vmem:[%s11407_s1 + $0x2198] sm:$0xff] }
 0x1cd   :  { %5212 = vmatpush1.bf16.msra.mxu0 %v5211_v62  ;;  %v1011_v62 = vld [vmem:[%s11407_s1 + $0x1e20] sm:$0xff]  ;;  %v1093_v51 = vld [vmem:[%s11407_s1 + $0x20b0] sm:$0xff]  ;;  %v1114_v56 = vld [vmem:[%s11407_s1 + $0x2158] sm:$0xff] }
 0x1ce   :  { %5500 = vmatpush1.bf16.msra.mxu1 %v5499_v63  ;;  %5214 = vmatprep.subr.bf16.mxu0 %v5213_v0  ;;  %v1021_v63 = vld [vmem:[%s11407_s1 + $0x1e70] sm:$0xff]  ;;  %v1182_v31 = vld [vmem:[%s11407_s1 + $0x2378] sm:$0xff] }
 0x1cf   :  { %5502 = vmatprep.subr.bf16.mxu1 %v5501_v4  ;;  %v1013_v0 = vld [vmem:[%s11407_s1 + $0x1e30] sm:$0xff]  ;;  %v1042_v4 = vld [vmem:[%s11407_s1 + $0x1f18] sm:$0xff]  ;;  %v5235_v7 = vpack.c.bf16 %v1021_v63, %v1011_v62 }
 0x1d0   :  { %v5523_v8 = vpack.c.bf16 %v1023_v2, %v1013_v0  ;;  %v5237_v9 = vpack.c.bf16 %v1042_v4, %v1032_v3  ;;  %v1121_v62 = vld [vmem:[%s11407_s1 + $0x2190] sm:$0xff]  ;;  %v5541_v0 = vpack.c.bf16 %v1124_v57, %v1114_v56  ;;  %v1132_v2 = vld [vmem:[%s11407_s1 + $0x21e8] sm:$0xff]  ;;  %v1142_v3 = vld [vmem:[%s11407_s1 + $0x2238] sm:$0xff] }
 0x1d1   :  { %5216 = vmatpush1.bf16.msra.mxu0 %v5215_v10  ;;  %v1031_v10 = vld [vmem:[%s11407_s1 + $0x1ec0] sm:$0xff]  ;;  %v1113_v63 = vld [vmem:[%s11407_s1 + $0x2150] sm:$0xff]  ;;  %v1134_v4 = vld [vmem:[%s11407_s1 + $0x21f8] sm:$0xff] }
 0x1d2   :  { %5504 = vmatpush1.bf16.msra.mxu1 %v5503_v11  ;;  %5218 = vmatprep.subr.bf16.mxu0 %v5217_v12  ;;  %v1041_v11 = vld [vmem:[%s11407_s1 + $0x1f10] sm:$0xff]  ;;  %v1174_v32 = vld [vmem:[%s11407_s1 + $0x2338] sm:$0xff] }
 0x1d3   :  { %5506 = vmatprep.subr.bf16.mxu1 %v5505_v16  ;;  %v1033_v12 = vld [vmem:[%s11407_s1 + $0x1ed0] sm:$0xff]  ;;  %v1062_v16 = vld [vmem:[%s11407_s1 + $0x1fb8] sm:$0xff]  ;;  %v5239_v20 = vpack.c.bf16 %v1041_v11, %v1031_v10 }
 0x1d4   :  { %v5527_v21 = vpack.c.bf16 %v1043_v14, %v1033_v12  ;;  %v1141_v10 = vld [vmem:[%s11407_s1 + $0x2230] sm:$0xff]  ;;  %v1143_v14 = vld [vmem:[%s11407_s1 + $0x2240] sm:$0xff]  ;;  %v1202_v43 = vld [vmem:[%s11407_s1 + $0x2418] sm:$0xff] }
 0x1d5   :  { %5220 = vmatpush1.bf16.msra.mxu0 %v5219_v22  ;;  %v5241_v22 = vpack.c.bf16 %v1062_v16, %v1052_v15  ;;  %v1133_v11 = vld [vmem:[%s11407_s1 + $0x21f0] sm:$0xff]  ;;  %v1152_v15 = vld [vmem:[%s11407_s1 + $0x2288] sm:$0xff]  ;;  %v1162_v16 = vld [vmem:[%s11407_s1 + $0x22d8] sm:$0xff] }
 0x1d6   :  { %5508 = vmatpush1.bf16.msra.mxu1 %v5507_v23  ;;  %5222 = vmatprep.subr.bf16.mxu0 %v5221_v24  ;;  %v1051_v23 = vld [vmem:[%s11407_s1 + $0x1f60] sm:$0xff]  ;;  %v1061_v24 = vld [vmem:[%s11407_s1 + $0x1fb0] sm:$0xff]  ;;  %v1194_v45 = vld [vmem:[%s11407_s1 + $0x23d8] sm:$0xff] }
 0x1d7   :  { %5510 = vmatprep.subr.bf16.mxu1 %v5509_v28  ;;  %v1072_v28 = vld [vmem:[%s11407_s1 + $0x2008] sm:$0xff]  ;;  %v5243_v33 = vpack.c.bf16 %v1061_v24, %v1051_v23  ;;  %v5547_v23 = vpack.c.bf16 %v1143_v14, %v1133_v11  ;;  %v5261_v24 = vpack.c.bf16 %v1162_v16, %v1152_v15  ;;  %v1222_v56 = vld [vmem:[%s11407_s1 + $0x24b8] sm:$0xff]  ;;  %v1241_v11 = vld [vmem:[%s11407_s1 + $0x2550] sm:$0xff] }
 0x1d8   :  { %v1214_v57 = vld [vmem:[%s11407_s1 + $0x2478] sm:$0xff]  ;;  %v1243_v15 = vld [vmem:[%s11407_s1 + $0x2560] sm:$0xff]  ;;  %v1252_v16 = vld [vmem:[%s11407_s1 + $0x25a8] sm:$0xff] }
 0x1d9   :  { %5224 = vmatpush1.bf16.msra.mxu0 %v5223_v34  ;;  %v5531_v34 = vpack.c.bf16 %v1063_v27, %v1053_v25  ;;  %v1151_v25 = vld [vmem:[%s11407_s1 + $0x2280] sm:$0xff]  ;;  %v1153_v27 = vld [vmem:[%s11407_s1 + $0x2290] sm:$0xff] }
 0x1da   :  { %5512 = vmatpush1.bf16.msra.mxu1 %v5511_v35  ;;  %5226 = vmatprep.subr.bf16.mxu0 %v5225_v36  ;;  %v5245_v35 = vpack.c.bf16 %v1082_v29, %v1072_v28  ;;  %v1071_v36 = vld [vmem:[%s11407_s1 + $0x2000] sm:$0xff]  ;;  %v5549_v28 = vpack.c.bf16 %v1164_v19, %v1154_v18  ;;  %v1262_v18 = vld [vmem:[%s11407_s1 + $0x25f8] sm:$0xff] }
 0x1db   :  { %5514 = vmatprep.subr.bf16.mxu1 %v5513_v40  ;;  %v1083_v40 = vld [vmem:[%s11407_s1 + $0x2060] sm:$0xff]  ;;  %v5247_v46 = vpack.c.bf16 %v1081_v37, %v1071_v36  ;;  %v1254_v19 = vld [vmem:[%s11407_s1 + $0x25b8] sm:$0xff] }
 0x1dc   :  { %v1163_v29 = vld [vmem:[%s11407_s1 + $0x22e0] sm:$0xff] }
 0x1dd   :  { %5228 = vmatpush1.bf16.msra.mxu0 %v5227_v47  ;;  %v5535_v47 = vpack.c.bf16 %v1083_v40, %v1073_v38  ;;  %v1171_v37 = vld [vmem:[%s11407_s1 + $0x2320] sm:$0xff]  ;;  %v1181_v38 = vld [vmem:[%s11407_s1 + $0x2370] sm:$0xff] }
 0x1de   :  { %5516 = vmatpush1.bf16.msra.mxu1 %v5515_v48  ;;  %5230 = vmatprep.subr.bf16.mxu0 %v5229_v49  ;;  %v5249_v48 = vpack.c.bf16 %v1102_v42, %v1092_v41  ;;  %v1091_v49 = vld [vmem:[%s11407_s1 + $0x20a0] sm:$0xff]  ;;  %v1192_v42 = vld [vmem:[%s11407_s1 + $0x23c8] sm:$0xff] }
 0x1df   :  { %5518 = vmatprep.subr.bf16.mxu1 %v5517_v53  ;;  %v1103_v53 = vld [vmem:[%s11407_s1 + $0x2100] sm:$0xff]  ;;  %v5251_v58 = vpack.c.bf16 %v1101_v50, %v1091_v49  ;;  %v5269_v49 = vpack.c.bf16 %v1202_v43, %v1192_v42  ;;  %v1292_v43 = vld [vmem:[%s11407_s1 + $0x26e8] sm:$0xff] }
 0x1e0   :  { %v1183_v41 = vld [vmem:[%s11407_s1 + $0x2380] sm:$0xff] }
 0x1e1   :  { %5232 = vmatpush1.bf16.msra.mxu0 %v5231_v59  ;;  %v5539_v59 = vpack.c.bf16 %v1103_v53, %v1093_v51  ;;  %v1191_v50 = vld [vmem:[%s11407_s1 + $0x23c0] sm:$0xff]  ;;  %v1201_v51 = vld [vmem:[%s11407_s1 + $0x2410] sm:$0xff] }
 0x1e2   :  { %5520 = vmatpush1.bf16.msra.mxu1 %v5519_v60  ;;  %5234 = vmatprep.subr.bf16.mxu0 %v5233_v61  ;;  %v5253_v60 = vpack.c.bf16 %v1122_v55, %v1112_v54  ;;  %v1111_v61 = vld [vmem:[%s11407_s1 + $0x2140] sm:$0xff]  ;;  %v1212_v55 = vld [vmem:[%s11407_s1 + $0x2468] sm:$0xff] }
 0x1e3   :  { %5522 = vmatprep.subr.bf16.mxu1 %v5521_v1  ;;  %v1123_v1 = vld [vmem:[%s11407_s1 + $0x21a0] sm:$0xff]  ;;  %v5255_v6 = vpack.c.bf16 %v1121_v62, %v1111_v61  ;;  %v5273_v61 = vpack.c.bf16 %v1222_v56, %v1212_v55  ;;  %v1312_v56 = vld [vmem:[%s11407_s1 + $0x2788] sm:$0xff] }
 0x1e4   :  { %2458 = vmatmul.mubr.f32.vlgmr.msra.gmra.mrb[2].mxu0 %v6195_v17  ;;  %v1203_v54 = vld [vmem:[%s11407_s1 + $0x2420] sm:$0xff] }
 0x1e5   :  { %5236 = vmatpush1.bf16.msra.mxu0 %v5235_v7  ;;  %2813 = vmatmul.mubr.f32.vlgmr.msra.gmra.mrb[2].mxu1 %v6195_v17  ;;  %v5543_v7 = vpack.c.bf16 %v1123_v1, %v1113_v63  ;;  %v1211_v62 = vld [vmem:[%s11407_s1 + $0x2460] sm:$0xff]  ;;  %v1221_v63 = vld [vmem:[%s11407_s1 + $0x24b0] sm:$0xff] }
 0x1e6   :  { %5524 = vmatpush1.bf16.msra.mxu1 %v5523_v8  ;;  %5238 = vmatprep.subr.bf16.mxu0 %v5237_v9  ;;  %v5257_v8 = vpack.c.bf16 %v1142_v3, %v1132_v2  ;;  %v1131_v9 = vld [vmem:[%s11407_s1 + $0x21e0] sm:$0xff]  ;;  %v1232_v3 = vld [vmem:[%s11407_s1 + $0x2508] sm:$0xff] }
 0x1e7   :  { %5526 = vmatprep.subr.bf16.mxu1 %v5525_v13  ;;  %2528 = vmatprep.mubr.f32.mxu0 %v6196_v30  ;;  %v5545_v13 = vpack.c.bf16 %v1144_v5, %v1134_v4  ;;  %v1223_v2 = vld [vmem:[%s11407_s1 + $0x24c0] sm:$0xff]  ;;  %v1242_v4 = vld [vmem:[%s11407_s1 + $0x2558] sm:$0xff] }
 0x1e8   :  { %2883 = vmatprep.mubr.f32.mxu1 %v6196_v30  ;;  %v1172_v30 = vld [vmem:[%s11407_s1 + $0x2328] sm:$0xff]  ;;  %v1234_v5 = vld [vmem:[%s11407_s1 + $0x2518] sm:$0xff]  ;;  %v1283_v42 = vld [vmem:[%s11407_s1 + $0x26a0] sm:$0xff] }
 0x1e9   :  { %5240 = vmatpush1.bf16.msra.mxu0 %v5239_v20  ;;  %v5265_v36 = vpack.c.bf16 %v1182_v31, %v1172_v30  ;;  %v1263_v30 = vld [vmem:[%s11407_s1 + $0x2600] sm:$0xff]  ;;  %v1272_v31 = vld [vmem:[%s11407_s1 + $0x2648] sm:$0xff] }
 0x1ea   :  { %5528 = vmatpush1.bf16.msra.mxu1 %v5527_v21  ;;  %5242 = vmatprep.subr.bf16.mxu0 %v5241_v22  ;;  %v5259_v21 = vpack.c.bf16 %v1141_v10, %v1131_v9  ;;  %v5277_v9 = vpack.c.bf16 %v1242_v4, %v1232_v3  ;;  %v1231_v10 = vld [vmem:[%s11407_s1 + $0x2500] sm:$0xff]  ;;  %v1332_v4 = vld [vmem:[%s11407_s1 + $0x2828] sm:$0xff] }
 0x1eb   :  { %5530 = vmatprep.subr.bf16.mxu1 %v5529_v26  ;;  %v1161_v26 = vld [vmem:[%s11407_s1 + $0x22d0] sm:$0xff]  ;;  %v1303_v55 = vld [vmem:[%s11407_s1 + $0x2740] sm:$0xff] }
 0x1ec   :  { %v1323_v3 = vld [vmem:[%s11407_s1 + $0x27e0] sm:$0xff] }
 0x1ed   :  { %5244 = vmatpush1.bf16.msra.mxu0 %v5243_v33  ;;  %v1184_v33 = vld [vmem:[%s11407_s1 + $0x2388] sm:$0xff] }
 0x1ee   :  { %5532 = vmatpush1.bf16.msra.mxu1 %v5531_v34  ;;  %5246 = vmatprep.subr.bf16.mxu0 %v5245_v35  ;;  %v5263_v34 = vpack.c.bf16 %v1161_v26, %v1151_v25  ;;  %v5551_v35 = vpack.c.bf16 %v1163_v29, %v1153_v27  ;;  %v5553_v40 = vpack.c.bf16 %v1184_v33, %v1174_v32  ;;  %v1251_v26 = vld [vmem:[%s11407_s1 + $0x25a0] sm:$0xff]  ;;  %v1261_v27 = vld [vmem:[%s11407_s1 + $0x25f0] sm:$0xff]  ;;  %v1282_v32 = vld [vmem:[%s11407_s1 + $0x2698] sm:$0xff] }
 0x1ef   :  { %5534 = vmatprep.subr.bf16.mxu1 %v5533_v39  ;;  %v1173_v39 = vld [vmem:[%s11407_s1 + $0x2330] sm:$0xff]  ;;  %v5281_v25 = vpack.c.bf16 %v1262_v18, %v1252_v16  ;;  %v1274_v33 = vld [vmem:[%s11407_s1 + $0x2658] sm:$0xff]  ;;  %v1343_v16 = vld [vmem:[%s11407_s1 + $0x2880] sm:$0xff] }
 0x1f0   :  { %v1352_v18 = vld [vmem:[%s11407_s1 + $0x28c8] sm:$0xff] }
 0x1f1   :  { %5248 = vmatpush1.bf16.msra.mxu0 %v5247_v46  ;;  %v1204_v46 = vld [vmem:[%s11407_s1 + $0x2428] sm:$0xff] }
 0x1f2   :  { %5536 = vmatpush1.bf16.msra.mxu1 %v5535_v47  ;;  %5250 = vmatprep.subr.bf16.mxu0 %v5249_v48  ;;  %v5267_v47 = vpack.c.bf16 %v1181_v38, %v1171_v37  ;;  %v5555_v48 = vpack.c.bf16 %v1183_v41, %v1173_v39  ;;  %v5557_v53 = vpack.c.bf16 %v1204_v46, %v1194_v45  ;;  %v1271_v38 = vld [vmem:[%s11407_s1 + $0x2640] sm:$0xff]  ;;  %v1281_v39 = vld [vmem:[%s11407_s1 + $0x2690] sm:$0xff]  ;;  %v1302_v45 = vld [vmem:[%s11407_s1 + $0x2738] sm:$0xff] }
 0x1f3   :  { %5538 = vmatprep.subr.bf16.mxu1 %v5537_v52  ;;  %v1193_v52 = vld [vmem:[%s11407_s1 + $0x23d0] sm:$0xff]  ;;  %v5285_v37 = vpack.c.bf16 %v1282_v32, %v1272_v31  ;;  %v1294_v46 = vld [vmem:[%s11407_s1 + $0x26f8] sm:$0xff]  ;;  %v1363_v31 = vld [vmem:[%s11407_s1 + $0x2920] sm:$0xff] }
 0x1f4   :  { %v1372_v32 = vld [vmem:[%s11407_s1 + $0x2968] sm:$0xff] }
 0x1f5   :  { %5252 = vmatpush1.bf16.msra.mxu0 %v5251_v58  ;;  %v1224_v58 = vld [vmem:[%s11407_s1 + $0x24c8] sm:$0xff] }
 0x1f6   :  { %5540 = vmatpush1.bf16.msra.mxu1 %v5539_v59  ;;  %5254 = vmatprep.subr.bf16.mxu0 %v5253_v60  ;;  %v5271_v59 = vpack.c.bf16 %v1201_v51, %v1191_v50  ;;  %v5559_v60 = vpack.c.bf16 %v1203_v54, %v1193_v52  ;;  %v5561_v1 = vpack.c.bf16 %v1224_v58, %v1214_v57  ;;  %v1291_v51 = vld [vmem:[%s11407_s1 + $0x26e0] sm:$0xff]  ;;  %v1301_v52 = vld [vmem:[%s11407_s1 + $0x2730] sm:$0xff]  ;;  %v1322_v57 = vld [vmem:[%s11407_s1 + $0x27d8] sm:$0xff] }
 0x1f7   :  { %v9367_v12 = vpop.f32.mrb[0].mxu0  ;;  %5542 = vmatprep.subr.bf16.mxu1 %v5541_v0  ;;  %v1213_v0 = vld [vmem:[%s11407_s1 + $0x2470] sm:$0xff]  ;;  %v5289_v50 = vpack.c.bf16 %v1302_v45, %v1292_v43  ;;  %v1314_v58 = vld [vmem:[%s11407_s1 + $0x2798] sm:$0xff]  ;;  %v1383_v45 = vld [vmem:[%s11407_s1 + $0x29c0] sm:$0xff] }
 0x1f8   :  { %v9378_v17 = vpop.f32.mrb[1].mxu0  ;;  %v9386_v20 = vpop.f32.mrb[0].mxu1 }
 0x1f9   :  { %5256 = vmatpush1.bf16.msra.mxu0 %v5255_v6  ;;  %v9388_v22 = vpop.f32.mrb[1].mxu1  ;;  %v1244_v6 = vld [vmem:[%s11407_s1 + $0x2568] sm:$0xff] }
 0x1fa   :  { %5544 = vmatpush1.bf16.msra.mxu1 %v5543_v7  ;;  %5258 = vmatprep.subr.bf16.mxu0 %v5257_v8  ;;  %v5275_v7 = vpack.c.bf16 %v1221_v63, %v1211_v62  ;;  %v5563_v8 = vpack.c.bf16 %v1223_v2, %v1213_v0  ;;  %v5565_v14 = vpack.c.bf16 %v1244_v6, %v1234_v5  ;;  %v1311_v63 = vld [vmem:[%s11407_s1 + $0x2780] sm:$0xff]  ;;  %v1321_v0 = vld [vmem:[%s11407_s1 + $0x27d0] sm:$0xff]  ;;  %v1342_v5 = vld [vmem:[%s11407_s1 + $0x2878] sm:$0xff] }
 0x1fb   :  { %5546 = vmatprep.subr.bf16.mxu1 %v5545_v13  ;;  %v1233_v13 = vld [vmem:[%s11407_s1 + $0x2510] sm:$0xff]  ;;  %v5293_v62 = vpack.c.bf16 %v1322_v57, %v1312_v56  ;;  %v1334_v6 = vld [vmem:[%s11407_s1 + $0x2838] sm:$0xff]  ;;  %v1403_v57 = vld [vmem:[%s11407_s1 + $0x2a60] sm:$0xff] }
 0x1fd   :  { %5260 = vmatpush1.bf16.msra.mxu0 %v5259_v21  ;;  %v1264_v21 = vld [vmem:[%s11407_s1 + $0x2608] sm:$0xff] }
 0x1fe   :  { %5548 = vmatpush1.bf16.msra.mxu1 %v5547_v23  ;;  %5262 = vmatprep.subr.bf16.mxu0 %v5261_v24  ;;  %v5279_v23 = vpack.c.bf16 %v1241_v11, %v1231_v10  ;;  %v5567_v24 = vpack.c.bf16 %v1243_v15, %v1233_v13  ;;  %v5569_v29 = vpack.c.bf16 %v1264_v21, %v1254_v19  ;;  %v1331_v11 = vld [vmem:[%s11407_s1 + $0x2820] sm:$0xff]  ;;  %v1341_v13 = vld [vmem:[%s11407_s1 + $0x2870] sm:$0xff]  ;;  %v1362_v19 = vld [vmem:[%s11407_s1 + $0x2918] sm:$0xff] }
 0x1ff   :  { %5550 = vmatprep.subr.bf16.mxu1 %v5549_v28  ;;  %v1253_v28 = vld [vmem:[%s11407_s1 + $0x25b0] sm:$0xff]  ;;  %v5297_v10 = vpack.c.bf16 %v1342_v5, %v1332_v4  ;;  %v1354_v21 = vld [vmem:[%s11407_s1 + $0x28d8] sm:$0xff]  ;;  %v1423_v5 = vld [vmem:[%s11407_s1 + $0x2b00] sm:$0xff] }
 0x201   :  { %5264 = vmatpush1.bf16.msra.mxu0 %v5263_v34  ;;  %v1284_v34 = vld [vmem:[%s11407_s1 + $0x26a8] sm:$0xff] }
 0x202   :  { %5552 = vmatpush1.bf16.msra.mxu1 %v5551_v35  ;;  %5266 = vmatprep.subr.bf16.mxu0 %v5265_v36  ;;  %v5283_v35 = vpack.c.bf16 %v1261_v27, %v1251_v26  ;;  %v5571_v36 = vpack.c.bf16 %v1263_v30, %v1253_v28  ;;  %v5573_v41 = vpack.c.bf16 %v1284_v34, %v1274_v33  ;;  %v1351_v27 = vld [vmem:[%s11407_s1 + $0x28c0] sm:$0xff]  ;;  %v1361_v28 = vld [vmem:[%s11407_s1 + $0x2910] sm:$0xff]  ;;  %v1382_v33 = vld [vmem:[%s11407_s1 + $0x29b8] sm:$0xff] }
 0x203   :  { %5554 = vmatprep.subr.bf16.mxu1 %v5553_v40  ;;  %v1273_v40 = vld [vmem:[%s11407_s1 + $0x2650] sm:$0xff]  ;;  %v5301_v26 = vpack.c.bf16 %v1362_v19, %v1352_v18 }
 0x204   :  { %v6197_v34 = vld [vmem:[%s11408_s0 + $0x30] sm:$0xff] }
 0x205   :  { %5268 = vmatpush1.bf16.msra.mxu0 %v5267_v47  ;;  %v1304_v47 = vld [vmem:[%s11407_s1 + $0x2748] sm:$0xff]  ;;  %v1433_v18 = vld [vmem:[%s11407_s1 + $0x2b50] sm:$0xff] }
 0x206   :  { %5556 = vmatpush1.bf16.msra.mxu1 %v5555_v48  ;;  %5270 = vmatprep.subr.bf16.mxu0 %v5269_v49  ;;  %v5287_v48 = vpack.c.bf16 %v1281_v39, %v1271_v38  ;;  %v5575_v49 = vpack.c.bf16 %v1283_v42, %v1273_v40  ;;  %v5577_v54 = vpack.c.bf16 %v1304_v47, %v1294_v46  ;;  %v1371_v40 = vld [vmem:[%s11407_s1 + $0x2960] sm:$0xff]  ;;  %v1373_v42 = vld [vmem:[%s11407_s1 + $0x2970] sm:$0xff]  ;;  %v1392_v46 = vld [vmem:[%s11407_s1 + $0x2a08] sm:$0xff] }
 0x207   :  { %5558 = vmatprep.subr.bf16.mxu1 %v5557_v53  ;;  %v1293_v53 = vld [vmem:[%s11407_s1 + $0x26f0] sm:$0xff]  ;;  %v5305_v39 = vpack.c.bf16 %v1382_v33, %v1372_v32  ;;  %v1402_v47 = vld [vmem:[%s11407_s1 + $0x2a58] sm:$0xff] }
 0x208   :  { %v1461_v32 = vld [vmem:[%s11407_s1 + $0x2c30] sm:$0xff] }
 0x209   :  { %5272 = vmatpush1.bf16.msra.mxu0 %v5271_v59  ;;  %v1324_v59 = vld [vmem:[%s11407_s1 + $0x27e8] sm:$0xff]  ;;  %v1453_v33 = vld [vmem:[%s11407_s1 + $0x2bf0] sm:$0xff] }
 0x20a   :  { %5560 = vmatpush1.bf16.msra.mxu1 %v5559_v60  ;;  %5274 = vmatprep.subr.bf16.mxu0 %v5273_v61  ;;  %v5291_v60 = vpack.c.bf16 %v1301_v52, %v1291_v51  ;;  %v5579_v61 = vpack.c.bf16 %v1303_v55, %v1293_v53  ;;  %v5581_v2 = vpack.c.bf16 %v1324_v59, %v1314_v58  ;;  %v1391_v53 = vld [vmem:[%s11407_s1 + $0x2a00] sm:$0xff]  ;;  %v1393_v55 = vld [vmem:[%s11407_s1 + $0x2a10] sm:$0xff]  ;;  %v1412_v58 = vld [vmem:[%s11407_s1 + $0x2aa8] sm:$0xff] }
 0x20b   :  { %5562 = vmatprep.subr.bf16.mxu1 %v5561_v1  ;;  %v1313_v1 = vld [vmem:[%s11407_s1 + $0x2790] sm:$0xff]  ;;  %v5595_v51 = vpack.c.bf16 %v1383_v45, %v1373_v42  ;;  %v5309_v52 = vpack.c.bf16 %v1402_v47, %v1392_v46  ;;  %v1422_v59 = vld [vmem:[%s11407_s1 + $0x2af8] sm:$0xff]  ;;  %v1471_v46 = vld [vmem:[%s11407_s1 + $0x2c80] sm:$0xff] }
 0x20c   :  { %v1481_v47 = vld [vmem:[%s11407_s1 + $0x2cd0] sm:$0xff] }
 0x20d   :  { %5276 = vmatpush1.bf16.msra.mxu0 %v5275_v7  ;;  %v1344_v7 = vld [vmem:[%s11407_s1 + $0x2888] sm:$0xff] }
 0x20e   :  { %5564 = vmatpush1.bf16.msra.mxu1 %v5563_v8  ;;  %5278 = vmatprep.subr.bf16.mxu0 %v5277_v9  ;;  %v5295_v8 = vpack.c.bf16 %v1321_v0, %v1311_v63  ;;  %v5583_v9 = vpack.c.bf16 %v1323_v3, %v1313_v1  ;;  %v5585_v15 = vpack.c.bf16 %v1344_v7, %v1334_v6  ;;  %v1411_v1 = vld [vmem:[%s11407_s1 + $0x2aa0] sm:$0xff]  ;;  %v1413_v3 = vld [vmem:[%s11407_s1 + $0x2ab0] sm:$0xff]  ;;  %v1432_v6 = vld [vmem:[%s11407_s1 + $0x2b48] sm:$0xff] }
 0x20f   :  { %5566 = vmatprep.subr.bf16.mxu1 %v5565_v14  ;;  %v1333_v14 = vld [vmem:[%s11407_s1 + $0x2830] sm:$0xff]  ;;  %v5599_v63 = vpack.c.bf16 %v1403_v57, %v1393_v55  ;;  %v5313_v0 = vpack.c.bf16 %v1422_v59, %v1412_v58  ;;  %v1442_v7 = vld [vmem:[%s11407_s1 + $0x2b98] sm:$0xff]  ;;  %v3343_v55 = vld [vmem:[%s11410_s3 + $0x88] sm:$0xff] }
 0x210   :  { %v55_v59 = vld [vmem:[%s11407_s1 + $0x40] sm:$0xff] }
 0x211   :  { %5280 = vmatpush1.bf16.msra.mxu0 %v5279_v23  ;;  %v1364_v23 = vld [vmem:[%s11407_s1 + $0x2928] sm:$0xff] }
 0x212   :  { %5568 = vmatpush1.bf16.msra.mxu1 %v5567_v24  ;;  %5282 = vmatprep.subr.bf16.mxu0 %v5281_v25  ;;  %v5299_v24 = vpack.c.bf16 %v1341_v13, %v1331_v11  ;;  %v5587_v25 = vpack.c.bf16 %v1343_v16, %v1333_v14  ;;  %v5589_v30 = vpack.c.bf16 %v1364_v23, %v1354_v21  ;;  %v1441_v16 = vld [vmem:[%s11407_s1 + $0x2b90] sm:$0xff]  ;;  %v1443_v21 = vld [vmem:[%s11407_s1 + $0x2ba0] sm:$0xff]  ;;  %v1452_v23 = vld [vmem:[%s11407_s1 + $0x2be8] sm:$0xff] }
 0x213   :  { %5570 = vmatprep.subr.bf16.mxu1 %v5569_v29  ;;  %v1353_v29 = vld [vmem:[%s11407_s1 + $0x28d0] sm:$0xff]  ;;  %v5603_v13 = vpack.c.bf16 %v1423_v5, %v1413_v3  ;;  %v5317_v14 = vpack.c.bf16 %v1442_v7, %v1432_v6 }
 0x214   :  { %v5591_v38 = vpack.c.bf16 %v1363_v31, %v1353_v29  ;;  %v5607_v29 = vpack.c.bf16 %v1443_v21, %v1433_v18  ;;  %v1451_v31 = vld [vmem:[%s11407_s1 + $0x2be0] sm:$0xff]  ;;  %v3344_v3 = vld [vmem:[%s11410_s3 + $0x90] sm:$0xff] }
 0x215   :  { %5284 = vmatpush1.bf16.msra.mxu0 %v5283_v35  ;;  %v1374_v35 = vld [vmem:[%s11407_s1 + $0x2978] sm:$0xff]  ;;  %v5323_v42 = vpack.c.bf16 %v1461_v32, %v1451_v31  ;;  %v85_v7 = vld [vmem:[%s11407_s1 + $0x130] sm:$0xff]  ;;  %v3346_v18 = vld [vmem:[%s11410_s3 + $0xa0] sm:$0xff] }
 0x216   :  { %5572 = vmatpush1.bf16.msra.mxu1 %v5571_v36  ;;  %5286 = vmatprep.subr.bf16.mxu0 %v5285_v37  ;;  %v1384_v36 = vld [vmem:[%s11407_s1 + $0x29c8] sm:$0xff]  ;;  %v5303_v37 = vpack.c.bf16 %v1361_v28, %v1351_v27  ;;  %v126_v32 = vld [vmem:[%s11407_s1 + $0x278] sm:$0xff] }
 0x217   :  { %5574 = vmatprep.subr.bf16.mxu1 %v5573_v41  ;;  %v1381_v41 = vld [vmem:[%s11407_s1 + $0x29b0] sm:$0xff]  ;;  %v5593_v43 = vpack.c.bf16 %v1384_v36, %v1374_v35  ;;  %v1464_v27 = vld [vmem:[%s11407_s1 + $0x2c48] sm:$0xff]  ;;  %v1463_v35 = vld [vmem:[%s11407_s1 + $0x2c40] sm:$0xff] }
 0x218   :  { %v1472_v36 = vld [vmem:[%s11407_s1 + $0x2c88] sm:$0xff] }
 0x219   :  { %5288 = vmatpush1.bf16.msra.mxu0 %v5287_v48  ;;  %v1394_v48 = vld [vmem:[%s11407_s1 + $0x2a18] sm:$0xff]  ;;  %v116_v31 = vld [vmem:[%s11407_s1 + $0x228] sm:$0xff] }
 0x21a   :  { %5576 = vmatpush1.bf16.msra.mxu1 %v5575_v49  ;;  %5290 = vmatprep.subr.bf16.mxu0 %v5289_v50  ;;  %v1404_v49 = vld [vmem:[%s11407_s1 + $0x2a68] sm:$0xff]  ;;  %v5307_v50 = vpack.c.bf16 %v1381_v41, %v1371_v40  ;;  %v9785_v41 = vld [vmem:[%s11409_s2] sm:$0xff] }
 0x21b   :  { %5578 = vmatprep.subr.bf16.mxu1 %v5577_v54  ;;  %v1401_v54 = vld [vmem:[%s11407_s1 + $0x2a50] sm:$0xff]  ;;  %v5597_v56 = vpack.c.bf16 %v1404_v49, %v1394_v48  ;;  %v1484_v40 = vld [vmem:[%s11407_s1 + $0x2ce8] sm:$0xff] }
 0x21c   :  { %v1473_v48 = vld [vmem:[%s11407_s1 + $0x2c90] sm:$0xff] }
 0x21d   :  { %5292 = vmatpush1.bf16.msra.mxu0 %v5291_v60  ;;  %v1414_v60 = vld [vmem:[%s11407_s1 + $0x2ab8] sm:$0xff] }
 0x21e   :  { %5580 = vmatpush1.bf16.msra.mxu1 %v5579_v61  ;;  %5294 = vmatprep.subr.bf16.mxu0 %v5293_v62  ;;  %v1424_v61 = vld [vmem:[%s11407_s1 + $0x2b08] sm:$0xff]  ;;  %v5311_v62 = vpack.c.bf16 %v1401_v54, %v1391_v53  ;;  %v3342_v54 = vld [vmem:[%s11410_s3 + $0x80] sm:$0xff] }
 0x21f   :  { %5582 = vmatprep.subr.bf16.mxu1 %v5581_v2  ;;  %v1421_v2 = vld [vmem:[%s11407_s1 + $0x2af0] sm:$0xff]  ;;  %v5601_v4 = vpack.c.bf16 %v1424_v61, %v1414_v60  ;;  %v5905_v61 = vpack.c.bf16 %v3343_v55, %v3342_v54  ;;  %v135_v54 = vld [vmem:[%s11407_s1 + $0x2c0] sm:$0xff] }
 0x220   :  { %v5315_v11 = vpack.c.bf16 %v1421_v2, %v1411_v1  ;;  %v65_v60 = vld [vmem:[%s11407_s1 + $0x90] sm:$0xff]  ;;  %v86_v2 = vld [vmem:[%s11407_s1 + $0x138] sm:$0xff] }
 0x221   :  { %5296 = vmatpush1.bf16.msra.mxu0 %v5295_v8  ;;  %v1491_v8 = vlaneseq  ;;  %v5619_v5 = vpack.c.bf16 %v65_v60, %v55_v59  ;;  %v145_v55 = vld [vmem:[%s11407_s1 + $0x310] sm:$0xff]  ;;  %v156_v59 = vld [vmem:[%s11407_s1 + $0x368] sm:$0xff]  ;;  %v166_v60 = vld [vmem:[%s11407_s1 + $0x3b8] sm:$0xff] }
 0x222   :  { %5584 = vmatpush1.bf16.msra.mxu1 %v5583_v9  ;;  %5298 = vmatprep.subr.bf16.mxu0 %v5297_v10  ;;  %v1434_v9 = vld [vmem:[%s11407_s1 + $0x2b58] sm:$0xff]  ;;  %v1444_v10 = vld [vmem:[%s11407_s1 + $0x2ba8] sm:$0xff] }
 0x223   :  { %5586 = vmatprep.subr.bf16.mxu1 %v5585_v15  ;;  %v1431_v15 = vld [vmem:[%s11407_s1 + $0x2b40] sm:$0xff]  ;;  %v5605_v19 = vpack.c.bf16 %v1444_v10, %v1434_v9 }
 0x224   :  { %2529 = vmatmul.mubr.f32.vlgmr.msra.gmra.mrb[2].mxu0 %v6197_v34  ;;  %v5319_v28 = vpack.c.bf16 %v1441_v16, %v1431_v15  ;;  %v6198_v16 = vld [vmem:[%s11408_s0 + $0x40] sm:$0xff] }
 0x225   :  { %5300 = vmatpush1.bf16.msra.mxu0 %v5299_v24  ;;  %2884 = vmatmul.mubr.f32.vlgmr.msra.gmra.mrb[2].mxu1 %v6197_v34  ;;  %v1462_v24 = vld [vmem:[%s11407_s1 + $0x2c38] sm:$0xff] }
 0x226   :  { %5588 = vmatpush1.bf16.msra.mxu1 %v5587_v25  ;;  %5302 = vmatprep.subr.bf16.mxu0 %v5301_v26  ;;  %v9749_v25 = vshrl.u32 %v1491_v8, 7  ;;  %v1454_v26 = vld [vmem:[%s11407_s1 + $0x2bf8] sm:$0xff]  ;;  %v3328_v8 = vld [vmem:[%s11410_s3 + $0x10] sm:$0xff] }
 0x227   :  { %5590 = vmatprep.subr.bf16.mxu1 %v5589_v30  ;;  %2599 = vmatprep.mubr.f32.mxu0 %v6209_v44  ;;  %v5321_v30 = vpack.c.bf16 %v1462_v24, %v1452_v23  ;;  %v5609_v34 = vpack.c.bf16 %v1464_v27, %v1454_v26  ;;  %v95_v26 = vld [vmem:[%s11407_s1 + $0x180] sm:$0xff]  ;;  %v105_v27 = vld [vmem:[%s11407_s1 + $0x1d0] sm:$0xff] }
 0x228   :  { %2954 = vmatprep.mubr.f32.mxu1 %v6209_v44 }
 0x229   :  { %5304 = vmatpush1.bf16.msra.mxu0 %v5303_v37  ;;  %v1482_v37 = vld [vmem:[%s11407_s1 + $0x2cd8] sm:$0xff] }
 0x22a   :  { %5592 = vmatpush1.bf16.msra.mxu1 %v5591_v38  ;;  %5306 = vmatprep.subr.bf16.mxu0 %v5305_v39  ;;  %v1497_v38 = vsub.s32 1, %v9749_v25  ;;  %v1474_v39 = vld [vmem:[%s11407_s1 + $0x2c98] sm:$0xff]  ;;  %v5325_v45 = vpack.c.bf16 %v1482_v37, %v1472_v36  ;;  %v5627_v36 = vpack.c.bf16 %v105_v27, %v95_v26  ;;  %v1505_v26 = vsub.s32 3, %v9749_v25  ;;  %v3356_v27 = vld [vmem:[%s11410_s3 + $0xf0] sm:$0xff] }
 0x22b   :  { %5594 = vmatprep.subr.bf16.mxu1 %v5593_v43  ;;  %v5611_v43 = vpack.c.bf16 %v1463_v35, %v1453_v33  ;;  %v5613_v49 = vpack.c.bf16 %v1484_v40, %v1474_v39  ;;  %v3348_v33 = vld [vmem:[%s11410_s3 + $0xb0] sm:$0xff]  ;;  %v6199_v35 = vld [vmem:[%s11408_s0 + $0x8] sm:$0xff]  ;;  %v5629_v39 = vpack.c.bf16 %v126_v32, %v116_v31  ;;  %v115_v40 = vld [vmem:[%s11407_s1 + $0x220] sm:$0xff] }
 0x22c   :  { %v1498_v53 = vrot.slane %v9785_v41, %v1497_v38  ;;  %v195_v32 = vld [vmem:[%s11407_s1 + $0x4a0] sm:$0xff] }
 0x22d   :  { %5308 = vmatpush1.bf16.msra.mxu0 %v5307_v50  ;;  %v1483_v50 = vld [vmem:[%s11407_s1 + $0x2ce0] sm:$0xff] }
 0x22e   :  { %5596 = vmatpush1.bf16.msra.mxu1 %v5595_v51  ;;  %5310 = vmatprep.subr.bf16.mxu0 %v5309_v52  ;;  %v56_v51 = vld [vmem:[%s11407_s1 + $0x48] sm:$0xff]  ;;  %v66_v52 = vld [vmem:[%s11407_s1 + $0x98] sm:$0xff]  ;;  %v5615_v57 = vpack.c.bf16 %v1483_v50, %v1473_v48  ;;  %v6138_v1 = vadd.f32 %v9378_v17, %v1498_v53  ;;  %v75_v17 = vld [vmem:[%s11407_s1 + $0xe0] sm:$0xff] }
 0x22f   :  { %5598 = vmatprep.subr.bf16.mxu1 %v5597_v56  ;;  %v5327_v56 = vpack.c.bf16 %v1481_v47, %v1471_v46  ;;  %v5617_v58 = vpack.c.bf16 %v66_v52, %v56_v51  ;;  %v5623_v21 = vpack.c.bf16 %v85_v7, %v75_v17  ;;  %v3333_v46 = vld [vmem:[%s11410_s3 + $0x38] sm:$0xff]  ;;  %v136_v47 = vld [vmem:[%s11407_s1 + $0x2c8] sm:$0xff] }
 0x230   :  { %v3317_v15 = vmax.f32 %v6138_v1, 0.0  ;;  %v146_v48 = vld [vmem:[%s11407_s1 + $0x318] sm:$0xff]  ;;  %v3351_v50 = vld [vmem:[%s11410_s3 + $0xc8] sm:$0xff]  ;;  %v5637_v1 = vpack.c.bf16 %v166_v60, %v156_v59 }
 0x231   :  { %5312 = vmatpush1.bf16.msra.mxu0 %v5311_v62  ;;  %v3326_v62 = vld [vmem:[%s11410_s3] sm:$0xff]  ;;  %v5633_v53 = vpack.c.bf16 %v146_v48, %v136_v47  ;;  %v176_v17 = vld [vmem:[%s11407_s1 + $0x408] sm:$0xff]  ;;  %v186_v7 = vld [vmem:[%s11407_s1 + $0x458] sm:$0xff] }
 0x232   :  { %5600 = vmatpush1.bf16.msra.mxu1 %v5599_v63  ;;  %5314 = vmatprep.subr.bf16.mxu0 %v5313_v0  ;;  %v3327_v63 = vld [vmem:[%s11410_s3 + $0x8] sm:$0xff] }
 0x233   :  { %5602 = vmatprep.subr.bf16.mxu1 %v5601_v4  ;;  %v76_v0 = vld [vmem:[%s11407_s1 + $0xe8] sm:$0xff]  ;;  %v3345_v4 = vld [vmem:[%s11410_s3 + $0x98] sm:$0xff]  ;;  %v5907_v6 = vpack.c.bf16 %v3327_v63, %v3326_v62  ;;  %v5635_v63 = vpack.c.bf16 %v145_v55, %v135_v54 }
 0x234   :  { %v5621_v9 = vpack.c.bf16 %v86_v2, %v76_v0  ;;  %v5909_v10 = vpack.c.bf16 %v3345_v4, %v3344_v3  ;;  %v3353_v62 = vld [vmem:[%s11410_s3 + $0xd8] sm:$0xff]  ;;  %v155_v2 = vld [vmem:[%s11407_s1 + $0x360] sm:$0xff]  ;;  %v165_v3 = vld [vmem:[%s11407_s1 + $0x3b0] sm:$0xff] }
 0x235   :  { %5316 = vmatpush1.bf16.msra.mxu0 %v5315_v11  ;;  %v3329_v11 = vld [vmem:[%s11410_s3 + $0x18] sm:$0xff]  ;;  %v3336_v4 = vld [vmem:[%s11410_s3 + $0x50] sm:$0xff]  ;;  %v3359_v54 = vld [vmem:[%s11410_s3 + $0x108] sm:$0xff] }
 0x236   :  { %5604 = vmatpush1.bf16.msra.mxu1 %v5603_v13  ;;  %5318 = vmatprep.subr.bf16.mxu0 %v5317_v14  ;;  %v96_v13 = vld [vmem:[%s11407_s1 + $0x188] sm:$0xff]  ;;  %v106_v14 = vld [vmem:[%s11407_s1 + $0x1d8] sm:$0xff]  ;;  %v5911_v23 = vpack.c.bf16 %v3329_v11, %v3328_v8  ;;  %v3354_v8 = vld [vmem:[%s11410_s3 + $0xe0] sm:$0xff] }
 0x237   :  { %5606 = vmatprep.subr.bf16.mxu1 %v5605_v19  ;;  %v3347_v19 = vld [vmem:[%s11410_s3 + $0xa8] sm:$0xff]  ;;  %v5625_v24 = vpack.c.bf16 %v106_v14, %v96_v13  ;;  %v5641_v13 = vpack.c.bf16 %v186_v7, %v176_v17  ;;  %v175_v14 = vld [vmem:[%s11407_s1 + $0x400] sm:$0xff] }
 0x238   :  { %v236_v55 = vld [vmem:[%s11407_s1 + $0x5e8] sm:$0xff] }
 0x239   :  { %5320 = vmatpush1.bf16.msra.mxu0 %v5319_v28  ;;  %v3330_v28 = vld [vmem:[%s11410_s3 + $0x20] sm:$0xff]  ;;  %v3379_v17 = vld [vmem:[%s11410_s3 + $0x1a8] sm:$0xff] }
 0x23a   :  { %5608 = vmatpush1.bf16.msra.mxu1 %v5607_v29  ;;  %5322 = vmatprep.subr.bf16.mxu0 %v5321_v30  ;;  %v5913_v29 = vpack.c.bf16 %v3347_v19, %v3346_v18  ;;  %v3331_v30 = vld [vmem:[%s11410_s3 + $0x28] sm:$0xff]  ;;  %v1493_v18 = vsub.s32 0, %v9749_v25 }
 0x23b   :  { %5610 = vmatprep.subr.bf16.mxu1 %v5609_v34  ;;  %v3349_v34 = vld [vmem:[%s11410_s3 + $0xb8] sm:$0xff]  ;;  %v5915_v37 = vpack.c.bf16 %v3331_v30, %v3330_v28 }
 0x23c   :  { %v3357_v28 = vld [vmem:[%s11410_s3 + $0xf8] sm:$0xff] }
 0x23d   :  { %5324 = vmatpush1.bf16.msra.mxu0 %v5323_v42  ;;  %v125_v42 = vld [vmem:[%s11407_s1 + $0x270] sm:$0xff] }
 0x23e   :  { %5612 = vmatpush1.bf16.msra.mxu1 %v5611_v43  ;;  %5326 = vmatprep.subr.bf16.mxu0 %v5325_v45  ;;  %v3332_v43 = vld [vmem:[%s11410_s3 + $0x30] sm:$0xff]  ;;  %v5917_v45 = vpack.c.bf16 %v3349_v34, %v3348_v33  ;;  %v5631_v51 = vpack.c.bf16 %v125_v42, %v115_v40  ;;  %v226_v40 = vld [vmem:[%s11407_s1 + $0x598] sm:$0xff]  ;;  %v1506_v42 = vrot.slane %v9785_v41, %v1505_v26 }
 0x23f   :  { %5614 = vmatprep.subr.bf16.mxu1 %v5613_v49  ;;  %v3350_v49 = vld [vmem:[%s11410_s3 + $0xc0] sm:$0xff]  ;;  %v5919_v52 = vpack.c.bf16 %v3333_v46, %v3332_v43  ;;  %v205_v33 = vld [vmem:[%s11407_s1 + $0x4f0] sm:$0xff] }
 0x240   :  { %v3340_v34 = vld [vmem:[%s11410_s3 + $0x70] sm:$0xff]  ;;  %v3374_v43 = vld [vmem:[%s11410_s3 + $0x180] sm:$0xff]  ;;  %v5647_v46 = vpack.c.bf16 %v205_v33, %v195_v32  ;;  %v3365_v32 = vld [vmem:[%s11410_s3 + $0x138] sm:$0xff] }
 0x241   :  { %5328 = vmatpush1.bf16.msra.mxu0 %v5327_v56  ;;  %v3334_v56 = vld [vmem:[%s11410_s3 + $0x40] sm:$0xff]  ;;  %v296_v33 = vld [vmem:[%s11407_s1 + $0x7c8] sm:$0xff] }
 0x242   :  { %5616 = vmatpush1.bf16.msra.mxu1 %v5615_v57  ;;  %5618 = vmatprep.subr.bf16.mxu0 %v5617_v58  ;;  %v5921_v57 = vpack.c.bf16 %v3351_v50, %v3350_v49  ;;  %v3335_v58 = vld [vmem:[%s11410_s3 + $0x48] sm:$0xff]  ;;  %v215_v49 = vld [vmem:[%s11407_s1 + $0x540] sm:$0xff]  ;;  %v225_v50 = vld [vmem:[%s11407_s1 + $0x590] sm:$0xff] }
 0x243   :  { %5906 = vmatprep.subr.bf16.mxu1 %v5905_v61  ;;  %v3352_v61 = vld [vmem:[%s11410_s3 + $0xd0] sm:$0xff]  ;;  %v5923_v0 = vpack.c.bf16 %v3335_v58, %v3334_v56  ;;  %v6140_v56 = vadd.f32 %v9388_v22, %v1506_v42  ;;  %v3377_v58 = vld [vmem:[%s11410_s3 + $0x198] sm:$0xff]  ;;  %v5651_v59 = vpack.c.bf16 %v225_v50, %v215_v49  ;;  %v235_v22 = vld [vmem:[%s11407_s1 + $0x5e0] sm:$0xff] }
 0x244   :  { %2600 = vmatmul.mubr.f32.vlgmr.msra.gmra.mrb[2].mxu0 %v6198_v16  ;;  %v295_v42 = vld [vmem:[%s11407_s1 + $0x7c0] sm:$0xff]  ;;  %v326_v49 = vld [vmem:[%s11407_s1 + $0x8b8] sm:$0xff]  ;;  %v3384_v50 = vld [vmem:[%s11410_s3 + $0x1d0] sm:$0xff] }
 0x245   :  { %2955 = vmatmul.mubr.f32.vlgmr.msra.gmra.mrb[2].mxu1 %v6198_v16  ;;  %5620 = vmatpush1.bf16.msra.mxu0 %v5619_v5  ;;  %v5925_v5 = vpack.c.bf16 %v3353_v62, %v3352_v61  ;;  %v3338_v16 = vld [vmem:[%s11410_s3 + $0x60] sm:$0xff]  ;;  %v245_v61 = vld [vmem:[%s11407_s1 + $0x630] sm:$0xff] }
 0x246   :  { %5908 = vmatpush3.bf16.msra.mxu1 %v5907_v6  ;;  %3557 = vmatprep.mubr.f32.mxu1 %v3317_v15  ;;  %v3337_v6 = vld [vmem:[%s11410_s3 + $0x58] sm:$0xff]  ;;  %v185_v15 = vld [vmem:[%s11407_s1 + $0x450] sm:$0xff]  ;;  %v5655_v7 = vpack.c.bf16 %v245_v61, %v235_v22  ;;  %v3386_v22 = vld [vmem:[%s11410_s3 + $0x1e0] sm:$0xff] }
 0x247   :  { %5622 = vmatprep.subr.bf16.mxu0 %v5621_v9  ;;  %5910 = vmatprep.subr.bf16.mxu1 %v5909_v10  ;;  %v3355_v9 = vld [vmem:[%s11410_s3 + $0xe8] sm:$0xff]  ;;  %v5639_v10 = vpack.c.bf16 %v165_v3, %v155_v2  ;;  %v5927_v11 = vpack.c.bf16 %v3337_v6, %v3336_v4  ;;  %v3360_v62 = vld [vmem:[%s11410_s3 + $0x110] sm:$0xff]  ;;  %v3361_v2 = vld [vmem:[%s11410_s3 + $0x118] sm:$0xff] }
 0x248   :  { %3025 = vmatprep.mubr.f32.mxu0 %v6199_v35  ;;  %v5929_v19 = vpack.c.bf16 %v3355_v9, %v3354_v8  ;;  %v1494_v35 = vrot.slane %v9785_v41, %v1493_v18  ;;  %v256_v3 = vld [vmem:[%s11407_s1 + $0x688] sm:$0xff]  ;;  %v266_v4 = vld [vmem:[%s11407_s1 + $0x6d8] sm:$0xff]  ;;  %v3378_v6 = vld [vmem:[%s11410_s3 + $0x1a0] sm:$0xff]  ;;  %v5943_v8 = vpack.c.bf16 %v3361_v2, %v3360_v62 }
 0x249   :  { %5624 = vmatpush1.bf16.msra.mxu0 %v5623_v21  ;;  %v3339_v21 = vld [vmem:[%s11410_s3 + $0x68] sm:$0xff]  ;;  %v5657_v9 = vpack.c.bf16 %v266_v4, %v256_v3  ;;  %v345_v2 = vld [vmem:[%s11407_s1 + $0x950] sm:$0xff]  ;;  %v3370_v3 = vld [vmem:[%s11410_s3 + $0x160] sm:$0xff]  ;;  %v1501_v4 = vsub.s32 2, %v9749_v25 }
 0x24a   :  { %5912 = vmatpush3.bf16.msra.mxu1 %v5911_v23  ;;  %5626 = vmatprep.subr.bf16.mxu0 %v5625_v24  ;;  %v196_v23 = vld [vmem:[%s11407_s1 + $0x4a8] sm:$0xff]  ;;  %v206_v24 = vld [vmem:[%s11407_s1 + $0x4f8] sm:$0xff]  ;;  %v5931_v30 = vpack.c.bf16 %v3339_v21, %v3338_v16  ;;  %v3380_v21 = vld [vmem:[%s11410_s3 + $0x1b0] sm:$0xff] }
 0x24b   :  { %5914 = vmatprep.subr.bf16.mxu1 %v5913_v29  ;;  %v5643_v29 = vpack.c.bf16 %v185_v15, %v175_v14  ;;  %v5645_v31 = vpack.c.bf16 %v206_v24, %v196_v23  ;;  %v5945_v14 = vpack.c.bf16 %v3379_v17, %v3378_v6  ;;  %v3363_v15 = vld [vmem:[%s11410_s3 + $0x128] sm:$0xff]  ;;  %v3381_v23 = vld [vmem:[%s11410_s3 + $0x1b8] sm:$0xff] }
 0x24c   :  { %v276_v16 = vld [vmem:[%s11407_s1 + $0x728] sm:$0xff] }
 0x24d   :  { %5628 = vmatpush1.bf16.msra.mxu0 %v5627_v36  ;;  %v5933_v36 = vpack.c.bf16 %v3357_v28, %v3356_v27  ;;  %v275_v28 = vld [vmem:[%s11407_s1 + $0x720] sm:$0xff]  ;;  %v3387_v61 = vld [vmem:[%s11410_s3 + $0x1e8] sm:$0xff] }
 0x24e   :  { %5916 = vmatpush3.bf16.msra.mxu1 %v5915_v37  ;;  %5630 = vmatprep.subr.bf16.mxu0 %v5629_v39  ;;  %v3341_v37 = vld [vmem:[%s11410_s3 + $0x78] sm:$0xff]  ;;  %v216_v39 = vld [vmem:[%s11407_s1 + $0x548] sm:$0xff] }
 0x24f   :  { %5918 = vmatprep.subr.bf16.mxu1 %v5917_v45  ;;  %v3375_v45 = vld [vmem:[%s11410_s3 + $0x188] sm:$0xff]  ;;  %v5935_v47 = vpack.c.bf16 %v3341_v37, %v3340_v34  ;;  %v5649_v48 = vpack.c.bf16 %v226_v40, %v216_v39  ;;  %v306_v34 = vld [vmem:[%s11407_s1 + $0x818] sm:$0xff] }
 0x250   :  { %v5665_v40 = vpack.c.bf16 %v306_v34, %v296_v33  ;;  %v3371_v6 = vld [vmem:[%s11410_s3 + $0x168] sm:$0xff] }
 0x251   :  { %5632 = vmatpush1.bf16.msra.mxu0 %v5631_v51  ;;  %v6137_v51 = vadd.f32 %v9367_v12, %v1494_v35  ;;  %v246_v12 = vld [vmem:[%s11407_s1 + $0x638] sm:$0xff]  ;;  %v3382_v35 = vld [vmem:[%s11410_s3 + $0x1c0] sm:$0xff]  ;;  %v356_v17 = vld [vmem:[%s11407_s1 + $0x9a8] sm:$0xff] }
 0x252   :  { %5920 = vmatpush3.bf16.msra.mxu1 %v5919_v52  ;;  %5634 = vmatprep.subr.bf16.mxu0 %v5633_v53  ;;  %v5937_v52 = vpack.c.bf16 %v3375_v45, %v3374_v43  ;;  %v3358_v53 = vld [vmem:[%s11410_s3 + $0x100] sm:$0xff]  ;;  %v305_v43 = vld [vmem:[%s11407_s1 + $0x810] sm:$0xff]  ;;  %v396_v34 = vld [vmem:[%s11407_s1 + $0xae8] sm:$0xff] }
 0x253   :  { %5922 = vmatprep.subr.bf16.mxu1 %v5921_v57  ;;  %v3376_v57 = vld [vmem:[%s11410_s3 + $0x190] sm:$0xff]  ;;  %v5939_v60 = vpack.c.bf16 %v3359_v54, %v3358_v53  ;;  %v3366_v45 = vld [vmem:[%s11410_s3 + $0x140] sm:$0xff] }
 0x255   :  { %5636 = vmatpush1.bf16.msra.mxu0 %v5635_v63  ;;  %v3316_v63 = vmax.f32 %v6137_v51, 0.0  ;;  %v3385_v51 = vld [vmem:[%s11410_s3 + $0x1d8] sm:$0xff] }
 0x256   :  { %5924 = vmatpush3.bf16.msra.mxu1 %v5923_v0  ;;  %5638 = vmatprep.subr.bf16.mxu0 %v5637_v1  ;;  %v5653_v0 = vpack.c.bf16 %v246_v12, %v236_v55  ;;  %v5941_v1 = vpack.c.bf16 %v3377_v58, %v3376_v57  ;;  %v315_v55 = vld [vmem:[%s11407_s1 + $0x860] sm:$0xff]  ;;  %v3368_v12 = vld [vmem:[%s11410_s3 + $0x150] sm:$0xff]  ;;  %v5957_v57 = vpack.c.bf16 %v3385_v51, %v3384_v50  ;;  %v3369_v58 = vld [vmem:[%s11410_s3 + $0x158] sm:$0xff] }
 0x257   :  { %5926 = vmatprep.subr.bf16.mxu1 %v5925_v5  ;;  %v3319_v5 = vmax.f32 %v6140_v56, 0.0  ;;  %v325_v56 = vld [vmem:[%s11407_s1 + $0x8b0] sm:$0xff]  ;;  %v6200_v51 = vld [vmem:[%s11408_s0] sm:$0xff] }
 0x258   :  { %v5671_v62 = vpack.c.bf16 %v325_v56, %v315_v55  ;;  %v3410_v56 = vld [vmem:[%s11410_s3 + $0x2a0] sm:$0xff] }
 0x259   :  { %5640 = vmatpush1.bf16.msra.mxu0 %v5639_v10  ;;  %v255_v10 = vld [vmem:[%s11407_s1 + $0x680] sm:$0xff] }
 0x25a   :  { %5928 = vmatpush3.bf16.msra.mxu1 %v5927_v11  ;;  %5642 = vmatprep.subr.bf16.mxu0 %v5641_v13  ;;  %v265_v11 = vld [vmem:[%s11407_s1 + $0x6d0] sm:$0xff]  ;;  %v3362_v13 = vld [vmem:[%s11410_s3 + $0x120] sm:$0xff] }
 0x25b   :  { %5930 = vmatprep.subr.bf16.mxu1 %v5929_v19  ;;  %v286_v19 = vld [vmem:[%s11407_s1 + $0x778] sm:$0xff]  ;;  %v5659_v24 = vpack.c.bf16 %v265_v11, %v255_v10  ;;  %v5947_v26 = vpack.c.bf16 %v3363_v15, %v3362_v13  ;;  %v5963_v11 = vpack.c.bf16 %v3371_v6, %v3370_v3  ;;  %v365_v15 = vld [vmem:[%s11407_s1 + $0x9f0] sm:$0xff]  ;;  %v435_v6 = vld [vmem:[%s11407_s1 + $0xc20] sm:$0xff] }
 0x25c   :  { %v5661_v27 = vpack.c.bf16 %v286_v19, %v276_v16  ;;  %v3372_v16 = vld [vmem:[%s11410_s3 + $0x170] sm:$0xff]  ;;  %v1502_v19 = vrot.slane %v9785_v41, %v1501_v4  ;;  %v3407_v41 = vld [vmem:[%s11410_s3 + $0x288] sm:$0xff]  ;;  %v3413_v4 = vld [vmem:[%s11410_s3 + $0x2b8] sm:$0xff] }
 0x25d   :  { %5644 = vmatpush1.bf16.msra.mxu0 %v5643_v29  ;;  %v285_v29 = vld [vmem:[%s11407_s1 + $0x770] sm:$0xff] }
 0x25e   :  { %5932 = vmatpush3.bf16.msra.mxu1 %v5931_v30  ;;  %5646 = vmatprep.subr.bf16.mxu0 %v5645_v31  ;;  %v3364_v30 = vld [vmem:[%s11410_s3 + $0x130] sm:$0xff]  ;;  %v5949_v31 = vpack.c.bf16 %v3381_v23, %v3380_v21  ;;  %v5663_v37 = vpack.c.bf16 %v285_v29, %v275_v28  ;;  %v3373_v23 = vld [vmem:[%s11410_s3 + $0x178] sm:$0xff]  ;;  %v6139_v33 = vadd.f32 %v9386_v20, %v1502_v19 }
 0x25f   :  { %5934 = vmatprep.subr.bf16.mxu1 %v5933_v36  ;;  %v3383_v36 = vld [vmem:[%s11410_s3 + $0x1c8] sm:$0xff]  ;;  %v5951_v39 = vpack.c.bf16 %v3365_v32, %v3364_v30  ;;  %v5967_v29 = vpack.c.bf16 %v3373_v23, %v3372_v16  ;;  %v385_v32 = vld [vmem:[%s11407_s1 + $0xa90] sm:$0xff] }
 0x260   :  { %v3412_v3 = vld [vmem:[%s11410_s3 + $0x2b0] sm:$0xff]  ;;  %v3415_v16 = vld [vmem:[%s11410_s3 + $0x2c8] sm:$0xff] }
 0x261   :  { %5648 = vmatpush1.bf16.msra.mxu0 %v5647_v46  ;;  %v5953_v46 = vpack.c.bf16 %v3383_v36, %v3382_v35  ;;  %v406_v35 = vld [vmem:[%s11407_s1 + $0xb38] sm:$0xff]  ;;  %v465_v23 = vld [vmem:[%s11407_s1 + $0xd10] sm:$0xff] }
 0x262   :  { %5936 = vmatpush3.bf16.msra.mxu1 %v5935_v47  ;;  %5650 = vmatprep.subr.bf16.mxu0 %v5649_v48  ;;  %v3367_v47 = vld [vmem:[%s11410_s3 + $0x148] sm:$0xff] }
 0x263   :  { %5938 = vmatprep.subr.bf16.mxu1 %v5937_v52  ;;  %v316_v48 = vld [vmem:[%s11407_s1 + $0x868] sm:$0xff]  ;;  %v5667_v52 = vpack.c.bf16 %v305_v43, %v295_v42  ;;  %v5955_v53 = vpack.c.bf16 %v3367_v47, %v3366_v45  ;;  %v3409_v42 = vld [vmem:[%s11410_s3 + $0x298] sm:$0xff]  ;;  %v5685_v43 = vpack.c.bf16 %v406_v35, %v396_v34  ;;  %v395_v45 = vld [vmem:[%s11407_s1 + $0xae0] sm:$0xff]  ;;  %v3318_v47 = vmax.f32 %v6139_v33, 0.0 }
 0x264   :  { %v5669_v54 = vpack.c.bf16 %v326_v49, %v316_v48  ;;  %v416_v48 = vld [vmem:[%s11407_s1 + $0xb88] sm:$0xff]  ;;  %v426_v49 = vld [vmem:[%s11407_s1 + $0xbd8] sm:$0xff]  ;;  %v475_v34 = vld [vmem:[%s11407_s1 + $0xd60] sm:$0xff] }
 0x265   :  { %3558 = vmatmul.mubr.f32.vlgmr.msra.gmra.mrb[4].mxu1 %v3316_v63  ;;  %5652 = vmatpush1.bf16.msra.mxu0 %v5651_v59  ;;  %v336_v59 = vld [vmem:[%s11407_s1 + $0x908] sm:$0xff]  ;;  %v5959_v63 = vpack.c.bf16 %v3369_v58, %v3368_v12  ;;  %v415_v58 = vld [vmem:[%s11407_s1 + $0xb80] sm:$0xff]  ;;  %v485_v35 = vld [vmem:[%s11407_s1 + $0xdb0] sm:$0xff] }
 0x266   :  { %5940 = vmatpush3.bf16.msra.mxu1 %v5939_v60  ;;  %3627 = vmatprep.mubr.f32.mxu1 %v3319_v5  ;;  %v346_v60 = vld [vmem:[%s11407_s1 + $0x958] sm:$0xff]  ;;  %v5961_v5 = vpack.c.bf16 %v3387_v61, %v3386_v22  ;;  %v3411_v12 = vld [vmem:[%s11410_s3 + $0x2a8] sm:$0xff] }
 0x267   :  { %5654 = vmatprep.subr.bf16.mxu0 %v5653_v0  ;;  %5942 = vmatprep.subr.bf16.mxu1 %v5941_v1  ;;  %v5673_v0 = vpack.c.bf16 %v346_v60, %v336_v59  ;;  %v335_v1 = vld [vmem:[%s11407_s1 + $0x900] sm:$0xff]  ;;  %v425_v59 = vld [vmem:[%s11407_s1 + $0xbd0] sm:$0xff]  ;;  %v6201_v60 = vld [vmem:[%s11408_s0 + $0x18] sm:$0xff] }
 0x268   :  { %v5675_v10 = vpack.c.bf16 %v345_v2, %v335_v1  ;;  %v436_v22 = vld [vmem:[%s11407_s1 + $0xc28] sm:$0xff]  ;;  %v446_v61 = vld [vmem:[%s11407_s1 + $0xc78] sm:$0xff]  ;;  %v5691_v2 = vpack.c.bf16 %v425_v59, %v415_v58  ;;  %v515_v59 = vld [vmem:[%s11407_s1 + $0xea0] sm:$0xff] }
 0x269   :  { %5656 = vmatpush1.bf16.msra.mxu0 %v5655_v7  ;;  %v366_v7 = vld [vmem:[%s11407_s1 + $0x9f8] sm:$0xff]  ;;  %v3395_v1 = vld [vmem:[%s11410_s3 + $0x228] sm:$0xff] }
 0x26a   :  { %5944 = vmatpush3.bf16.msra.mxu1 %v5943_v8  ;;  %5658 = vmatprep.subr.bf16.mxu0 %v5657_v9  ;;  %v3388_v8 = vld [vmem:[%s11410_s3 + $0x1f0] sm:$0xff]  ;;  %v3389_v9 = vld [vmem:[%s11410_s3 + $0x1f8] sm:$0xff]  ;;  %v5677_v13 = vpack.c.bf16 %v366_v7, %v356_v17  ;;  %v456_v7 = vld [vmem:[%s11407_s1 + $0xcc8] sm:$0xff] }
 0x26b   :  { %5946 = vmatprep.subr.bf16.mxu1 %v5945_v14  ;;  %v355_v14 = vld [vmem:[%s11407_s1 + $0x9a0] sm:$0xff]  ;;  %v5965_v21 = vpack.c.bf16 %v3389_v9, %v3388_v8  ;;  %v445_v17 = vld [vmem:[%s11407_s1 + $0xc70] sm:$0xff]  ;;  %v466_v8 = vld [vmem:[%s11407_s1 + $0xd18] sm:$0xff] }
 0x26c   :  { %v5679_v28 = vpack.c.bf16 %v365_v15, %v355_v14  ;;  %v5695_v14 = vpack.c.bf16 %v445_v17, %v435_v6  ;;  %v3414_v15 = vld [vmem:[%s11410_s3 + $0x2c0] sm:$0xff]  ;;  %v5697_v19 = vpack.c.bf16 %v466_v8, %v456_v7  ;;  %v545_v17 = vld [vmem:[%s11407_s1 + $0xf90] sm:$0xff]  ;;  %v556_v7 = vld [vmem:[%s11407_s1 + $0xfe8] sm:$0xff] }
 0x26d   :  { %5660 = vmatpush1.bf16.msra.mxu0 %v5659_v24  ;;  %v376_v24 = vld [vmem:[%s11407_s1 + $0xa48] sm:$0xff]  ;;  %v535_v6 = vld [vmem:[%s11407_s1 + $0xf40] sm:$0xff]  ;;  %v566_v8 = vld [vmem:[%s11407_s1 + $0x1038] sm:$0xff] }
 0x26e   :  { %5948 = vmatpush3.bf16.msra.mxu1 %v5947_v26  ;;  %5662 = vmatprep.subr.bf16.mxu0 %v5661_v27  ;;  %v386_v26 = vld [vmem:[%s11407_s1 + $0xa98] sm:$0xff]  ;;  %v3406_v27 = vld [vmem:[%s11410_s3 + $0x280] sm:$0xff] }
 0x26f   :  { %5950 = vmatprep.subr.bf16.mxu1 %v5949_v31  ;;  %v5681_v30 = vpack.c.bf16 %v386_v26, %v376_v24  ;;  %v375_v31 = vld [vmem:[%s11407_s1 + $0xa40] sm:$0xff]  ;;  %v5969_v36 = vpack.c.bf16 %v3407_v41, %v3406_v27  ;;  %v476_v24 = vld [vmem:[%s11407_s1 + $0xd68] sm:$0xff]  ;;  %v486_v26 = vld [vmem:[%s11407_s1 + $0xdb8] sm:$0xff]  ;;  %v5985_v41 = vpack.c.bf16 %v3415_v16, %v3414_v15 }
 0x270   :  { %v5683_v20 = vpack.c.bf16 %v385_v32, %v375_v31  ;;  %v3416_v31 = vld [vmem:[%s11410_s3 + $0x2d0] sm:$0xff]  ;;  %v3417_v32 = vld [vmem:[%s11410_s3 + $0x2d8] sm:$0xff]  ;;  %v5701_v33 = vpack.c.bf16 %v486_v26, %v476_v24  ;;  %v576_v16 = vld [vmem:[%s11407_s1 + $0x1088] sm:$0xff] }
 0x271   :  { %5664 = vmatpush1.bf16.msra.mxu0 %v5663_v37  ;;  %v3390_v37 = vld [vmem:[%s11410_s3 + $0x200] sm:$0xff]  ;;  %v565_v15 = vld [vmem:[%s11407_s1 + $0x1030] sm:$0xff] }
 0x272   :  { %5952 = vmatpush3.bf16.msra.mxu1 %v5951_v39  ;;  %5666 = vmatprep.subr.bf16.mxu0 %v5665_v40  ;;  %v3391_v39 = vld [vmem:[%s11410_s3 + $0x208] sm:$0xff]  ;;  %v3408_v40 = vld [vmem:[%s11410_s3 + $0x290] sm:$0xff]  ;;  %v575_v24 = vld [vmem:[%s11407_s1 + $0x1080] sm:$0xff] }
 0x273   :  { %5954 = vmatprep.subr.bf16.mxu1 %v5953_v46  ;;  %v405_v46 = vld [vmem:[%s11407_s1 + $0xb30] sm:$0xff]  ;;  %v5971_v50 = vpack.c.bf16 %v3391_v39, %v3390_v37  ;;  %v506_v37 = vld [vmem:[%s11407_s1 + $0xe58] sm:$0xff] }
 0x274   :  { %v5687_v55 = vpack.c.bf16 %v405_v46, %v395_v45  ;;  %v3418_v45 = vld [vmem:[%s11410_s3 + $0x2e0] sm:$0xff]  ;;  %v3419_v46 = vld [vmem:[%s11410_s3 + $0x2e8] sm:$0xff]  ;;  %v585_v26 = vld [vmem:[%s11407_s1 + $0x10d0] sm:$0xff] }
 0x275   :  { %5668 = vmatpush1.bf16.msra.mxu0 %v5667_v52  ;;  %v5973_v52 = vpack.c.bf16 %v3409_v42, %v3408_v40  ;;  %v3400_v40 = vld [vmem:[%s11410_s3 + $0x250] sm:$0xff]  ;;  %v3401_v42 = vld [vmem:[%s11410_s3 + $0x258] sm:$0xff] }
 0x276   :  { %5956 = vmatpush3.bf16.msra.mxu1 %v5955_v53  ;;  %5670 = vmatprep.subr.bf16.mxu0 %v5669_v54  ;;  %v3392_v53 = vld [vmem:[%s11410_s3 + $0x210] sm:$0xff]  ;;  %v3393_v54 = vld [vmem:[%s11410_s3 + $0x218] sm:$0xff] }
 0x277   :  { %5958 = vmatprep.subr.bf16.mxu1 %v5957_v57  ;;  %v5689_v57 = vpack.c.bf16 %v426_v49, %v416_v48  ;;  %v495_v48 = vld [vmem:[%s11407_s1 + $0xe00] sm:$0xff]  ;;  %v505_v49 = vld [vmem:[%s11407_s1 + $0xe50] sm:$0xff] }
 0x279   :  { %5672 = vmatpush1.bf16.msra.mxu0 %v5671_v62  ;;  %v5975_v62 = vpack.c.bf16 %v3393_v54, %v3392_v53  ;;  %v5993_v53 = vpack.c.bf16 %v3419_v46, %v3418_v45  ;;  %v3402_v54 = vld [vmem:[%s11410_s3 + $0x260] sm:$0xff]  ;;  %v645_v45 = vld [vmem:[%s11407_s1 + $0x12b0] sm:$0xff]  ;;  %v656_v46 = vld [vmem:[%s11407_s1 + $0x1308] sm:$0xff] }
 0x27a   :  { %5960 = vmatpush3.bf16.msra.mxu1 %v5959_v63  ;;  %5674 = vmatprep.subr.bf16.mxu0 %v5673_v0  ;;  %v5977_v63 = vpack.c.bf16 %v3411_v12, %v3410_v56  ;;  %v3394_v0 = vld [vmem:[%s11410_s3 + $0x220] sm:$0xff]  ;;  %v5707_v56 = vpack.c.bf16 %v505_v49, %v495_v48  ;;  %v3420_v12 = vld [vmem:[%s11410_s3 + $0x2f0] sm:$0xff] }
 0x27b   :  { %5962 = vmatprep.subr.bf16.mxu1 %v5961_v5  ;;  %v5693_v5 = vpack.c.bf16 %v446_v61, %v436_v22  ;;  %v5979_v9 = vpack.c.bf16 %v3395_v1, %v3394_v0  ;;  %v536_v22 = vld [vmem:[%s11407_s1 + $0xf48] sm:$0xff]  ;;  %v546_v61 = vld [vmem:[%s11407_s1 + $0xf98] sm:$0xff]  ;;  %v3404_v0 = vld [vmem:[%s11410_s3 + $0x270] sm:$0xff] }
 0x27c   :  { %v3405_v1 = vld [vmem:[%s11410_s3 + $0x278] sm:$0xff] }
 0x27d   :  { %5676 = vmatpush1.bf16.msra.mxu0 %v5675_v10  ;;  %v5981_v10 = vpack.c.bf16 %v3413_v4, %v3412_v3  ;;  %v3438_v3 = vld [vmem:[%s11410_s3 + $0x380] sm:$0xff]  ;;  %v3439_v4 = vld [vmem:[%s11410_s3 + $0x388] sm:$0xff] }
 0x27e   :  { %5964 = vmatpush3.bf16.msra.mxu1 %v5963_v11  ;;  %5678 = vmatprep.subr.bf16.mxu0 %v5677_v13  ;;  %v3396_v11 = vld [vmem:[%s11410_s3 + $0x230] sm:$0xff]  ;;  %v3397_v13 = vld [vmem:[%s11410_s3 + $0x238] sm:$0xff] }
 0x27f   :  { %5966 = vmatprep.subr.bf16.mxu1 %v5965_v21  ;;  %v455_v21 = vld [vmem:[%s11407_s1 + $0xcc0] sm:$0xff]  ;;  %v5983_v27 = vpack.c.bf16 %v3397_v13, %v3396_v11  ;;  %v5715_v11 = vpack.c.bf16 %v545_v17, %v535_v6  ;;  %v5717_v13 = vpack.c.bf16 %v566_v8, %v556_v7  ;;  %v6202_v6 = vld [vmem:[%s11408_s0 + $0x10] sm:$0xff]  ;;  %v6203_v7 = vld [vmem:[%s11408_s0 + $0x28] sm:$0xff] }
 0x281   :  { %5680 = vmatpush1.bf16.msra.mxu0 %v5679_v28  ;;  %v3398_v28 = vld [vmem:[%s11410_s3 + $0x240] sm:$0xff] }
 0x282   :  { %5968 = vmatpush3.bf16.msra.mxu1 %v5967_v29  ;;  %5682 = vmatprep.subr.bf16.mxu0 %v5681_v30  ;;  %v3399_v29 = vld [vmem:[%s11410_s3 + $0x248] sm:$0xff]  ;;  %v5699_v30 = vpack.c.bf16 %v465_v23, %v455_v21 }
 0x283   :  { %5970 = vmatprep.subr.bf16.mxu1 %v5969_v36  ;;  %v496_v36 = vld [vmem:[%s11407_s1 + $0xe08] sm:$0xff]  ;;  %v5987_v39 = vpack.c.bf16 %v3399_v29, %v3398_v28  ;;  %v5723_v28 = vpack.c.bf16 %v585_v26, %v575_v24 }
 0x284   :  { %3026 = vmatmul.mubr.f32.vlgmr.msra.gmra.mrb[4].mxu0 %v6200_v51  ;;  %v526_v51 = vld [vmem:[%s11407_s1 + $0xef8] sm:$0xff] }
 0x285   :  { %3628 = vmatmul.mubr.f32.vlgmr.msra.gmra.mrb[6].mxu1 %v3318_v47  ;;  %5684 = vmatpush1.bf16.msra.mxu0 %v5683_v20  ;;  %v5989_v20 = vpack.c.bf16 %v3417_v32, %v3416_v31  ;;  %v5705_v47 = vpack.c.bf16 %v506_v37, %v496_v36  ;;  %v605_v31 = vld [vmem:[%s11407_s1 + $0x1170] sm:$0xff]  ;;  %v616_v32 = vld [vmem:[%s11407_s1 + $0x11c8] sm:$0xff]  ;;  %v615_v36 = vld [vmem:[%s11407_s1 + $0x11c0] sm:$0xff] }
 0x286   :  { %5686 = vmatprep.subr.bf16.mxu0 %v5685_v43  ;;  %3096 = vmatprep.mubr.f32.mxu0 %v6201_v60  ;;  %v5703_v43 = vpack.c.bf16 %v485_v35, %v475_v34  ;;  %v525_v60 = vld [vmem:[%s11407_s1 + $0xef0] sm:$0xff] }
 0x287   :  { %5972 = vmatpush3.bf16.msra.mxu1 %v5971_v50  ;;  %v516_v50 = vld [vmem:[%s11407_s1 + $0xea8] sm:$0xff]  ;;  %v625_v37 = vld [vmem:[%s11407_s1 + $0x1210] sm:$0xff] }
 0x288   :  { %5974 = vmatprep.subr.bf16.mxu1 %v5973_v52  ;;  %v5991_v52 = vpack.c.bf16 %v3401_v42, %v3400_v40  ;;  %v5709_v58 = vpack.c.bf16 %v526_v51, %v516_v50  ;;  %v5731_v40 = vpack.c.bf16 %v625_v37, %v615_v36  ;;  %v655_v50 = vld [vmem:[%s11407_s1 + $0x1300] sm:$0xff]  ;;  %v665_v51 = vld [vmem:[%s11407_s1 + $0x1350] sm:$0xff] }
 0x289   :  { %5688 = vmatpush1.bf16.msra.mxu0 %v5687_v55  ;;  %v3403_v55 = vld [vmem:[%s11410_s3 + $0x268] sm:$0xff] }
 0x28a   :  { %5690 = vmatprep.subr.bf16.mxu0 %v5689_v57  ;;  %v3421_v57 = vld [vmem:[%s11410_s3 + $0x2f8] sm:$0xff] }
 0x28b   :  { %5976 = vmatpush3.bf16.msra.mxu1 %v5975_v62  ;;  %v5995_v62 = vpack.c.bf16 %v3403_v55, %v3402_v54  ;;  %v5739_v54 = vpack.c.bf16 %v665_v51, %v655_v50 }
 0x28c   :  { %5978 = vmatprep.subr.bf16.mxu1 %v5977_v63  ;;  %v5997_v63 = vpack.c.bf16 %v3421_v57, %v3420_v12  ;;  %v685_v12 = vld [vmem:[%s11407_s1 + $0x13f0] sm:$0xff]  ;;  %v696_v57 = vld [vmem:[%s11407_s1 + $0x1448] sm:$0xff] }
 0x28d   :  { %5692 = vmatpush1.bf16.msra.mxu0 %v5691_v2  ;;  %v5711_v2 = vpack.c.bf16 %v525_v60, %v515_v59 }
 0x28e   :  { %5694 = vmatprep.subr.bf16.mxu0 %v5693_v5  ;;  %v5713_v5 = vpack.c.bf16 %v546_v61, %v536_v22  ;;  %v695_v22 = vld [vmem:[%s11407_s1 + $0x1440] sm:$0xff]  ;;  %v705_v61 = vld [vmem:[%s11407_s1 + $0x1490] sm:$0xff] }
 0x28f   :  { %5980 = vmatpush3.bf16.msra.mxu1 %v5979_v9  ;;  %v5999_v9 = vpack.c.bf16 %v3405_v1, %v3404_v0  ;;  %v5747_v0 = vpack.c.bf16 %v705_v61, %v695_v22 }
 0x290   :  { %5982 = vmatprep.subr.bf16.mxu1 %v5981_v10  ;;  %v6001_v10 = vpack.c.bf16 %v3439_v4, %v3438_v3  ;;  %v725_v3 = vld [vmem:[%s11407_s1 + $0x1530] sm:$0xff]  ;;  %v736_v4 = vld [vmem:[%s11407_s1 + $0x1588] sm:$0xff] }
 0x291   :  { %5696 = vmatpush1.bf16.msra.mxu0 %v5695_v14  ;;  %v555_v14 = vld [vmem:[%s11407_s1 + $0xfe0] sm:$0xff] }
 0x292   :  { %5698 = vmatprep.subr.bf16.mxu0 %v5697_v19  ;;  %v586_v19 = vld [vmem:[%s11407_s1 + $0x10d8] sm:$0xff]  ;;  %v5719_v21 = vpack.c.bf16 %v565_v15, %v555_v14 }
 0x293   :  { %5984 = vmatpush3.bf16.msra.mxu1 %v5983_v27  ;;  %v5721_v23 = vpack.c.bf16 %v586_v19, %v576_v16  ;;  %v596_v27 = vld [vmem:[%s11407_s1 + $0x1128] sm:$0xff]  ;;  %v755_v16 = vld [vmem:[%s11407_s1 + $0x1620] sm:$0xff]  ;;  %v765_v19 = vld [vmem:[%s11407_s1 + $0x1670] sm:$0xff] }
 0x294   :  { %5986 = vmatprep.subr.bf16.mxu1 %v5985_v41  ;;  %v606_v41 = vld [vmem:[%s11407_s1 + $0x1178] sm:$0xff]  ;;  %v5759_v24 = vpack.c.bf16 %v765_v19, %v755_v16  ;;  %v955_v16 = vld [vmem:[%s11407_s1 + $0x1c60] sm:$0xff]  ;;  %v965_v19 = vld [vmem:[%s11407_s1 + $0x1cb0] sm:$0xff] }
 0x295   :  { %5700 = vmatpush1.bf16.msra.mxu0 %v5699_v30  ;;  %v5725_v29 = vpack.c.bf16 %v606_v41, %v596_v27  ;;  %v595_v30 = vld [vmem:[%s11407_s1 + $0x1120] sm:$0xff]  ;;  %v785_v41 = vld [vmem:[%s11407_s1 + $0x1710] sm:$0xff] }
 0x296   :  { %5702 = vmatprep.subr.bf16.mxu0 %v5701_v33  ;;  %v626_v33 = vld [vmem:[%s11407_s1 + $0x1218] sm:$0xff]  ;;  %v5727_v34 = vpack.c.bf16 %v605_v31, %v595_v30  ;;  %v775_v27 = vld [vmem:[%s11407_s1 + $0x16c0] sm:$0xff] }
 0x297   :  { %5988 = vmatpush3.bf16.msra.mxu1 %v5987_v39  ;;  %v5729_v35 = vpack.c.bf16 %v626_v33, %v616_v32  ;;  %v636_v39 = vld [vmem:[%s11407_s1 + $0x1268] sm:$0xff]  ;;  %v5763_v30 = vpack.c.bf16 %v785_v41, %v775_v27  ;;  %v795_v32 = vld [vmem:[%s11407_s1 + $0x1760] sm:$0xff]  ;;  %v805_v33 = vld [vmem:[%s11407_s1 + $0x17b0] sm:$0xff] }
 0x298   :  { %5990 = vmatprep.subr.bf16.mxu1 %v5989_v20  ;;  %v646_v20 = vld [vmem:[%s11407_s1 + $0x12b8] sm:$0xff]  ;;  %v5767_v36 = vpack.c.bf16 %v805_v33, %v795_v32  ;;  %v975_v27 = vld [vmem:[%s11407_s1 + $0x1d00] sm:$0xff]  ;;  %v985_v41 = vld [vmem:[%s11407_s1 + $0x1d50] sm:$0xff] }
 0x299   :  { %5704 = vmatpush1.bf16.msra.mxu0 %v5703_v43  ;;  %v5733_v42 = vpack.c.bf16 %v646_v20, %v636_v39  ;;  %v635_v43 = vld [vmem:[%s11407_s1 + $0x1260] sm:$0xff]  ;;  %v825_v20 = vld [vmem:[%s11407_s1 + $0x1850] sm:$0xff] }
 0x29a   :  { %5706 = vmatprep.subr.bf16.mxu0 %v5705_v47  ;;  %v666_v47 = vld [vmem:[%s11407_s1 + $0x1358] sm:$0xff]  ;;  %v5735_v48 = vpack.c.bf16 %v645_v45, %v635_v43  ;;  %v815_v39 = vld [vmem:[%s11407_s1 + $0x1800] sm:$0xff]  ;;  %v1005_v33 = vld [vmem:[%s11407_s1 + $0x1df0] sm:$0xff] }
 0x29b   :  { %5992 = vmatpush3.bf16.msra.mxu1 %v5991_v52  ;;  %v5737_v49 = vpack.c.bf16 %v666_v47, %v656_v46  ;;  %v676_v52 = vld [vmem:[%s11407_s1 + $0x13a8] sm:$0xff]  ;;  %v5771_v43 = vpack.c.bf16 %v825_v20, %v815_v39  ;;  %v835_v46 = vld [vmem:[%s11407_s1 + $0x18a0] sm:$0xff]  ;;  %v845_v47 = vld [vmem:[%s11407_s1 + $0x18f0] sm:$0xff] }
 0x29c   :  { %5994 = vmatprep.subr.bf16.mxu1 %v5993_v53  ;;  %v686_v53 = vld [vmem:[%s11407_s1 + $0x13f8] sm:$0xff]  ;;  %v5775_v50 = vpack.c.bf16 %v845_v47, %v835_v46  ;;  %v995_v32 = vld [vmem:[%s11407_s1 + $0x1da0] sm:$0xff]  ;;  %v1025_v20 = vld [vmem:[%s11407_s1 + $0x1e90] sm:$0xff] }
 0x29d   :  { %5708 = vmatpush1.bf16.msra.mxu0 %v5707_v56  ;;  %v5741_v55 = vpack.c.bf16 %v686_v53, %v676_v52  ;;  %v675_v56 = vld [vmem:[%s11407_s1 + $0x13a0] sm:$0xff]  ;;  %v865_v53 = vld [vmem:[%s11407_s1 + $0x1990] sm:$0xff] }
 0x29e   :  { %5710 = vmatprep.subr.bf16.mxu0 %v5709_v58  ;;  %v706_v58 = vld [vmem:[%s11407_s1 + $0x1498] sm:$0xff]  ;;  %v5743_v59 = vpack.c.bf16 %v685_v12, %v675_v56  ;;  %v855_v52 = vld [vmem:[%s11407_s1 + $0x1940] sm:$0xff]  ;;  %v1045_v47 = vld [vmem:[%s11407_s1 + $0x1f30] sm:$0xff] }
 0x29f   :  { %5996 = vmatpush3.bf16.msra.mxu1 %v5995_v62  ;;  %v5745_v60 = vpack.c.bf16 %v706_v58, %v696_v57  ;;  %v716_v62 = vld [vmem:[%s11407_s1 + $0x14e8] sm:$0xff]  ;;  %v5779_v56 = vpack.c.bf16 %v865_v53, %v855_v52  ;;  %v875_v57 = vld [vmem:[%s11407_s1 + $0x19e0] sm:$0xff]  ;;  %v885_v58 = vld [vmem:[%s11407_s1 + $0x1a30] sm:$0xff] }
 0x2a0   :  { %5998 = vmatprep.subr.bf16.mxu1 %v5997_v63  ;;  %v726_v63 = vld [vmem:[%s11407_s1 + $0x1538] sm:$0xff]  ;;  %v5783_v22 = vpack.c.bf16 %v885_v58, %v875_v57  ;;  %v1015_v39 = vld [vmem:[%s11407_s1 + $0x1e40] sm:$0xff] }
 0x2a1   :  { %5712 = vmatpush1.bf16.msra.mxu0 %v5711_v2  ;;  %v5749_v1 = vpack.c.bf16 %v726_v63, %v716_v62  ;;  %v715_v2 = vld [vmem:[%s11407_s1 + $0x14e0] sm:$0xff]  ;;  %v905_v63 = vld [vmem:[%s11407_s1 + $0x1ad0] sm:$0xff]  ;;  %v6205_v52 = vld [vmem:[%s11408_s0 + $0x38] sm:$0xff] }
 0x2a2   :  { %5714 = vmatprep.subr.bf16.mxu0 %v5713_v5  ;;  %v746_v5 = vld [vmem:[%s11407_s1 + $0x15d8] sm:$0xff]  ;;  %v5751_v17 = vpack.c.bf16 %v725_v3, %v715_v2  ;;  %v895_v62 = vld [vmem:[%s11407_s1 + $0x1a80] sm:$0xff] }
 0x2a3   :  { %6000 = vmatpush3.bf16.msra.mxu1 %v5999_v9  ;;  %v5753_v8 = vpack.c.bf16 %v746_v5, %v736_v4  ;;  %v735_v9 = vld [vmem:[%s11407_s1 + $0x1580] sm:$0xff]  ;;  %v5787_v2 = vpack.c.bf16 %v905_v63, %v895_v62  ;;  %v925_v5 = vld [vmem:[%s11407_s1 + $0x1b70] sm:$0xff] }
 0x2a4   :  { %6002 = vmatprep.subr.bf16.mxu1 %v6001_v10  ;;  %v745_v10 = vld [vmem:[%s11407_s1 + $0x15d0] sm:$0xff]  ;;  %v915_v4 = vld [vmem:[%s11407_s1 + $0x1b20] sm:$0xff] }
 0x2a5   :  { %5716 = vmatpush1.bf16.msra.mxu0 %v5715_v11  ;;  %v756_v11 = vld [vmem:[%s11407_s1 + $0x1628] sm:$0xff]  ;;  %v5755_v14 = vpack.c.bf16 %v745_v10, %v735_v9  ;;  %v935_v9 = vld [vmem:[%s11407_s1 + $0x1bc0] sm:$0xff]  ;;  %v945_v10 = vld [vmem:[%s11407_s1 + $0x1c10] sm:$0xff] }
 0x2a6   :  { %5718 = vmatprep.subr.bf16.mxu0 %v5717_v13  ;;  %v766_v13 = vld [vmem:[%s11407_s1 + $0x1678] sm:$0xff]  ;;  %v1035_v46 = vld [vmem:[%s11407_s1 + $0x1ee0] sm:$0xff] }
 0x2a7   :  { %v5757_v15 = vpack.c.bf16 %v766_v13, %v756_v11  ;;  %v956_v11 = vld [vmem:[%s11407_s1 + $0x1c68] sm:$0xff]  ;;  %v966_v13 = vld [vmem:[%s11407_s1 + $0x1cb8] sm:$0xff] }
 0x2a9   :  { %5720 = vmatpush1.bf16.msra.mxu0 %v5719_v21  ;;  %v776_v21 = vld [vmem:[%s11407_s1 + $0x16c8] sm:$0xff] }
 0x2aa   :  { %5722 = vmatprep.subr.bf16.mxu0 %v5721_v23  ;;  %v786_v23 = vld [vmem:[%s11407_s1 + $0x1718] sm:$0xff] }
 0x2ab   :  { %v5761_v26 = vpack.c.bf16 %v786_v23, %v776_v21  ;;  %v976_v21 = vld [vmem:[%s11407_s1 + $0x1d08] sm:$0xff]  ;;  %v986_v23 = vld [vmem:[%s11407_s1 + $0x1d58] sm:$0xff] }
 0x2ad   :  { %5724 = vmatpush1.bf16.msra.mxu0 %v5723_v28  ;;  %v796_v28 = vld [vmem:[%s11407_s1 + $0x1768] sm:$0xff] }
 0x2ae   :  { %5726 = vmatprep.subr.bf16.mxu0 %v5725_v29  ;;  %v806_v29 = vld [vmem:[%s11407_s1 + $0x17b8] sm:$0xff] }
 0x2af   :  { %v5765_v31 = vpack.c.bf16 %v806_v29, %v796_v28  ;;  %v996_v28 = vld [vmem:[%s11407_s1 + $0x1da8] sm:$0xff]  ;;  %v1006_v29 = vld [vmem:[%s11407_s1 + $0x1df8] sm:$0xff] }
 0x2b1   :  { %5728 = vmatpush1.bf16.msra.mxu0 %v5727_v34  ;;  %v816_v34 = vld [vmem:[%s11407_s1 + $0x1808] sm:$0xff] }
 0x2b2   :  { %5730 = vmatprep.subr.bf16.mxu0 %v5729_v35  ;;  %v826_v35 = vld [vmem:[%s11407_s1 + $0x1858] sm:$0xff] }
 0x2b3   :  { %v5769_v37 = vpack.c.bf16 %v826_v35, %v816_v34  ;;  %v1016_v34 = vld [vmem:[%s11407_s1 + $0x1e48] sm:$0xff]  ;;  %v1026_v35 = vld [vmem:[%s11407_s1 + $0x1e98] sm:$0xff] }
 0x2b5   :  { %5732 = vmatpush1.bf16.msra.mxu0 %v5731_v40  ;;  %v836_v40 = vld [vmem:[%s11407_s1 + $0x18a8] sm:$0xff] }
 0x2b6   :  { %5734 = vmatprep.subr.bf16.mxu0 %v5733_v42  ;;  %v846_v42 = vld [vmem:[%s11407_s1 + $0x18f8] sm:$0xff] }
 0x2b7   :  { %v5773_v45 = vpack.c.bf16 %v846_v42, %v836_v40  ;;  %v1036_v40 = vld [vmem:[%s11407_s1 + $0x1ee8] sm:$0xff]  ;;  %v1046_v42 = vld [vmem:[%s11407_s1 + $0x1f38] sm:$0xff] }
 0x2b9   :  { %5736 = vmatpush1.bf16.msra.mxu0 %v5735_v48  ;;  %v856_v48 = vld [vmem:[%s11407_s1 + $0x1948] sm:$0xff] }
 0x2ba   :  { %5738 = vmatprep.subr.bf16.mxu0 %v5737_v49  ;;  %v866_v49 = vld [vmem:[%s11407_s1 + $0x1998] sm:$0xff] }
 0x2bb   :  { %v5777_v51 = vpack.c.bf16 %v866_v49, %v856_v48  ;;  %v1056_v48 = vld [vmem:[%s11407_s1 + $0x1f88] sm:$0xff]  ;;  %v1066_v49 = vld [vmem:[%s11407_s1 + $0x1fd8] sm:$0xff] }
 0x2bc   :  { %v5817_v53 = vpack.c.bf16 %v1066_v49, %v1056_v48 }
 0x2bd   :  { %5740 = vmatpush1.bf16.msra.mxu0 %v5739_v54  ;;  %v876_v54 = vld [vmem:[%s11407_s1 + $0x19e8] sm:$0xff] }
 0x2be   :  { %5742 = vmatprep.subr.bf16.mxu0 %v5741_v55  ;;  %v886_v55 = vld [vmem:[%s11407_s1 + $0x1a38] sm:$0xff] }
 0x2bf   :  { %v5781_v12 = vpack.c.bf16 %v886_v55, %v876_v54  ;;  %v1055_v54 = vld [vmem:[%s11407_s1 + $0x1f80] sm:$0xff]  ;;  %v1065_v55 = vld [vmem:[%s11407_s1 + $0x1fd0] sm:$0xff] }
 0x2c0   :  { %v5819_v57 = vpack.c.bf16 %v1065_v55, %v1055_v54  ;;  %v3442_v54 = vld [vmem:[%s11410_s3 + $0x3a0] sm:$0xff]  ;;  %v3443_v55 = vld [vmem:[%s11410_s3 + $0x3a8] sm:$0xff] }
 0x2c1   :  { %5744 = vmatpush1.bf16.msra.mxu0 %v5743_v59  ;;  %v896_v59 = vld [vmem:[%s11407_s1 + $0x1a88] sm:$0xff] }
 0x2c2   :  { %5746 = vmatprep.subr.bf16.mxu0 %v5745_v60  ;;  %v906_v60 = vld [vmem:[%s11407_s1 + $0x1ad8] sm:$0xff] }
 0x2c3   :  { %v5785_v61 = vpack.c.bf16 %v906_v60, %v896_v59  ;;  %v1075_v59 = vld [vmem:[%s11407_s1 + $0x2020] sm:$0xff]  ;;  %v1085_v60 = vld [vmem:[%s11407_s1 + $0x2070] sm:$0xff] }
 0x2c4   :  { %3097 = vmatmul.mubr.f32.vlgmr.msra.gmra.mrb[4].mxu0 %v6202_v6  ;;  %v936_v6 = vld [vmem:[%s11407_s1 + $0x1bc8] sm:$0xff]  ;;  %v5823_v62 = vpack.c.bf16 %v1085_v60, %v1075_v59  ;;  %v1206_v60 = vld [vmem:[%s11407_s1 + $0x2438] sm:$0xff] }
 0x2c5   :  { %5748 = vmatpush1.bf16.msra.mxu0 %v5747_v0  ;;  %3167 = vmatprep.mubr.f32.mxu0 %v6203_v7  ;;  %v916_v0 = vld [vmem:[%s11407_s1 + $0x1b28] sm:$0xff]  ;;  %v5791_v7 = vpack.c.bf16 %v925_v5, %v915_v4  ;;  %v1509_v4 = vsub.s32 4, %v9749_v25 }
 0x2c6   :  { %5750 = vmatprep.subr.bf16.mxu0 %v5749_v1  ;;  %v926_v1 = vld [vmem:[%s11407_s1 + $0x1b78] sm:$0xff]  ;;  %v1196_v59 = vld [vmem:[%s11407_s1 + $0x23e8] sm:$0xff] }
 0x2c7   :  { %v5789_v3 = vpack.c.bf16 %v926_v1, %v916_v0  ;;  %v1095_v0 = vld [vmem:[%s11407_s1 + $0x20c0] sm:$0xff]  ;;  %v1105_v1 = vld [vmem:[%s11407_s1 + $0x2110] sm:$0xff] }
 0x2c8   :  { %v5827_v5 = vpack.c.bf16 %v1105_v1, %v1095_v0  ;;  %v3444_v0 = vld [vmem:[%s11410_s3 + $0x3b0] sm:$0xff]  ;;  %v3445_v1 = vld [vmem:[%s11410_s3 + $0x3b8] sm:$0xff] }
 0x2c9   :  { %5752 = vmatpush1.bf16.msra.mxu0 %v5751_v17  ;;  %v946_v17 = vld [vmem:[%s11407_s1 + $0x1c18] sm:$0xff] }
 0x2ca   :  { %5754 = vmatprep.subr.bf16.mxu0 %v5753_v8  ;;  %v5793_v8 = vpack.c.bf16 %v946_v17, %v936_v6  ;;  %v1513_v6 = vsub.s32 5, %v9749_v25 }
 0x2cd   :  { %5756 = vmatpush1.bf16.msra.mxu0 %v5755_v14  ;;  %v5795_v14 = vpack.c.bf16 %v945_v10, %v935_v9  ;;  %v1521_v9 = vsub.s32 7, %v9749_v25  ;;  %v1136_v10 = vld [vmem:[%s11407_s1 + $0x2208] sm:$0xff] }
 0x2ce   :  { %5758 = vmatprep.subr.bf16.mxu0 %v5757_v15  ;;  %v5797_v15 = vpack.c.bf16 %v966_v13, %v956_v11  ;;  %v1146_v11 = vld [vmem:[%s11407_s1 + $0x2258] sm:$0xff]  ;;  %v10792_v13 = vld [vmem:[%s11409_s2] sm:$0xff] }
 0x2d1   :  { %5760 = vmatpush1.bf16.msra.mxu0 %v5759_v24  ;;  %v5799_v24 = vpack.c.bf16 %v965_v19, %v955_v16  ;;  %v5833_v19 = vpack.c.bf16 %v1146_v11, %v1136_v10  ;;  %v3446_v11 = vld [vmem:[%s11410_s3 + $0x3c0] sm:$0xff] }
 0x2d2   :  { %5762 = vmatprep.subr.bf16.mxu0 %v5761_v26  ;;  %v5801_v26 = vpack.c.bf16 %v986_v23, %v976_v21  ;;  %v1135_v21 = vld [vmem:[%s11407_s1 + $0x2200] sm:$0xff]  ;;  %v1145_v23 = vld [vmem:[%s11407_s1 + $0x2250] sm:$0xff] }
 0x2d5   :  { %5764 = vmatpush1.bf16.msra.mxu0 %v5763_v30  ;;  %v5803_v30 = vpack.c.bf16 %v985_v41, %v975_v27  ;;  %v1156_v27 = vld [vmem:[%s11407_s1 + $0x22a8] sm:$0xff]  ;;  %v1166_v41 = vld [vmem:[%s11407_s1 + $0x22f8] sm:$0xff] }
 0x2d6   :  { %5766 = vmatprep.subr.bf16.mxu0 %v5765_v31  ;;  %v5805_v31 = vpack.c.bf16 %v1006_v29, %v996_v28 }
 0x2d9   :  { %5768 = vmatpush1.bf16.msra.mxu0 %v5767_v36  ;;  %v5807_v36 = vpack.c.bf16 %v1005_v33, %v995_v32 }
 0x2da   :  { %5770 = vmatprep.subr.bf16.mxu0 %v5769_v37  ;;  %v5809_v37 = vpack.c.bf16 %v1026_v35, %v1016_v34  ;;  %v5835_v34 = vpack.c.bf16 %v1145_v23, %v1135_v21  ;;  %v3440_v35 = vld [vmem:[%s11410_s3 + $0x390] sm:$0xff]  ;;  %v1236_v23 = vld [vmem:[%s11407_s1 + $0x2528] sm:$0xff] }
 0x2dd   :  { %5772 = vmatpush1.bf16.msra.mxu0 %v5771_v43  ;;  %v5811_v43 = vpack.c.bf16 %v1025_v20, %v1015_v39  ;;  %v5837_v39 = vpack.c.bf16 %v1166_v41, %v1156_v27  ;;  %v1155_v20 = vld [vmem:[%s11407_s1 + $0x22a0] sm:$0xff]  ;;  %v3431_v41 = vld [vmem:[%s11410_s3 + $0x348] sm:$0xff] }
 0x2de   :  { %5774 = vmatprep.subr.bf16.mxu0 %v5773_v45  ;;  %v5813_v45 = vpack.c.bf16 %v1046_v42, %v1036_v40  ;;  %v1165_v40 = vld [vmem:[%s11407_s1 + $0x22f0] sm:$0xff]  ;;  %v3430_v27 = vld [vmem:[%s11410_s3 + $0x340] sm:$0xff] }
 0x2e1   :  { %5776 = vmatpush1.bf16.msra.mxu0 %v5775_v50  ;;  %v6204_v50 = vld [vmem:[%s11408_s0 + $0x20] sm:$0xff] }
 0x2e2   :  { %5778 = vmatprep.subr.bf16.mxu0 %v5777_v51  ;;  %v5815_v51 = vpack.c.bf16 %v1045_v47, %v1035_v46  ;;  %v1176_v46 = vld [vmem:[%s11407_s1 + $0x2348] sm:$0xff]  ;;  %v1186_v47 = vld [vmem:[%s11407_s1 + $0x2398] sm:$0xff] }
 0x2e5   :  { %5780 = vmatpush1.bf16.msra.mxu0 %v5779_v56  ;;  %v1076_v56 = vld [vmem:[%s11407_s1 + $0x2028] sm:$0xff] }
 0x2e6   :  { %5782 = vmatprep.subr.bf16.mxu0 %v5781_v12  ;;  %v1086_v12 = vld [vmem:[%s11407_s1 + $0x2078] sm:$0xff] }
 0x2e7   :  { %v5821_v58 = vpack.c.bf16 %v1086_v12, %v1076_v56  ;;  %v5841_v56 = vpack.c.bf16 %v1186_v47, %v1176_v46  ;;  %v1175_v12 = vld [vmem:[%s11407_s1 + $0x2340] sm:$0xff]  ;;  %v1517_v47 = vsub.s32 6, %v9749_v25  ;;  %v3846_v25 = vld [vmem:[%s11412_s5 + $0x10] sm:$0xff] }
 0x2e9   :  { %5784 = vmatpush1.bf16.msra.mxu0 %v5783_v22  ;;  %v1096_v22 = vld [vmem:[%s11407_s1 + $0x20c8] sm:$0xff] }
 0x2ea   :  { %5786 = vmatprep.subr.bf16.mxu0 %v5785_v61  ;;  %v1106_v61 = vld [vmem:[%s11407_s1 + $0x2118] sm:$0xff] }
 0x2eb   :  { %v5825_v63 = vpack.c.bf16 %v1106_v61, %v1096_v22  ;;  %v6009_v22 = vpack.c.bf16 %v3443_v55, %v3442_v54  ;;  %v3426_v61 = vld [vmem:[%s11410_s3 + $0x320] sm:$0xff]  ;;  %v3435_v55 = vld [vmem:[%s11410_s3 + $0x368] sm:$0xff] }
 0x2ec   :  { %v3434_v54 = vld [vmem:[%s11410_s3 + $0x360] sm:$0xff] }
 0x2ed   :  { %5788 = vmatpush1.bf16.msra.mxu0 %v5787_v2  ;;  %v1116_v2 = vld [vmem:[%s11407_s1 + $0x2168] sm:$0xff] }
 0x2ee   :  { %5790 = vmatprep.subr.bf16.mxu0 %v5789_v3  ;;  %v1126_v3 = vld [vmem:[%s11407_s1 + $0x21b8] sm:$0xff] }
 0x2ef   :  { %v5829_v17 = vpack.c.bf16 %v1126_v3, %v1116_v2  ;;  %v5845_v2 = vpack.c.bf16 %v1206_v60, %v1196_v59  ;;  %v1195_v3 = vld [vmem:[%s11407_s1 + $0x23e0] sm:$0xff] }
 0x2f0   :  { %v1275_v60 = vld [vmem:[%s11407_s1 + $0x2660] sm:$0xff] }
 0x2f1   :  { %5792 = vmatpush1.bf16.msra.mxu0 %v5791_v7  ;;  %v1115_v7 = vld [vmem:[%s11407_s1 + $0x2160] sm:$0xff] }
 0x2f2   :  { %5794 = vmatprep.subr.bf16.mxu0 %v5793_v8  ;;  %v1125_v8 = vld [vmem:[%s11407_s1 + $0x21b0] sm:$0xff] }
 0x2f3   :  { %v5831_v16 = vpack.c.bf16 %v1125_v8, %v1115_v7  ;;  %v6013_v7 = vpack.c.bf16 %v3445_v1, %v3444_v0  ;;  %v3428_v8 = vld [vmem:[%s11410_s3 + $0x330] sm:$0xff]  ;;  %v3437_v1 = vld [vmem:[%s11410_s3 + $0x378] sm:$0xff] }
 0x2f4   :  { %v3436_v0 = vld [vmem:[%s11410_s3 + $0x370] sm:$0xff] }
 0x2f5   :  { %5796 = vmatpush1.bf16.msra.mxu0 %v5795_v14  ;;  %v1510_v14 = vrot.slane %v10792_v13, %v1509_v4  ;;  %v1205_v4 = vld [vmem:[%s11407_s1 + $0x2430] sm:$0xff] }
 0x2f6   :  { %5798 = vmatprep.subr.bf16.mxu0 %v5797_v15  ;;  %v1514_v15 = vrot.slane %v10792_v13, %v1513_v6  ;;  %v1216_v6 = vld [vmem:[%s11407_s1 + $0x2488] sm:$0xff]  ;;  %v5847_v10 = vpack.c.bf16 %v1205_v4, %v1195_v3 }
 0x2f9   :  { %5800 = vmatpush1.bf16.msra.mxu0 %v5799_v24  ;;  %v1522_v24 = vrot.slane %v10792_v13, %v1521_v9  ;;  %v3429_v9 = vld [vmem:[%s11410_s3 + $0x338] sm:$0xff] }
 0x2fa   :  { %5802 = vmatprep.subr.bf16.mxu0 %v5801_v26  ;;  %v6015_v21 = vpack.c.bf16 %v3429_v9, %v3428_v8 }
 0x2fd   :  { %5804 = vmatpush1.bf16.msra.mxu0 %v5803_v30  ;;  %v3422_v30 = vld [vmem:[%s11410_s3 + $0x300] sm:$0xff] }
 0x2fe   :  { %5806 = vmatprep.subr.bf16.mxu0 %v5805_v31  ;;  %v3423_v31 = vld [vmem:[%s11410_s3 + $0x308] sm:$0xff] }
 0x301   :  { %5808 = vmatpush1.bf16.msra.mxu0 %v5807_v36  ;;  %v3441_v36 = vld [vmem:[%s11410_s3 + $0x398] sm:$0xff] }
 0x302   :  { %5810 = vmatprep.subr.bf16.mxu0 %v5809_v37  ;;  %v6005_v49 = vpack.c.bf16 %v3441_v36, %v3440_v35  ;;  %v6019_v35 = vpack.c.bf16 %v3431_v41, %v3430_v27  ;;  %v1256_v36 = vld [vmem:[%s11407_s1 + $0x25c8] sm:$0xff]  ;;  %v1335_v27 = vld [vmem:[%s11407_s1 + $0x2840] sm:$0xff]  ;;  %v1345_v41 = vld [vmem:[%s11407_s1 + $0x2890] sm:$0xff] }
 0x304   :  { %3168 = vmatmul.mubr.f32.vlgmr.msra.gmra.mrb[4].mxu0 %v6204_v50  ;;  %v3424_v50 = vld [vmem:[%s11410_s3 + $0x310] sm:$0xff] }
 0x305   :  { %5812 = vmatpush1.bf16.msra.mxu0 %v5811_v43  ;;  %3238 = vmatprep.mubr.f32.mxu0 %v6205_v52 }
 0x306   :  { %5814 = vmatprep.subr.bf16.mxu0 %v5813_v45  ;;  %v6003_v45 = vpack.c.bf16 %v3423_v31, %v3422_v30  ;;  %v3449_v30 = vld [vmem:[%s11410_s3 + $0x3d8] sm:$0xff] }
 0x309   :  { %5816 = vmatpush1.bf16.msra.mxu0 %v5815_v51  ;;  %v3425_v51 = vld [vmem:[%s11410_s3 + $0x318] sm:$0xff] }
 0x30a   :  { %5818 = vmatprep.subr.bf16.mxu0 %v5817_v53  ;;  %v5839_v53 = vpack.c.bf16 %v1165_v40, %v1155_v20  ;;  %v3432_v20 = vld [vmem:[%s11410_s3 + $0x350] sm:$0xff]  ;;  %v3433_v40 = vld [vmem:[%s11410_s3 + $0x358] sm:$0xff] }
 0x30d   :  { %5820 = vmatpush1.bf16.msra.mxu0 %v5819_v57  ;;  %v1185_v57 = vld [vmem:[%s11407_s1 + $0x2390] sm:$0xff] }
 0x30e   :  { %5822 = vmatprep.subr.bf16.mxu0 %v5821_v58  ;;  %v6007_v58 = vpack.c.bf16 %v3425_v51, %v3424_v50  ;;  %v6023_v50 = vpack.c.bf16 %v3433_v40, %v3432_v20  ;;  %v1276_v51 = vld [vmem:[%s11407_s1 + $0x2668] sm:$0xff]  ;;  %v1375_v40 = vld [vmem:[%s11407_s1 + $0x2980] sm:$0xff] }
 0x311   :  { %5824 = vmatpush1.bf16.msra.mxu0 %v5823_v62  ;;  %v3427_v62 = vld [vmem:[%s11410_s3 + $0x328] sm:$0xff] }
 0x312   :  { %5826 = vmatprep.subr.bf16.mxu0 %v5825_v63  ;;  %v5843_v63 = vpack.c.bf16 %v1185_v57, %v1175_v12  ;;  %v3452_v12 = vld [vmem:[%s11410_s3 + $0x3f0] sm:$0xff]  ;;  %v3453_v57 = vld [vmem:[%s11410_s3 + $0x3f8] sm:$0xff] }
 0x315   :  { %5828 = vmatpush1.bf16.msra.mxu0 %v5827_v5  ;;  %v6011_v5 = vpack.c.bf16 %v3427_v62, %v3426_v61  ;;  %v6027_v61 = vpack.c.bf16 %v3435_v55, %v3434_v54  ;;  %v1296_v62 = vld [vmem:[%s11407_s1 + $0x2708] sm:$0xff]  ;;  %v1415_v54 = vld [vmem:[%s11407_s1 + $0x2ac0] sm:$0xff]  ;;  %v1425_v55 = vld [vmem:[%s11407_s1 + $0x2b10] sm:$0xff] }
 0x316   :  { %5830 = vmatprep.subr.bf16.mxu0 %v5829_v17  ;;  %v1226_v17 = vld [vmem:[%s11407_s1 + $0x24d8] sm:$0xff] }
 0x317   :  { %v2601_v26 = vpop.f32.mrb[2].mxu0 }
 0x318   :  { %v6141_v28 = vadd.f32 %v2601_v26, %v1510_v14  ;;  %v2603_v29 = vpop.f32.mrb[3].mxu0  ;;  %v10815_v32 = vpop.f32.mrb[2].mxu1  ;;  %v3447_v14 = vld [vmem:[%s11410_s3 + $0x3c8] sm:$0xff] }
 0x319   :  { %v6142_v33 = vadd.f32 %v2603_v29, %v1514_v15  ;;  %5832 = vmatpush1.bf16.msra.mxu0 %v5831_v16  ;;  %v2958_v37 = vpop.f32.mrb[3].mxu1  ;;  %v5849_v15 = vpack.c.bf16 %v1226_v17, %v1216_v6  ;;  %v1215_v16 = vld [vmem:[%s11407_s1 + $0x2480] sm:$0xff]  ;;  %v6017_v26 = vpack.c.bf16 %v3447_v14, %v3446_v11  ;;  %v3448_v29 = vld [vmem:[%s11410_s3 + $0x3d0] sm:$0xff]  ;;  %v6031_v17 = vpack.c.bf16 %v3437_v1, %v3436_v0 }
 0x31a   :  { %5834 = vmatprep.subr.bf16.mxu0 %v5833_v19  ;;  %v6144_v42 = vadd.f32 %v2958_v37, %v1522_v24  ;;  %v3320_v48 = vmax.f32 %v6141_v28, 0.0  ;;  %v1225_v19 = vld [vmem:[%s11407_s1 + $0x24d0] sm:$0xff]  ;;  %v1246_v24 = vld [vmem:[%s11407_s1 + $0x2578] sm:$0xff]  ;;  %v4130_v1 = vld [vmem:[%s11411_s4] ss:$0 sm:$0xff] }
 0x31b   :  { %v3321_v43 = vmax.f32 %v6142_v33, 0.0  ;;  %v5851_v28 = vpack.c.bf16 %v1225_v19, %v1215_v16  ;;  %v5853_v31 = vpack.c.bf16 %v1246_v24, %v1236_v23  ;;  %v1235_v33 = vld [vmem:[%s11407_s1 + $0x2520] sm:$0xff]  ;;  %v1266_v37 = vld [vmem:[%s11407_s1 + $0x2618] sm:$0xff]  ;;  %v1305_v6 = vld [vmem:[%s11407_s1 + $0x2750] sm:$0xff] }
 0x31c   :  { %v3323_v52 = vmax.f32 %v6144_v42, 0.0  ;;  %v5857_v46 = vpack.c.bf16 %v1266_v37, %v1256_v36  ;;  %v1315_v16 = vld [vmem:[%s11407_s1 + $0x27a0] sm:$0xff]  ;;  %v1325_v19 = vld [vmem:[%s11407_s1 + $0x27f0] sm:$0xff]  ;;  %v1346_v23 = vld [vmem:[%s11407_s1 + $0x2898] sm:$0xff] }
 0x31d   :  { %5836 = vmatpush1.bf16.msra.mxu0 %v5835_v34  ;;  %3697 = vmatprep.mubr.f32.mxu1 %v3321_v43  ;;  %v1245_v34 = vld [vmem:[%s11407_s1 + $0x2570] sm:$0xff]  ;;  %v3450_v43 = vld [vmem:[%s11410_s3 + $0x3e0] sm:$0xff]  ;;  %v5871_v24 = vpack.c.bf16 %v1325_v19, %v1315_v16  ;;  %v1386_v36 = vld [vmem:[%s11407_s1 + $0x29d8] sm:$0xff] }
 0x31e   :  { %3698 = vmatmul.mubr.f32.vlgmr.msra.gmra.mrb[8].mxu1 %v3320_v48  ;;  %5838 = vmatprep.subr.bf16.mxu0 %v5837_v39  ;;  %v6021_v39 = vpack.c.bf16 %v3449_v30, %v3448_v29  ;;  %v5855_v42 = vpack.c.bf16 %v1245_v34, %v1235_v33  ;;  %v1255_v48 = vld [vmem:[%s11407_s1 + $0x25c0] sm:$0xff]  ;;  %v1366_v29 = vld [vmem:[%s11407_s1 + $0x2938] sm:$0xff]  ;;  %v5875_v30 = vpack.c.bf16 %v1345_v41, %v1335_v27  ;;  %v1365_v34 = vld [vmem:[%s11407_s1 + $0x2930] sm:$0xff] }
 0x31f   :  { %6004 = vmatpush3.bf16.msra.mxu1 %v6003_v45  ;;  %3767 = vmatprep.mubr.f32.mxu1 %v3323_v52  ;;  %v3451_v45 = vld [vmem:[%s11410_s3 + $0x3e8] sm:$0xff]  ;;  %v1286_v52 = vld [vmem:[%s11407_s1 + $0x26b8] sm:$0xff]  ;;  %v1355_v33 = vld [vmem:[%s11407_s1 + $0x28e0] sm:$0xff] }
 0x320   :  { %6006 = vmatprep.subr.bf16.mxu1 %v6005_v49  ;;  %v1265_v49 = vld [vmem:[%s11407_s1 + $0x2610] sm:$0xff]  ;;  %v5861_v59 = vpack.c.bf16 %v1286_v52, %v1276_v51  ;;  %v1426_v51 = vld [vmem:[%s11407_s1 + $0x2b18] sm:$0xff]  ;;  %v3471_v16 = vld [vmem:[%s11410_s3 + $0x488] sm:$0xff] }
 0x321   :  { %5840 = vmatpush1.bf16.msra.mxu0 %v5839_v53  ;;  %v6025_v53 = vpack.c.bf16 %v3451_v45, %v3450_v43  ;;  %v6207_v37 = vld [vmem:[%s11408_s0 + $0x30] sm:$0xff]  ;;  %v1396_v43 = vld [vmem:[%s11407_s1 + $0x2a28] sm:$0xff]  ;;  %v1406_v45 = vld [vmem:[%s11407_s1 + $0x2a78] sm:$0xff] }
 0x322   :  { %5842 = vmatprep.subr.bf16.mxu0 %v5841_v56  ;;  %v5859_v56 = vpack.c.bf16 %v1265_v49, %v1255_v48  ;;  %v1395_v48 = vld [vmem:[%s11407_s1 + $0x2a20] sm:$0xff]  ;;  %v1405_v49 = vld [vmem:[%s11407_s1 + $0x2a70] sm:$0xff] }
 0x323   :  { %6008 = vmatpush3.bf16.msra.mxu1 %v6007_v58  ;;  %v1518_v58 = vrot.slane %v10792_v13, %v1517_v47  ;;  %v6029_v13 = vpack.c.bf16 %v3453_v57, %v3452_v12  ;;  %v5885_v47 = vpack.c.bf16 %v1406_v45, %v1396_v43  ;;  %v5887_v52 = vpack.c.bf16 %v1405_v49, %v1395_v48  ;;  %v1446_v12 = vld [vmem:[%s11407_s1 + $0x2bb8] sm:$0xff]  ;;  %v1465_v0 = vld [vmem:[%s11407_s1 + $0x2c50] sm:$0xff]  ;;  %v3454_v19 = vld [vmem:[%s11410_s3 + $0x400] sm:$0xff] }
 0x324   :  { %6010 = vmatprep.subr.bf16.mxu1 %v6009_v22  ;;  %v1285_v22 = vld [vmem:[%s11407_s1 + $0x26b0] sm:$0xff]  ;;  %v5891_v57 = vpack.c.bf16 %v1425_v55, %v1415_v54  ;;  %v3461_v43 = vld [vmem:[%s11410_s3 + $0x438] sm:$0xff]  ;;  %v3478_v45 = vld [vmem:[%s11410_s3 + $0x4c0] sm:$0xff] }
 0x325   :  { %5844 = vmatpush1.bf16.msra.mxu0 %v5843_v63  ;;  %v1306_v63 = vld [vmem:[%s11407_s1 + $0x2758] sm:$0xff]  ;;  %v6143_v3 = vadd.f32 %v10815_v32, %v1518_v58  ;;  %v3462_v49 = vld [vmem:[%s11410_s3 + $0x440] sm:$0xff]  ;;  %v3464_v55 = vld [vmem:[%s11410_s3 + $0x450] sm:$0xff] }
 0x326   :  { %5846 = vmatprep.subr.bf16.mxu0 %v5845_v2  ;;  %v5863_v2 = vpack.c.bf16 %v1285_v22, %v1275_v60  ;;  %v5865_v4 = vpack.c.bf16 %v1306_v63, %v1296_v62  ;;  %v1326_v32 = vld [vmem:[%s11407_s1 + $0x27f8] sm:$0xff]  ;;  %v1445_v60 = vld [vmem:[%s11407_s1 + $0x2bb0] sm:$0xff]  ;;  %v1456_v22 = vld [vmem:[%s11407_s1 + $0x2c08] sm:$0xff] }
 0x327   :  { %6012 = vmatpush3.bf16.msra.mxu1 %v6011_v5  ;;  %v1295_v5 = vld [vmem:[%s11407_s1 + $0x2700] sm:$0xff]  ;;  %v3322_v11 = vmax.f32 %v6143_v3, 0.0  ;;  %v1486_v3 = vld [vmem:[%s11407_s1 + $0x2cf8] sm:$0xff] }
 0x328   :  { %6014 = vmatprep.subr.bf16.mxu1 %v6013_v7  ;;  %v1316_v7 = vld [vmem:[%s11407_s1 + $0x27a8] sm:$0xff] }
 0x329   :  { %5848 = vmatpush1.bf16.msra.mxu0 %v5847_v10  ;;  %v5867_v10 = vpack.c.bf16 %v1305_v6, %v1295_v5 }
 0x32a   :  { %5850 = vmatprep.subr.bf16.mxu0 %v5849_v15  ;;  %v5869_v15 = vpack.c.bf16 %v1326_v32, %v1316_v7 }
 0x32b   :  { %6016 = vmatpush3.bf16.msra.mxu1 %v6015_v21  ;;  %v1336_v21 = vld [vmem:[%s11407_s1 + $0x2848] sm:$0xff] }
 0x32c   :  { %6018 = vmatprep.subr.bf16.mxu1 %v6017_v26  ;;  %v5873_v26 = vpack.c.bf16 %v1346_v23, %v1336_v21  ;;  %v3455_v23 = vld [vmem:[%s11410_s3 + $0x408] sm:$0xff] }
 0x32d   :  { %5852 = vmatpush1.bf16.msra.mxu0 %v5851_v28  ;;  %v1356_v28 = vld [vmem:[%s11407_s1 + $0x28e8] sm:$0xff]  ;;  %v6035_v27 = vpack.c.bf16 %v3455_v23, %v3454_v19 }
 0x32e   :  { %5854 = vmatprep.subr.bf16.mxu0 %v5853_v31  ;;  %v5877_v31 = vpack.c.bf16 %v1366_v29, %v1356_v28  ;;  %v3456_v28 = vld [vmem:[%s11410_s3 + $0x410] sm:$0xff]  ;;  %v3457_v29 = vld [vmem:[%s11410_s3 + $0x418] sm:$0xff]  ;;  %v3845_v23 = vld [vmem:[%s11412_s5 + $0x8] sm:$0xff] }
 0x32f   :  { %6020 = vmatpush3.bf16.msra.mxu1 %v6019_v35  ;;  %v1376_v35 = vld [vmem:[%s11407_s1 + $0x2988] sm:$0xff] }
 0x330   :  { %6022 = vmatprep.subr.bf16.mxu1 %v6021_v39  ;;  %v5879_v39 = vpack.c.bf16 %v1365_v34, %v1355_v33  ;;  %v5881_v20 = vpack.c.bf16 %v1386_v36, %v1376_v35  ;;  %v6039_v33 = vpack.c.bf16 %v3457_v29, %v3456_v28  ;;  %v3458_v35 = vld [vmem:[%s11410_s3 + $0x420] sm:$0xff]  ;;  %v3459_v36 = vld [vmem:[%s11410_s3 + $0x428] sm:$0xff] }
 0x331   :  { %5856 = vmatpush1.bf16.msra.mxu0 %v5855_v42  ;;  %v1385_v42 = vld [vmem:[%s11407_s1 + $0x29d0] sm:$0xff]  ;;  %v3848_v28 = vld [vmem:[%s11412_s5 + $0x20] sm:$0xff]  ;;  %v3849_v29 = vld [vmem:[%s11412_s5 + $0x28] sm:$0xff] }
 0x332   :  { %5858 = vmatprep.subr.bf16.mxu0 %v5857_v46  ;;  %v5883_v46 = vpack.c.bf16 %v1385_v42, %v1375_v40  ;;  %v3460_v42 = vld [vmem:[%s11410_s3 + $0x430] sm:$0xff] }
 0x333   :  { %6024 = vmatpush3.bf16.msra.mxu1 %v6023_v50  ;;  %v1416_v50 = vld [vmem:[%s11407_s1 + $0x2ac8] sm:$0xff] }
 0x334   :  { %6026 = vmatprep.subr.bf16.mxu1 %v6025_v53  ;;  %v5889_v53 = vpack.c.bf16 %v1426_v51, %v1416_v50  ;;  %v3463_v50 = vld [vmem:[%s11410_s3 + $0x448] sm:$0xff]  ;;  %v3480_v51 = vld [vmem:[%s11410_s3 + $0x4d0] sm:$0xff] }
 0x335   :  { %5860 = vmatpush1.bf16.msra.mxu0 %v5859_v56  ;;  %v1436_v56 = vld [vmem:[%s11407_s1 + $0x2b68] sm:$0xff] }
 0x336   :  { %5862 = vmatprep.subr.bf16.mxu0 %v5861_v59  ;;  %v5893_v58 = vpack.c.bf16 %v1446_v12, %v1436_v56  ;;  %v1435_v59 = vld [vmem:[%s11407_s1 + $0x2b60] sm:$0xff]  ;;  %v3465_v56 = vld [vmem:[%s11410_s3 + $0x458] sm:$0xff] }
 0x337   :  { %6028 = vmatpush3.bf16.msra.mxu1 %v6027_v61  ;;  %v1466_v61 = vld [vmem:[%s11407_s1 + $0x2c58] sm:$0xff]  ;;  %v5895_v62 = vpack.c.bf16 %v1445_v60, %v1435_v59  ;;  %v3482_v12 = vld [vmem:[%s11410_s3 + $0x4e0] sm:$0xff] }
 0x338   :  { %v4166_v8 = vpop.f32.mrb[4].mxu1  ;;  %6030 = vmatprep.subr.bf16.mxu1 %v6029_v13  ;;  %v5897_v63 = vpack.c.bf16 %v1466_v61, %v1456_v22  ;;  %v1455_v13 = vld [vmem:[%s11407_s1 + $0x2c00] sm:$0xff]  ;;  %v3467_v22 = vld [vmem:[%s11410_s3 + $0x468] sm:$0xff] }
 0x339   :  { %v4167_v9 = vpop.f32.mrb[5].mxu1  ;;  %5864 = vmatpush1.bf16.msra.mxu0 %v5863_v2  ;;  %v1476_v2 = vld [vmem:[%s11407_s1 + $0x2ca8] sm:$0xff]  ;;  %v5899_v6 = vpack.c.bf16 %v1465_v0, %v1455_v13  ;;  %v3466_v60 = vld [vmem:[%s11410_s3 + $0x460] sm:$0xff]  ;;  %v3468_v0 = vld [vmem:[%s11410_s3 + $0x470] sm:$0xff] }
 0x33a   :  { %v11000_v14 = vadd.f32 %v4167_v9, %v4166_v8  ;;  %5866 = vmatprep.subr.bf16.mxu0 %v5865_v4  ;;  %v5901_v32 = vpack.c.bf16 %v1486_v3, %v1476_v2  ;;  %v1475_v8 = vld [vmem:[%s11407_s1 + $0x2ca0] sm:$0xff]  ;;  %v1485_v9 = vld [vmem:[%s11407_s1 + $0x2cf0] sm:$0xff]  ;;  %v6059_v61 = vpack.c.bf16 %v3467_v22, %v3466_v60  ;;  %v6210_v3 = vmov 0.0|0.0   ;;  %v3943_v60 = vld [vmem:[%s11413_s7 + $0x28] sm:$0xff] }
 0x33b   :  { %6032 = vmatpush3.bf16.msra.mxu1 %v6031_v17 }
 0x33c   :  { %v3560_v17 = vadd.f32 %v11000_v14, %v4130_v1  ;;  %v6208_v14 = vld [vmem:[%s11408_s0 + $0x40] sm:$0xff]  ;;  %v3469_v1 = vld [vmem:[%s11410_s3 + $0x478] sm:$0xff] }
 0x33d   :  { %5868 = vmatpush1.bf16.msra.mxu0 %v5867_v10  ;;  %v6063_v2 = vpack.c.bf16 %v3469_v1, %v3468_v0  ;;  %v3947_v0 = vld [vmem:[%s11413_s7 + $0x48] sm:$0xff] }
 0x33e   :  { %3768 = vmatmul.mubr.f32.vlgmr.msra.gmra.mrb[10].mxu1 %v3322_v11  ;;  %5870 = vmatprep.subr.bf16.mxu0 %v5869_v15  ;;  %v5903_v11 = vpack.c.bf16 %v1485_v9, %v1475_v8  ;;  %v3470_v15 = vld [vmem:[%s11410_s3 + $0x480] sm:$0xff] }
 0x33f   :  { %v6033_v21 = vpack.c.bf16 %v3471_v16, %v3470_v15 }
 0x341   :  { %5872 = vmatpush1.bf16.msra.mxu0 %v5871_v24  ;;  %v3472_v24 = vld [vmem:[%s11410_s3 + $0x490] sm:$0xff]  ;;  %6034 = vmatprep.subr.bf16.mxu1 %v6033_v21 }
 0x342   :  { %5874 = vmatprep.subr.bf16.mxu0 %v5873_v26  ;;  %v3473_v26 = vld [vmem:[%s11410_s3 + $0x498] sm:$0xff]  ;;  %6036 = vmatpush3.bf16.msra.mxu1 %v6035_v27 }
 0x343   :  { %v6037_v41 = vpack.c.bf16 %v3473_v26, %v3472_v24 }
 0x344   :  { %3239 = vmatmul.mubr.f32.vlgmr.msra.gmra.mrb[4].mxu0 %v6207_v37  ;;  %v3476_v37 = vld [vmem:[%s11410_s3 + $0x4b0] sm:$0xff] }
 0x345   :  { %5876 = vmatpush1.bf16.msra.mxu0 %v5875_v30  ;;  %3309 = vmatprep.mubr.f32.mxu0 %v6209_v44  ;;  %v3474_v30 = vld [vmem:[%s11410_s3 + $0x4a0] sm:$0xff] }
 0x346   :  { %5878 = vmatprep.subr.bf16.mxu0 %v5877_v31  ;;  %v3475_v31 = vld [vmem:[%s11410_s3 + $0x4a8] sm:$0xff]  ;;  %6038 = vmatprep.subr.bf16.mxu1 %v6037_v41 }
 0x347   :  { %v6041_v34 = vpack.c.bf16 %v3475_v31, %v3474_v30  ;;  %6040 = vmatpush3.bf16.msra.mxu1 %v6039_v33  ;;  %v6072_v30 = vpack.c.bf16 %v3849_v29, %v3848_v28  ;;  %v3850_v31 = vld [vmem:[%s11412_s5 + $0x30] sm:$0xff]  ;;  %v3851_v33 = vld [vmem:[%s11412_s5 + $0x38] sm:$0xff]  ;;  %v4040_v29 = vld [vmem:[%s11415_s9 + $0x40] sm:$0xff] }
 0x349   :  { %5880 = vmatpush1.bf16.msra.mxu0 %v5879_v39  ;;  %v3477_v39 = vld [vmem:[%s11410_s3 + $0x4b8] sm:$0xff]  ;;  %6042 = vmatprep.subr.bf16.mxu1 %v6041_v34  ;;  %v6075_v34 = vpack.c.bf16 %v3851_v33, %v3850_v31  ;;  %v4042_v33 = vld [vmem:[%s11415_s9 + $0x50] sm:$0xff] }
 0x34a   :  { %5882 = vmatprep.subr.bf16.mxu0 %v5881_v20  ;;  %v6043_v20 = vpack.c.bf16 %v3459_v36, %v3458_v35  ;;  %v6045_v40 = vpack.c.bf16 %v3477_v39, %v3476_v37  ;;  %v3852_v35 = vld [vmem:[%s11412_s5 + $0x40] sm:$0xff]  ;;  %v3853_v36 = vld [vmem:[%s11412_s5 + $0x48] sm:$0xff]  ;;  %v3854_v39 = vld [vmem:[%s11412_s5 + $0x50] sm:$0xff] }
 0x34b   :  { %v6078_v37 = vpack.c.bf16 %v3853_v36, %v3852_v35  ;;  %v4044_v36 = vld [vmem:[%s11415_s9 + $0x60] sm:$0xff] }
 0x34c   :  { %6044 = vmatpush3.bf16.msra.mxu1 %v6043_v20  ;;  %v3855_v20 = vld [vmem:[%s11412_s5 + $0x58] sm:$0xff] }
 0x34d   :  { %5884 = vmatpush1.bf16.msra.mxu0 %v5883_v46  ;;  %v3479_v46 = vld [vmem:[%s11410_s3 + $0x4c8] sm:$0xff]  ;;  %6046 = vmatprep.subr.bf16.mxu1 %v6045_v40  ;;  %v6081_v40 = vpack.c.bf16 %v3855_v20, %v3854_v39  ;;  %v4046_v20 = vld [vmem:[%s11415_s9 + $0x70] sm:$0xff] }
 0x34e   :  { %5886 = vmatprep.subr.bf16.mxu0 %v5885_v47  ;;  %v6047_v47 = vpack.c.bf16 %v3461_v43, %v3460_v42  ;;  %v6049_v48 = vpack.c.bf16 %v3479_v46, %v3478_v45  ;;  %v3856_v42 = vld [vmem:[%s11412_s5 + $0x60] sm:$0xff]  ;;  %v3857_v43 = vld [vmem:[%s11412_s5 + $0x68] sm:$0xff]  ;;  %v3858_v46 = vld [vmem:[%s11412_s5 + $0x70] sm:$0xff] }
 0x34f   :  { %v6084_v45 = vpack.c.bf16 %v3857_v43, %v3856_v42  ;;  %v4132_v43 = vld [vmem:[%s11416_s8] ss:$0 sm:$0xff] }
 0x350   :  { %6048 = vmatpush3.bf16.msra.mxu1 %v6047_v47  ;;  %v3859_v47 = vld [vmem:[%s11412_s5 + $0x78] sm:$0xff] }
 0x351   :  { %5888 = vmatpush1.bf16.msra.mxu0 %v5887_v52  ;;  %v3481_v52 = vld [vmem:[%s11410_s3 + $0x4d8] sm:$0xff]  ;;  %6050 = vmatprep.subr.bf16.mxu1 %v6049_v48  ;;  %v6087_v48 = vpack.c.bf16 %v3859_v47, %v3858_v46 }
 0x352   :  { %5890 = vmatprep.subr.bf16.mxu0 %v5889_v53  ;;  %v6051_v53 = vpack.c.bf16 %v3463_v50, %v3462_v49  ;;  %v6053_v54 = vpack.c.bf16 %v3481_v52, %v3480_v51  ;;  %v3938_v52 = vld [vmem:[%s11413_s7] sm:$0xff] }
 0x354   :  { %6052 = vmatpush3.bf16.msra.mxu1 %v6051_v53  ;;  %v3939_v53 = vld [vmem:[%s11413_s7 + $0x8] sm:$0xff] }
 0x355   :  { %5892 = vmatpush1.bf16.msra.mxu0 %v5891_v57  ;;  %v3483_v57 = vld [vmem:[%s11410_s3 + $0x4e8] sm:$0xff]  ;;  %6054 = vmatprep.subr.bf16.mxu1 %v6053_v54 }
 0x356   :  { %5894 = vmatprep.subr.bf16.mxu0 %v5893_v58  ;;  %v6055_v58 = vpack.c.bf16 %v3465_v56, %v3464_v55  ;;  %v6057_v59 = vpack.c.bf16 %v3483_v57, %v3482_v12  ;;  %v6090_v55 = vpack.c.bf16 %v3939_v53, %v3938_v52  ;;  %v3940_v12 = vld [vmem:[%s11413_s7 + $0x10] sm:$0xff]  ;;  %v3941_v57 = vld [vmem:[%s11413_s7 + $0x18] sm:$0xff] }
 0x358   :  { %v4201_v4 = vpop.f32.mrb[6].mxu1  ;;  %6056 = vmatpush3.bf16.msra.mxu1 %v6055_v58  ;;  %v6093_v58 = vpack.c.bf16 %v3941_v57, %v3940_v12 }
 0x359   :  { %v4202_v5 = vpop.f32.mrb[7].mxu1  ;;  %5896 = vmatpush1.bf16.msra.mxu0 %v5895_v62  ;;  %6058 = vmatprep.subr.bf16.mxu1 %v6057_v59  ;;  %v3484_v62 = vld [vmem:[%s11410_s3 + $0x4f0] sm:$0xff]  ;;  %v3942_v59 = vld [vmem:[%s11413_s7 + $0x20] sm:$0xff] }
 0x35a   :  { %v4203_v7 = vadd.f32 %v4202_v5, %v4201_v4  ;;  %5898 = vmatprep.subr.bf16.mxu0 %v5897_v63  ;;  %v3485_v63 = vld [vmem:[%s11410_s3 + $0x4f8] sm:$0xff]  ;;  %v6096_v22 = vpack.c.bf16 %v3943_v60, %v3942_v59 }
 0x35b   :  { %v6061_v13 = vpack.c.bf16 %v3485_v63, %v3484_v62  ;;  %v3945_v62 = vld [vmem:[%s11413_s7 + $0x38] sm:$0xff] }
 0x35c   :  { %v11112_v10 = vadd.f32 %v4203_v7, %v3560_v17  ;;  %6060 = vmatpush3.bf16.msra.mxu1 %v6059_v61  ;;  %v3944_v61 = vld [vmem:[%s11413_s7 + $0x30] sm:$0xff] }
 0x35d   :  { %5900 = vmatpush1.bf16.msra.mxu0 %v5899_v6  ;;  %6062 = vmatprep.subr.bf16.mxu1 %v6061_v13  ;;  %v6099_v63 = vpack.c.bf16 %v3945_v62, %v3944_v61  ;;  %v3946_v13 = vld [vmem:[%s11413_s7 + $0x40] sm:$0xff] }
 0x35e   :  { %5902 = vmatprep.subr.bf16.mxu0 %v5901_v32  ;;  %v6102_v1 = vpack.c.bf16 %v3947_v0, %v3946_v13 }
 0x360   :  { %6064 = vmatpush3.bf16.msra.mxu1 %v6063_v2  ;;  %v3948_v2 = vld [vmem:[%s11413_s7 + $0x50] sm:$0xff] }
 0x361   :  { %5904 = vmatpush1.bf16.msra.mxu0 %v5903_v11  ;;  %6065 = vmatprep.subr.bf16.mxu1 %v6210_v3  ;;  %v1488_v11 = vld [vmem:[%s11409_s2 + $0x8] sm:$0x3] }
 0x362   :  { %v1530_v15 = vrot.slane %v1488_v11, %v1497_v38  ;;  %v3847_v38 = vld [vmem:[%s11412_s5 + $0x18] sm:$0xff] }
 0x364   :  { %3310 = vmatmul.mubr.f32.vlgmr.msra.gmra.mrb[4].mxu0 %v6208_v14  ;;  %v1526_v14 = vrot.slane %v1488_v11, %v1493_v18  ;;  %v6069_v18 = vpack.c.bf16 %v3847_v38, %v3846_v25  ;;  %v4131_v11 = vld [vmem:[%s11414_s6] ss:$0 sm:$0xff]  ;;  %v4037_v25 = vld [vmem:[%s11415_s9 + $0x28] sm:$0xff] }
 0x3f1   :  { %v4236_v4 = vpop.f32.mrb[8].mxu1 }
 0x3f2   :  { %v4237_v5 = vpop.f32.mrb[9].mxu1 }
 0x3f3   :  { %v4238_v6 = vadd.f32 %v4237_v5, %v4236_v4  ;;  %v3949_v4 = vld [vmem:[%s11413_s7 + $0x58] sm:$0xff] }
 0x3f4   :  { %v6105_v5 = vpack.c.bf16 %v3949_v4, %v3948_v2 }
 0x3f5   :  { %v3700_v17 = vadd.f32 %v4238_v6, %v11112_v10  ;;  %v3844_v10 = vld [vmem:[%s11412_s5] sm:$0xff] }
 0x3f6   :  { %v6066_v27 = vpack.c.bf16 %v3845_v23, %v3844_v10  ;;  %v3950_v6 = vld [vmem:[%s11413_s7 + $0x60] sm:$0xff] }
 0x411   :  { %v4271_v7 = vpop.f32.mrb[10].mxu1 }
 0x412   :  { %v4272_v32 = vpop.f32.mrb[11].mxu1 }
 0x413   :  { %v4273_v8 = vadd.f32 %v4272_v32, %v4271_v7  ;;  %v3952_v32 = vld [vmem:[%s11413_s7 + $0x70] sm:$0xff] }
 0x415   :  { %v3770_v9 = vadd.f32 %v4273_v8, %v3700_v17  ;;  %v3951_v17 = vld [vmem:[%s11413_s7 + $0x68] sm:$0xff]  ;;  %v3953_v8 = vld [vmem:[%s11413_s7 + $0x78] sm:$0xff] }
 0x416   :  { %v6108_v7 = vpack.c.bf16 %v3951_v17, %v3950_v6 }
 0x437   :  { %v3311_v16 = vpop.f32.mrb[4].mxu0 }
 0x438   :  { %v6145_v19 = vadd.f32 %v3311_v16, %v1526_v14  ;;  %v3313_v21 = vpop.f32.mrb[5].mxu0  ;;  %v4032_v14 = vld [vmem:[%s11415_s9] sm:$0xff] }
 0x439   :  { %v6146_v24 = vadd.f32 %v3313_v21, %v1530_v15  ;;  %v4033_v15 = vld [vmem:[%s11415_s9 + $0x8] sm:$0xff] }
 0x43a   :  { %v3324_v41 = vmax.f32 %v6145_v19, 0.0  ;;  %v6114_v10 = vpack.c.bf16 %v4033_v15, %v4032_v14 }
 0x43b   :  { %v3325_v26 = vmax.f32 %v6146_v24, 0.0  ;;  %v4034_v24 = vld [vmem:[%s11415_s9 + $0x10] sm:$0xff] }
 0x43d   :  { %3837 = vmatprep.mubr.f32.mxu1 %v3325_v26  ;;  %v4035_v26 = vld [vmem:[%s11415_s9 + $0x18] sm:$0xff] }
 0x43e   :  { %3838 = vmatmul.mubr.f32.vlgmr.msra.gmra.mrb[12].mxu1 %v3324_v41  ;;  %v4036_v41 = vld [vmem:[%s11415_s9 + $0x20] sm:$0xff] }
 0x43f   :  { %6067 = vmatpush3.bf16.msra.mxu1 %v6066_v27  ;;  %4392 = vmatprep.mubr.msk.f32.mxu1 %vm6211_vm0, %v6209_v44  ;;  %v6117_v27 = vpack.c.bf16 %v4035_v26, %v4034_v24  ;;  %v6120_v38 = vpack.c.bf16 %v4037_v25, %v4036_v41 }
 0x440   :  { %6068 = vmatprep.subr.bf16.mxu1 %v6210_v3 }
 0x443   :  { %6070 = vmatpush3.bf16.msra.mxu1 %v6069_v18  ;;  %v4038_v18 = vld [vmem:[%s11415_s9 + $0x30] sm:$0xff] }
 0x444   :  { %6071 = vmatprep.subr.bf16.mxu1 %v6210_v3 }
 0x447   :  { %6073 = vmatpush3.bf16.msra.mxu1 %v6072_v30  ;;  %v4041_v30 = vld [vmem:[%s11415_s9 + $0x48] sm:$0xff] }
 0x448   :  { %6074 = vmatprep.subr.bf16.mxu1 %v6210_v3  ;;  %v6126_v31 = vpack.c.bf16 %v4041_v30, %v4040_v29 }
 0x44b   :  { %6076 = vmatpush3.bf16.msra.mxu1 %v6075_v34  ;;  %v4043_v34 = vld [vmem:[%s11415_s9 + $0x58] sm:$0xff] }
 0x44c   :  { %6077 = vmatprep.subr.bf16.mxu1 %v6210_v3  ;;  %v6129_v35 = vpack.c.bf16 %v4043_v34, %v4042_v33 }
 0x44f   :  { %6079 = vmatpush3.bf16.msra.mxu1 %v6078_v37  ;;  %v4045_v37 = vld [vmem:[%s11415_s9 + $0x68] sm:$0xff] }
 0x450   :  { %6080 = vmatprep.subr.bf16.mxu1 %v6210_v3  ;;  %v6132_v39 = vpack.c.bf16 %v4045_v37, %v4044_v36 }
 0x453   :  { %6082 = vmatpush3.bf16.msra.mxu1 %v6081_v40  ;;  %v4047_v40 = vld [vmem:[%s11415_s9 + $0x78] sm:$0xff] }
 0x454   :  { %6083 = vmatprep.subr.bf16.mxu1 %v6210_v3  ;;  %v6135_v42 = vpack.c.bf16 %v4047_v40, %v4046_v20 }
 0x457   :  { %6085 = vmatpush3.bf16.msra.mxu1 %v6084_v45 }
 0x458   :  { %6086 = vmatprep.subr.bf16.mxu1 %v6210_v3 }
 0x45b   :  { %6088 = vmatpush3.bf16.msra.mxu1 %v6087_v48 }
 0x45c   :  { %6089 = vmatprep.subr.bf16.mxu1 %v6210_v3 }
 0x511   :  { %v4306_v49 = vpop.f32.mrb[12].mxu1 }
 0x512   :  { %v4307_v50 = vpop.f32.mrb[13].mxu1 }
 0x513   :  { %v4308_v51 = vadd.f32 %v4307_v50, %v4306_v49 }
 0x515   :  { %v3840_v54 = vadd.f32 %v4308_v51, %v3770_v9  ;;  %v6111_v9 = vpack.c.bf16 %v3953_v8, %v3952_v32 }
 0x517   :  { %v3843_v56 = vmax.f32 %v3840_v54, 0.0 }
 0x519   :  { %4393 = vmatmul.mubr.f32.vlgmr.msra.gmra.mrb[14].mxu1 %v3843_v56 }
 0x51a   :  { %6091 = vmatpush3.bf16.msra.mxu1 %v6090_v55  ;;  %4427 = vmatprep.mubr.msk.f32.mxu1 %vm6211_vm0, %v6209_v44 }
 0x51b   :  { %6092 = vmatprep.subr.bf16.mxu1 %v6210_v3 }
 0x51e   :  { %6094 = vmatpush3.bf16.msra.mxu1 %v6093_v58 }
 0x51f   :  { %6095 = vmatprep.subr.bf16.mxu1 %v6210_v3 }
 0x522   :  { %6097 = vmatpush3.bf16.msra.mxu1 %v6096_v22 }
 0x523   :  { %6098 = vmatprep.subr.bf16.mxu1 %v6210_v3 }
 0x526   :  { %6100 = vmatpush3.bf16.msra.mxu1 %v6099_v63 }
 0x527   :  { %6101 = vmatprep.subr.bf16.mxu1 %v6210_v3 }
 0x52a   :  { %6103 = vmatpush3.bf16.msra.mxu1 %v6102_v1 }
 0x52b   :  { %6104 = vmatprep.subr.bf16.mxu1 %v6210_v3 }
 0x52e   :  { %6106 = vmatpush3.bf16.msra.mxu1 %v6105_v5 }
 0x52f   :  { %6107 = vmatprep.subr.bf16.mxu1 %v6210_v3 }
 0x532   :  { %6109 = vmatpush3.bf16.msra.mxu1 %v6108_v7 }
 0x533   :  { %6110 = vmatprep.subr.bf16.mxu1 %v6210_v3 }
 0x536   :  { %6112 = vmatpush3.bf16.msra.mxu1 %v6111_v9 }
 0x537   :  { %6113 = vmatprep.subr.bf16.mxu1 %v6210_v3 }
 0x5ec   :  { %v3933_v16 = vpop.f32.mrb[14].mxu1 }
 0x5ed   :  { %v3934_v19 = vadd.f32 %v4131_v11, %v3933_v16  ;;  %v4394_v21 = vpop.f32.mrb[15].mxu1 }
 0x5ef   :  { %v3937_v23 = vmax.f32 %v3934_v19, 0.0 }
 0x5f1   :  { %4428 = vmatmul.mubr.f32.vlgmr.msra.gmra.mrb[16].mxu1 %v3937_v23 }
 0x5f2   :  { %6115 = vmatpush3.bf16.msra.mxu1 %v6114_v10  ;;  %4462 = vmatprep.mubr.msk.f32.mxu1 %vm6211_vm0, %v6209_v44  ;;  %v4039_v44 = vld [vmem:[%s11415_s9 + $0x38] sm:$0xff] }
 0x5f3   :  { %6116 = vmatprep.subr.bf16.mxu1 %v6210_v3  ;;  %v6123_v28 = vpack.c.bf16 %v4039_v44, %v4038_v18 }
 0x5f6   :  { %6118 = vmatpush3.bf16.msra.mxu1 %v6117_v27 }
 0x5f7   :  { %6119 = vmatprep.subr.bf16.mxu1 %v6210_v3 }
 0x5fa   :  { %6121 = vmatpush3.bf16.msra.mxu1 %v6120_v38 }
 0x5fb   :  { %6122 = vmatprep.subr.bf16.mxu1 %v6210_v3 }
 0x5fe   :  { %6124 = vmatpush3.bf16.msra.mxu1 %v6123_v28 }
 0x5ff   :  { %6125 = vmatprep.subr.bf16.mxu1 %v6210_v3 }
 0x602   :  { %6127 = vmatpush3.bf16.msra.mxu1 %v6126_v31 }
 0x603   :  { %6128 = vmatprep.subr.bf16.mxu1 %v6210_v3 }
 0x606   :  { %6130 = vmatpush3.bf16.msra.mxu1 %v6129_v35 }
 0x607   :  { %6131 = vmatprep.subr.bf16.mxu1 %v6210_v3 }
 0x60a   :  { %6133 = vmatpush3.bf16.msra.mxu1 %v6132_v39 }
 0x60b   :  { %6134 = vmatprep.subr.bf16.mxu1 %v6210_v3  ;;  %v4133_v3 = vld [vmem:[%s11417_s10] ss:$0 sm:$0xff] }
 0x60e   :  { %6136 = vmatpush3.bf16.msra.mxu1 %v6135_v42 }
 0x6c4   :  { %v4027_v45 = vpop.f32.mrb[16].mxu1 }
 0x6c5   :  { %v4028_v46 = vadd.f32 %v4132_v43, %v4027_v45  ;;  %v4429_v47 = vpop.f32.mrb[17].mxu1 }
 0x6c7   :  { %v4031_v48 = vmax.f32 %v4028_v46, 0.0 }
 0x6c9   :  { %4463 = vmatmul.mubr.f32.vlgmr.msra.gmra.mrb[18].mxu1 %v4031_v48 }
 0x79c   :  { %v4121_v49 = vpop.f32.mrb[18].mxu1 }
 0x79d   :  { %v4122_v50 = vadd.f32 %v4133_v3, %v4121_v49  ;;  %v4464_v51 = vpop.f32.mrb[19].mxu1 }
 0x79f   :  { %4125 = vst [vmem:[%s11418_s11] sm:$0xff] %v4122_v50 }

</bundles_post_ra>
